<compile_context>
chip_gen: v7x
topology: tpu7x:2x2x1
jax: 0.10.0
libtpu: 0.0.40
codegen_flags: <defaults>
</compile_context>

<pallas_src>
import functools

import jax
import jax.numpy as jnp
from jax.experimental import pallas as pl
from jax.experimental.pallas import tpu as pltpu


# ----------------------------------------------------------------------------
# Fused kernel: all four layers of D_DownBlock in one body (no grid).
# Blocked layout: high-res (padded) tensors are (N, nb, nb, s*s*C) where the
# minor dim packs (phase_y, phase_x, channel); nb = (H + 2p)/s, Ho = nb - 1.
# ----------------------------------------------------------------------------
def _d_down_block_kernel(xb_ref, w0_ref, b0_ref, w1_ref, b1_ref,
                         w2_ref, b2_ref, w3_ref, b3_ref, mask_ref, alphas_ref,
                         o_ref, acc_ref, *, N, nb, s, nf):
    f32 = jnp.float32
    P = s * s                      # phases per block
    Cb = P * nf                    # blocked channel width (lane-dense, 512 here)
    Ho = nb - 1                    # low-res spatial size
    M1 = N * Ho * Ho               # rows of the low-res GEMMs

    def prelu(v, alpha):
        return jnp.where(v >= 0.0, v, alpha * v)

    mask = mask_ref[...]                                        # (1, nb, nb, Cb)

    # ---- layer 0: 1x1 conv + PReLU (block-diagonal per-phase GEMM weight) ----
    xf = jnp.dot(xb_ref[...], w0_ref[...],
                 preferred_element_type=f32) + b0_ref[...]      # (N*nb*nb, Cb)
    xf = prelu(xf, alphas_ref[0])
    xfB = xf.reshape(N, nb, nb, Cb) * mask                      # zero the border

    # ---- layer 1: down_conv1 (k=2s, stride s) == 2x2 conv on the block grid ----
    acc1 = jnp.zeros((M1, nf), f32) + b1_ref[...]
    for a in range(2):
        for b in range(2):
            patch = xfB[:, a:a + Ho, b:b + Ho, :].reshape(M1, Cb)
            acc1 = acc1 + jnp.dot(patch, w1_ref[2 * a + b],
                                  preferred_element_type=f32)
    l0 = prelu(acc1, alphas_ref[1])                             # (M1, nf)

    # ---- layer 2: ConvTranspose2d as a 2x2 scatter over the block grid --------
    # (only the k/s x k/s真 taps are contracted: no dilation, no structural zeros)
    acc_ref[...] = jnp.zeros_like(acc_ref)
    for a in range(2):
        for b in range(2):
            contrib = jnp.dot(l0, w2_ref[2 * a + b],
                              preferred_element_type=f32)       # (M1, Cb)
            acc_ref[:, a:a + Ho, b:b + Ho, :] += contrib.reshape(N, Ho, Ho, Cb)
    h0B = prelu(acc_ref[...] + b2_ref[...], alphas_ref[2])      # (N, nb, nb, Cb)

    # fused residual: diff = (h0 - xf), re-zero the padding border
    diffB = (h0B - xfB) * mask

    # ---- layer 3: down_conv3 + fused "+ l0" epilogue ---------------------------
    acc3 = jnp.zeros((M1, nf), f32) + b3_ref[...]
    for a in range(2):
        for b in range(2):
            patch = diffB[:, a:a + Ho, b:b + Ho, :].reshape(M1, Cb)
            acc3 = acc3 + jnp.dot(patch, w3_ref[2 * a + b],
                                  preferred_element_type=f32)
    l1 = prelu(acc3, alphas_ref[3])
    o_ref[...] = l1 + l0


# ----------------------------------------------------------------------------
# Parameter init: raw weights (for the reference check) + GEMM-ready blocked
# weights, biases tiled per phase, PReLU slopes = 0.25 (PyTorch default).
# ----------------------------------------------------------------------------
def init_d_down_block(key, num_filter, kernel_size, stride, num_stages=1):
    nf, k, s = num_filter, kernel_size, stride
    assert k == 2 * s, "blocked decomposition requires kernel == 2*stride"
    P = s * s
    cin = nf * num_stages
    ks = jax.random.split(key, 8)

    def conv_w(kk_, cout, cin_, ksz):
        fan_in = cin_ * ksz * ksz
        return (jax.random.normal(kk_, (cout, cin_, ksz, ksz), jnp.float32)
                * jnp.sqrt(2.0 / fan_in))

    def bias(kk_, cout):
        return jax.random.normal(kk_, (cout,), jnp.float32) * 0.05

    # layer 0: 1x1 conv cin -> nf; block-diagonal (per-phase) GEMM weight
    w0 = conv_w(ks[0], nf, cin, 1)[:, :, 0, 0]                    # (nf, cin)
    w0big = jnp.kron(jnp.eye(P, dtype=jnp.float32), w0.T)         # (P*cin, P*nf)
    b0 = bias(ks[1], nf)

    # layers 1/3: Conv2d(nf, nf, k, s, p) -> four (P*nf, nf) GEMM weights
    def conv_blocked(w):                                          # w: (co, ci, k, k)
        wb = w.reshape(nf, nf, 2, s, 2, s)                        # (co,ci,a,ry,b,rx)
        wb = wb.transpose(2, 4, 3, 5, 1, 0)                       # (a,b,ry,rx,ci,co)
        return wb.reshape(4, P * nf, nf)

    w1 = conv_w(ks[2], nf, nf, k)
    b1 = bias(ks[3], nf)
    w3 = conv_w(ks[6], nf, nf, k)
    b3 = bias(ks[7], nf)

    # layer 2: ConvTranspose2d(nf, nf, k, s, p); weight layout (ci, co, kh, kw)
    w2 = (jax.random.normal(ks[4], (nf, nf, k, k), jnp.float32)
          * jnp.sqrt(2.0 / (nf * k * k)))
    w2b = w2.reshape(nf, nf, 2, s, 2, s)                          # (ci,co,a,ry,b,rx)
    w2b = w2b.transpose(2, 4, 0, 3, 5, 1).reshape(4, nf, P * nf)  # (a,b)(ci)(ry,rx,co)
    b2 = bias(ks[5], nf)

    return {
        "w0big": w0big, "b0big": jnp.tile(b0, P).reshape(1, P * nf),
        "w1b": conv_blocked(w1), "b1": b1.reshape(1, nf),
        "w2b": w2b, "b2big": jnp.tile(b2, P).reshape(1, P * nf),
        "w3b": conv_blocked(w3), "b3": b3.reshape(1, nf),
        "alphas": jnp.full((4,), 0.25, jnp.float32),
        # raw weights kept only for the plain-JAX reference check
        "raw": {"w0": w0, "b0": b0, "w1": w1, "b1": b1,
                "w2": w2, "b2": b2, "w3": w3, "b3": b3},
    }


# ----------------------------------------------------------------------------
# Forward wrapper: one-time NCHW -> blocked/padded channels-last glue on the
# input, a single pallas_call, and one tiny transpose of the (N,4,4,nf) result.
# ----------------------------------------------------------------------------
def d_down_block_forward(params, x_nchw, kernel_size, stride, padding):
    N, Cin, H, W = x_nchw.shape
    k, s, p = kernel_size, stride, padding
    nf = params["b1"].shape[-1]
    assert k == 2 * s and H == W and (H + 2 * p) % s == 0
    nb = (H + 2 * p) // s
    Ho = (H + 2 * p - k) // s + 1
    assert Ho == nb - 1 and (Ho - 1) * s - 2 * p + k == H
    P = s * s
    Cb = P * nf
    assert params["w0big"].shape[0] == P * Cin

    # NCHW -> padded -> (s x s)-blocked channels-last, flattened to (N*nb*nb, P*Cin)
    xp = jnp.pad(jnp.transpose(x_nchw, (0, 2, 3, 1)).astype(jnp.float32),
                 ((0, 0), (p, p), (p, p), (0, 0)))
    xb = xp.reshape(N, nb, s, nb, s, Cin).transpose(0, 1, 3, 2, 4, 5)
    xb = xb.reshape(N * nb * nb, P * Cin)

    # border-validity mask in the blocked layout (zero outside the original HxW)
    coord = jnp.arange(nb * s)
    valid = ((coord >= p) & (coord < H + p)).astype(jnp.float32).reshape(nb, s)
    mask = valid[:, None, :, None] * valid[None, :, None, :]          # (nb,nb,s,s)
    mask = jnp.broadcast_to(mask[..., None], (nb, nb, s, s, nf))
    mask = mask.reshape(1, nb, nb, Cb)

    kernel = functools.partial(_d_down_block_kernel, N=N, nb=nb, s=s, nf=nf)
    vmem = [pl.BlockSpec(memory_space=pltpu.MemorySpace.VMEM) for _ in range(10)]
    smem = pl.BlockSpec(memory_space=pltpu.MemorySpace.SMEM)

    out2d = pl.pallas_call(
        kernel,
        out_shape=jax.ShapeDtypeStruct((N * Ho * Ho, nf), jnp.float32),
        in_specs=vmem + [smem],
        out_specs=pl.BlockSpec(memory_space=pltpu.MemorySpace.VMEM),
        scratch_shapes=[pltpu.VMEM((N, nb, nb, Cb), jnp.float32)],
        compiler_params=pltpu.CompilerParams(vmem_limit_bytes=32 * 1024 * 1024),
    )(xb, params["w0big"], params["b0big"], params["w1b"], params["b1"],
      params["w2b"], params["b2big"], params["w3b"], params["b3"],
      mask, params["alphas"])

    return jnp.transpose(out2d.reshape(N, Ho, Ho, nf), (0, 3, 1, 2))


# ----------------------------------------------------------------------------
# Plain-JAX reference (float32, HIGHEST precision) for a numerical self-check.
# ----------------------------------------------------------------------------
def _reference_forward(params, x, k, s, p):
    raw = params["raw"]
    dn = ("NCHW", "OIHW", "NCHW")
    prec = jax.lax.Precision.HIGHEST

    def prelu(v, a):
        return jnp.where(v >= 0, v, a * v)

    a0, a1, a2, a3 = (params["alphas"][i] for i in range(4))
    xf = jax.lax.conv_general_dilated(x, raw["w0"][:, :, None, None], (1, 1),
                                      "VALID", dimension_numbers=dn, precision=prec)
    xf = prelu(xf + raw["b0"][None, :, None, None], a0)
    l0 = jax.lax.conv_general_dilated(xf, raw["w1"], (s, s), [(p, p), (p, p)],
                                      dimension_numbers=dn, precision=prec)
    l0 = prelu(l0 + raw["b1"][None, :, None, None], a1)
    w2t = jnp.flip(raw["w2"], (2, 3)).transpose(1, 0, 2, 3)
    h0 = jax.lax.conv_general_dilated(l0, w2t, (1, 1),
                                      [(k - 1 - p, k - 1 - p)] * 2,
                                      lhs_dilation=(s, s),
                                      dimension_numbers=dn, precision=prec)
    h0 = prelu(h0 + raw["b2"][None, :, None, None], a2)
    l1 = jax.lax.conv_general_dilated(h0 - xf, raw["w3"], (s, s), [(p, p), (p, p)],
                                      dimension_numbers=dn, precision=prec)
    l1 = prelu(l1 + raw["b3"][None, :, None, None], a3)
    return l1 + l0


# ----------------------------------------------------------------------------
if __name__ == "__main__":
    # D_DownBlock(num_filter=32, kernel_size=8, stride=4, padding=2, num_stages=1)
    num_filter, num_stages = 32, 1
    kernel_size, stride, padding = 8, 4, 2
    N, H, W = 2, 16, 16

    key = jax.random.PRNGKey(0)
    kp, kx = jax.random.split(key)
    params = init_d_down_block(kp, num_filter, kernel_size, stride, num_stages)
    x = jax.random.normal(kx, (N, num_filter * num_stages, H, W), jnp.float32)

    fwd = jax.jit(functools.partial(d_down_block_forward, kernel_size=kernel_size,
                                    stride=stride, padding=padding))
    out = fwd(params, x)
    jax.block_until_ready(out)

    Ho = (H + 2 * padding - kernel_size) // stride + 1
    assert out.shape == (N, num_filter, Ho, Ho), out.shape
    assert bool(jnp.all(jnp.isfinite(out)))

    ref = _reference_forward(params, x, kernel_size, stride, padding)
    err = float(jnp.max(jnp.abs(out - ref)))
    scale = float(jnp.max(jnp.abs(ref)))
    assert err <= 2e-2 * (1.0 + scale), f"kernel/reference mismatch: {err} vs {scale}"

    print("KERNEL_OK")
</pallas_src>

<mosaic_0001>
module attributes {stable_mosaic.version = 11 : i64} {
  func.func @_d_down_block_kernel(%arg0: memref<50x512xf32, #tpu.memory_space<vmem>>, %arg1: memref<512x512xf32, #tpu.memory_space<vmem>>, %arg2: memref<1x512xf32, #tpu.memory_space<vmem>>, %arg3: memref<4x512x32xf32, #tpu.memory_space<vmem>>, %arg4: memref<1x32xf32, #tpu.memory_space<vmem>>, %arg5: memref<4x32x512xf32, #tpu.memory_space<vmem>>, %arg6: memref<1x512xf32, #tpu.memory_space<vmem>>, %arg7: memref<4x512x32xf32, #tpu.memory_space<vmem>>, %arg8: memref<1x32xf32, #tpu.memory_space<vmem>>, %arg9: memref<1x5x5x512xf32, #tpu.memory_space<vmem>>, %arg10: memref<4xf32, #tpu.memory_space<smem>>, %arg11: memref<32x32xf32, #tpu.memory_space<vmem>>, %arg12: memref<2x5x5x512xf32, #tpu.memory_space<vmem>>) attributes {dimension_semantics = [], scalar_prefetch = 0 : i64, scratch_operands = 1 : i64, tpu.core_type = #tpu.core_type<tc>} {
    %c0 = arith.constant 0 : index
    %c0_0 = arith.constant 0 : index
    %c0_1 = arith.constant 0 : index
    %c0_2 = arith.constant 0 : index
    %0 = vector.load %arg9[%c0, %c0_0, %c0_1, %c0_2] : memref<1x5x5x512xf32, #tpu.memory_space<vmem>>, vector<1x5x5x512xf32>
    %c0_3 = arith.constant 0 : index
    %c0_4 = arith.constant 0 : index
    %1 = vector.load %arg0[%c0_3, %c0_4] : memref<50x512xf32, #tpu.memory_space<vmem>>, vector<50x512xf32>
    %c0_5 = arith.constant 0 : index
    %c0_6 = arith.constant 0 : index
    %2 = vector.load %arg1[%c0_5, %c0_6] : memref<512x512xf32, #tpu.memory_space<vmem>>, vector<512x512xf32>
    %cst = arith.constant dense<0.000000e+00> : vector<50x512xf32>
    %3 = tpu.matmul %1, %2, %cst {dimension_numbers = #tpu.dot_dimension_numbers<[1], [0], [0], [1], [0, 0, 1, 1], [], []>} : vector<50x512xf32>, vector<512x512xf32>, vector<50x512xf32> -> vector<50x512xf32>
    %c0_7 = arith.constant 0 : index
    %c0_8 = arith.constant 0 : index
    %4 = vector.load %arg2[%c0_7, %c0_8] : memref<1x512xf32, #tpu.memory_space<vmem>>, vector<1x512xf32>
    %5 = vector.broadcast %4 : vector<1x512xf32> to vector<50x512xf32>
    %6 = arith.addf %3, %5 : vector<50x512xf32>
    %c0_9 = arith.constant 0 : index
    %7 = memref.load %arg10[%c0_9] : memref<4xf32, #tpu.memory_space<smem>>
    %cst_10 = arith.constant 0.000000e+00 : f32
    %8 = vector.broadcast %cst_10 : f32 to vector<50x512xf32>
    %9 = arith.cmpf oge, %6, %8 : vector<50x512xf32>
    %10 = vector.broadcast %7 : f32 to vector<50x512xf32>
    %11 = arith.mulf %10, %6 : vector<50x512xf32>
    %12 = arith.select %9, %6, %11 : vector<50x512xi1>, vector<50x512xf32>
    %13 = vector.shape_cast %12 : vector<50x512xf32> to vector<2x5x5x512xf32>
    %14 = vector.broadcast %0 : vector<1x5x5x512xf32> to vector<2x5x5x512xf32>
    %15 = arith.mulf %13, %14 : vector<2x5x5x512xf32>
    %cst_11 = arith.constant 0.000000e+00 : f32
    %16 = vector.broadcast %cst_11 : f32 to vector<32x32xf32>
    %c0_12 = arith.constant 0 : index
    %c0_13 = arith.constant 0 : index
    %17 = vector.load %arg4[%c0_12, %c0_13] : memref<1x32xf32, #tpu.memory_space<vmem>>, vector<1x32xf32>
    %18 = vector.broadcast %17 : vector<1x32xf32> to vector<32x32xf32>
    %19 = arith.addf %16, %18 : vector<32x32xf32>
    %20 = vector.extract_strided_slice %15 {offsets = [0, 0, 0, 0], sizes = [2, 4, 4, 512], strides = [1, 1, 1, 1]} : vector<2x5x5x512xf32> to vector<2x4x4x512xf32>
    %21 = vector.shape_cast %20 : vector<2x4x4x512xf32> to vector<32x512xf32>
    %c0_14 = arith.constant 0 : index
    %c0_15 = arith.constant 0 : index
    %c0_16 = arith.constant 0 : index
    %22 = vector.load %arg3[%c0_14, %c0_15, %c0_16] : memref<4x512x32xf32, #tpu.memory_space<vmem>>, vector<1x512x32xf32>
    %23 = vector.shape_cast %22 : vector<1x512x32xf32> to vector<512x32xf32>
    %cst_17 = arith.constant dense<0.000000e+00> : vector<32x32xf32>
    %24 = tpu.matmul %21, %23, %cst_17 {dimension_numbers = #tpu.dot_dimension_numbers<[1], [0], [0], [1], [0, 0, 1, 1], [], []>} : vector<32x512xf32>, vector<512x32xf32>, vector<32x32xf32> -> vector<32x32xf32>
    %25 = arith.addf %19, %24 : vector<32x32xf32>
    %26 = vector.extract_strided_slice %15 {offsets = [0, 0, 1, 0], sizes = [2, 4, 4, 512], strides = [1, 1, 1, 1]} : vector<2x5x5x512xf32> to vector<2x4x4x512xf32>
    %27 = vector.shape_cast %26 : vector<2x4x4x512xf32> to vector<32x512xf32>
    %c1 = arith.constant 1 : index
    %c0_18 = arith.constant 0 : index
    %c0_19 = arith.constant 0 : index
    %28 = vector.load %arg3[%c1, %c0_18, %c0_19] : memref<4x512x32xf32, #tpu.memory_space<vmem>>, vector<1x512x32xf32>
    %29 = vector.shape_cast %28 : vector<1x512x32xf32> to vector<512x32xf32>
    %cst_20 = arith.constant dense<0.000000e+00> : vector<32x32xf32>
    %30 = tpu.matmul %27, %29, %cst_20 {dimension_numbers = #tpu.dot_dimension_numbers<[1], [0], [0], [1], [0, 0, 1, 1], [], []>} : vector<32x512xf32>, vector<512x32xf32>, vector<32x32xf32> -> vector<32x32xf32>
    %31 = arith.addf %25, %30 : vector<32x32xf32>
    %32 = vector.extract_strided_slice %15 {offsets = [0, 1, 0, 0], sizes = [2, 4, 4, 512], strides = [1, 1, 1, 1]} : vector<2x5x5x512xf32> to vector<2x4x4x512xf32>
    %33 = vector.shape_cast %32 : vector<2x4x4x512xf32> to vector<32x512xf32>
    %c2 = arith.constant 2 : index
    %c0_21 = arith.constant 0 : index
    %c0_22 = arith.constant 0 : index
    %34 = vector.load %arg3[%c2, %c0_21, %c0_22] : memref<4x512x32xf32, #tpu.memory_space<vmem>>, vector<1x512x32xf32>
    %35 = vector.shape_cast %34 : vector<1x512x32xf32> to vector<512x32xf32>
    %cst_23 = arith.constant dense<0.000000e+00> : vector<32x32xf32>
    %36 = tpu.matmul %33, %35, %cst_23 {dimension_numbers = #tpu.dot_dimension_numbers<[1], [0], [0], [1], [0, 0, 1, 1], [], []>} : vector<32x512xf32>, vector<512x32xf32>, vector<32x32xf32> -> vector<32x32xf32>
    %37 = arith.addf %31, %36 : vector<32x32xf32>
    %38 = vector.extract_strided_slice %15 {offsets = [0, 1, 1, 0], sizes = [2, 4, 4, 512], strides = [1, 1, 1, 1]} : vector<2x5x5x512xf32> to vector<2x4x4x512xf32>
    %39 = vector.shape_cast %38 : vector<2x4x4x512xf32> to vector<32x512xf32>
    %c3 = arith.constant 3 : index
    %c0_24 = arith.constant 0 : index
    %c0_25 = arith.constant 0 : index
    %40 = vector.load %arg3[%c3, %c0_24, %c0_25] : memref<4x512x32xf32, #tpu.memory_space<vmem>>, vector<1x512x32xf32>
    %41 = vector.shape_cast %40 : vector<1x512x32xf32> to vector<512x32xf32>
    %cst_26 = arith.constant dense<0.000000e+00> : vector<32x32xf32>
    %42 = tpu.matmul %39, %41, %cst_26 {dimension_numbers = #tpu.dot_dimension_numbers<[1], [0], [0], [1], [0, 0, 1, 1], [], []>} : vector<32x512xf32>, vector<512x32xf32>, vector<32x32xf32> -> vector<32x32xf32>
    %43 = arith.addf %37, %42 : vector<32x32xf32>
    %c1_27 = arith.constant 1 : index
    %44 = memref.load %arg10[%c1_27] : memref<4xf32, #tpu.memory_space<smem>>
    %cst_28 = arith.constant 0.000000e+00 : f32
    %45 = vector.broadcast %cst_28 : f32 to vector<32x32xf32>
    %46 = arith.cmpf oge, %43, %45 : vector<32x32xf32>
    %47 = vector.broadcast %44 : f32 to vector<32x32xf32>
    %48 = arith.mulf %47, %43 : vector<32x32xf32>
    %49 = arith.select %46, %43, %48 : vector<32x32xi1>, vector<32x32xf32>
    %cst_29 = arith.constant 0.000000e+00 : f32
    %50 = vector.broadcast %cst_29 : f32 to vector<2x5x5x512xf32>
    %c0_30 = arith.constant 0 : index
    %c0_31 = arith.constant 0 : index
    %c0_32 = arith.constant 0 : index
    %c0_33 = arith.constant 0 : index
    %51 = vector.load %arg12[%c0_30, %c0_31, %c0_32, %c0_33] : memref<2x5x5x512xf32, #tpu.memory_space<vmem>>, vector<2x5x5x512xf32>
    tpu.vector_store %arg12[%c0_30, %c0_31, %c0_32, %c0_33], %50 {strides = array<i32>} : memref<2x5x5x512xf32, #tpu.memory_space<vmem>>, vector<2x5x5x512xf32>,
    %c0_34 = arith.constant 0 : index
    %c0_35 = arith.constant 0 : index
    %c0_36 = arith.constant 0 : index
    %52 = vector.load %arg5[%c0_34, %c0_35, %c0_36] : memref<4x32x512xf32, #tpu.memory_space<vmem>>, vector<1x32x512xf32>
    %53 = vector.shape_cast %52 : vector<1x32x512xf32> to vector<32x512xf32>
    %cst_37 = arith.constant dense<0.000000e+00> : vector<32x512xf32>
    %54 = tpu.matmul %49, %53, %cst_37 {dimension_numbers = #tpu.dot_dimension_numbers<[1], [0], [0], [1], [0, 0, 1, 1], [], []>} : vector<32x32xf32>, vector<32x512xf32>, vector<32x512xf32> -> vector<32x512xf32>
    %c0_38 = arith.constant 0 : index
    %c0_39 = arith.constant 0 : index
    %c0_40 = arith.constant 0 : index
    %c0_41 = arith.constant 0 : index
    %55 = vector.load %arg12[%c0_38, %c0_39, %c0_40, %c0_41] : memref<2x5x5x512xf32, #tpu.memory_space<vmem>>, vector<2x4x4x512xf32>
    %56 = vector.shape_cast %54 : vector<32x512xf32> to vector<2x4x4x512xf32>
    %57 = arith.addf %55, %56 : vector<2x4x4x512xf32>
    %c0_42 = arith.constant 0 : index
    %c0_43 = arith.constant 0 : index
    %c0_44 = arith.constant 0 : index
    %c0_45 = arith.constant 0 : index
    %58 = vector.load %arg12[%c0_42, %c0_43, %c0_44, %c0_45] : memref<2x5x5x512xf32, #tpu.memory_space<vmem>>, vector<2x4x4x512xf32>
    tpu.vector_store %arg12[%c0_42, %c0_43, %c0_44, %c0_45], %57 {strides = array<i32>} : memref<2x5x5x512xf32, #tpu.memory_space<vmem>>, vector<2x4x4x512xf32>,
    %c1_46 = arith.constant 1 : index
    %c0_47 = arith.constant 0 : index
    %c0_48 = arith.constant 0 : index
    %59 = vector.load %arg5[%c1_46, %c0_47, %c0_48] : memref<4x32x512xf32, #tpu.memory_space<vmem>>, vector<1x32x512xf32>
    %60 = vector.shape_cast %59 : vector<1x32x512xf32> to vector<32x512xf32>
    %cst_49 = arith.constant dense<0.000000e+00> : vector<32x512xf32>
    %61 = tpu.matmul %49, %60, %cst_49 {dimension_numbers = #tpu.dot_dimension_numbers<[1], [0], [0], [1], [0, 0, 1, 1], [], []>} : vector<32x32xf32>, vector<32x512xf32>, vector<32x512xf32> -> vector<32x512xf32>
    %c0_50 = arith.constant 0 : index
    %c0_51 = arith.constant 0 : index
    %c1_52 = arith.constant 1 : index
    %c0_53 = arith.constant 0 : index
    %62 = vector.load %arg12[%c0_50, %c0_51, %c1_52, %c0_53] : memref<2x5x5x512xf32, #tpu.memory_space<vmem>>, vector<2x4x4x512xf32>
    %63 = vector.shape_cast %61 : vector<32x512xf32> to vector<2x4x4x512xf32>
    %64 = arith.addf %62, %63 : vector<2x4x4x512xf32>
    %c0_54 = arith.constant 0 : index
    %c0_55 = arith.constant 0 : index
    %c1_56 = arith.constant 1 : index
    %c0_57 = arith.constant 0 : index
    %65 = vector.load %arg12[%c0_54, %c0_55, %c1_56, %c0_57] : memref<2x5x5x512xf32, #tpu.memory_space<vmem>>, vector<2x4x4x512xf32>
    tpu.vector_store %arg12[%c0_54, %c0_55, %c1_56, %c0_57], %64 {strides = array<i32>} : memref<2x5x5x512xf32, #tpu.memory_space<vmem>>, vector<2x4x4x512xf32>,
    %c2_58 = arith.constant 2 : index
    %c0_59 = arith.constant 0 : index
    %c0_60 = arith.constant 0 : index
    %66 = vector.load %arg5[%c2_58, %c0_59, %c0_60] : memref<4x32x512xf32, #tpu.memory_space<vmem>>, vector<1x32x512xf32>
    %67 = vector.shape_cast %66 : vector<1x32x512xf32> to vector<32x512xf32>
    %cst_61 = arith.constant dense<0.000000e+00> : vector<32x512xf32>
    %68 = tpu.matmul %49, %67, %cst_61 {dimension_numbers = #tpu.dot_dimension_numbers<[1], [0], [0], [1], [0, 0, 1, 1], [], []>} : vector<32x32xf32>, vector<32x512xf32>, vector<32x512xf32> -> vector<32x512xf32>
    %c0_62 = arith.constant 0 : index
    %c1_63 = arith.constant 1 : index
    %c0_64 = arith.constant 0 : index
    %c0_65 = arith.constant 0 : index
    %69 = vector.load %arg12[%c0_62, %c1_63, %c0_64, %c0_65] : memref<2x5x5x512xf32, #tpu.memory_space<vmem>>, vector<2x4x4x512xf32>
    %70 = vector.shape_cast %68 : vector<32x512xf32> to vector<2x4x4x512xf32>
    %71 = arith.addf %69, %70 : vector<2x4x4x512xf32>
    %c0_66 = arith.constant 0 : index
    %c1_67 = arith.constant 1 : index
    %c0_68 = arith.constant 0 : index
    %c0_69 = arith.constant 0 : index
    %72 = vector.load %arg12[%c0_66, %c1_67, %c0_68, %c0_69] : memref<2x5x5x512xf32, #tpu.memory_space<vmem>>, vector<2x4x4x512xf32>
    tpu.vector_store %arg12[%c0_66, %c1_67, %c0_68, %c0_69], %71 {strides = array<i32>} : memref<2x5x5x512xf32, #tpu.memory_space<vmem>>, vector<2x4x4x512xf32>,
    %c3_70 = arith.constant 3 : index
    %c0_71 = arith.constant 0 : index
    %c0_72 = arith.constant 0 : index
    %73 = vector.load %arg5[%c3_70, %c0_71, %c0_72] : memref<4x32x512xf32, #tpu.memory_space<vmem>>, vector<1x32x512xf32>
    %74 = vector.shape_cast %73 : vector<1x32x512xf32> to vector<32x512xf32>
    %cst_73 = arith.constant dense<0.000000e+00> : vector<32x512xf32>
    %75 = tpu.matmul %49, %74, %cst_73 {dimension_numbers = #tpu.dot_dimension_numbers<[1], [0], [0], [1], [0, 0, 1, 1], [], []>} : vector<32x32xf32>, vector<32x512xf32>, vector<32x512xf32> -> vector<32x512xf32>
    %c0_74 = arith.constant 0 : index
    %c1_75 = arith.constant 1 : index
    %c1_76 = arith.constant 1 : index
    %c0_77 = arith.constant 0 : index
    %76 = vector.load %arg12[%c0_74, %c1_75, %c1_76, %c0_77] : memref<2x5x5x512xf32, #tpu.memory_space<vmem>>, vector<2x4x4x512xf32>
    %77 = vector.shape_cast %75 : vector<32x512xf32> to vector<2x4x4x512xf32>
    %78 = arith.addf %76, %77 : vector<2x4x4x512xf32>
    %c0_78 = arith.constant 0 : index
    %c1_79 = arith.constant 1 : index
    %c1_80 = arith.constant 1 : index
    %c0_81 = arith.constant 0 : index
    %79 = vector.load %arg12[%c0_78, %c1_79, %c1_80, %c0_81] : memref<2x5x5x512xf32, #tpu.memory_space<vmem>>, vector<2x4x4x512xf32>
    tpu.vector_store %arg12[%c0_78, %c1_79, %c1_80, %c0_81], %78 {strides = array<i32>} : memref<2x5x5x512xf32, #tpu.memory_space<vmem>>, vector<2x4x4x512xf32>,
    %c0_82 = arith.constant 0 : index
    %c0_83 = arith.constant 0 : index
    %c0_84 = arith.constant 0 : index
    %c0_85 = arith.constant 0 : index
    %80 = vector.load %arg12[%c0_82, %c0_83, %c0_84, %c0_85] : memref<2x5x5x512xf32, #tpu.memory_space<vmem>>, vector<2x5x5x512xf32>
    %c0_86 = arith.constant 0 : index
    %c0_87 = arith.constant 0 : index
    %81 = vector.load %arg6[%c0_86, %c0_87] : memref<1x512xf32, #tpu.memory_space<vmem>>, vector<1x512xf32>
    %82 = vector.shape_cast %81 : vector<1x512xf32> to vector<1x1x1x512xf32>
    %83 = vector.broadcast %82 : vector<1x1x1x512xf32> to vector<2x5x5x512xf32>
    %84 = arith.addf %80, %83 : vector<2x5x5x512xf32>
    %c2_88 = arith.constant 2 : index
    %85 = memref.load %arg10[%c2_88] : memref<4xf32, #tpu.memory_space<smem>>
    %cst_89 = arith.constant 0.000000e+00 : f32
    %86 = vector.broadcast %cst_89 : f32 to vector<2x5x5x512xf32>
    %87 = arith.cmpf oge, %84, %86 : vector<2x5x5x512xf32>
    %88 = vector.broadcast %85 : f32 to vector<2x5x5x512xf32>
    %89 = arith.mulf %88, %84 : vector<2x5x5x512xf32>
    %90 = arith.select %87, %84, %89 : vector<2x5x5x512xi1>, vector<2x5x5x512xf32>
    %91 = arith.subf %90, %15 : vector<2x5x5x512xf32>
    %92 = vector.broadcast %0 : vector<1x5x5x512xf32> to vector<2x5x5x512xf32>
    %93 = arith.mulf %91, %92 : vector<2x5x5x512xf32>
    %cst_90 = arith.constant 0.000000e+00 : f32
    %94 = vector.broadcast %cst_90 : f32 to vector<32x32xf32>
    %c0_91 = arith.constant 0 : index
    %c0_92 = arith.constant 0 : index
    %95 = vector.load %arg8[%c0_91, %c0_92] : memref<1x32xf32, #tpu.memory_space<vmem>>, vector<1x32xf32>
    %96 = vector.broadcast %95 : vector<1x32xf32> to vector<32x32xf32>
    %97 = arith.addf %94, %96 : vector<32x32xf32>
    %98 = vector.extract_strided_slice %93 {offsets = [0, 0, 0, 0], sizes = [2, 4, 4, 512], strides = [1, 1, 1, 1]} : vector<2x5x5x512xf32> to vector<2x4x4x512xf32>
    %99 = vector.shape_cast %98 : vector<2x4x4x512xf32> to vector<32x512xf32>
    %c0_93 = arith.constant 0 : index
    %c0_94 = arith.constant 0 : index
    %c0_95 = arith.constant 0 : index
    %100 = vector.load %arg7[%c0_93, %c0_94, %c0_95] : memref<4x512x32xf32, #tpu.memory_space<vmem>>, vector<1x512x32xf32>
    %101 = vector.shape_cast %100 : vector<1x512x32xf32> to vector<512x32xf32>
    %cst_96 = arith.constant dense<0.000000e+00> : vector<32x32xf32>
    %102 = tpu.matmul %99, %101, %cst_96 {dimension_numbers = #tpu.dot_dimension_numbers<[1], [0], [0], [1], [0, 0, 1, 1], [], []>} : vector<32x512xf32>, vector<512x32xf32>, vector<32x32xf32> -> vector<32x32xf32>
    %103 = arith.addf %97, %102 : vector<32x32xf32>
    %104 = vector.extract_strided_slice %93 {offsets = [0, 0, 1, 0], sizes = [2, 4, 4, 512], strides = [1, 1, 1, 1]} : vector<2x5x5x512xf32> to vector<2x4x4x512xf32>
    %105 = vector.shape_cast %104 : vector<2x4x4x512xf32> to vector<32x512xf32>
    %c1_97 = arith.constant 1 : index
    %c0_98 = arith.constant 0 : index
    %c0_99 = arith.constant 0 : index
    %106 = vector.load %arg7[%c1_97, %c0_98, %c0_99] : memref<4x512x32xf32, #tpu.memory_space<vmem>>, vector<1x512x32xf32>
    %107 = vector.shape_cast %106 : vector<1x512x32xf32> to vector<512x32xf32>
    %cst_100 = arith.constant dense<0.000000e+00> : vector<32x32xf32>
    %108 = tpu.matmul %105, %107, %cst_100 {dimension_numbers = #tpu.dot_dimension_numbers<[1], [0], [0], [1], [0, 0, 1, 1], [], []>} : vector<32x512xf32>, vector<512x32xf32>, vector<32x32xf32> -> vector<32x32xf32>
    %109 = arith.addf %103, %108 : vector<32x32xf32>
    %110 = vector.extract_strided_slice %93 {offsets = [0, 1, 0, 0], sizes = [2, 4, 4, 512], strides = [1, 1, 1, 1]} : vector<2x5x5x512xf32> to vector<2x4x4x512xf32>
    %111 = vector.shape_cast %110 : vector<2x4x4x512xf32> to vector<32x512xf32>
    %c2_101 = arith.constant 2 : index
    %c0_102 = arith.constant 0 : index
    %c0_103 = arith.constant 0 : index
    %112 = vector.load %arg7[%c2_101, %c0_102, %c0_103] : memref<4x512x32xf32, #tpu.memory_space<vmem>>, vector<1x512x32xf32>
    %113 = vector.shape_cast %112 : vector<1x512x32xf32> to vector<512x32xf32>
    %cst_104 = arith.constant dense<0.000000e+00> : vector<32x32xf32>
    %114 = tpu.matmul %111, %113, %cst_104 {dimension_numbers = #tpu.dot_dimension_numbers<[1], [0], [0], [1], [0, 0, 1, 1], [], []>} : vector<32x512xf32>, vector<512x32xf32>, vector<32x32xf32> -> vector<32x32xf32>
    %115 = arith.addf %109, %114 : vector<32x32xf32>
    %116 = vector.extract_strided_slice %93 {offsets = [0, 1, 1, 0], sizes = [2, 4, 4, 512], strides = [1, 1, 1, 1]} : vector<2x5x5x512xf32> to vector<2x4x4x512xf32>
    %117 = vector.shape_cast %116 : vector<2x4x4x512xf32> to vector<32x512xf32>
    %c3_105 = arith.constant 3 : index
    %c0_106 = arith.constant 0 : index
    %c0_107 = arith.constant 0 : index
    %118 = vector.load %arg7[%c3_105, %c0_106, %c0_107] : memref<4x512x32xf32, #tpu.memory_space<vmem>>, vector<1x512x32xf32>
    %119 = vector.shape_cast %118 : vector<1x512x32xf32> to vector<512x32xf32>
    %cst_108 = arith.constant dense<0.000000e+00> : vector<32x32xf32>
    %120 = tpu.matmul %117, %119, %cst_108 {dimension_numbers = #tpu.dot_dimension_numbers<[1], [0], [0], [1], [0, 0, 1, 1], [], []>} : vector<32x512xf32>, vector<512x32xf32>, vector<32x32xf32> -> vector<32x32xf32>
    %121 = arith.addf %115, %120 : vector<32x32xf32>
    %c3_109 = arith.constant 3 : index
    %122 = memref.load %arg10[%c3_109] : memref<4xf32, #tpu.memory_space<smem>>
    %cst_110 = arith.constant 0.000000e+00 : f32
    %123 = vector.broadcast %cst_110 : f32 to vector<32x32xf32>
    %124 = arith.cmpf oge, %121, %123 : vector<32x32xf32>
    %125 = vector.broadcast %122 : f32 to vector<32x32xf32>
    %126 = arith.mulf %125, %121 : vector<32x32xf32>
    %127 = arith.select %124, %121, %126 : vector<32x32xi1>, vector<32x32xf32>
    %128 = arith.addf %127, %49 : vector<32x32xf32>
    %c0_111 = arith.constant 0 : index
    %c0_112 = arith.constant 0 : index
    %129 = vector.load %arg11[%c0_111, %c0_112] : memref<32x32xf32, #tpu.memory_space<vmem>>, vector<32x32xf32>
    tpu.vector_store %arg11[%c0_111, %c0_112], %128 {strides = array<i32>} : memref<32x32xf32, #tpu.memory_space<vmem>>, vector<32x32xf32>,
    return
  }
}

</mosaic_0001>

<bundles_post_ra>
// kernel: d_down_block_forward.1
= control target key start
LH: loop header
LB: loop body
LE: loop exit
PB: predicated region body
PF: predicated region fallthrough
CT: control target
= control target key end

     0   :  { %16 = vsyncpa [#allocation5], 0  ;;  %s15288_s0 = inlined_call_operand.vmem [shape: f32[50,512], index: 0, kind: input, shape index: {}]   ;;  %s15289_s1 = inlined_call_operand.vmem [shape: f32[512,512], index: 1, kind: input, shape index: {}]   ;;  %s15290_s2 = inlined_call_operand.vmem [shape: f32[1,512], index: 2, kind: input, shape index: {}]   ;;  %s15291_s3 = inlined_call_operand.vmem [shape: f32[4,512,32], index: 3, kind: input, shape index: {}]   ;;  %s15292_s4 = inlined_call_operand.vmem [shape: f32[1,32], index: 4, kind: input, shape index: {}]   ;;  %s15293_s5 = inlined_call_operand.vmem [shape: f32[4,32,512], index: 5, kind: input, shape index: {}]   ;;  %s15294_s6 = inlined_call_operand.vmem [shape: f32[1,512], index: 6, kind: input, shape index: {}]   ;;  %s15295_s7 = inlined_call_operand.vmem [shape: f32[4,512,32], index: 7, kind: input, shape index: {}]   ;;  %s15296_s8 = inlined_call_operand.vmem [shape: f32[1,32], index: 8, kind: input, shape index: {}]   ;;  %s15297_s9 = inlined_call_operand.vmem [shape: f32[1,5,5,512], index: 9, kind: input, shape index: {}]   ;;  %s15298_s10 = inlined_call_operand.vmem [shape: f32[4], index: 10, kind: input, shape index: {}]   ;;  %s15299_s11 = inlined_call_operand.hbm [shape: f32[32,32], index: 11, kind: output, shape index: {}]  }
   0x1   :  { %17 = vsyncpa [#allocation4], 0  ;;  %s44_s19 = sshll.u32 %s15298_s10, 4  ;;  %s45_s19 = int_to_ptr.vmem [resolvable:$true] %s44_s19 }
   0x2   :  { %s9315_s20 = scalar_lea.vmem %s45_s19, 16  ;;  %p9320_p1 = scmp.lt.s32.totalorder %s45_s19, %s45_s19 }
   0x3   :  { %p9316_p0 = scmp.ne.s32.totalorder %s45_s19, %s9315_s20  ;;  %p9321_p2 = scmp.lt.s32.totalorder %s9315_s20, %s9315_s20 }
   0x5   :  { %p9322_p3 = por %p9321_p2, %p9320_p1 }
   0x7   :  { %p9323_p4 = pnand %p9322_p3, %p9316_p0 }
   0x9   :  { %9326 = shalt.err (!%p9323_p4)
}
   0xa   :  { %s9353_s21 = smov [#allocation3]  }
   0xb   :  { %47 = dma.vmem_to_smem %s45_s19, 16, %s9353_s21, [#allocation5]  }
   0xc   :  { %9349 = dma.done.wait [#allocation5], 16  }
   0xd   :  { %9350 = vsyncadd [#allocation5], 4294967280 }
   0xe   :  { %51 = sfence }
   0xf   :  { %v101_v0 = vld [vmem:[%s15289_s1 + $0x8] sm:$0xff]  ;;  %v103_v2 = vld [vmem:[%s15289_s1 + $0x18] sm:$0xff]  ;;  %v100_v5 = vld [vmem:[%s15289_s1] sm:$0xff]  ;;  %s10584_s29 = sld [smem:[#allocation3]]  ;;  %s9356_s23 = smov [#allocation6]  }
  0x10   :  { %v105_v1 = vld [vmem:[%s15289_s1 + $0x28] sm:$0xff]  ;;  %v107_v4 = vld [vmem:[%s15289_s1 + $0x38] sm:$0xff]  ;;  %v104_v6 = vld [vmem:[%s15289_s1 + $0x20] sm:$0xff] }
  0x11   :  { %v8377_v3 = vpack.c.bf16 %v105_v1, %v101_v0  ;;  %v8505_v7 = vpack.c.bf16 %v107_v4, %v103_v2  ;;  %v8379_v8 = vpack.c.bf16 %v104_v6, %v100_v5  ;;  %v102_v9 = vld [vmem:[%s15289_s1 + $0x10] sm:$0xff]  ;;  %v109_v11 = vld [vmem:[%s15289_s1 + $0x48] sm:$0xff]  ;;  %v111_v14 = vld [vmem:[%s15289_s1 + $0x58] sm:$0xff] }
  0x12   :  { %v106_v10 = vld [vmem:[%s15289_s1 + $0x30] sm:$0xff]  ;;  %v113_v13 = vld [vmem:[%s15289_s1 + $0x68] sm:$0xff]  ;;  %v115_v15 = vld [vmem:[%s15289_s1 + $0x78] sm:$0xff] }
  0x13   :  { %8378 = vmatprep.subr.bf16.mxu0 %v8377_v3  ;;  %v8507_v12 = vpack.c.bf16 %v106_v10, %v102_v9  ;;  %8506 = vmatprep.subr.bf16.mxu1 %v8505_v7  ;;  %v8381_v16 = vpack.c.bf16 %v113_v13, %v109_v11  ;;  %v8509_v17 = vpack.c.bf16 %v115_v15, %v111_v14  ;;  %v108_v18 = vld [vmem:[%s15289_s1 + $0x40] sm:$0xff]  ;;  %v110_v20 = vld [vmem:[%s15289_s1 + $0x50] sm:$0xff]  ;;  %v117_v23 = vld [vmem:[%s15289_s1 + $0x88] sm:$0xff] }
  0x14   :  { %8380 = vmatpush1.bf16.msra.mxu0 %v8379_v8  ;;  %v112_v19 = vld [vmem:[%s15289_s1 + $0x60] sm:$0xff]  ;;  %v114_v22 = vld [vmem:[%s15289_s1 + $0x70] sm:$0xff]  ;;  %v121_v24 = vld [vmem:[%s15289_s1 + $0xa8] sm:$0xff] }
  0x15   :  { %8508 = vmatpush1.bf16.msra.mxu1 %v8507_v12  ;;  %v8383_v21 = vpack.c.bf16 %v112_v19, %v108_v18  ;;  %8382 = vmatprep.subr.bf16.mxu0 %v8381_v16  ;;  %v8511_v25 = vpack.c.bf16 %v114_v22, %v110_v20  ;;  %v8385_v26 = vpack.c.bf16 %v121_v24, %v117_v23  ;;  %v119_v27 = vld [vmem:[%s15289_s1 + $0x98] sm:$0xff]  ;;  %v116_v29 = vld [vmem:[%s15289_s1 + $0x80] sm:$0xff]  ;;  %v118_v32 = vld [vmem:[%s15289_s1 + $0x90] sm:$0xff] }
  0x16   :  { %8510 = vmatprep.subr.bf16.mxu1 %v8509_v17  ;;  %v123_v28 = vld [vmem:[%s15289_s1 + $0xb8] sm:$0xff]  ;;  %v120_v31 = vld [vmem:[%s15289_s1 + $0xa0] sm:$0xff]  ;;  %v122_v33 = vld [vmem:[%s15289_s1 + $0xb0] sm:$0xff] }
  0x17   :  { %v8513_v30 = vpack.c.bf16 %v123_v28, %v119_v27  ;;  %v8387_v34 = vpack.c.bf16 %v120_v31, %v116_v29  ;;  %v125_v35 = vld [vmem:[%s15289_s1 + $0xc8] sm:$0xff]  ;;  %v127_v37 = vld [vmem:[%s15289_s1 + $0xd8] sm:$0xff]  ;;  %v8515_v38 = vpack.c.bf16 %v122_v33, %v118_v32  ;;  %v124_v41 = vld [vmem:[%s15289_s1 + $0xc0] sm:$0xff] }
  0x18   :  { %8384 = vmatpush1.bf16.msra.mxu0 %v8383_v21  ;;  %v129_v36 = vld [vmem:[%s15289_s1 + $0xe8] sm:$0xff]  ;;  %v131_v40 = vld [vmem:[%s15289_s1 + $0xf8] sm:$0xff]  ;;  %v128_v42 = vld [vmem:[%s15289_s1 + $0xe0] sm:$0xff] }
  0x19   :  { %8512 = vmatpush1.bf16.msra.mxu1 %v8511_v25  ;;  %8386 = vmatprep.subr.bf16.mxu0 %v8385_v26  ;;  %v8389_v39 = vpack.c.bf16 %v129_v36, %v125_v35  ;;  %v8517_v43 = vpack.c.bf16 %v131_v40, %v127_v37  ;;  %v126_v44 = vld [vmem:[%s15289_s1 + $0xd0] sm:$0xff]  ;;  %v133_v46 = vld [vmem:[%s15289_s1 + $0x108] sm:$0xff]  ;;  %v135_v48 = vld [vmem:[%s15289_s1 + $0x118] sm:$0xff]  ;;  %v8391_v50 = vpack.c.bf16 %v128_v42, %v124_v41 }
  0x1a   :  { %8514 = vmatprep.subr.bf16.mxu1 %v8513_v30  ;;  %v130_v45 = vld [vmem:[%s15289_s1 + $0xf0] sm:$0xff]  ;;  %v137_v47 = vld [vmem:[%s15289_s1 + $0x128] sm:$0xff]  ;;  %v139_v49 = vld [vmem:[%s15289_s1 + $0x138] sm:$0xff] }
  0x1b   :  { %v8519_v51 = vpack.c.bf16 %v130_v45, %v126_v44  ;;  %v8393_v52 = vpack.c.bf16 %v137_v47, %v133_v46  ;;  %v132_v53 = vld [vmem:[%s15289_s1 + $0x100] sm:$0xff]  ;;  %v134_v55 = vld [vmem:[%s15289_s1 + $0x110] sm:$0xff]  ;;  %v8521_v56 = vpack.c.bf16 %v139_v49, %v135_v48  ;;  %v141_v58 = vld [vmem:[%s15289_s1 + $0x148] sm:$0xff] }
  0x1c   :  { %8388 = vmatpush1.bf16.msra.mxu0 %v8387_v34  ;;  %v136_v54 = vld [vmem:[%s15289_s1 + $0x120] sm:$0xff]  ;;  %v138_v57 = vld [vmem:[%s15289_s1 + $0x130] sm:$0xff]  ;;  %v145_v59 = vld [vmem:[%s15289_s1 + $0x168] sm:$0xff] }
  0x1d   :  { %8516 = vmatpush1.bf16.msra.mxu1 %v8515_v38  ;;  %8390 = vmatprep.subr.bf16.mxu0 %v8389_v39  ;;  %v143_v60 = vld [vmem:[%s15289_s1 + $0x158] sm:$0xff]  ;;  %v8395_v62 = vpack.c.bf16 %v136_v54, %v132_v53  ;;  %v8523_v63 = vpack.c.bf16 %v138_v57, %v134_v55  ;;  %v8397_v0 = vpack.c.bf16 %v145_v59, %v141_v58  ;;  %v140_v1 = vld [vmem:[%s15289_s1 + $0x140] sm:$0xff]  ;;  %v142_v3 = vld [vmem:[%s15289_s1 + $0x150] sm:$0xff] }
  0x1e   :  { %8518 = vmatprep.subr.bf16.mxu1 %v8517_v43  ;;  %v147_v61 = vld [vmem:[%s15289_s1 + $0x178] sm:$0xff]  ;;  %v144_v2 = vld [vmem:[%s15289_s1 + $0x160] sm:$0xff]  ;;  %v146_v5 = vld [vmem:[%s15289_s1 + $0x170] sm:$0xff] }
  0x1f   :  { %v8525_v4 = vpack.c.bf16 %v147_v61, %v143_v60  ;;  %v149_v6 = vld [vmem:[%s15289_s1 + $0x188] sm:$0xff]  ;;  %v151_v8 = vld [vmem:[%s15289_s1 + $0x198] sm:$0xff]  ;;  %v8399_v10 = vpack.c.bf16 %v144_v2, %v140_v1  ;;  %v8527_v11 = vpack.c.bf16 %v146_v5, %v142_v3  ;;  %v148_v13 = vld [vmem:[%s15289_s1 + $0x180] sm:$0xff] }
  0x20   :  { %8392 = vmatpush1.bf16.msra.mxu0 %v8391_v50  ;;  %v153_v7 = vld [vmem:[%s15289_s1 + $0x1a8] sm:$0xff]  ;;  %v155_v9 = vld [vmem:[%s15289_s1 + $0x1b8] sm:$0xff]  ;;  %v152_v14 = vld [vmem:[%s15289_s1 + $0x1a0] sm:$0xff] }
  0x21   :  { %8520 = vmatpush1.bf16.msra.mxu1 %v8519_v51  ;;  %8394 = vmatprep.subr.bf16.mxu0 %v8393_v52  ;;  %v8401_v12 = vpack.c.bf16 %v153_v7, %v149_v6  ;;  %v150_v15 = vld [vmem:[%s15289_s1 + $0x190] sm:$0xff]  ;;  %v8529_v16 = vpack.c.bf16 %v155_v9, %v151_v8  ;;  %v157_v18 = vld [vmem:[%s15289_s1 + $0x1c8] sm:$0xff]  ;;  %v159_v20 = vld [vmem:[%s15289_s1 + $0x1d8] sm:$0xff]  ;;  %v8403_v22 = vpack.c.bf16 %v152_v14, %v148_v13 }
  0x22   :  { %8522 = vmatprep.subr.bf16.mxu1 %v8521_v56  ;;  %v154_v17 = vld [vmem:[%s15289_s1 + $0x1b0] sm:$0xff]  ;;  %v161_v19 = vld [vmem:[%s15289_s1 + $0x1e8] sm:$0xff]  ;;  %v163_v21 = vld [vmem:[%s15289_s1 + $0x1f8] sm:$0xff] }
  0x23   :  { %v8531_v23 = vpack.c.bf16 %v154_v17, %v150_v15  ;;  %v8405_v24 = vpack.c.bf16 %v161_v19, %v157_v18  ;;  %v156_v25 = vld [vmem:[%s15289_s1 + $0x1c0] sm:$0xff]  ;;  %v158_v27 = vld [vmem:[%s15289_s1 + $0x1d0] sm:$0xff]  ;;  %v8533_v28 = vpack.c.bf16 %v163_v21, %v159_v20  ;;  %v165_v30 = vld [vmem:[%s15289_s1 + $0x208] sm:$0xff] }
  0x24   :  { %8396 = vmatpush1.bf16.msra.mxu0 %v8395_v62  ;;  %v160_v26 = vld [vmem:[%s15289_s1 + $0x1e0] sm:$0xff]  ;;  %v162_v29 = vld [vmem:[%s15289_s1 + $0x1f0] sm:$0xff]  ;;  %v169_v31 = vld [vmem:[%s15289_s1 + $0x228] sm:$0xff] }
  0x25   :  { %8524 = vmatpush1.bf16.msra.mxu1 %v8523_v63  ;;  %8398 = vmatprep.subr.bf16.mxu0 %v8397_v0  ;;  %v167_v32 = vld [vmem:[%s15289_s1 + $0x218] sm:$0xff]  ;;  %v8407_v34 = vpack.c.bf16 %v160_v26, %v156_v25  ;;  %v8535_v35 = vpack.c.bf16 %v162_v29, %v158_v27  ;;  %v8409_v36 = vpack.c.bf16 %v169_v31, %v165_v30  ;;  %v164_v37 = vld [vmem:[%s15289_s1 + $0x200] sm:$0xff]  ;;  %v166_v39 = vld [vmem:[%s15289_s1 + $0x210] sm:$0xff] }
  0x26   :  { %8526 = vmatprep.subr.bf16.mxu1 %v8525_v4  ;;  %v171_v33 = vld [vmem:[%s15289_s1 + $0x238] sm:$0xff]  ;;  %v168_v38 = vld [vmem:[%s15289_s1 + $0x220] sm:$0xff]  ;;  %v170_v41 = vld [vmem:[%s15289_s1 + $0x230] sm:$0xff] }
  0x27   :  { %v8537_v40 = vpack.c.bf16 %v171_v33, %v167_v32  ;;  %v173_v42 = vld [vmem:[%s15289_s1 + $0x248] sm:$0xff]  ;;  %v175_v44 = vld [vmem:[%s15289_s1 + $0x258] sm:$0xff]  ;;  %v8411_v46 = vpack.c.bf16 %v168_v38, %v164_v37  ;;  %v8539_v47 = vpack.c.bf16 %v170_v41, %v166_v39  ;;  %v172_v49 = vld [vmem:[%s15289_s1 + $0x240] sm:$0xff] }
  0x28   :  { %8400 = vmatpush1.bf16.msra.mxu0 %v8399_v10  ;;  %v177_v43 = vld [vmem:[%s15289_s1 + $0x268] sm:$0xff]  ;;  %v179_v45 = vld [vmem:[%s15289_s1 + $0x278] sm:$0xff]  ;;  %v176_v50 = vld [vmem:[%s15289_s1 + $0x260] sm:$0xff] }
  0x29   :  { %8528 = vmatpush1.bf16.msra.mxu1 %v8527_v11  ;;  %8402 = vmatprep.subr.bf16.mxu0 %v8401_v12  ;;  %v8413_v48 = vpack.c.bf16 %v177_v43, %v173_v42  ;;  %v174_v51 = vld [vmem:[%s15289_s1 + $0x250] sm:$0xff]  ;;  %v8541_v52 = vpack.c.bf16 %v179_v45, %v175_v44  ;;  %v181_v54 = vld [vmem:[%s15289_s1 + $0x288] sm:$0xff]  ;;  %v183_v56 = vld [vmem:[%s15289_s1 + $0x298] sm:$0xff]  ;;  %v8415_v58 = vpack.c.bf16 %v176_v50, %v172_v49 }
  0x2a   :  { %8530 = vmatprep.subr.bf16.mxu1 %v8529_v16  ;;  %v178_v53 = vld [vmem:[%s15289_s1 + $0x270] sm:$0xff]  ;;  %v185_v55 = vld [vmem:[%s15289_s1 + $0x2a8] sm:$0xff]  ;;  %v187_v57 = vld [vmem:[%s15289_s1 + $0x2b8] sm:$0xff] }
  0x2b   :  { %v8543_v59 = vpack.c.bf16 %v178_v53, %v174_v51  ;;  %v8417_v60 = vpack.c.bf16 %v185_v55, %v181_v54  ;;  %v180_v61 = vld [vmem:[%s15289_s1 + $0x280] sm:$0xff]  ;;  %v182_v63 = vld [vmem:[%s15289_s1 + $0x290] sm:$0xff]  ;;  %v8545_v0 = vpack.c.bf16 %v187_v57, %v183_v56  ;;  %v189_v2 = vld [vmem:[%s15289_s1 + $0x2c8] sm:$0xff] }
  0x2c   :  { %8404 = vmatpush1.bf16.msra.mxu0 %v8403_v22  ;;  %v184_v62 = vld [vmem:[%s15289_s1 + $0x2a0] sm:$0xff]  ;;  %v186_v1 = vld [vmem:[%s15289_s1 + $0x2b0] sm:$0xff]  ;;  %v193_v3 = vld [vmem:[%s15289_s1 + $0x2e8] sm:$0xff] }
  0x2d   :  { %8532 = vmatpush1.bf16.msra.mxu1 %v8531_v23  ;;  %8406 = vmatprep.subr.bf16.mxu0 %v8405_v24  ;;  %v191_v4 = vld [vmem:[%s15289_s1 + $0x2d8] sm:$0xff]  ;;  %v8419_v6 = vpack.c.bf16 %v184_v62, %v180_v61  ;;  %v188_v7 = vld [vmem:[%s15289_s1 + $0x2c0] sm:$0xff]  ;;  %v8547_v8 = vpack.c.bf16 %v186_v1, %v182_v63  ;;  %v8421_v9 = vpack.c.bf16 %v193_v3, %v189_v2  ;;  %v190_v11 = vld [vmem:[%s15289_s1 + $0x2d0] sm:$0xff] }
  0x2e   :  { %8534 = vmatprep.subr.bf16.mxu1 %v8533_v28  ;;  %v195_v5 = vld [vmem:[%s15289_s1 + $0x2f8] sm:$0xff]  ;;  %v192_v10 = vld [vmem:[%s15289_s1 + $0x2e0] sm:$0xff]  ;;  %v194_v12 = vld [vmem:[%s15289_s1 + $0x2f0] sm:$0xff] }
  0x2f   :  { %v8549_v13 = vpack.c.bf16 %v195_v5, %v191_v4  ;;  %v197_v14 = vld [vmem:[%s15289_s1 + $0x308] sm:$0xff]  ;;  %v199_v17 = vld [vmem:[%s15289_s1 + $0x318] sm:$0xff]  ;;  %v8423_v19 = vpack.c.bf16 %v192_v10, %v188_v7  ;;  %v8551_v20 = vpack.c.bf16 %v194_v12, %v190_v11  ;;  %v196_v22 = vld [vmem:[%s15289_s1 + $0x300] sm:$0xff] }
  0x30   :  { %8408 = vmatpush1.bf16.msra.mxu0 %v8407_v34  ;;  %v201_v15 = vld [vmem:[%s15289_s1 + $0x328] sm:$0xff]  ;;  %v203_v18 = vld [vmem:[%s15289_s1 + $0x338] sm:$0xff]  ;;  %v200_v23 = vld [vmem:[%s15289_s1 + $0x320] sm:$0xff] }
  0x31   :  { %8536 = vmatpush1.bf16.msra.mxu1 %v8535_v35  ;;  %8410 = vmatprep.subr.bf16.mxu0 %v8409_v36  ;;  %v73_v16 = vld [vmem:[%s15288_s0 + $0x8] sm:$0xff]  ;;  %v8425_v21 = vpack.c.bf16 %v201_v15, %v197_v14  ;;  %v198_v24 = vld [vmem:[%s15289_s1 + $0x310] sm:$0xff]  ;;  %v8553_v25 = vpack.c.bf16 %v203_v18, %v199_v17  ;;  %v207_v29 = vld [vmem:[%s15289_s1 + $0x358] sm:$0xff]  ;;  %v8427_v31 = vpack.c.bf16 %v200_v23, %v196_v22 }
  0x32   :  { %8538 = vmatprep.subr.bf16.mxu1 %v8537_v40  ;;  %442 = vmatprep.mubr.f32.mxu0 %v73_v16  ;;  %v202_v26 = vld [vmem:[%s15289_s1 + $0x330] sm:$0xff]  ;;  %v205_v27 = vld [vmem:[%s15289_s1 + $0x348] sm:$0xff]  ;;  %v211_v30 = vld [vmem:[%s15289_s1 + $0x378] sm:$0xff] }
  0x33   :  { %656 = vmatprep.mubr.f32.mxu1 %v73_v16  ;;  %v209_v28 = vld [vmem:[%s15289_s1 + $0x368] sm:$0xff]  ;;  %v8555_v32 = vpack.c.bf16 %v202_v26, %v198_v24  ;;  %v204_v34 = vld [vmem:[%s15289_s1 + $0x340] sm:$0xff]  ;;  %v206_v36 = vld [vmem:[%s15289_s1 + $0x350] sm:$0xff]  ;;  %v8557_v37 = vpack.c.bf16 %v211_v30, %v207_v29 }
  0x34   :  { %8412 = vmatpush1.bf16.msra.mxu0 %v8411_v46  ;;  %v8429_v33 = vpack.c.bf16 %v209_v28, %v205_v27  ;;  %v208_v35 = vld [vmem:[%s15289_s1 + $0x360] sm:$0xff]  ;;  %v210_v38 = vld [vmem:[%s15289_s1 + $0x370] sm:$0xff]  ;;  %v213_v39 = vld [vmem:[%s15289_s1 + $0x388] sm:$0xff] }
  0x35   :  { %8540 = vmatpush1.bf16.msra.mxu1 %v8539_v47  ;;  %8414 = vmatprep.subr.bf16.mxu0 %v8413_v48  ;;  %v217_v40 = vld [vmem:[%s15289_s1 + $0x3a8] sm:$0xff]  ;;  %v215_v41 = vld [vmem:[%s15289_s1 + $0x398] sm:$0xff]  ;;  %v8431_v43 = vpack.c.bf16 %v208_v35, %v204_v34  ;;  %v8559_v44 = vpack.c.bf16 %v210_v38, %v206_v36  ;;  %v212_v46 = vld [vmem:[%s15289_s1 + $0x380] sm:$0xff] }
  0x36   :  { %8542 = vmatprep.subr.bf16.mxu1 %v8541_v52  ;;  %v219_v42 = vld [vmem:[%s15289_s1 + $0x3b8] sm:$0xff]  ;;  %v8433_v45 = vpack.c.bf16 %v217_v40, %v213_v39  ;;  %v216_v47 = vld [vmem:[%s15289_s1 + $0x3a0] sm:$0xff]  ;;  %v214_v48 = vld [vmem:[%s15289_s1 + $0x390] sm:$0xff] }
  0x37   :  { %v8561_v49 = vpack.c.bf16 %v219_v42, %v215_v41  ;;  %v218_v50 = vld [vmem:[%s15289_s1 + $0x3b0] sm:$0xff]  ;;  %v221_v51 = vld [vmem:[%s15289_s1 + $0x3c8] sm:$0xff]  ;;  %v223_v53 = vld [vmem:[%s15289_s1 + $0x3d8] sm:$0xff]  ;;  %v8435_v55 = vpack.c.bf16 %v216_v47, %v212_v46 }
  0x38   :  { %8416 = vmatpush1.bf16.msra.mxu0 %v8415_v58  ;;  %v225_v52 = vld [vmem:[%s15289_s1 + $0x3e8] sm:$0xff]  ;;  %v227_v54 = vld [vmem:[%s15289_s1 + $0x3f8] sm:$0xff]  ;;  %v8563_v56 = vpack.c.bf16 %v218_v50, %v214_v48  ;;  %v220_v58 = vld [vmem:[%s15289_s1 + $0x3c0] sm:$0xff] }
  0x39   :  { %8544 = vmatpush1.bf16.msra.mxu1 %v8543_v59  ;;  %8418 = vmatprep.subr.bf16.mxu0 %v8417_v60  ;;  %v8437_v57 = vpack.c.bf16 %v225_v52, %v221_v51  ;;  %v224_v59 = vld [vmem:[%s15289_s1 + $0x3e0] sm:$0xff]  ;;  %v222_v60 = vld [vmem:[%s15289_s1 + $0x3d0] sm:$0xff]  ;;  %v8565_v61 = vpack.c.bf16 %v227_v54, %v223_v53  ;;  %v229_v63 = vld [vmem:[%s15289_s1 + $0x408] sm:$0xff] }
  0x3a   :  { %8546 = vmatprep.subr.bf16.mxu1 %v8545_v0  ;;  %v226_v62 = vld [vmem:[%s15289_s1 + $0x3f0] sm:$0xff]  ;;  %v233_v0 = vld [vmem:[%s15289_s1 + $0x428] sm:$0xff]  ;;  %v231_v1 = vld [vmem:[%s15289_s1 + $0x418] sm:$0xff]  ;;  %v8439_v3 = vpack.c.bf16 %v224_v59, %v220_v58 }
  0x3b   :  { %v235_v2 = vld [vmem:[%s15289_s1 + $0x438] sm:$0xff]  ;;  %v8567_v4 = vpack.c.bf16 %v226_v62, %v222_v60  ;;  %v8441_v5 = vpack.c.bf16 %v233_v0, %v229_v63  ;;  %v232_v7 = vld [vmem:[%s15289_s1 + $0x420] sm:$0xff]  ;;  %v234_v10 = vld [vmem:[%s15289_s1 + $0x430] sm:$0xff] }
  0x3c   :  { %8420 = vmatpush1.bf16.msra.mxu0 %v8419_v6  ;;  %v228_v6 = vld [vmem:[%s15289_s1 + $0x400] sm:$0xff]  ;;  %v237_v11 = vld [vmem:[%s15289_s1 + $0x448] sm:$0xff]  ;;  %v243_v14 = vld [vmem:[%s15289_s1 + $0x478] sm:$0xff] }
  0x3d   :  { %8548 = vmatpush1.bf16.msra.mxu1 %v8547_v8  ;;  %8422 = vmatprep.subr.bf16.mxu0 %v8421_v9  ;;  %v230_v8 = vld [vmem:[%s15289_s1 + $0x410] sm:$0xff]  ;;  %v8569_v9 = vpack.c.bf16 %v235_v2, %v231_v1  ;;  %v241_v12 = vld [vmem:[%s15289_s1 + $0x468] sm:$0xff]  ;;  %v72_v15 = vld [vmem:[%s15288_s0] sm:$0xff]  ;;  %v8443_v16 = vpack.c.bf16 %v232_v7, %v228_v6 }
  0x3e   :  { %8550 = vmatprep.subr.bf16.mxu1 %v8549_v13  ;;  %v239_v13 = vld [vmem:[%s15289_s1 + $0x458] sm:$0xff]  ;;  %v8571_v17 = vpack.c.bf16 %v234_v10, %v230_v8  ;;  %v8445_v18 = vpack.c.bf16 %v241_v12, %v237_v11  ;;  %v242_v23 = vld [vmem:[%s15289_s1 + $0x470] sm:$0xff]  ;;  %v245_v24 = vld [vmem:[%s15289_s1 + $0x488] sm:$0xff] }
  0x3f   :  { %v8573_v22 = vpack.c.bf16 %v243_v14, %v239_v13  ;;  %v247_v26 = vld [vmem:[%s15289_s1 + $0x498] sm:$0xff]  ;;  %v244_v29 = vld [vmem:[%s15289_s1 + $0x480] sm:$0xff]  ;;  %v250_v34 = vld [vmem:[%s15289_s1 + $0x4b0] sm:$0xff] }
  0x40   :  { %8424 = vmatpush1.bf16.msra.mxu0 %v8423_v19  ;;  %v236_v19 = vld [vmem:[%s15289_s1 + $0x440] sm:$0xff]  ;;  %v251_v27 = vld [vmem:[%s15289_s1 + $0x4b8] sm:$0xff]  ;;  %v253_v35 = vld [vmem:[%s15289_s1 + $0x4c8] sm:$0xff] }
  0x41   :  { %8552 = vmatpush1.bf16.msra.mxu1 %v8551_v20  ;;  %8426 = vmatprep.subr.bf16.mxu0 %v8425_v21  ;;  %v240_v20 = vld [vmem:[%s15289_s1 + $0x460] sm:$0xff]  ;;  %v238_v21 = vld [vmem:[%s15289_s1 + $0x450] sm:$0xff]  ;;  %v8577_v36 = vpack.c.bf16 %v251_v27, %v247_v26  ;;  %v77_v38 = vld [vmem:[%s15288_s0 + $0x28] sm:$0xff] }
  0x42   :  { %8554 = vmatprep.subr.bf16.mxu1 %v8553_v25  ;;  %v249_v25 = vld [vmem:[%s15289_s1 + $0x4a8] sm:$0xff]  ;;  %v8447_v28 = vpack.c.bf16 %v240_v20, %v236_v19  ;;  %v248_v30 = vld [vmem:[%s15289_s1 + $0x4a0] sm:$0xff]  ;;  %v255_v40 = vld [vmem:[%s15289_s1 + $0x4d8] sm:$0xff] }
  0x43   :  { %v76_v39 = vld [vmem:[%s15288_s0 + $0x20] sm:$0xff]  ;;  %v259_v41 = vld [vmem:[%s15289_s1 + $0x4f8] sm:$0xff]  ;;  %v8451_v42 = vpack.c.bf16 %v248_v30, %v244_v29  ;;  %v254_v47 = vld [vmem:[%s15289_s1 + $0x4d0] sm:$0xff] }
  0x44   :  { %8428 = vmatpush1.bf16.msra.mxu0 %v8427_v31  ;;  %v8575_v31 = vpack.c.bf16 %v242_v23, %v238_v21  ;;  %v81_v48 = vld [vmem:[%s15288_s0 + $0x48] sm:$0xff]  ;;  %v8581_v50 = vpack.c.bf16 %v259_v41, %v255_v40  ;;  %v258_v51 = vld [vmem:[%s15289_s1 + $0x4f0] sm:$0xff]  ;;  %v263_v54 = vld [vmem:[%s15289_s1 + $0x518] sm:$0xff] }
  0x45   :  { %8556 = vmatpush1.bf16.msra.mxu1 %v8555_v32  ;;  %8430 = vmatprep.subr.bf16.mxu0 %v8429_v33  ;;  %v8449_v32 = vpack.c.bf16 %v249_v25, %v245_v24  ;;  %v246_v33 = vld [vmem:[%s15289_s1 + $0x490] sm:$0xff]  ;;  %v261_v52 = vld [vmem:[%s15289_s1 + $0x508] sm:$0xff]  ;;  %v8583_v59 = vpack.c.bf16 %v258_v51, %v254_v47  ;;  %v84_v63 = vld [vmem:[%s15288_s0 + $0x60] sm:$0xff] }
  0x46   :  { %8558 = vmatprep.subr.bf16.mxu1 %v8557_v37  ;;  %v257_v37 = vld [vmem:[%s15289_s1 + $0x4e8] sm:$0xff]  ;;  %v262_v62 = vld [vmem:[%s15289_s1 + $0x510] sm:$0xff]  ;;  %v268_v7 = vld [vmem:[%s15289_s1 + $0x540] sm:$0xff] }
  0x47   :  { %v8453_v46 = vpack.c.bf16 %v257_v37, %v253_v35  ;;  %v265_v53 = vld [vmem:[%s15289_s1 + $0x528] sm:$0xff]  ;;  %v266_v1 = vld [vmem:[%s15289_s1 + $0x530] sm:$0xff]  ;;  %v272_v11 = vld [vmem:[%s15289_s1 + $0x560] sm:$0xff] }
  0x48   :  { %8432 = vmatpush1.bf16.msra.mxu0 %v8431_v43  ;;  %v252_v43 = vld [vmem:[%s15289_s1 + $0x4c0] sm:$0xff]  ;;  %v85_v58 = vld [vmem:[%s15288_s0 + $0x68] sm:$0xff]  ;;  %v8457_v60 = vpack.c.bf16 %v265_v53, %v261_v52  ;;  %v270_v12 = vld [vmem:[%s15289_s1 + $0x550] sm:$0xff]  ;;  %v8463_v20 = vpack.c.bf16 %v272_v11, %v268_v7 }
  0x49   :  { %8560 = vmatpush1.bf16.msra.mxu1 %v8559_v44  ;;  %8434 = vmatprep.subr.bf16.mxu0 %v8433_v45  ;;  %v256_v44 = vld [vmem:[%s15289_s1 + $0x4e0] sm:$0xff]  ;;  %v8579_v45 = vpack.c.bf16 %v250_v34, %v246_v33  ;;  %v269_v2 = vld [vmem:[%s15289_s1 + $0x548] sm:$0xff]  ;;  %v283_v19 = vld [vmem:[%s15289_s1 + $0x5b8] sm:$0xff] }
  0x4a   :  { %8562 = vmatprep.subr.bf16.mxu1 %v8561_v49  ;;  %v80_v49 = vld [vmem:[%s15288_s0 + $0x40] sm:$0xff]  ;;  %v89_v8 = vld [vmem:[%s15288_s0 + $0x88] sm:$0xff]  ;;  %v278_v26 = vld [vmem:[%s15289_s1 + $0x590] sm:$0xff] }
  0x4b   :  { %v88_v13 = vld [vmem:[%s15288_s0 + $0x80] sm:$0xff]  ;;  %v282_v29 = vld [vmem:[%s15289_s1 + $0x5b0] sm:$0xff]  ;;  %v285_v30 = vld [vmem:[%s15289_s1 + $0x5c8] sm:$0xff] }
  0x4c   :  { %8436 = vmatpush1.bf16.msra.mxu0 %v8435_v55  ;;  %v267_v55 = vld [vmem:[%s15289_s1 + $0x538] sm:$0xff]  ;;  %v276_v21 = vld [vmem:[%s15289_s1 + $0x580] sm:$0xff]  ;;  %v8595_v37 = vpack.c.bf16 %v282_v29, %v278_v26  ;;  %v286_v40 = vld [vmem:[%s15289_s1 + $0x5d0] sm:$0xff] }
  0x4d   :  { %8564 = vmatpush1.bf16.msra.mxu1 %v8563_v56  ;;  %8438 = vmatprep.subr.bf16.mxu0 %v8437_v57  ;;  %v8455_v56 = vpack.c.bf16 %v256_v44, %v252_v43  ;;  %v260_v57 = vld [vmem:[%s15289_s1 + $0x500] sm:$0xff]  ;;  %v8585_v0 = vpack.c.bf16 %v267_v55, %v263_v54  ;;  %v291_v33 = vld [vmem:[%s15289_s1 + $0x5f8] sm:$0xff]  ;;  %v290_v43 = vld [vmem:[%s15289_s1 + $0x5f0] sm:$0xff] }
  0x4e   :  { %8566 = vmatprep.subr.bf16.mxu1 %v8565_v61  ;;  %v264_v61 = vld [vmem:[%s15289_s1 + $0x520] sm:$0xff]  ;;  %v293_v44 = vld [vmem:[%s15289_s1 + $0x608] sm:$0xff]  ;;  %v299_v47 = vld [vmem:[%s15289_s1 + $0x638] sm:$0xff] }
  0x4f   :  { %v8459_v6 = vpack.c.bf16 %v264_v61, %v260_v57  ;;  %v280_v25 = vld [vmem:[%s15289_s1 + $0x5a0] sm:$0xff]  ;;  %v294_v54 = vld [vmem:[%s15289_s1 + $0x610] sm:$0xff]  ;;  %v301_v57 = vld [vmem:[%s15289_s1 + $0x648] sm:$0xff] }
  0x50   :  { %8440 = vmatpush1.bf16.msra.mxu0 %v8439_v3  ;;  %v273_v3 = vld [vmem:[%s15289_s1 + $0x568] sm:$0xff]  ;;  %v92_v27 = vld [vmem:[%s15288_s0 + $0xa0] sm:$0xff]  ;;  %v8467_v34 = vpack.c.bf16 %v280_v25, %v276_v21  ;;  %v311_v7 = vld [vmem:[%s15289_s1 + $0x698] sm:$0xff] }
  0x51   :  { %8568 = vmatpush1.bf16.msra.mxu1 %v8567_v4  ;;  %8442 = vmatprep.subr.bf16.mxu0 %v8441_v5  ;;  %v271_v4 = vld [vmem:[%s15289_s1 + $0x558] sm:$0xff]  ;;  %v8461_v10 = vpack.c.bf16 %v273_v3, %v269_v2  ;;  %v284_v35 = vld [vmem:[%s15289_s1 + $0x5c0] sm:$0xff]  ;;  %v302_v2 = vld [vmem:[%s15289_s1 + $0x650] sm:$0xff] }
  0x52   :  { %8570 = vmatprep.subr.bf16.mxu1 %v8569_v9  ;;  %v275_v5 = vld [vmem:[%s15289_s1 + $0x578] sm:$0xff]  ;;  %v8587_v9 = vpack.c.bf16 %v266_v1, %v262_v62  ;;  %v96_v41 = vld [vmem:[%s15288_s0 + $0xc0] sm:$0x3]  ;;  %v318_v26 = vld [vmem:[%s15289_s1 + $0x6d0] sm:$0xff] }
  0x53   :  { %443 = vmatmul.mubr.f32.vlgmr.msra.gmra.mrb[0].mxu0 %v72_v15  ;;  %v8589_v14 = vpack.c.bf16 %v275_v5, %v271_v4  ;;  %v292_v52 = vld [vmem:[%s15289_s1 + $0x600] sm:$0xff]  ;;  %v306_v4 = vld [vmem:[%s15289_s1 + $0x670] sm:$0xff]  ;;  %v309_v5 = vld [vmem:[%s15289_s1 + $0x688] sm:$0xff] }
  0x54   :  { %8444 = vmatpush1.bf16.msra.mxu0 %v8443_v16  ;;  %657 = vmatmul.mubr.f32.vlgmr.msra.gmra.mrb[0].mxu1 %v72_v15  ;;  %v274_v15 = vld [vmem:[%s15289_s1 + $0x570] sm:$0xff]  ;;  %v277_v16 = vld [vmem:[%s15289_s1 + $0x588] sm:$0xff]  ;;  %v296_v53 = vld [vmem:[%s15289_s1 + $0x620] sm:$0xff] }
  0x55   :  { %8572 = vmatpush1.bf16.msra.mxu1 %v8571_v17  ;;  %8446 = vmatprep.subr.bf16.mxu0 %v8445_v18  ;;  %v281_v17 = vld [vmem:[%s15289_s1 + $0x5a8] sm:$0xff]  ;;  %v279_v18 = vld [vmem:[%s15289_s1 + $0x598] sm:$0xff]  ;;  %v8591_v23 = vpack.c.bf16 %v274_v15, %v270_v12  ;;  %v8475_v61 = vpack.c.bf16 %v296_v53, %v292_v52  ;;  %v304_v1 = vld [vmem:[%s15289_s1 + $0x660] sm:$0xff] }
  0x56   :  { %8574 = vmatprep.subr.bf16.mxu1 %v8573_v22  ;;  %448 = vmatprep.mubr.f32.mxu0 %v77_v38  ;;  %v93_v22 = vld [vmem:[%s15288_s0 + $0xa8] sm:$0xff]  ;;  %v8465_v24 = vpack.c.bf16 %v281_v17, %v277_v16  ;;  %v308_v12 = vld [vmem:[%s15289_s1 + $0x680] sm:$0xff]  ;;  %v314_v16 = vld [vmem:[%s15289_s1 + $0x6b0] sm:$0xff] }
  0x57   :  { %662 = vmatprep.mubr.f32.mxu1 %v77_v38  ;;  %449 = vmatmul.mubr.f32.gmra.mrb[2].mxu0 %v76_v39  ;;  %v317_v17 = vld [vmem:[%s15289_s1 + $0x6c8] sm:$0xff]  ;;  %v320_v25 = vld [vmem:[%s15289_s1 + $0x6e0] sm:$0xff]  ;;  %v338_v52 = vld [vmem:[%s15289_s1 + $0x770] sm:$0xff] }
  0x58   :  { %8448 = vmatpush1.bf16.msra.mxu0 %v8447_v28  ;;  %663 = vmatmul.mubr.f32.gmra.mrb[2].mxu1 %v76_v39  ;;  %v8593_v28 = vpack.c.bf16 %v283_v19, %v279_v18  ;;  %v288_v39 = vld [vmem:[%s15289_s1 + $0x5e0] sm:$0xff]  ;;  %v321_v18 = vld [vmem:[%s15289_s1 + $0x6e8] sm:$0xff]  ;;  %v319_v19 = vld [vmem:[%s15289_s1 + $0x6d8] sm:$0xff] }
  0x59   :  { %8576 = vmatpush1.bf16.msra.mxu1 %v8575_v31  ;;  %8450 = vmatprep.subr.bf16.mxu0 %v8449_v32  ;;  %v289_v31 = vld [vmem:[%s15289_s1 + $0x5e8] sm:$0xff]  ;;  %v287_v32 = vld [vmem:[%s15289_s1 + $0x5d8] sm:$0xff] }
  0x5a   :  { %8578 = vmatprep.subr.bf16.mxu1 %v8577_v36  ;;  %454 = vmatprep.mubr.f32.mxu0 %v81_v48  ;;  %v97_v36 = vld [vmem:[%s15288_s0 + $0xc8] sm:$0x3]  ;;  %v8469_v38 = vpack.c.bf16 %v289_v31, %v285_v30  ;;  %v327_v31 = vld [vmem:[%s15289_s1 + $0x718] sm:$0xff] }
  0x5b   :  { %668 = vmatprep.mubr.f32.mxu1 %v81_v48  ;;  %455 = vmatmul.mubr.f32.gmra.mrb[4].mxu0 %v80_v49  ;;  %v8471_v48 = vpack.c.bf16 %v288_v39, %v284_v35  ;;  %v325_v29 = vld [vmem:[%s15289_s1 + $0x708] sm:$0xff] }
  0x5c   :  { %8452 = vmatpush1.bf16.msra.mxu0 %v8451_v42  ;;  %669 = vmatmul.mubr.f32.gmra.mrb[4].mxu1 %v80_v49  ;;  %v8597_v42 = vpack.c.bf16 %v291_v33, %v287_v32  ;;  %v75_v49 = vld [vmem:[%s15288_s0 + $0x18] sm:$0xff]  ;;  %v329_v30 = vld [vmem:[%s15289_s1 + $0x728] sm:$0xff] }
  0x5d   :  { %8580 = vmatpush1.bf16.msra.mxu1 %v8579_v45  ;;  %8454 = vmatprep.subr.bf16.mxu0 %v8453_v46  ;;  %v297_v45 = vld [vmem:[%s15289_s1 + $0x628] sm:$0xff]  ;;  %v295_v46 = vld [vmem:[%s15289_s1 + $0x618] sm:$0xff]  ;;  %v8489_v35 = vpack.c.bf16 %v329_v30, %v325_v29  ;;  %v90_v29 = vld [vmem:[%s15288_s0 + $0x90] sm:$0xff] }
  0x5e   :  { %8582 = vmatprep.subr.bf16.mxu1 %v8581_v50  ;;  %460 = vmatprep.mubr.f32.mxu0 %v85_v58  ;;  %v8599_v50 = vpack.c.bf16 %v290_v43, %v286_v40  ;;  %v8473_v51 = vpack.c.bf16 %v297_v45, %v293_v44  ;;  %v8601_v55 = vpack.c.bf16 %v299_v47, %v295_v46  ;;  %v331_v32 = vld [vmem:[%s15289_s1 + $0x738] sm:$0xff]  ;;  %v330_v40 = vld [vmem:[%s15289_s1 + $0x730] sm:$0xff]  ;;  %v341_v53 = vld [vmem:[%s15289_s1 + $0x788] sm:$0xff] }
  0x5f   :  { %674 = vmatprep.mubr.f32.mxu1 %v85_v58  ;;  %461 = vmatmul.mubr.f32.gmra.mrb[6].mxu0 %v84_v63  ;;  %v305_v58 = vld [vmem:[%s15289_s1 + $0x668] sm:$0xff]  ;;  %v8617_v39 = vpack.c.bf16 %v331_v32, %v327_v31  ;;  %v335_v43 = vld [vmem:[%s15289_s1 + $0x758] sm:$0xff]  ;;  %v94_v31 = vld [vmem:[%s15288_s0 + $0xb0] sm:$0xff] }
  0x60   :  { %8456 = vmatpush1.bf16.msra.mxu0 %v8455_v56  ;;  %675 = vmatmul.mubr.f32.gmra.mrb[6].mxu1 %v84_v63  ;;  %v298_v56 = vld [vmem:[%s15289_s1 + $0x630] sm:$0xff]  ;;  %v8477_v63 = vpack.c.bf16 %v305_v58, %v301_v57  ;;  %v339_v44 = vld [vmem:[%s15289_s1 + $0x778] sm:$0xff] }
  0x61   :  { %8584 = vmatpush1.bf16.msra.mxu1 %v8583_v59  ;;  %8458 = vmatprep.subr.bf16.mxu0 %v8457_v60  ;;  %v303_v59 = vld [vmem:[%s15289_s1 + $0x658] sm:$0xff]  ;;  %v8603_v62 = vpack.c.bf16 %v298_v56, %v294_v54  ;;  %v345_v54 = vld [vmem:[%s15289_s1 + $0x7a8] sm:$0xff] }
  0x62   :  { %8586 = vmatprep.subr.bf16.mxu1 %v8585_v0  ;;  %466 = vmatprep.mubr.f32.mxu0 %v89_v8  ;;  %v307_v60 = vld [vmem:[%s15289_s1 + $0x678] sm:$0xff]  ;;  %v300_v0 = vld [vmem:[%s15289_s1 + $0x640] sm:$0xff] }
  0x63   :  { %680 = vmatprep.mubr.f32.mxu1 %v89_v8  ;;  %467 = vmatmul.mubr.f32.gmra.mrb[8].mxu0 %v88_v13  ;;  %v8605_v3 = vpack.c.bf16 %v307_v60, %v303_v59  ;;  %v315_v8 = vld [vmem:[%s15289_s1 + $0x6b8] sm:$0xff]  ;;  %v8497_v59 = vpack.c.bf16 %v345_v54, %v341_v53  ;;  %v340_v60 = vld [vmem:[%s15289_s1 + $0x780] sm:$0xff]  ;;  %v1824_v53 = vld [vmem:[%s15291_s3 + $0xa8] sm:$0xff] }
  0x64   :  { %8460 = vmatpush1.bf16.msra.mxu0 %v8459_v6  ;;  %681 = vmatmul.mubr.f32.gmra.mrb[8].mxu1 %v88_v13  ;;  %v313_v6 = vld [vmem:[%s15289_s1 + $0x6a8] sm:$0xff]  ;;  %v312_v13 = vld [vmem:[%s15289_s1 + $0x6a0] sm:$0xff]  ;;  %v8609_v15 = vpack.c.bf16 %v315_v8, %v311_v7  ;;  %v347_v56 = vld [vmem:[%s15289_s1 + $0x7b8] sm:$0xff] }
  0x65   :  { %8588 = vmatpush1.bf16.msra.mxu1 %v8587_v9  ;;  %8462 = vmatprep.subr.bf16.mxu0 %v8461_v10  ;;  %v8479_v9 = vpack.c.bf16 %v304_v1, %v300_v0  ;;  %v8607_v10 = vpack.c.bf16 %v306_v4, %v302_v2  ;;  %v8481_v11 = vpack.c.bf16 %v313_v6, %v309_v5  ;;  %v346_v0 = vld [vmem:[%s15289_s1 + $0x7b0] sm:$0xff]  ;;  %v349_v1 = vld [vmem:[%s15289_s1 + $0x7c8] sm:$0xff]  ;;  %v355_v4 = vld [vmem:[%s15289_s1 + $0x7f8] sm:$0xff] }
  0x66   :  { %8590 = vmatprep.subr.bf16.mxu1 %v8589_v14  ;;  %472 = vmatprep.mubr.f32.mxu0 %v93_v22  ;;  %v310_v14 = vld [vmem:[%s15289_s1 + $0x690] sm:$0xff]  ;;  %v8483_v21 = vpack.c.bf16 %v312_v13, %v308_v12  ;;  %v353_v2 = vld [vmem:[%s15289_s1 + $0x7e8] sm:$0xff]  ;;  %v348_v8 = vld [vmem:[%s15289_s1 + $0x7c0] sm:$0xff] }
  0x67   :  { %686 = vmatprep.mubr.f32.mxu1 %v93_v22  ;;  %473 = vmatmul.mubr.f32.gmra.mrb[10].mxu0 %v92_v27  ;;  %v8611_v22 = vpack.c.bf16 %v314_v16, %v310_v14  ;;  %v8501_v7 = vpack.c.bf16 %v353_v2, %v349_v1  ;;  %v354_v12 = vld [vmem:[%s15289_s1 + $0x7f0] sm:$0xff]  ;;  %v1819_v13 = vld [vmem:[%s15291_s3 + $0x80] sm:$0xff]  ;;  %v1820_v14 = vld [vmem:[%s15291_s3 + $0x88] sm:$0xff] }
  0x68   :  { %8464 = vmatpush1.bf16.msra.mxu0 %v8463_v20  ;;  %687 = vmatmul.mubr.f32.gmra.mrb[10].mxu1 %v92_v27  ;;  %v323_v20 = vld [vmem:[%s15289_s1 + $0x6f8] sm:$0xff]  ;;  %v1852_v16 = vld [vmem:[%s15291_s3 + $0x188] sm:$0xff]  ;;  %v1855_v54 = vld [vmem:[%s15291_s3 + $0x1a0] sm:$0xff] }
  0x69   :  { %8592 = vmatpush1.bf16.msra.mxu1 %v8591_v23  ;;  %8466 = vmatprep.subr.bf16.mxu0 %v8465_v24  ;;  %v8485_v23 = vpack.c.bf16 %v321_v18, %v317_v17  ;;  %v316_v24 = vld [vmem:[%s15289_s1 + $0x6c0] sm:$0xff]  ;;  %v8613_v27 = vpack.c.bf16 %v323_v20, %v319_v19  ;;  %v8633_v19 = vpack.c.bf16 %v1820_v14, %v1819_v13  ;;  %v95_v30 = vld [vmem:[%s15288_s0 + $0xb8] sm:$0xff]  ;;  %v1857_v2 = vld [vmem:[%s15291_s3 + $0x1b0] sm:$0xff] }
  0x6a   :  { %8594 = vmatprep.subr.bf16.mxu1 %v8593_v28  ;;  %478 = vmatprep.mubr.f32.mxu0 %v97_v36  ;;  %v322_v28 = vld [vmem:[%s15289_s1 + $0x6f0] sm:$0xff]  ;;  %v8487_v33 = vpack.c.bf16 %v320_v25, %v316_v24  ;;  %v83_v24 = vld [vmem:[%s15288_s0 + $0x58] sm:$0xff]  ;;  %v1828_v13 = vld [vmem:[%s15291_s3 + $0xc8] sm:$0xff] }
  0x6b   :  { %692 = vmatprep.mubr.f32.mxu1 %v97_v36  ;;  %479 = vmatmul.mubr.f32.gmra.mrb[12].mxu0 %v96_v41  ;;  %v324_v36 = vld [vmem:[%s15289_s1 + $0x700] sm:$0xff]  ;;  %v82_v25 = vld [vmem:[%s15288_s0 + $0x50] sm:$0xff]  ;;  %v99_v32 = vld [vmem:[%s15288_s0 + $0xd8] sm:$0x3] }
  0x6c   :  { %8468 = vmatpush1.bf16.msra.mxu0 %v8467_v34  ;;  %693 = vmatmul.mubr.f32.gmra.mrb[12].mxu1 %v96_v41  ;;  %v8615_v34 = vpack.c.bf16 %v322_v28, %v318_v26  ;;  %v333_v41 = vld [vmem:[%s15289_s1 + $0x748] sm:$0xff]  ;;  %v87_v26 = vld [vmem:[%s15288_s0 + $0x78] sm:$0xff]  ;;  %v1859_v14 = vld [vmem:[%s15291_s3 + $0x1c0] sm:$0xff] }
  0x6d   :  { %8596 = vmatpush1.bf16.msra.mxu1 %v8595_v37  ;;  %8470 = vmatprep.subr.bf16.mxu0 %v8469_v38  ;;  %v328_v37 = vld [vmem:[%s15289_s1 + $0x720] sm:$0xff]  ;;  %v326_v38 = vld [vmem:[%s15289_s1 + $0x710] sm:$0xff]  ;;  %v91_v28 = vld [vmem:[%s15288_s0 + $0x98] sm:$0xff] }
  0x6e   :  { %8598 = vmatprep.subr.bf16.mxu1 %v8597_v42  ;;  %549 = vmatprep.mubr.f32.mxu0 %v75_v49  ;;  %v337_v42 = vld [vmem:[%s15289_s1 + $0x768] sm:$0xff]  ;;  %v8491_v45 = vpack.c.bf16 %v328_v37, %v324_v36  ;;  %v8619_v46 = vpack.c.bf16 %v330_v40, %v326_v38  ;;  %v1835_v36 = vld [vmem:[%s15291_s3 + $0x100] sm:$0xff]  ;;  %v1821_v40 = vld [vmem:[%s15291_s3 + $0x90] sm:$0xff] }
  0x6f   :  { %763 = vmatprep.mubr.f32.mxu1 %v75_v49  ;;  %v8493_v47 = vpack.c.bf16 %v337_v42, %v333_v41  ;;  %v336_v49 = vld [vmem:[%s15289_s1 + $0x760] sm:$0xff]  ;;  %v1836_v38 = vld [vmem:[%s15291_s3 + $0x108] sm:$0xff]  ;;  %v1822_v41 = vld [vmem:[%s15291_s3 + $0x98] sm:$0xff] }
  0x70   :  { %8472 = vmatpush1.bf16.msra.mxu0 %v8471_v48  ;;  %v332_v48 = vld [vmem:[%s15289_s1 + $0x740] sm:$0xff]  ;;  %v1853_v42 = vld [vmem:[%s15291_s3 + $0x190] sm:$0xff]  ;;  %v1826_v1 = vld [vmem:[%s15291_s3 + $0xb8] sm:$0xff] }
  0x71   :  { %8600 = vmatpush1.bf16.msra.mxu1 %v8599_v50  ;;  %8474 = vmatprep.subr.bf16.mxu0 %v8473_v51  ;;  %v334_v50 = vld [vmem:[%s15289_s1 + $0x750] sm:$0xff]  ;;  %v8621_v51 = vpack.c.bf16 %v339_v44, %v335_v43  ;;  %v8495_v57 = vpack.c.bf16 %v336_v49, %v332_v48  ;;  %v8637_v43 = vpack.c.bf16 %v1822_v41, %v1821_v40  ;;  %v1854_v44 = vld [vmem:[%s15291_s3 + $0x198] sm:$0xff]  ;;  %v1864_v40 = vld [vmem:[%s15291_s3 + $0x1e8] sm:$0xff] }
  0x72   :  { %8602 = vmatprep.subr.bf16.mxu1 %v8601_v55  ;;  %v343_v55 = vld [vmem:[%s15289_s1 + $0x798] sm:$0xff]  ;;  %v8623_v58 = vpack.c.bf16 %v338_v52, %v334_v50  ;;  %v1837_v49 = vld [vmem:[%s15291_s3 + $0x110] sm:$0xff]  ;;  %v1823_v52 = vld [vmem:[%s15291_s3 + $0xa0] sm:$0xff] }
  0x73   :  { %v1838_v50 = vld [vmem:[%s15291_s3 + $0x118] sm:$0xff] }
  0x74   :  { %8476 = vmatpush1.bf16.msra.mxu0 %v8475_v61  ;;  %v344_v61 = vld [vmem:[%s15289_s1 + $0x7a0] sm:$0xff] }
  0x75   :  { %8604 = vmatpush1.bf16.msra.mxu1 %v8603_v62  ;;  %8478 = vmatprep.subr.bf16.mxu0 %v8477_v63  ;;  %v342_v62 = vld [vmem:[%s15289_s1 + $0x790] sm:$0xff]  ;;  %v8625_v63 = vpack.c.bf16 %v347_v56, %v343_v55  ;;  %v8499_v5 = vpack.c.bf16 %v344_v61, %v340_v60  ;;  %v8641_v55 = vpack.c.bf16 %v1824_v53, %v1823_v52  ;;  %v1856_v56 = vld [vmem:[%s15291_s3 + $0x1a8] sm:$0xff]  ;;  %v1839_v60 = vld [vmem:[%s15291_s3 + $0x120] sm:$0xff] }
  0x76   :  { %8606 = vmatprep.subr.bf16.mxu1 %v8605_v3  ;;  %v351_v3 = vld [vmem:[%s15289_s1 + $0x7d8] sm:$0xff]  ;;  %v8627_v6 = vpack.c.bf16 %v346_v0, %v342_v62  ;;  %v1840_v61 = vld [vmem:[%s15291_s3 + $0x128] sm:$0xff]  ;;  %v1825_v0 = vld [vmem:[%s15291_s3 + $0xb0] sm:$0xff] }
  0x77   :  { %v1866_v52 = vld [vmem:[%s15291_s3 + $0x1f8] sm:$0xff]  ;;  %v1817_v53 = vld [vmem:[%s15291_s3 + $0x70] sm:$0xff] }
  0x78   :  { %8480 = vmatpush1.bf16.msra.mxu0 %v8479_v9  ;;  %v352_v9 = vld [vmem:[%s15289_s1 + $0x7e0] sm:$0xff] }
  0x79   :  { %8608 = vmatpush1.bf16.msra.mxu1 %v8607_v10  ;;  %8482 = vmatprep.subr.bf16.mxu0 %v8481_v11  ;;  %v350_v10 = vld [vmem:[%s15289_s1 + $0x7d0] sm:$0xff]  ;;  %v8629_v11 = vpack.c.bf16 %v355_v4, %v351_v3  ;;  %v8503_v17 = vpack.c.bf16 %v352_v9, %v348_v8  ;;  %v8645_v3 = vpack.c.bf16 %v1826_v1, %v1825_v0  ;;  %v1858_v4 = vld [vmem:[%s15291_s3 + $0x1b8] sm:$0xff]  ;;  %v7138_v0 = vld [vmem:[%s15291_s3 + $0x388] sm:$0xff]  ;;  %v358_v1 = vlaneseq }
  0x7a   :  { %8610 = vmatprep.subr.bf16.mxu1 %v8609_v15  ;;  %v1851_v15 = vld [vmem:[%s15291_s3 + $0x180] sm:$0xff]  ;;  %v8631_v18 = vpack.c.bf16 %v354_v12, %v350_v10  ;;  %v1841_v8 = vld [vmem:[%s15291_s3 + $0x130] sm:$0xff]  ;;  %v1842_v10 = vld [vmem:[%s15291_s3 + $0x138] sm:$0xff] }
  0x7b   :  { %v8665_v20 = vpack.c.bf16 %v1852_v16, %v1851_v15  ;;  %v1827_v12 = vld [vmem:[%s15291_s3 + $0xc0] sm:$0xff]  ;;  %v1860_v16 = vld [vmem:[%s15291_s3 + $0x1c8] sm:$0xff] }
  0x7c   :  { %8484 = vmatpush1.bf16.msra.mxu0 %v8483_v21  ;;  %v74_v21 = vld [vmem:[%s15288_s0 + $0x10] sm:$0xff]  ;;  %v8649_v15 = vpack.c.bf16 %v1828_v13, %v1827_v12  ;;  %v56_v13 = vld [vmem:[%s15297_s9 + $0x20] sm:$0x1f] }
  0x7d   :  { %8612 = vmatpush1.bf16.msra.mxu1 %v8611_v22  ;;  %8486 = vmatprep.subr.bf16.mxu0 %v8485_v23  ;;  %v79_v22 = vld [vmem:[%s15288_s0 + $0x38] sm:$0xff]  ;;  %v78_v23 = vld [vmem:[%s15288_s0 + $0x30] sm:$0xff] }
  0x7e   :  { %8614 = vmatprep.subr.bf16.mxu1 %v8613_v27  ;;  %v86_v27 = vld [vmem:[%s15288_s0 + $0x70] sm:$0xff] }
  0x80   :  { %8488 = vmatpush1.bf16.msra.mxu0 %v8487_v33  ;;  %v98_v33 = vld [vmem:[%s15288_s0 + $0xd0] sm:$0x3]  ;;  %s7076_s0 = sshll.u32 %s9356_s23, 4  ;;  %s7077_s0 = int_to_ptr.vmem [resolvable:$true] %s7076_s0 }
  0x81   :  { %8616 = vmatpush1.bf16.msra.mxu1 %v8615_v34  ;;  %8490 = vmatprep.subr.bf16.mxu0 %v8489_v35  ;;  %v1803_v34 = vld [vmem:[%s15291_s3] sm:$0xff]  ;;  %v1804_v35 = vld [vmem:[%s15291_s3 + $0x8] sm:$0xff]  ;;  %p9332_p6 = scmp.lt.s32.totalorder %s7077_s0, %s7077_s0 }
  0x82   :  { %8618 = vmatprep.subr.bf16.mxu1 %v8617_v39  ;;  %v8635_v37 = vpack.c.bf16 %v1804_v35, %v1803_v34  ;;  %v8667_v39 = vpack.c.bf16 %v1836_v38, %v1835_v36  ;;  %v1846_v34 = vld [vmem:[%s15291_s3 + $0x158] sm:$0xff]  ;;  %v1831_v36 = vld [vmem:[%s15291_s3 + $0xe0] sm:$0xff] }
  0x83   :  { %v1863_v38 = vld [vmem:[%s15291_s3 + $0x1e0] sm:$0xff] }
  0x84   :  { %8492 = vmatpush1.bf16.msra.mxu0 %v8491_v45  ;;  %v1805_v45 = vld [vmem:[%s15291_s3 + $0x10] sm:$0xff]  ;;  %v8689_v41 = vpack.c.bf16 %v1864_v40, %v1863_v38 }
  0x85   :  { %8620 = vmatpush1.bf16.msra.mxu1 %v8619_v46  ;;  %8494 = vmatprep.subr.bf16.mxu0 %v8493_v47  ;;  %v1806_v46 = vld [vmem:[%s15291_s3 + $0x18] sm:$0xff]  ;;  %v8669_v47 = vpack.c.bf16 %v1854_v44, %v1853_v42  ;;  %v1815_v42 = vld [vmem:[%s15291_s3 + $0x60] sm:$0xff] }
  0x86   :  { %8622 = vmatprep.subr.bf16.mxu1 %v8621_v51  ;;  %v8639_v48 = vpack.c.bf16 %v1806_v46, %v1805_v45  ;;  %v8671_v51 = vpack.c.bf16 %v1838_v50, %v1837_v49  ;;  %v1847_v44 = vld [vmem:[%s15291_s3 + $0x160] sm:$0xff]  ;;  %v1848_v46 = vld [vmem:[%s15291_s3 + $0x168] sm:$0xff]  ;;  %v1834_v49 = vld [vmem:[%s15291_s3 + $0xf8] sm:$0xff] }
  0x87   :  { %v1865_v50 = vld [vmem:[%s15291_s3 + $0x1f0] sm:$0xff] }
  0x88   :  { %8496 = vmatpush1.bf16.msra.mxu0 %v8495_v57  ;;  %v1807_v57 = vld [vmem:[%s15291_s3 + $0x20] sm:$0xff] }
  0x89   :  { %8624 = vmatpush1.bf16.msra.mxu1 %v8623_v58  ;;  %8498 = vmatprep.subr.bf16.mxu0 %v8497_v59  ;;  %v8673_v58 = vpack.c.bf16 %v1856_v56, %v1855_v54  ;;  %v1808_v59 = vld [vmem:[%s15291_s3 + $0x28] sm:$0xff]  ;;  %v1818_v54 = vld [vmem:[%s15291_s3 + $0x78] sm:$0xff] }
  0x8a   :  { %8626 = vmatprep.subr.bf16.mxu1 %v8625_v63  ;;  %v8643_v62 = vpack.c.bf16 %v1808_v59, %v1807_v57  ;;  %v8675_v63 = vpack.c.bf16 %v1840_v61, %v1839_v60  ;;  %v8663_v56 = vpack.c.bf16 %v1818_v54, %v1817_v53  ;;  %v1849_v57 = vld [vmem:[%s15291_s3 + $0x170] sm:$0xff]  ;;  %v7105_v60 = vld [vmem:[%s15291_s3 + $0x280] sm:$0xff]  ;;  %v7106_v61 = vld [vmem:[%s15291_s3 + $0x288] sm:$0xff] }
  0x8c   :  { %8500 = vmatpush1.bf16.msra.mxu0 %v8499_v5  ;;  %v8677_v5 = vpack.c.bf16 %v1858_v4, %v1857_v2 }
  0x8d   :  { %8628 = vmatpush1.bf16.msra.mxu1 %v8627_v6  ;;  %8502 = vmatprep.subr.bf16.mxu0 %v8501_v7  ;;  %v1809_v6 = vld [vmem:[%s15291_s3 + $0x30] sm:$0xff]  ;;  %v1810_v7 = vld [vmem:[%s15291_s3 + $0x38] sm:$0xff] }
  0x8e   :  { %8630 = vmatprep.subr.bf16.mxu1 %v8629_v11  ;;  %v8647_v9 = vpack.c.bf16 %v1810_v7, %v1809_v6  ;;  %v8679_v11 = vpack.c.bf16 %v1842_v10, %v1841_v8  ;;  %v10483_v7 = vld [vmem:[%s15297_s9] sm:$0x1f]  ;;  %v10488_v8 = vld [vmem:[%s15297_s9 + $0x8] sm:$0x1f]  ;;  %v10498_v10 = vld [vmem:[%s15297_s9 + $0x18] sm:$0x1f] }
  0x90   :  { %8504 = vmatpush1.bf16.msra.mxu0 %v8503_v17  ;;  %v1811_v17 = vld [vmem:[%s15291_s3 + $0x40] sm:$0xff] }
  0x91   :  { %8632 = vmatpush1.bf16.msra.mxu1 %v8631_v18  ;;  %8634 = vmatprep.subr.bf16.mxu0 %v8633_v19  ;;  %v1812_v18 = vld [vmem:[%s15291_s3 + $0x48] sm:$0xff]  ;;  %v8681_v19 = vpack.c.bf16 %v1860_v16, %v1859_v14  ;;  %v58_v16 = vld [vmem:[%s15297_s9 + $0x30] sm:$0x1f] }
  0x92   :  { %8666 = vmatprep.subr.bf16.mxu1 %v8665_v20  ;;  %v8651_v20 = vpack.c.bf16 %v1812_v18, %v1811_v17  ;;  %v59_v17 = vld [vmem:[%s15297_s9 + $0x38] sm:$0x1f]  ;;  %v1430_v18 = vcombine.low %v10483_v7, %v10488_v8 }
  0x93   :  { %550 = vmatmul.mubr.f32.vlgmr.msra.gmra.mrb[0].mxu0 %v74_v21 }
  0x94   :  { %764 = vmatmul.mubr.f32.vlgmr.msra.gmra.mrb[0].mxu1 %v74_v21  ;;  %555 = vmatprep.mubr.f32.mxu0 %v79_v22  ;;  %v1843_v21 = vld [vmem:[%s15291_s3 + $0x140] sm:$0xff] }
  0x95   :  { %769 = vmatprep.mubr.f32.mxu1 %v79_v22  ;;  %8636 = vmatpush3.bf16.msra.mxu0 %v8635_v37  ;;  %v1844_v22 = vld [vmem:[%s15291_s3 + $0x148] sm:$0xff] }
  0x96   :  { %8668 = vmatpush3.bf16.msra.mxu1 %v8667_v39  ;;  %8638 = vmatprep.subr.bf16.mxu0 %v8637_v43  ;;  %v1832_v37 = vld [vmem:[%s15291_s3 + $0xe8] sm:$0xff] }
  0x97   :  { %556 = vmatmul.mubr.f32.gmra.mrb[2].mxu0 %v78_v23  ;;  %8670 = vmatprep.subr.bf16.mxu1 %v8669_v47  ;;  %v8657_v39 = vpack.c.bf16 %v1832_v37, %v1831_v36  ;;  %v1816_v43 = vld [vmem:[%s15291_s3 + $0x68] sm:$0xff]  ;;  %v8691_v47 = vpack.c.bf16 %v1848_v46, %v1847_v44  ;;  %v71_v36 = vld [vmem:[%s15297_s9 + $0x98] sm:$0x1f] }
  0x98   :  { %770 = vmatmul.mubr.f32.gmra.mrb[2].mxu1 %v78_v23  ;;  %561 = vmatprep.mubr.f32.mxu0 %v83_v24  ;;  %v8683_v23 = vpack.c.bf16 %v1844_v22, %v1843_v21  ;;  %v8659_v45 = vpack.c.bf16 %v1816_v43, %v1815_v42  ;;  %v60_v21 = vld [vmem:[%s15297_s9 + $0x40] sm:$0x1f]  ;;  %v61_v22 = vld [vmem:[%s15297_s9 + $0x48] sm:$0x1f] }
  0x99   :  { %775 = vmatprep.mubr.f32.mxu1 %v83_v24  ;;  %8640 = vmatpush3.bf16.msra.mxu0 %v8639_v48  ;;  %v1829_v24 = vld [vmem:[%s15291_s3 + $0xd0] sm:$0xff]  ;;  %v1546_v37 = vcombine.low %v60_v21, %v61_v22 }
  0x9a   :  { %8672 = vmatpush3.bf16.msra.mxu1 %v8671_v51  ;;  %8642 = vmatprep.subr.bf16.mxu0 %v8641_v55  ;;  %v1833_v48 = vld [vmem:[%s15291_s3 + $0xf0] sm:$0xff]  ;;  %v8693_v55 = vpack.c.bf16 %v1866_v52, %v1865_v50  ;;  %v1547_v52 = vcombine.high %v60_v21, %v61_v22 }
  0x9b   :  { %562 = vmatmul.mubr.f32.gmra.mrb[4].mxu0 %v82_v25  ;;  %8674 = vmatprep.subr.bf16.mxu1 %v8673_v58  ;;  %v8661_v51 = vpack.c.bf16 %v1834_v49, %v1833_v48  ;;  %v1850_v58 = vld [vmem:[%s15291_s3 + $0x178] sm:$0xff] }
  0x9c   :  { %776 = vmatmul.mubr.f32.gmra.mrb[4].mxu1 %v82_v25  ;;  %567 = vmatprep.mubr.f32.mxu0 %v87_v26  ;;  %v1830_v25 = vld [vmem:[%s15291_s3 + $0xd8] sm:$0xff]  ;;  %v8695_v59 = vpack.c.bf16 %v1850_v58, %v1849_v57 }
  0x9d   :  { %781 = vmatprep.mubr.f32.mxu1 %v87_v26  ;;  %8644 = vmatpush3.bf16.msra.mxu0 %v8643_v62  ;;  %v1861_v26 = vld [vmem:[%s15291_s3 + $0x1d0] sm:$0xff]  ;;  %v7137_v62 = vld [vmem:[%s15291_s3 + $0x380] sm:$0xff] }
  0x9e   :  { %8676 = vmatpush3.bf16.msra.mxu1 %v8675_v63  ;;  %8646 = vmatprep.subr.bf16.mxu0 %v8645_v3  ;;  %v8697_v63 = vpack.c.bf16 %v7106_v61, %v7105_v60  ;;  %v8729_v2 = vpack.c.bf16 %v7138_v0, %v7137_v62  ;;  %v9354_v3 = vmov 1966171168  }
  0x9f   :  { %568 = vmatmul.mubr.f32.gmra.mrb[6].mxu0 %v86_v27  ;;  %8678 = vmatprep.subr.bf16.mxu1 %v8677_v5  ;;  %v925_v4 = vunpack.c.l.s4 %v9354_v3  ;;  %v10478_v5 = vshrl.u32 %v358_v1, 7  ;;  %v1431_v1 = vcombine.high %v10483_v7, %v10488_v8 }
  0xa0   :  { %782 = vmatmul.mubr.f32.gmra.mrb[6].mxu1 %v86_v27  ;;  %573 = vmatprep.mubr.f32.mxu0 %v91_v28  ;;  %v8653_v27 = vpack.c.bf16 %v1830_v25, %v1829_v24  ;;  %v63_v24 = vld [vmem:[%s15297_s9 + $0x58] sm:$0x1f]  ;;  %v64_v25 = vld [vmem:[%s15297_s9 + $0x60] sm:$0x1f] }
  0xa1   :  { %787 = vmatprep.mubr.f32.mxu1 %v91_v28  ;;  %8648 = vmatpush3.bf16.msra.mxu0 %v8647_v9  ;;  %v1862_v28 = vld [vmem:[%s15291_s3 + $0x1d8] sm:$0xff]  ;;  %15511 = vst [vmem:[#allocation9_spill] sm:$0xff] %v10478_v5  ;;  %v926_v6 = vunpack.c.0.s8 %v925_v4  ;;  %v10493_v9 = vld [vmem:[%s15297_s9 + $0x10] sm:$0x1f]  ;;  %v15302_v12 = vsub.s32 2, %v10478_v5  ;;  %v15301_v40 = vsub.s32 1, %v10478_v5 }
  0xa2   :  { %8680 = vmatpush3.bf16.msra.mxu1 %v8679_v11  ;;  %8650 = vmatprep.subr.bf16.mxu0 %v8649_v15  ;;  %v15303_v11 = vsub.s32 0, %v10478_v5  ;;  %v57_v15 = vld [vmem:[%s15297_s9 + $0x28] sm:$0x1f]  ;;  %v15300_v44 = vsub.s32 3, %v10478_v5 }
  0xa3   :  { %574 = vmatmul.mubr.f32.gmra.mrb[8].mxu0 %v90_v29  ;;  %8682 = vmatprep.subr.bf16.mxu1 %v8681_v19  ;;  %v10506_v14 = vsub.s32 %v926_v6, %v10478_v5  ;;  %v1432_v19 = vcombine.low %v10493_v9, %v10498_v10  ;;  %v1489_v50 = vcombine.high %v56_v13, %v57_v15  ;;  %v10823_v5 = vld [vmem:[%s15291_s3 + $0x2b0] sm:$0xff] }
  0xa4   :  { %788 = vmatmul.mubr.f32.gmra.mrb[8].mxu1 %v90_v29  ;;  %579 = vmatprep.mubr.f32.mxu0 %v95_v30  ;;  %v8685_v29 = vpack.c.bf16 %v1862_v28, %v1861_v26  ;;  %v65_v26 = vld [vmem:[%s15297_s9 + $0x68] sm:$0x1f]  ;;  %v67_v28 = vld [vmem:[%s15297_s9 + $0x78] sm:$0x1f]  ;;  %15541 = vst [vmem:[#allocation39_spill] sm:$0xff] %v10823_v5 }
  0xa5   :  { %793 = vmatprep.mubr.f32.mxu1 %v95_v30  ;;  %8652 = vmatpush3.bf16.msra.mxu0 %v8651_v20  ;;  %v1813_v30 = vld [vmem:[%s15291_s3 + $0x50] sm:$0xff]  ;;  %v10524_v20 = vld [vmem:[%s15290_s2] sm:$0xf]  ;;  %v1556_v53 = vrot.slane %v1546_v37, %v10506_v14  ;;  %v1605_v58 = vcombine.high %v64_v25, %v65_v26  ;;  %v1505_v3 = vrot.slane %v1489_v50, %v10506_v14  ;;  %v10641_v37 = vld [vmem:[%s15291_s3 + $0x208] sm:$0xff] }
  0xa6   :  { %8684 = vmatpush3.bf16.msra.mxu1 %v8683_v23  ;;  %8654 = vmatprep.subr.bf16.mxu0 %v8653_v27  ;;  %v62_v23 = vld [vmem:[%s15297_s9 + $0x50] sm:$0x1f]  ;;  %v10573_v43 = vrot.slane %v10524_v20, %v15302_v12  ;;  %v1447_v22 = vrot.slane %v1431_v1, %v10506_v14  ;;  %15516 = vst [vmem:[#allocation14_spill] sm:$0xff] %v10641_v37  ;;  %v10969_v37 = vld [vmem:[%s15291_s3 + $0x348] sm:$0xff] }
  0xa7   :  { %580 = vmatmul.mubr.f32.gmra.mrb[10].mxu0 %v94_v31  ;;  %8686 = vmatprep.subr.bf16.mxu1 %v8685_v29  ;;  %v66_v27 = vld [vmem:[%s15297_s9 + $0x70] sm:$0x1f]  ;;  %v68_v29 = vld [vmem:[%s15297_s9 + $0x80] sm:$0x1f]  ;;  %v1548_v38 = vcombine.low %v62_v23, %v63_v24  ;;  %15559 = vst [vmem:[#allocation57_spill] sm:$0xff] %v10969_v37 }
  0xa8   :  { %794 = vmatmul.mubr.f32.gmra.mrb[10].mxu1 %v94_v31  ;;  %585 = vmatprep.mubr.f32.mxu0 %v99_v32  ;;  %v1814_v31 = vld [vmem:[%s15291_s3 + $0x58] sm:$0xff]  ;;  %v1606_v42 = vcombine.low %v66_v27, %v67_v28  ;;  %v1607_v60 = vcombine.high %v66_v27, %v67_v28 }
  0xa9   :  { %799 = vmatprep.mubr.f32.mxu1 %v99_v32  ;;  %v1845_v32 = vld [vmem:[%s15291_s3 + $0x150] sm:$0xff]  ;;  %v1570_v54 = vrot.slane %v1548_v38, %v10506_v14  ;;  %v10646_v38 = vld [vmem:[%s15291_s3 + $0x300] sm:$0xff] }
  0xaa   :  { %v8687_v35 = vpack.c.bf16 %v1846_v34, %v1845_v32  ;;  %v1488_v32 = vcombine.low %v56_v13, %v57_v15  ;;  %v69_v34 = vld [vmem:[%s15297_s9 + $0x88] sm:$0x1f]  ;;  %v1628_v57 = vrot.slane %v1606_v42, %v10506_v14  ;;  %v1563_v15 = vrot.slane %v1547_v52, %v10506_v14  ;;  %15517 = vst [vmem:[#allocation15_spill] sm:$0xff] %v10646_v38 }
  0xab   :  { %586 = vmatmul.mubr.f32.gmra.mrb[12].mxu0 %v98_v33  ;;  %v1578_v6 = vcombine.low %v1556_v53, %v1570_v54  ;;  %v1579_v13 = vcombine.high %v1556_v53, %v1570_v54  ;;  %v10654_v42 = vstv %s10584_s29  ;;  %v10698_v54 = vld [vmem:[%s15291_s3 + $0x398] sm:$0xff] }
  0xac   :  { %800 = vmatmul.mubr.f32.gmra.mrb[12].mxu1 %v98_v33  ;;  %v8655_v33 = vpack.c.bf16 %v1814_v31, %v1813_v30  ;;  %v1440_v30 = vrot.slane %v1430_v18, %v10506_v14  ;;  %v1454_v31 = vrot.slane %v1432_v19, %v10506_v14  ;;  %v1498_v48 = vrot.slane %v1488_v32, %v10506_v14 }
  0xad   :  { %8688 = vmatpush3.bf16.msra.mxu1 %v8687_v35  ;;  %v70_v35 = vld [vmem:[%s15297_s9 + $0x90] sm:$0x1f]  ;;  %v1621_v18 = vrot.slane %v1605_v58, %v10506_v14  ;;  %v1635_v19 = vrot.slane %v1607_v60, %v10506_v14  ;;  %15522 = vst [vmem:[#allocation20_spill] sm:$0xff] %v10698_v54  ;;  %v10927_v54 = vld [vmem:[%s15291_s3 + $0x240] sm:$0xff] }
  0xae   :  { %8656 = vmatpush3.bf16.msra.mxu0 %v8655_v33  ;;  %8690 = vmatprep.subr.bf16.mxu1 %v8689_v41  ;;  %v1490_v33 = vcombine.low %v58_v16, %v59_v17  ;;  %v1604_v41 = vcombine.low %v64_v25, %v65_v26  ;;  %v1664_v46 = vcombine.low %v70_v35, %v71_v36  ;;  %v10636_v36 = vld [vmem:[%s15291_s3 + $0x200] sm:$0xff] }
  0xaf   :  { %8658 = vmatprep.subr.bf16.mxu0 %v8657_v39  ;;  %v10567_v39 = vrot.slane %v10524_v20, %v15303_v11  ;;  %v1638_v32 = vcombine.low %v1621_v18, %v1635_v19  ;;  %15515 = vst [vmem:[#allocation13_spill] sm:$0xff] %v10636_v36  ;;  %v10779_v19 = vld [vmem:[%s15291_s3 + $0x220] sm:$0xff]  ;;  %15554 = vst [vmem:[#allocation52_spill] sm:$0xff] %v10927_v54 }
  0xb0   :  { %v1512_v49 = vrot.slane %v1490_v33, %v10506_v14  ;;  %v1686_v62 = vrot.slane %v1664_v46, %v10506_v14  ;;  %15536 = vst [vmem:[#allocation34_spill] sm:$0xff] %v10779_v19 }
  0xb1   :  { %8692 = vmatpush3.bf16.msra.mxu1 %v8691_v47  ;;  %v1462_v47 = vcombine.low %v1440_v30, %v1454_v31 }
  0xb2   :  { %8660 = vmatpush3.bf16.msra.mxu0 %v8659_v45  ;;  %8694 = vmatprep.subr.bf16.mxu1 %v8693_v55  ;;  %v1662_v45 = vcombine.low %v68_v29, %v69_v34  ;;  %v1549_v55 = vcombine.high %v62_v23, %v63_v24  ;;  %v1521_v0 = vcombine.high %v1498_v48, %v1512_v49 }
  0xb3   :  { %8662 = vmatprep.subr.bf16.mxu0 %v8661_v51  ;;  %v1491_v51 = vcombine.high %v58_v16, %v59_v17  ;;  %v10616_v29 = vrot.slane %v1578_v6, %v10506_v14  ;;  %v10763_v6 = vld [vmem:[%s15291_s3 + $0x3a0] sm:$0xff] }
  0xb4   :  { %v1672_v61 = vrot.slane %v1662_v45, %v10506_v14  ;;  %v1577_v16 = vrot.slane %v1549_v55, %v10506_v14  ;;  %v10613_v26 = vrot.slane %v1521_v0, %v10506_v14  ;;  %v10659_v45 = vrot.slane %v10524_v20, %v15300_v44  ;;  %v10703_v55 = vld [vmem:[%s15291_s3 + $0x210] sm:$0xff]  ;;  %15534 = vst [vmem:[#allocation32_spill] sm:$0xff] %v10763_v6 }
  0xb5   :  { %8696 = vmatpush3.bf16.msra.mxu1 %v8695_v59  ;;  %v1463_v59 = vcombine.high %v1440_v30, %v1454_v31  ;;  %v1519_v4 = vrot.slane %v1491_v51, %v10506_v14  ;;  %15514 = vst [vmem:[#allocation12_spill] sm:$0xff] %v10616_v29  ;;  %v10619_v30 = vrot.slane %v1579_v13, %v10506_v14  ;;  %15523 = vst [vmem:[#allocation21_spill] sm:$0xff] %v10703_v55  ;;  %v10768_v13 = vld [vmem:[%s15291_s3 + $0x3a8] sm:$0xff] }
  0xb6   :  { %8664 = vmatpush3.bf16.msra.mxu0 %v8663_v56  ;;  %8730 = vmatprep.subr.bf16.mxu1 %v8729_v2  ;;  %v1614_v56 = vrot.slane %v1604_v41, %v10506_v14  ;;  %v1433_v2 = vcombine.high %v10493_v9, %v10498_v10  ;;  %v1694_v7 = vcombine.low %v1672_v61, %v1686_v62  ;;  %v10651_v41 = vld [vmem:[%s15291_s3 + $0x308] sm:$0xff] }
  0xb7   :  { %8698 = vmatprep.subr.bf16.mxu0 %v8697_v63  ;;  %v1520_v63 = vcombine.low %v1498_v48, %v1512_v49  ;;  %v1695_v8 = vcombine.high %v1672_v61, %v1686_v62  ;;  %v10599_v9 = vrot.slane %v10524_v20, %v15301_v40  ;;  %v10602_v10 = vrot.slane %v1462_v47, %v10506_v14  ;;  %v10668_v47 = vld [vmem:[%s15291_s3 + $0x290] sm:$0xff]  ;;  %v10673_v48 = vld [vmem:[%s15291_s3 + $0x298] sm:$0xff] }
  0xb8   :  { %v1636_v17 = vcombine.low %v1614_v56, %v1628_v57  ;;  %v1637_v21 = vcombine.high %v1614_v56, %v1628_v57  ;;  %v1461_v23 = vrot.slane %v1433_v2, %v10506_v14  ;;  %v10607_v24 = vrot.slane %v1463_v59, %v10506_v14  ;;  %15518 = vst [vmem:[#allocation16_spill] sm:$0xff] %v10651_v41  ;;  %v10678_v49 = vld [vmem:[%s15291_s3 + $0x390] sm:$0xff]  ;;  %v10708_v56 = vld [vmem:[%s15291_s3 + $0x218] sm:$0xff] }
  0xb9   :  { %15512 = vst [vmem:[#allocation10_spill] sm:$0xff] %v10602_v10  ;;  %v10610_v25 = vrot.slane %v1520_v63, %v10506_v14  ;;  %v1522_v27 = vcombine.low %v1505_v3, %v1519_v4  ;;  %v1580_v28 = vcombine.low %v1563_v15, %v1577_v16  ;;  %v10628_v34 = vrot.slane %v1694_v7, %v10506_v14  ;;  %v10728_v61 = vld [vmem:[%s15291_s3 + $0x310] sm:$0xff]  ;;  %v10733_v62 = vld [vmem:[%s15291_s3 + $0x318] sm:$0xff]  ;;  %v10738_v63 = vld [vmem:[%s15291_s3 + $0x2a0] sm:$0xff] }
  0xba   :  { %15513 = vst [vmem:[#allocation11_spill] sm:$0xff] %v10607_v24  ;;  %v10622_v31 = vrot.slane %v1636_v17, %v10506_v14  ;;  %v10625_v33 = vrot.slane %v1637_v21, %v10506_v14  ;;  %v10631_v35 = vrot.slane %v1695_v8, %v10506_v14  ;;  %v10663_v46 = vcombine.high %v10602_v10, %v10602_v10  ;;  %v10758_v4 = vld [vmem:[%s15291_s3 + $0x2a8] sm:$0xff] }
  0xbb   :  { %15519 = vst [vmem:[#allocation17_spill] sm:$0xff] %v10668_v47  ;;  %15520 = vst [vmem:[#allocation18_spill] sm:$0xff] %v10673_v48  ;;  %v1464_v20 = vcombine.low %v1447_v22, %v1461_v23  ;;  %v10682_v50 = vcombine.high %v10607_v24, %v10607_v24  ;;  %v10686_v51 = vcombine.high %v10610_v25, %v10610_v25  ;;  %v10784_v21 = vld [vmem:[%s15291_s3 + $0x228] sm:$0xff] }
  0xbc   :  { %15521 = vst [vmem:[#allocation19_spill] sm:$0xff] %v10678_v49  ;;  %v10689_v52 = vrot.slane %v1522_v27, %v10506_v14  ;;  %v10693_v53 = vcombine.high %v10613_v26, %v10613_v26  ;;  %15524 = vst [vmem:[#allocation22_spill] sm:$0xff] %v10708_v56  ;;  %v10711_v57 = vrot.slane %v1580_v28, %v10506_v14 }
  0xbd   :  { %v10715_v58 = vcombine.high %v10616_v29, %v10616_v29  ;;  %v10719_v59 = vcombine.high %v10619_v30, %v10619_v30  ;;  %v10723_v60 = vcombine.high %v10622_v31, %v10622_v31  ;;  %15527 = vst [vmem:[#allocation25_spill] sm:$0xff] %v10728_v61  ;;  %15528 = vst [vmem:[#allocation26_spill] sm:$0xff] %v10733_v62  ;;  %v10854_v61 = vld [vmem:[%s15291_s3 + $0x238] sm:$0xff] }
  0xbe   :  { %15525 = vst [vmem:[#allocation23_spill] sm:$0xff] %v10711_v57  ;;  %15529 = vst [vmem:[#allocation27_spill] sm:$0xff] %v10738_v63  ;;  %v10741_v0 = vrot.slane %v1638_v32, %v10506_v14  ;;  %v10745_v1 = vcombine.high %v10625_v33, %v10625_v33  ;;  %v10749_v2 = vcombine.high %v10628_v34, %v10628_v34 }
  0xbf   :  { %15526 = vst [vmem:[#allocation24_spill] sm:$0xff] %v10719_v59  ;;  %v10753_v3 = vcombine.high %v10631_v35, %v10631_v35  ;;  %15533 = vst [vmem:[#allocation31_spill] sm:$0xff] %v10758_v4  ;;  %v10787_v7 = vrot.slane %v1464_v20, %v10506_v14  ;;  %v10849_v4 = vld [vmem:[%s15291_s3 + $0x230] sm:$0xff] }
  0xc0   :  { %15530 = vst [vmem:[#allocation28_spill] sm:$0xff] %v10741_v0  ;;  %15531 = vst [vmem:[#allocation29_spill] sm:$0xff] %v10749_v2 }
  0xc1   :  { %15532 = vst [vmem:[#allocation30_spill] sm:$0xff] %v10753_v3  ;;  %15535 = vst [vmem:[#allocation33_spill] sm:$0xff] %v10768_v13 }
  0xc2   :  { %15537 = vst [vmem:[#allocation35_spill] sm:$0xff] %v10784_v21  ;;  %15538 = vst [vmem:[#allocation36_spill] sm:$0xff] %v10787_v7 }
  0xc3   :  { %15545 = vst [vmem:[#allocation43_spill] sm:$0xff] %v10849_v4  ;;  %15546 = vst [vmem:[#allocation44_spill] sm:$0xff] %v10854_v61  ;;  %v10910_v4 = vld [vmem:[%s15291_s3 + $0x3c8] sm:$0xff] }
  0xc4   :  { %15552 = vst [vmem:[#allocation50_spill] sm:$0xff] %v10910_v4 }
 0x166   :  { %v551_v15 = vpop.f32.mrb[0].mxu0 }
 0x167   :  { %v9209_v8 = vadd.f32 %v551_v15, %v10567_v39  ;;  %v765_v22 = vpop.f32.mrb[0].mxu1  ;;  %v553_v23 = vpop.f32.mrb[1].mxu0 }
 0x168   :  { %v9223_v44 = vadd.f32 %v765_v22, %v10573_v43  ;;  %v9210_v40 = vadd.f32 %v553_v23, %v10599_v9  ;;  %v767_v12 = vpop.f32.mrb[1].mxu1  ;;  %v10809_v22 = vld [vmem:[%s15291_s3 + $0x320] sm:$0xff]  ;;  %v10814_v23 = vld [vmem:[%s15291_s3 + $0x328] sm:$0xff] }
 0x169   :  { %vm807_vm0 = vcmp.ge.f32.partialorder %v9209_v8, 0.0  ;;  %v836_v11 = vmul.f32 %v9209_v8, %v10654_v42  ;;  %v9224_v27 = vadd.f32 %v767_v12, %v10659_v45  ;;  %15539 = vst [vmem:[#allocation37_spill] sm:$0xff] %v10809_v22  ;;  %15540 = vst [vmem:[#allocation38_spill] sm:$0xff] %v10814_v23 }
 0x16a   :  { %vm809_vm1 = vcmp.ge.f32.partialorder %v9223_v44, 0.0  ;;  %v838_v15 = vmul.f32 %v9223_v44, %v10654_v42  ;;  %vm808_vm2 = vcmp.ge.f32.partialorder %v9210_v40, 0.0  ;;  %v837_v20 = vmul.f32 %v9210_v40, %v10654_v42  ;;  %v557_v12 = vpop.f32.mrb[2].mxu0 }
 0x16b   :  { %v864_v32 = vsel %vm807_vm0, %v9209_v8, %v836_v11  ;;  %vm810_vm3 = vcmp.ge.f32.partialorder %v9224_v27, 0.0  ;;  %v839_v28 = vmul.f32 %v9224_v27, %v10654_v42  ;;  %v9211_v18 = vadd.f32 %v557_v12, %v10567_v39  ;;  %v771_v17 = vpop.f32.mrb[2].mxu1  ;;  %v559_v16 = vpop.f32.mrb[3].mxu0  ;;  %v10831_v8 = vld [vmem:[%s15291_s3 + $0x2b8] sm:$0xff]  ;;  %v10836_v12 = vld [vmem:[%s15291_s3 + $0x3b0] sm:$0xff] }
 0x16c   :  { %v866_v19 = vsel %vm809_vm1, %v9223_v44, %v838_v15  ;;  %v865_v21 = vsel %vm808_vm2, %v9210_v40, %v837_v20  ;;  %v9212_v6 = vadd.f32 %v559_v16, %v10599_v9  ;;  %v773_v13 = vpop.f32.mrb[3].mxu1  ;;  %15542 = vst [vmem:[#allocation40_spill] sm:$0xff] %v10831_v8  ;;  %15543 = vst [vmem:[#allocation41_spill] sm:$0xff] %v10836_v12  ;;  %v10841_v40 = vld [vmem:[%s15291_s3 + $0x3b8] sm:$0xff] }
 0x16d   :  { %15544 = vst [vmem:[#allocation42_spill] sm:$0xff] %v10841_v40  ;;  %v920_v44 = vcombine.low %v864_v32, %v865_v21  ;;  %v921_v16 = vcombine.high %v864_v32, %v865_v21  ;;  %v867_v20 = vsel %vm810_vm3, %v9224_v27, %v839_v28  ;;  %v9225_v15 = vadd.f32 %v771_v17, %v10573_v43  ;;  %v10905_v28 = vld [vmem:[%s15291_s3 + $0x3c0] sm:$0xff] }
 0x16e   :  { %v922_v11 = vcombine.low %v866_v19, %v867_v20  ;;  %v923_v22 = vcombine.high %v866_v19, %v867_v20  ;;  %vm811_vm4 = vcmp.ge.f32.partialorder %v9211_v18, 0.0  ;;  %v840_v23 = vmul.f32 %v9211_v18, %v10654_v42  ;;  %v563_v63 = vpop.f32.mrb[4].mxu0  ;;  %15551 = vst [vmem:[#allocation49_spill] sm:$0xff] %v10905_v28 }
 0x16f   :  { %v930_v21 = vrot.slane %v920_v44, %v10506_v14  ;;  %v937_v17 = vrot.slane %v921_v16, %v10506_v14  ;;  %v777_v27 = vpop.f32.mrb[4].mxu1  ;;  %v10858_v19 = vpop.f32.mrb[5].mxu0  ;;  %vm812_vm5 = vcmp.ge.f32.partialorder %v9212_v6, 0.0  ;;  %v841_v55 = vmul.f32 %v9212_v6, %v10654_v42 }
 0x170   :  { %v944_v20 = vrot.slane %v922_v11, %v10506_v14  ;;  %v951_v62 = vrot.slane %v923_v22, %v10506_v14  ;;  %v10867_v56 = vpop.f32.mrb[5].mxu1  ;;  %v868_v44 = vsel %vm811_vm4, %v9211_v18, %v840_v23  ;;  %v842_v16 = vmul.f32 %v9225_v15, %v10654_v42  ;;  %v10877_v11 = vld [vmem:[%s15291_s3 + $0x330] sm:$0xff]  ;;  %v10884_v18 = vld [vmem:[%s15291_s3 + $0x338] sm:$0xff]  ;;  %v10894_v23 = vld [vmem:[%s15291_s3 + $0x2c8] sm:$0xff] }
 0x171   :  { %v9226_v7 = vadd.f32 %v773_v13, %v10659_v45  ;;  %15547 = vst [vmem:[#allocation45_spill] sm:$0xff] %v10877_v11  ;;  %15548 = vst [vmem:[#allocation46_spill] sm:$0xff] %v10884_v18  ;;  %v10889_v13 = vld [vmem:[%s15291_s3 + $0x2c0] sm:$0xff]  ;;  %vm813_vm6 = vcmp.ge.f32.partialorder %v9225_v15, 0.0  ;;  %v9228_v3 = vadd.f32 %v10867_v56, %v10659_v45 }
 0x172   :  { %v952_v22 = vcombine.low %v930_v21, %v944_v20  ;;  %v953_v32 = vcombine.high %v930_v21, %v944_v20  ;;  %v954_v12 = vcombine.low %v937_v17, %v951_v62  ;;  %v955_v40 = vcombine.high %v937_v17, %v951_v62  ;;  %v10879_v5 = vpop.f32.mrb[6].mxu0  ;;  %15549 = vst [vmem:[#allocation47_spill] sm:$0xff] %v10889_v13 }
 0x173   :  { %15550 = vst [vmem:[#allocation48_spill] sm:$0xff] %v10894_v23  ;;  %v869_v62 = vsel %vm812_vm5, %v9212_v6, %v841_v55  ;;  %vm814_vm7 = vcmp.ge.f32.partialorder %v9226_v7, 0.0  ;;  %v843_v21 = vmul.f32 %v9226_v7, %v10654_v42  ;;  %v10898_v17 = vpop.f32.mrb[6].mxu1  ;;  %v10900_v20 = vpop.f32.mrb[7].mxu0  ;;  %v870_v38 = vsel %vm813_vm6, %v9225_v15, %v842_v16 }
 0x174   :  { %v10913_v61 = vrot.slane %v952_v22, %v10506_v14  ;;  %v10916_v55 = vrot.slane %v954_v12, %v10506_v14  ;;  %v10919_v6 = vrot.slane %v953_v32, %v10506_v14  ;;  %v983_v8 = vrot.slane %v955_v40, %v10506_v14  ;;  %v10922_v49 = vpop.f32.mrb[7].mxu1  ;;  %v10932_v22 = vld [vmem:[%s15291_s3 + $0x248] sm:$0xff]  ;;  %v10974_v32 = vld [vmem:[%s15291_s3 + $0x2d0] sm:$0xff] }
 0x175   :  { %15555 = vst [vmem:[#allocation53_spill] sm:$0xff] %v10932_v22  ;;  %v988_v47 = vcombine.low %v868_v44, %v869_v62  ;;  %v989_v12 = vcombine.high %v868_v44, %v869_v62  ;;  %v871_v41 = vsel %vm814_vm7, %v9226_v7, %v843_v21  ;;  %v10949_v44 = vld [vmem:[%s15291_s3 + $0x340] sm:$0xff]  ;;  %v9213_v7 = vadd.f32 %v563_v63, %v10567_v39  ;;  %v10979_v63 = vld [vmem:[%s15291_s3 + $0x2d8] sm:$0xff] }
 0x176   :  { %15553 = vst [vmem:[#allocation51_spill] sm:$0xff] %v10916_v55  ;;  %v985_v48 = vcombine.high %v10916_v55, %v10916_v55  ;;  %v10942_v36 = vpop.f32.mrb[8].mxu0  ;;  %15556 = vst [vmem:[#allocation54_spill] sm:$0xff] %v10949_v44  ;;  %v10953_v62 = vmul.f32 %v10602_v10, %v10913_v61  ;;  %v10957_v40 = vmul.f32 %v10607_v24, %v10919_v6  ;;  %vm818_vm11 = vcmp.ge.f32.partialorder %v9228_v3, 0.0 }
 0x177   :  { %v10960_v15 = vpop.f32.mrb[8].mxu1  ;;  %v10962_v16 = vpop.f32.mrb[9].mxu0  ;;  %15560 = vst [vmem:[#allocation58_spill] sm:$0xff] %v10974_v32  ;;  %15561 = vst [vmem:[#allocation59_spill] sm:$0xff] %v10979_v63  ;;  %v10982_v28 = vmul.f32 %v10610_v25, %v983_v8  ;;  %v998_v54 = vrot.slane %v988_v47, %v10506_v14  ;;  %v9227_v22 = vadd.f32 %v777_v27, %v10573_v43  ;;  %v11005_v27 = vld [vmem:[%s15291_s3 + $0x3d0] sm:$0xff]  ;;  %vm815_vm8 = vcmp.ge.f32.partialorder %v9213_v7, 0.0 }
 0x178   :  { %15557 = vst [vmem:[#allocation55_spill] sm:$0xff] %v10953_v62  ;;  %15558 = vst [vmem:[#allocation56_spill] sm:$0xff] %v10957_v40  ;;  %v10985_v21 = vmul.f32 %v10613_v26, %v985_v48  ;;  %v10989_v4 = vpop.f32.mrb[9].mxu1  ;;  %v1005_v23 = vrot.slane %v989_v12, %v10506_v14  ;;  %v990_v11 = vcombine.low %v870_v38, %v871_v41  ;;  %v11018_v48 = vld [vmem:[%s15291_s3 + $0x3d8] sm:$0xff]  ;;  %v11023_v47 = vld [vmem:[%s15291_s3 + $0x250] sm:$0xff] }
 0x179   :  { %v991_v18 = vcombine.high %v870_v38, %v871_v41  ;;  %v987_v55 = vcombine.high %v983_v8, %v983_v8  ;;  %15562 = vst [vmem:[#allocation60_spill] sm:$0xff] %v11005_v27  ;;  %v9214_v41 = vadd.f32 %v10858_v19, %v10599_v9  ;;  %15564 = vst [vmem:[#allocation62_spill] sm:$0xff] %v11018_v48  ;;  %vm817_vm9 = vcmp.ge.f32.partialorder %v9227_v22, 0.0  ;;  %v11095_v48 = vld [vmem:[%s15291_s3 + $0x2e0] sm:$0xff] }
 0x17a   :  { %v10996_v2 = vpop.f32.mrb[10].mxu0  ;;  %v1012_v12 = vrot.slane %v990_v11, %v10506_v14  ;;  %15565 = vst [vmem:[#allocation63_spill] sm:$0xff] %v11023_v47  ;;  %v11028_v11 = vld [vmem:[%s15291_s3 + $0x258] sm:$0xff]  ;;  %v844_v19 = vmul.f32 %v9213_v7, %v10654_v42  ;;  %15575 = vst [vmem:[#allocation73_spill] sm:$0xff] %v11095_v48 }
 0x17b   :  { %v1019_v38 = vrot.slane %v991_v18, %v10506_v14  ;;  %v11011_v8 = vpop.f32.mrb[10].mxu1  ;;  %v11013_v13 = vpop.f32.mrb[11].mxu0  ;;  %15566 = vst [vmem:[#allocation64_spill] sm:$0xff] %v11028_v11  ;;  %v846_v18 = vmul.f32 %v9227_v22, %v10654_v42  ;;  %v11037_v62 = vmul.f32 %v10686_v51, %v987_v55  ;;  %v845_v0 = vmul.f32 %v9214_v41, %v10654_v42 }
 0x17c   :  { %15563 = vst [vmem:[#allocation61_spill] sm:$0xff] %v11011_v8  ;;  %v11034_v32 = vpop.f32.mrb[11].mxu1  ;;  %v1020_v63 = vcombine.low %v998_v54, %v1012_v12  ;;  %v1021_v44 = vcombine.high %v998_v54, %v1012_v12  ;;  %vm816_vm10 = vcmp.ge.f32.partialorder %v9214_v41, 0.0  ;;  %v847_v8 = vmul.f32 %v9228_v3, %v10654_v42 }
 0x17d   :  { %15567 = vst [vmem:[#allocation65_spill] sm:$0xff] %v11034_v32  ;;  %v1022_v37 = vcombine.low %v1005_v23, %v1019_v38  ;;  %v1023_v40 = vcombine.high %v1005_v23, %v1019_v38  ;;  %15568 = vst [vmem:[#allocation66_spill] sm:$0xff] %v11037_v62  ;;  %v872_v38 = vsel %vm815_vm8, %v9213_v7, %v844_v19  ;;  %v11077_v7 = vld [vmem:[%s15291_s3 + $0x350] sm:$0xff]  ;;  %v11082_v19 = vld [vmem:[%s15291_s3 + $0x358] sm:$0xff] }
 0x17e   :  { %v11040_v24 = vpop.f32.mrb[12].mxu0  ;;  %v1030_v56 = vrot.slane %v1020_v63, %v10506_v14  ;;  %v1044_v54 = vrot.slane %v1021_v44, %v10506_v14  ;;  %v874_v10 = vsel %vm817_vm9, %v9227_v22, %v846_v18  ;;  %15572 = vst [vmem:[#allocation70_spill] sm:$0xff] %v11077_v7  ;;  %15573 = vst [vmem:[#allocation71_spill] sm:$0xff] %v11082_v19 }
 0x17f   :  { %v1037_v32 = vrot.slane %v1022_v37, %v10506_v14  ;;  %v11050_v23 = vrot.slane %v1023_v40, %v10506_v14  ;;  %v11052_v55 = vpop.f32.mrb[12].mxu1  ;;  %v11054_v12 = vpop.f32.mrb[13].mxu0  ;;  %v9229_v7 = vadd.f32 %v10898_v17, %v10573_v43 }
 0x180   :  { %15569 = vst [vmem:[#allocation67_spill] sm:$0xff] %v11054_v12  ;;  %v11059_v47 = vpop.f32.mrb[13].mxu1  ;;  %v1052_v63 = vcombine.high %v1030_v56, %v1030_v56  ;;  %v1054_v11 = vcombine.high %v1044_v54, %v1044_v54  ;;  %v11062_v40 = vmul.f32 %v10693_v53, %v1030_v56  ;;  %v11065_v44 = vmul.f32 %v10689_v52, %v1044_v54 }
 0x181   :  { %15570 = vst [vmem:[#allocation68_spill] sm:$0xff] %v11059_v47  ;;  %v1053_v37 = vcombine.high %v1037_v32, %v1037_v32  ;;  %v11068_v27 = vmul.f32 %v10715_v58, %v1037_v32  ;;  %v11072_v22 = vmul.f32 %v10719_v59, %v11050_v23  ;;  %v873_v54 = vsel %vm816_vm10, %v9214_v41, %v845_v0  ;;  %v11100_v47 = vld [vmem:[%s15291_s3 + $0x2e8] sm:$0xff] }
 0x182   :  { %v1755_v18 = vmul.f32 %v10616_v29, %v1052_v63  ;;  %v11086_v56 = vmul.f32 %v10619_v30, %v1054_v11  ;;  %15576 = vst [vmem:[#allocation74_spill] sm:$0xff] %v11100_v47  ;;  %v1902_v63 = vcombine.low %v11037_v62, %v11062_v40  ;;  %v875_v0 = vsel %vm818_vm11, %v9228_v3, %v847_v8 }
 0x183   :  { %15571 = vst [vmem:[#allocation69_spill] sm:$0xff] %v11072_v22  ;;  %v11089_v32 = vmul.f32 %v10711_v57, %v1053_v37  ;;  %v1968_v11 = vcombine.low %v11068_v27, %v11072_v22  ;;  %v15577_v62 = vcombine.low %v10982_v28, %v10985_v21  ;;  %v1056_v12 = vcombine.low %v872_v38, %v873_v54  ;;  %v11136_v28 = vld [vmem:[%s15291_s3 + $0x3e0] sm:$0xff] }
 0x184   :  { %v1967_v41 = vcombine.low %v1755_v18, %v11086_v56  ;;  %v11123_v37 = vrot.slane %v1902_v63, %v10506_v14  ;;  %v1057_v59 = vcombine.high %v872_v38, %v873_v54  ;;  %v1058_v57 = vcombine.low %v874_v10, %v875_v0  ;;  %15578 = vst [vmem:[#allocation75_spill] sm:$0xff] %v11136_v28  ;;  %v11147_v38 = vld [vmem:[%s15291_s3 + $0x3e8] sm:$0xff]  ;;  %v11152_v54 = vld [vmem:[%s15291_s3 + $0x260] sm:$0xff] }
 0x185   :  { %15574 = vst [vmem:[#allocation72_spill] sm:$0xff] %v11089_v32  ;;  %v11120_v29 = vrot.slane %v15577_v62, %v10506_v14  ;;  %v11126_v3 = vrot.slane %v1968_v11, %v10506_v14  ;;  %v1059_v11 = vcombine.high %v874_v10, %v875_v0  ;;  %v9215_v8 = vadd.f32 %v10879_v5, %v10567_v39 }
 0x186   :  { %v11131_v18 = vrot.slane %v1967_v41, %v10506_v14  ;;  %15579 = vst [vmem:[#allocation76_spill] sm:$0xff] %v11147_v38  ;;  %15580 = vst [vmem:[#allocation77_spill] sm:$0xff] %v11152_v54  ;;  %v11157_v41 = vld [vmem:[%s15291_s3 + $0x268] sm:$0xff]  ;;  %v1066_v0 = vrot.slane %v1056_v12, %v10506_v14  ;;  %v1073_v63 = vrot.slane %v1057_v59, %v10506_v14  ;;  %vm821_vm13 = vcmp.ge.f32.partialorder %v9229_v7, 0.0 }
 0x187   :  { %15581 = vst [vmem:[#allocation78_spill] sm:$0xff] %v11157_v41  ;;  %v1055_v62 = vcombine.high %v11050_v23, %v11050_v23  ;;  %v1080_v48 = vrot.slane %v1058_v57, %v10506_v14  ;;  %v1087_v47 = vrot.slane %v1059_v11, %v10506_v14  ;;  %v984_v10 = vcombine.high %v10913_v61, %v10913_v61  ;;  %v11222_v59 = vld [vmem:[%s15291_s3 + $0x368] sm:$0xff] }
 0x188   :  { %v9216_v5 = vadd.f32 %v10900_v20, %v10599_v9  ;;  %v986_v57 = vcombine.high %v10919_v6, %v10919_v6  ;;  %vm819_vm12 = vcmp.ge.f32.partialorder %v9215_v8, 0.0  ;;  %v848_v32 = vmul.f32 %v9215_v8, %v10654_v42  ;;  %15588 = vst [vmem:[#allocation85_spill] sm:$0xff] %v11222_v59 }
 0x189   :  { %v1088_v23 = vcombine.low %v1066_v0, %v1080_v48  ;;  %v1089_v11 = vcombine.high %v1066_v0, %v1080_v48  ;;  %v1090_v19 = vcombine.low %v1073_v63, %v1087_v47  ;;  %v1091_v17 = vcombine.high %v1073_v63, %v1087_v47 }
 0x18a   :  { %v9230_v61 = vadd.f32 %v10922_v49, %v10659_v45  ;;  %v1760_v20 = vmul.f32 %v10622_v31, %v1055_v62  ;;  %v850_v47 = vmul.f32 %v9229_v7, %v10654_v42  ;;  %v849_v63 = vmul.f32 %v9216_v5, %v10654_v42 }
 0x18b   :  { %v1098_v12 = vrot.slane %v1088_v23, %v10506_v14  ;;  %v11187_v28 = vrot.slane %v1089_v11, %v10506_v14  ;;  %v11190_v6 = vrot.slane %v1090_v19, %v10506_v14  ;;  %v11193_v48 = vrot.slane %v1091_v17, %v10506_v14 }
 0x18c   :  { %vm820_vm14 = vcmp.ge.f32.partialorder %v9216_v5, 0.0  ;;  %v876_v11 = vsel %vm819_vm12, %v9215_v8, %v848_v32  ;;  %v851_v17 = vmul.f32 %v9230_v61, %v10654_v42  ;;  %vm822_vm15 = vcmp.ge.f32.partialorder %v9230_v61, 0.0 }
 0x18d   :  { %15582 = vst [vmem:[#allocation79_spill] sm:$0xff] %v11190_v6  ;;  %15583 = vst [vmem:[#allocation80_spill] sm:$0xff] %v11193_v48  ;;  %v1120_v0 = vcombine.high %v1098_v12, %v1098_v12  ;;  %v11198_v49 = vmul.f32 %v10625_v33, %v1098_v12  ;;  %v11202_v62 = vmul.f32 %v10723_v60, %v11187_v28  ;;  %v11217_v12 = vld [vmem:[%s15291_s3 + $0x360] sm:$0xff]  ;;  %vm3646_vm12 = vcmask 261120  }
 0x18e   :  { %v11206_v19 = vmul.f32 %v10628_v34, %v11190_v6  ;;  %v11210_v23 = vmul.f32 %v10631_v35, %v11193_v48  ;;  %15587 = vst [vmem:[#allocation84_spill] sm:$0xff] %v11217_v12  ;;  %v878_v54 = vsel %vm821_vm13, %v9229_v7, %v850_v47  ;;  %v877_v41 = vsel %vm820_vm14, %v9216_v5, %v849_v63 }
 0x18f   :  { %15584 = vst [vmem:[#allocation81_spill] sm:$0xff] %v11198_v49  ;;  %v11225_v6 = vmul.f32 %v10745_v1, %v1120_v0  ;;  %v1969_v48 = vcombine.low %v1760_v20, %v11198_v49  ;;  %v9217_v38 = vadd.f32 %v10942_v36, %v10567_v39  ;;  %v11236_v22 = vmul.f32 %v10663_v46, %v984_v10 }
 0x190   :  { %15585 = vst [vmem:[#allocation82_spill] sm:$0xff] %v11206_v19  ;;  %15586 = vst [vmem:[#allocation83_spill] sm:$0xff] %v11210_v23  ;;  %v1124_v20 = vcombine.low %v876_v11, %v877_v41  ;;  %v1125_v8 = vcombine.high %v876_v11, %v877_v41  ;;  %v879_v23 = vsel %vm822_vm15, %v9230_v61, %v851_v17 }
 0x191   :  { %v1970_v0 = vcombine.low %v11202_v62, %v11225_v6  ;;  %v11243_v49 = vrot.slane %v1969_v48, %v10506_v14  ;;  %v9231_v7 = vadd.f32 %v10960_v15, %v10573_v43  ;;  %v1126_v5 = vcombine.low %v878_v54, %v879_v23 }
 0x192   :  { %v1134_v10 = vrot.slane %v1124_v20, %v10506_v14  ;;  %v1127_v47 = vcombine.high %v878_v54, %v879_v23  ;;  %v11252_v63 = vmul.f32 %v10682_v50, %v986_v57  ;;  %v1141_v32 = vrot.slane %v1125_v8, %v10506_v14 }
 0x193   :  { %v11248_v36 = vrot.slane %v1970_v0, %v10506_v14  ;;  %vm823_vm0 = vcmp.ge.f32.partialorder %v9217_v38, 0.0  ;;  %v852_v48 = vmul.f32 %v9217_v38, %v10654_v42  ;;  %v1148_v61 = vrot.slane %v1126_v5, %v10506_v14 }
 0x194   :  { %v1155_v11 = vrot.slane %v1127_v47, %v10506_v14  ;;  %vm825_vm1 = vcmp.ge.f32.partialorder %v9231_v7, 0.0  ;;  %v854_v54 = vmul.f32 %v9231_v7, %v10654_v42  ;;  %v9218_v57 = vadd.f32 %v10962_v16, %v10599_v9 }
 0x195   :  { %v9232_v23 = vadd.f32 %v10989_v4, %v10659_v45  ;;  %v1156_v17 = vcombine.low %v1134_v10, %v1148_v61  ;;  %v1157_v8 = vcombine.high %v1134_v10, %v1148_v61  ;;  %v880_v16 = vsel %vm823_vm0, %v9217_v38, %v852_v48 }
 0x196   :  { %v1158_v0 = vcombine.low %v1141_v32, %v1155_v11  ;;  %v1159_v20 = vcombine.high %v1141_v32, %v1155_v11  ;;  %vm824_vm2 = vcmp.ge.f32.partialorder %v9218_v57, 0.0  ;;  %v853_v41 = vmul.f32 %v9218_v57, %v10654_v42 }
 0x197   :  { %vm826_vm3 = vcmp.ge.f32.partialorder %v9232_v23, 0.0  ;;  %v855_v5 = vmul.f32 %v9232_v23, %v10654_v42  ;;  %v1180_v15 = vrot.slane %v1157_v8, %v10506_v14  ;;  %v11276_v4 = vrot.slane %v1156_v17, %v10506_v14 }
 0x198   :  { %v1173_v47 = vrot.slane %v1158_v0, %v10506_v14  ;;  %v11272_v19 = vrot.slane %v1159_v20, %v10506_v14  ;;  %v882_v32 = vsel %vm825_vm1, %v9231_v7, %v854_v54  ;;  %v881_v10 = vsel %vm824_vm2, %v9218_v57, %v853_v41 }
 0x199   :  { %15589 = vst [vmem:[#allocation86_spill] sm:$0xff] %v11276_v4  ;;  %v9219_v61 = vadd.f32 %v10996_v2, %v10567_v39  ;;  %v1190_v12 = vcombine.high %v1180_v15, %v1180_v15  ;;  %v883_v8 = vsel %vm826_vm3, %v9232_v23, %v855_v5  ;;  %v15590_v20 = vcombine.low %v11120_v29, %v11123_v37 }
 0x19a   :  { %v1189_v11 = vcombine.high %v1173_v47, %v1173_v47  ;;  %v1191_v0 = vcombine.high %v11272_v19, %v11272_v19  ;;  %v1122_v48 = vcombine.high %v11187_v28, %v11187_v28  ;;  %v1192_v7 = vcombine.low %v880_v16, %v881_v10 }
 0x19b   :  { %v11287_v38 = vrot.slane %v15590_v20, %v10506_v14  ;;  %v1193_v41 = vcombine.high %v880_v16, %v881_v10  ;;  %v11292_v54 = vmul.f32 %v10663_v46, %v1190_v12  ;;  %v11295_v2 = vmul.f32 %v10682_v50, %v1173_v47  ;;  %v15592_v16 = vld [vmem:[#allocation61_spill] sm:$0xff]  ;;  %v15595_v46 = vld [vmem:[#allocation11_spill] sm:$0xff] }
 0x19c   :  { %v1775_v57 = vmul.f32 %v10610_v25, %v1189_v11  ;;  %v11299_v23 = vmul.f32 %v10613_v26, %v1191_v0  ;;  %v1202_v17 = vrot.slane %v1192_v7, %v10506_v14  ;;  %v1194_v20 = vcombine.low %v882_v32, %v883_v8  ;;  %v15593_v10 = vld [vmem:[#allocation65_spill] sm:$0xff] }
 0x19d   :  { %15591 = vst [vmem:[#allocation87_spill] sm:$0xff] %v11287_v38  ;;  %v1209_v5 = vrot.slane %v1193_v41, %v10506_v14  ;;  %v1195_v59 = vcombine.high %v882_v32, %v883_v8  ;;  %v1188_v28 = vcombine.high %v11276_v4, %v11276_v4  ;;  %vm827_vm4 = vcmp.ge.f32.partialorder %v9219_v61, 0.0 }
 0x19e   :  { %v2037_v50 = vcombine.low %v1775_v57, %v11299_v23  ;;  %v1216_v25 = vrot.slane %v1194_v20, %v10506_v14  ;;  %v856_v12 = vmul.f32 %v9219_v61, %v10654_v42  ;;  %v9220_v47 = vadd.f32 %v11013_v13, %v10599_v9  ;;  %v15594_v20 = vld [vmem:[#allocation10_spill] sm:$0xff] }
 0x19f   :  { %v1223_v26 = vrot.slane %v1195_v59, %v10506_v14  ;;  %v9233_v32 = vadd.f32 %v15592_v16, %v10573_v43  ;;  %v9234_v11 = vadd.f32 %v15593_v10, %v10659_v45  ;;  %v11319_v0 = vadd.f32 %v11040_v24, %v10567_v39 }
 0x1a0   :  { %v11323_v8 = vadd.f32 %v11052_v55, %v10573_v43  ;;  %v1224_v59 = vcombine.low %v1202_v17, %v1216_v25  ;;  %v1225_v7 = vcombine.high %v1202_v17, %v1216_v25  ;;  %v11326_v13 = vmul.f32 %v15594_v20, %v1180_v15 }
 0x1a1   :  { %v1226_v41 = vcombine.low %v1209_v5, %v1223_v26  ;;  %v1227_v57 = vcombine.high %v1209_v5, %v1223_v26  ;;  %v11329_v16 = vmul.f32 %v15595_v46, %v1188_v28  ;;  %vm828_vm5 = vcmp.ge.f32.partialorder %v9220_v47, 0.0 }
 0x1a2   :  { %v857_v10 = vmul.f32 %v9220_v47, %v10654_v42  ;;  %v1234_v39 = vrot.slane %v1224_v59, %v10506_v14  ;;  %v1248_v43 = vrot.slane %v1225_v7, %v10506_v14  ;;  %v884_v17 = vsel %vm827_vm4, %v9219_v61, %v856_v12 }
 0x1a3   :  { %v1241_v24 = vrot.slane %v1226_v41, %v10506_v14  ;;  %v11336_v55 = vrot.slane %v1227_v57, %v10506_v14  ;;  %vm829_vm6 = vcmp.ge.f32.partialorder %v9233_v32, 0.0  ;;  %v858_v15 = vmul.f32 %v9233_v32, %v10654_v42  ;;  %v15600_v57 = vld [vmem:[#allocation24_spill] sm:$0xff] }
 0x1a4   :  { %v885_v5 = vsel %vm828_vm5, %v9220_v47, %v857_v10  ;;  %v1256_v28 = vcombine.high %v1234_v39, %v1234_v39  ;;  %v1258_v25 = vcombine.high %v1248_v43, %v1248_v43  ;;  %vm830_vm7 = vcmp.ge.f32.partialorder %v9234_v11, 0.0  ;;  %v15599_v47 = vld [vmem:[#allocation12_spill] sm:$0xff] }
 0x1a5   :  { %v1257_v46 = vcombine.high %v1241_v24, %v1241_v24  ;;  %v11341_v26 = vmul.f32 %v10686_v51, %v1234_v39  ;;  %v11344_v59 = vmul.f32 %v10693_v53, %v1248_v43  ;;  %v11347_v7 = vmul.f32 %v10619_v30, %v1241_v24 }
 0x1a6   :  { %v11351_v61 = vmul.f32 %v10715_v58, %v11336_v55  ;;  %v11354_v12 = vmul.f32 %v10689_v52, %v1256_v28  ;;  %v1780_v41 = vmul.f32 %v15599_v47, %v1258_v25  ;;  %v859_v51 = vmul.f32 %v9234_v11, %v10654_v42  ;;  %v15601_v28 = vld [vmem:[#allocation28_spill] sm:$0xff] }
 0x1a7   :  { %15596 = vst [vmem:[#allocation61_spill] sm:$0xff] %v11347_v7  ;;  %v11358_v20 = vmul.f32 %v15600_v57, %v1257_v46  ;;  %v2038_v53 = vcombine.low %v11341_v26, %v11344_v59  ;;  %v1260_v10 = vcombine.low %v884_v17, %v885_v5  ;;  %v886_v43 = vsel %vm829_vm6, %v9233_v32, %v858_v15 }
 0x1a8   :  { %15597 = vst [vmem:[#allocation65_spill] sm:$0xff] %v11351_v61  ;;  %15598 = vst [vmem:[#allocation10_spill] sm:$0xff] %v11354_v12  ;;  %v2103_v52 = vcombine.low %v1780_v41, %v11347_v7  ;;  %v11374_v46 = vmul.f32 %v15601_v28, %v1122_v48  ;;  %v11377_v25 = vrot.slane %v2037_v50, %v10506_v14  ;;  %vm831_vm8 = vcmp.ge.f32.partialorder %v11319_v0, 0.0 }
 0x1a9   :  { %v2104_v39 = vcombine.low %v11351_v61, %v11358_v20  ;;  %v11380_v47 = vrot.slane %v2038_v53, %v10506_v14  ;;  %v1261_v57 = vcombine.high %v884_v17, %v885_v5  ;;  %v887_v32 = vsel %vm830_vm7, %v9234_v11, %v859_v51  ;;  %v15603_v5 = vld [vmem:[#allocation68_spill] sm:$0xff] }
 0x1aa   :  { %v11385_v58 = vrot.slane %v2103_v52, %v10506_v14  ;;  %v1270_v15 = vrot.slane %v1260_v10, %v10506_v14  ;;  %v1262_v17 = vcombine.low %v886_v43, %v887_v32  ;;  %v860_v30 = vmul.f32 %v11319_v0, %v10654_v42  ;;  %v15602_v10 = vld [vmem:[#allocation67_spill] sm:$0xff] }
 0x1ab   :  { %v11388_v24 = vrot.slane %v2104_v39, %v10506_v14  ;;  %v1277_v52 = vrot.slane %v1261_v57, %v10506_v14  ;;  %v1263_v39 = vcombine.high %v886_v43, %v887_v32  ;;  %v9222_v48 = vadd.f32 %v15602_v10, %v10599_v9 }
 0x1ac   :  { %v1284_v51 = vrot.slane %v1262_v17, %v10506_v14  ;;  %v9236_v53 = vadd.f32 %v15603_v5, %v10659_v45  ;;  %v1900_v43 = vcombine.low %v11236_v22, %v11252_v63  ;;  %vm833_vm9 = vcmp.ge.f32.partialorder %v11323_v8, 0.0 }
 0x1ad   :  { %v1291_v50 = vrot.slane %v1263_v39, %v10506_v14  ;;  %vm832_vm10 = vcmp.ge.f32.partialorder %v9222_v48, 0.0  ;;  %v862_v9 = vmul.f32 %v11323_v8, %v10654_v42  ;;  %v861_v39 = vmul.f32 %v9222_v48, %v10654_v42 }
 0x1ae   :  { %v1292_v57 = vcombine.low %v1270_v15, %v1284_v51  ;;  %v1293_v32 = vcombine.high %v1270_v15, %v1284_v51  ;;  %v888_v45 = vsel %vm831_vm8, %v11319_v0, %v860_v30  ;;  %vm834_vm11 = vcmp.ge.f32.partialorder %v9236_v53, 0.0 }
 0x1af   :  { %v1294_v17 = vcombine.low %v1277_v52, %v1291_v50  ;;  %v1295_v11 = vcombine.high %v1277_v52, %v1291_v50  ;;  %v889_v51 = vsel %vm832_vm10, %v9222_v48, %v861_v39  ;;  %v863_v4 = vmul.f32 %v9236_v53, %v10654_v42 }
 0x1b0   :  { %v1302_v10 = vrot.slane %v1292_v57, %v10506_v14  ;;  %v1316_v41 = vrot.slane %v1293_v32, %v10506_v14  ;;  %v890_v0 = vsel %vm833_vm9, %v11323_v8, %v862_v9  ;;  %v1916_v30 = vrot.slane %v1900_v43, %v10506_v14 }
 0x1b1   :  { %v1309_v5 = vrot.slane %v1294_v17, %v10506_v14  ;;  %v1323_v15 = vrot.slane %v1295_v11, %v10506_v14  ;;  %v891_v8 = vsel %vm834_vm11, %v9236_v53, %v863_v4  ;;  %v15606_v17 = vld [vmem:[#allocation56_spill] sm:$0xff] }
 0x1b2   :  { %v1324_v50 = vcombine.high %v1302_v10, %v1302_v10  ;;  %v1326_v52 = vcombine.high %v1316_v41, %v1316_v41  ;;  %v1785_v61 = vmul.f32 %v10622_v31, %v1302_v10  ;;  %v11426_v7 = vmul.f32 %v10625_v33, %v1316_v41 }
 0x1b3   :  { %v1325_v57 = vcombine.high %v1309_v5, %v1309_v5  ;;  %v11429_v32 = vmul.f32 %v15601_v28, %v1309_v5  ;;  %v1328_v33 = vcombine.low %v888_v45, %v889_v51  ;;  %v1327_v41 = vcombine.high %v1323_v15, %v1323_v15 }
 0x1b4   :  { %v11436_v48 = vmul.f32 %v10723_v60, %v1324_v50  ;;  %v11439_v42 = vmul.f32 %v10745_v1, %v1326_v52  ;;  %v2105_v31 = vcombine.low %v1785_v61, %v11426_v7  ;;  %v11443_v11 = vmul.f32 %v10628_v34, %v1323_v15  ;;  %v15605_v61 = vld [vmem:[#allocation55_spill] sm:$0xff]  ;;  %v15610_v50 = vld [vmem:[#allocation29_spill] sm:$0xff]  ;;  %v15631_v60 = vld [vmem:[#allocation16_spill] sm:$0xff] }
 0x1b5   :  { %15604 = vst [vmem:[#allocation11_spill] sm:$0xff] %v11429_v32  ;;  %v11446_v28 = vmul.f32 %v10631_v35, %v1325_v57  ;;  %v15607_v9 = vcombine.low %v15605_v61, %v15606_v17  ;;  %v11463_v4 = vrot.slane %v1328_v33, %v10506_v14  ;;  %v1329_v53 = vcombine.low %v890_v0, %v891_v8 }
 0x1b6   :  { %v2106_v43 = vcombine.low %v11436_v48, %v11439_v42  ;;  %v2127_v39 = vrot.slane %v2105_v31, %v10506_v14  ;;  %v15608_v15 = vcombine.high %v11120_v29, %v11123_v37  ;;  %v11473_v52 = vmul.f32 %v15610_v50, %v1327_v41 }
 0x1b7   :  { %v1909_v34 = vrot.slane %v15607_v9, %v10506_v14  ;;  %v11476_v57 = vrot.slane %v1329_v53, %v10506_v14  ;;  %v15611_v0 = vcombine.high %v11131_v18, %v11126_v3  ;;  %v15623_v35 = vcombine.high %v11377_v25, %v11380_v47 }
 0x1b8   :  { %v2134_v10 = vrot.slane %v2106_v43, %v10506_v14  ;;  %v11470_v51 = vrot.slane %v15608_v15, %v10506_v14 }
 0x1b9   :  { %v1931_v45 = vcombine.low %v1909_v34, %v1916_v30  ;;  %v1932_v5 = vcombine.high %v1909_v34, %v1916_v30  ;;  %v11482_v31 = vrot.slane %v15611_v0, %v10506_v14  ;;  %v15613_v30 = vcombine.high %v11243_v49, %v11248_v36 }
 0x1ba   :  { %15609 = vst [vmem:[#allocation12_spill] sm:$0xff] %v11470_v51  ;;  %v2137_v29 = vcombine.low %v2127_v39, %v2134_v10  ;;  %v2138_v37 = vcombine.high %v2127_v39, %v2134_v10  ;;  %v1344_v43 = vcombine.low %v11463_v4, %v11476_v57  ;;  %v15617_v34 = vcombine.low %v11131_v18, %v11126_v3 }
 0x1bb   :  { %15612 = vst [vmem:[#allocation24_spill] sm:$0xff] %v11482_v31  ;;  %v11488_v33 = vrot.slane %v15613_v30, %v10506_v14  ;;  %v11491_v41 = vrot.slane %v1932_v5, %v10506_v14  ;;  %v11494_v8 = vrot.slane %v1931_v45, %v10506_v14  ;;  %v15619_v3 = vcombine.low %v11243_v49, %v11248_v36 }
 0x1bc   :  { %v11506_v39 = vrot.slane %v15617_v34, %v10506_v14  ;;  %v1352_v15 = vrot.slane %v1344_v43, %v10506_v14  ;;  %v15621_v30 = vcombine.low %v11326_v13, %v11329_v16  ;;  %v15622_v43 = vcombine.low %v11292_v54, %v11295_v2  ;;  %v15627_v13 = vld [vmem:[#allocation30_spill] sm:$0xff] }
 0x1bd   :  { %15614 = vst [vmem:[#allocation28_spill] sm:$0xff] %v11488_v33  ;;  %15615 = vst [vmem:[#allocation67_spill] sm:$0xff] %v11491_v41  ;;  %v2033_v9 = vcombine.low %v11482_v31, %v11488_v33  ;;  %v1965_v53 = vcombine.low %v11491_v41, %v11470_v51  ;;  %v1966_v10 = vcombine.high %v11491_v41, %v11470_v51  ;;  %v15632_v41 = vld [vmem:[#allocation15_spill] sm:$0xff] }
 0x1be   :  { %15616 = vst [vmem:[#allocation68_spill] sm:$0xff] %v11494_v8  ;;  %15618 = vst [vmem:[#allocation55_spill] sm:$0xff] %v11506_v39  ;;  %v1963_v45 = vcombine.low %v11494_v8, %v11287_v38  ;;  %v1964_v5 = vcombine.high %v11494_v8, %v11287_v38  ;;  %v2034_v0 = vcombine.high %v11482_v31, %v11488_v33  ;;  %v15637_v33 = vld [vmem:[#allocation17_spill] sm:$0xff] }
 0x1bf   :  { %v11523_v18 = vrot.slane %v15619_v3, %v10506_v14  ;;  %v2045_v34 = vrot.slane %v15621_v30, %v10506_v14  ;;  %2251 = vmatprep.mubr.f32.mxu0 %v1965_v53  ;;  %2336 = vmatprep.mubr.f32.mxu1 %v1966_v10  ;;  %v2052_v61 = vrot.slane %v15622_v43, %v10506_v14  ;;  %v15628_v30 = vld [vmem:[#allocation14_spill] sm:$0xff] }
 0x1c0   :  { %v11537_v1 = vrot.slane %v15623_v35, %v10506_v14  ;;  %v15625_v49 = vcombine.low %v11377_v25, %v11380_v47  ;;  %v11546_v53 = vmul.f32 %v15627_v13, %v1352_v15  ;;  %2252 = vmatmul.mubr.f32.vlgmr.msra.gmra.mrb[14].mxu0 %v1963_v45  ;;  %2337 = vmatmul.mubr.f32.vlgmr.msra.gmra.mrb[14].mxu1 %v1964_v5  ;;  %v15629_v35 = vld [vmem:[#allocation13_spill] sm:$0xff] }
 0x1c1   :  { %15620 = vst [vmem:[#allocation56_spill] sm:$0xff] %v11523_v18  ;;  %v2031_v10 = vcombine.low %v11506_v39, %v11523_v18  ;;  %v2032_v3 = vcombine.high %v11506_v39, %v11523_v18  ;;  %v15630_v43 = vpack.c.bf16 %v15628_v30, %v15629_v35  ;;  %v15633_v25 = vpack.c.bf16 %v15631_v60, %v15632_v41  ;;  %v15636_v18 = vld [vmem:[#allocation18_spill] sm:$0xff]  ;;  %v15639_v30 = vld [vmem:[#allocation20_spill] sm:$0xff]  ;;  %v15640_v35 = vld [vmem:[#allocation19_spill] sm:$0xff] }
 0x1c2   :  { %15624 = vst [vmem:[#allocation29_spill] sm:$0xff] %v11537_v1  ;;  %v11543_v36 = vrot.slane %v15625_v49, %v10506_v14  ;;  %v2068_v47 = vcombine.high %v2045_v34, %v2052_v61  ;;  %v2067_v49 = vcombine.low %v2045_v34, %v2052_v61  ;;  %v15634_v45 = vcombine.high %v11385_v58, %v11388_v24  ;;  %v15669_v15 = vld [vmem:[#allocation37_spill] sm:$0xff] }
 0x1c3   :  { %8700 = vmatpush3.bf16.msra.mxu0 %v15630_v43  ;;  %8732 = vmatpush3.bf16.msra.mxu1 %v15633_v25  ;;  %v15638_v38 = vpack.c.bf16 %v15636_v18, %v15637_v33  ;;  %v15641_v43 = vpack.c.bf16 %v15639_v30, %v15640_v35  ;;  %v11573_v60 = vrot.slane %v2138_v37, %v10506_v14  ;;  %v15650_v18 = vld [vmem:[#allocation22_spill] sm:$0xff]  ;;  %v15651_v25 = vld [vmem:[#allocation21_spill] sm:$0xff]  ;;  %v15656_v35 = vld [vmem:[#allocation31_spill] sm:$0xff] }
 0x1c4   :  { %15626 = vst [vmem:[#allocation88_spill] sm:$0xff] %v11543_v36  ;;  %v11562_v5 = vrot.slane %v15634_v45, %v10506_v14  ;;  %v15643_v41 = vcombine.low %v11385_v58, %v11388_v24  ;;  %2256 = vmatprep.mubr.f32.mxu0 %v2033_v9  ;;  %2341 = vmatprep.mubr.f32.mxu1 %v2034_v0  ;;  %v15648_v24 = vld [vmem:[#allocation51_spill] sm:$0xff]  ;;  %v15649_v9 = vld [vmem:[#allocation36_spill] sm:$0xff]  ;;  %v15654_v45 = vld [vmem:[#allocation25_spill] sm:$0xff] }
 0x1c5   :  { %8702 = vmatprep.subr.bf16.mxu0 %v15638_v38  ;;  %8734 = vmatprep.subr.bf16.mxu1 %v15641_v43  ;;  %15642 = vst [vmem:[#allocation14_spill] sm:$0xff] %v11573_v60  ;;  %v11582_v34 = vrot.slane %v2068_v47, %v10506_v14  ;;  %v11585_v38 = vrot.slane %v2067_v49, %v10506_v14  ;;  %v15653_v49 = vld [vmem:[#allocation26_spill] sm:$0xff]  ;;  %v15657_v43 = vld [vmem:[#allocation27_spill] sm:$0xff] }
 0x1c6   :  { %15635 = vst [vmem:[#allocation30_spill] sm:$0xff] %v11562_v5  ;;  %v11579_v61 = vrot.slane %v15643_v41, %v10506_v14  ;;  %v11588_v33 = vrot.slane %v2137_v29, %v10506_v14  ;;  %2257 = vmatmul.mubr.f32.gmra.mrb[16].mxu0 %v2031_v10  ;;  %2342 = vmatmul.mubr.f32.gmra.mrb[16].mxu1 %v2032_v3 }
 0x1c7   :  { %15645 = vst [vmem:[#allocation16_spill] sm:$0xff] %v11582_v34  ;;  %15646 = vst [vmem:[#allocation15_spill] sm:$0xff] %v11585_v38  ;;  %v2169_v37 = vcombine.low %v11562_v5, %v11573_v60  ;;  %v2170_v58 = vcombine.high %v11562_v5, %v11573_v60  ;;  %v1749_v0 = vmul.f32 %v15649_v9, %v15648_v24  ;;  %v15659_v24 = vld [vmem:[#allocation33_spill] sm:$0xff] }
 0x1c8   :  { %15644 = vst [vmem:[#allocation13_spill] sm:$0xff] %v11579_v61  ;;  %15647 = vst [vmem:[#allocation18_spill] sm:$0xff] %v11588_v33  ;;  %v15652_v47 = vpack.c.bf16 %v15650_v18, %v15651_v25  ;;  %v15655_v30 = vpack.c.bf16 %v15653_v49, %v15654_v45  ;;  %v2101_v29 = vcombine.low %v11582_v34, %v11537_v1  ;;  %v15660_v18 = vld [vmem:[#allocation32_spill] sm:$0xff] }
 0x1c9   :  { %v2102_v10 = vcombine.high %v11582_v34, %v11537_v1  ;;  %v2099_v3 = vcombine.low %v11585_v38, %v11543_v36  ;;  %v15658_v41 = vpack.c.bf16 %v15656_v35, %v15657_v43  ;;  %v15661_v25 = vpack.c.bf16 %v15659_v24, %v15660_v18  ;;  %v15662_v43 = vld [vmem:[#allocation66_spill] sm:$0xff] }
 0x1ca   :  { %8704 = vmatpush3.bf16.msra.mxu0 %v15652_v47  ;;  %8736 = vmatpush3.bf16.msra.mxu1 %v15655_v30  ;;  %v2100_v47 = vcombine.high %v11585_v38, %v11543_v36  ;;  %v2167_v49 = vcombine.low %v11579_v61, %v11588_v33  ;;  %v2168_v45 = vcombine.high %v11579_v61, %v11588_v33  ;;  %v15674_v38 = vld [vmem:[#allocation42_spill] sm:$0xff] }
 0x1cb   :  { %8706 = vmatprep.subr.bf16.mxu0 %v15658_v41  ;;  %8738 = vmatprep.subr.bf16.mxu1 %v15661_v25  ;;  %v2434_v30 = vcombine.low %v15606_v17, %v11236_v22  ;;  %v2435_v35 = vcombine.low %v11252_v63, %v1749_v0  ;;  %v2436_v41 = vcombine.low %v10985_v21, %v15662_v43  ;;  %v15666_v22 = vld [vmem:[#allocation34_spill] sm:$0xff]  ;;  %v15671_v43 = vld [vmem:[#allocation40_spill] sm:$0xff] }
 0x1cc   :  { %2261 = vmatprep.mubr.f32.mxu0 %v2101_v29  ;;  %2346 = vmatprep.mubr.f32.mxu1 %v2102_v10  ;;  %v15663_v24 = vcombine.low %v11062_v40, %v11065_v44  ;;  %v11630_v25 = vrot.slane %v1749_v0, %v10506_v14  ;;  %v2505_v29 = vcombine.low %v11225_v6, %v11374_v46  ;;  %v15665_v10 = vld [vmem:[#allocation35_spill] sm:$0xff]  ;;  %v15668_v63 = vld [vmem:[#allocation38_spill] sm:$0xff]  ;;  %v15675_v6 = vld [vmem:[#allocation41_spill] sm:$0xff] }
 0x1cd   :  { %2262 = vmatmul.mubr.f32.gmra.mrb[18].mxu0 %v2099_v3  ;;  %2347 = vmatmul.mubr.f32.gmra.mrb[18].mxu1 %v2100_v47  ;;  %v15667_v17 = vpack.c.bf16 %v15665_v10, %v15666_v22  ;;  %v15670_v21 = vpack.c.bf16 %v15668_v63, %v15669_v15  ;;  %v2444_v3 = vrot.slane %v2434_v30, %v10506_v14  ;;  %v15672_v0 = vld [vmem:[#allocation39_spill] sm:$0xff] }
 0x1ce   :  { %v2465_v18 = vrot.slane %v15663_v24, %v10506_v14  ;;  %15664 = vst [vmem:[#allocation17_spill] sm:$0xff] %v11630_v25  ;;  %v2451_v47 = vrot.slane %v2435_v35, %v10506_v14  ;;  %v2458_v40 = vrot.slane %v2436_v41, %v10506_v14  ;;  %v15673_v24 = vpack.c.bf16 %v15671_v43, %v15672_v0  ;;  %v15679_v35 = vld [vmem:[#allocation69_spill] sm:$0xff]  ;;  %v15680_v41 = vld [vmem:[#allocation72_spill] sm:$0xff]  ;;  %v15683_v0 = vld [vmem:[#allocation43_spill] sm:$0xff] }
 0x1cf   :  { %8708 = vmatpush3.bf16.msra.mxu0 %v15667_v17  ;;  %8740 = vmatpush3.bf16.msra.mxu1 %v15670_v21  ;;  %v15676_v34 = vpack.c.bf16 %v15674_v38, %v15675_v6  ;;  %v11651_v10 = vrot.slane %v11630_v25, %v10506_v14  ;;  %v15678_v15 = vcombine.low %v11086_v56, %v11068_v27  ;;  %v15682_v56 = vld [vmem:[#allocation44_spill] sm:$0xff]  ;;  %v15685_v6 = vld [vmem:[#allocation46_spill] sm:$0xff]  ;;  %v15702_v43 = vld [vmem:[#allocation57_spill] sm:$0xff] }
 0x1d0   :  { %8710 = vmatprep.subr.bf16.mxu0 %v15673_v24  ;;  %v15681_v22 = vcombine.low %v15679_v35, %v15680_v41  ;;  %2266 = vmatprep.mubr.f32.mxu0 %v2169_v37  ;;  %v2466_v63 = vcombine.low %v2444_v3, %v2451_v47  ;;  %v2467_v21 = vcombine.high %v2444_v3, %v2451_v47  ;;  %v15689_v3 = vld [vmem:[#allocation47_spill] sm:$0xff]  ;;  %v15692_v35 = vld [vmem:[#allocation49_spill] sm:$0xff] }
 0x1d1   :  { %8742 = vmatprep.subr.bf16.mxu1 %v15676_v34  ;;  %15677 = vst [vmem:[#allocation20_spill] sm:$0xff] %v11651_v10  ;;  %v2512_v30 = vrot.slane %v15678_v15, %v10506_v14  ;;  %2351 = vmatprep.mubr.f32.mxu1 %v2170_v58  ;;  %v2468_v38 = vcombine.low %v2458_v40, %v2465_v18  ;;  %v15686_v15 = vld [vmem:[#allocation45_spill] sm:$0xff] }
 0x1d2   :  { %v2519_v17 = vrot.slane %v15681_v22, %v10506_v14  ;;  %2267 = vmatmul.mubr.f32.gmra.mrb[20].mxu0 %v2167_v49  ;;  %2352 = vmatmul.mubr.f32.gmra.mrb[20].mxu1 %v2168_v45  ;;  %v2469_v34 = vcombine.high %v2458_v40, %v2465_v18  ;;  %v15684_v24 = vpack.c.bf16 %v15682_v56, %v15683_v0  ;;  %v15688_v18 = vld [vmem:[#allocation48_spill] sm:$0xff]  ;;  %v15691_v40 = vld [vmem:[#allocation50_spill] sm:$0xff] }
 0x1d3   :  { %v15687_v37 = vpack.c.bf16 %v15685_v6, %v15686_v15  ;;  %v2483_v58 = vrot.slane %v2467_v21, %v10506_v14  ;;  %v11673_v49 = vrot.slane %v2466_v63, %v10506_v14  ;;  %v11676_v45 = vrot.slane %v2468_v38, %v10506_v14  ;;  %v11690_v21 = vld [vmem:[%s15291_s3 + $0x2f0] sm:$0xff]  ;;  %v11695_v63 = vld [vmem:[%s15291_s3 + $0x2f8] sm:$0xff]  ;;  %v15694_v38 = vld [vmem:[#allocation81_spill] sm:$0xff] }
 0x1d4   :  { %8712 = vmatpush3.bf16.msra.mxu0 %v15684_v24  ;;  %v15690_v47 = vpack.c.bf16 %v15688_v18, %v15689_v3  ;;  %v15693_v22 = vpack.c.bf16 %v15691_v40, %v15692_v35  ;;  %v11685_v56 = vrot.slane %v2469_v34, %v10506_v14  ;;  %v15695_v0 = vcombine.low %v15694_v38, %v11202_v62  ;;  %v15703_v15 = vld [vmem:[#allocation54_spill] sm:$0xff] }
 0x1d5   :  { %8744 = vmatpush3.bf16.msra.mxu1 %v15687_v37  ;;  %v2533_v6 = vrot.slane %v2505_v29, %v10506_v14  ;;  %v2535_v37 = vcombine.high %v2512_v30, %v2519_v17  ;;  %v2534_v18 = vcombine.low %v2512_v30, %v2519_v17  ;;  %v15696_v62 = vcombine.high %v11336_v55, %v11336_v55  ;;  %v15699_v29 = vld [vmem:[#allocation53_spill] sm:$0xff] }
 0x1d6   :  { %8714 = vmatprep.subr.bf16.mxu0 %v15690_v47  ;;  %8746 = vmatprep.subr.bf16.mxu1 %v15693_v22  ;;  %v2526_v24 = vrot.slane %v15695_v0, %v10506_v14  ;;  %v2500_v3 = vcombine.low %v2483_v58, %v11685_v56  ;;  %v2501_v47 = vcombine.high %v2483_v58, %v11685_v56  ;;  %v15697_v22 = vld [vmem:[#allocation23_spill] sm:$0xff]  ;;  %v15700_v0 = vld [vmem:[#allocation52_spill] sm:$0xff] }
 0x1d7   :  { %v11712_v38 = vmul.f32 %v15697_v22, %v15696_v62  ;;  %v15701_v27 = vpack.c.bf16 %v15699_v29, %v15700_v0  ;;  %v15704_v34 = vpack.c.bf16 %v15702_v43, %v15703_v15  ;;  %v8725_v30 = vpack.c.bf16 %v11695_v63, %v11690_v21  ;;  %v15705_v58 = vld [vmem:[#allocation59_spill] sm:$0xff]  ;;  %v7152_v43 = vld [vmem:[%s15291_s3 + $0x3f8] sm:$0xff]  ;;  %v15708_v15 = vld [vmem:[#allocation62_spill] sm:$0xff] }
 0x1d8   :  { %v2537_v40 = vcombine.high %v2526_v24, %v2533_v6  ;;  %v2536_v35 = vcombine.low %v2526_v24, %v2533_v6  ;;  %v11723_v17 = vrot.slane %v2535_v37, %v10506_v14  ;;  %v15706_v24 = vld [vmem:[#allocation58_spill] sm:$0xff]  ;;  %2786 = vmatprep.mubr.f32.mxu0 %v2500_v3  ;;  %v7151_v6 = vld [vmem:[%s15291_s3 + $0x3f0] sm:$0xff]  ;;  %v11743_v63 = vrot.slane %v2534_v18, %v10506_v14  ;;  %v15709_v37 = vld [vmem:[#allocation60_spill] sm:$0xff] }
 0x1d9   :  { %15698 = vst [vmem:[#allocation19_spill] sm:$0xff] %v11712_v38  ;;  %8716 = vmatpush3.bf16.msra.mxu0 %v15701_v27  ;;  %8748 = vmatpush3.bf16.msra.mxu1 %v15704_v34  ;;  %v15707_v55 = vpack.c.bf16 %v15705_v58, %v15706_v24  ;;  %v11737_v27 = vld [vmem:[%s15291_s3 + $0x270] sm:$0xff]  ;;  %v15710_v3 = vpack.c.bf16 %v15708_v15, %v15709_v37  ;;  %v7104_v62 = vld [vmem:[%s15291_s3 + $0x278] sm:$0xff]  ;;  %v7169_v0 = vld [vmem:[%s15291_s3 + $0x480] sm:$0xff] }
 0x1da   :  { %v11740_v21 = vrot.slane %v2537_v40, %v10506_v14  ;;  %v11746_v34 = vrot.slane %v2536_v35, %v10506_v14  ;;  %2871 = vmatprep.mubr.f32.mxu1 %v2501_v47  ;;  %v7135_v40 = vld [vmem:[%s15291_s3 + $0x370] sm:$0xff]  ;;  %v7136_v18 = vld [vmem:[%s15291_s3 + $0x378] sm:$0xff]  ;;  %v11762_v35 = vmul.f32 %v15649_v9, %v11272_v19  ;;  %v2570_v22 = vcombine.low %v11329_v16, %v11292_v54  ;;  %v7170_v58 = vld [vmem:[%s15291_s3 + $0x488] sm:$0xff] }
 0x1db   :  { %8718 = vmatprep.subr.bf16.mxu0 %v15707_v55  ;;  %8750 = vmatprep.subr.bf16.mxu1 %v15710_v3  ;;  %v15712_v47 = vcombine.low %v11299_v23, %v11341_v26  ;;  %v15713_v16 = vld [vmem:[#allocation64_spill] sm:$0xff]  ;;  %v15714_v26 = vld [vmem:[#allocation63_spill] sm:$0xff]  ;;  %v15717_v15 = vld [vmem:[#allocation70_spill] sm:$0xff]  ;;  %v8757_v10 = vpack.c.bf16 %v7152_v43, %v7151_v6  ;;  %v8727_v8 = vpack.c.bf16 %v7104_v62, %v11737_v27 }
 0x1dc   :  { %15711 = vst [vmem:[#allocation51_spill] sm:$0xff] %v11762_v35  ;;  %v15715_v24 = vpack.c.bf16 %v15713_v16, %v15714_v26  ;;  %v15716_v55 = vld [vmem:[#allocation71_spill] sm:$0xff]  ;;  %v7201_v3 = vld [vmem:[%s15291_s3 + $0x580] sm:$0xff]  ;;  %v2571_v54 = vcombine.low %v11295_v2, %v11762_v35  ;;  %v2580_v23 = vrot.slane %v2570_v22, %v10506_v14  ;;  %v15719_v16 = vcombine.low %v11344_v59, %v11354_v12  ;;  %v7186_v43 = vld [vmem:[%s15291_s3 + $0x508] sm:$0xff] }
 0x1dd   :  { %v2594_v29 = vrot.slane %v15712_v47, %v10506_v14  ;;  %v15718_v37 = vpack.c.bf16 %v15716_v55, %v15717_v15  ;;  %v7202_v47 = vld [vmem:[%s15291_s3 + $0x588] sm:$0xff]  ;;  %v15721_v55 = vld [vmem:[#allocation73_spill] sm:$0xff]  ;;  %v15724_v9 = vld [vmem:[#allocation75_spill] sm:$0xff]  ;;  %v8759_v25 = vpack.c.bf16 %v7136_v18, %v7135_v40  ;;  %v8761_v2 = vpack.c.bf16 %v7170_v58, %v7169_v0 }
 0x1de   :  { %8720 = vmatpush3.bf16.msra.mxu0 %v15715_v24  ;;  %v2601_v26 = vrot.slane %v15719_v16, %v10506_v14  ;;  %v15720_v24 = vld [vmem:[#allocation74_spill] sm:$0xff]  ;;  %v11813_v22 = vld [vmem:[%s15291_s3 + $0x400] sm:$0xff]  ;;  %v2587_v59 = vrot.slane %v2571_v54, %v10506_v14  ;;  %v2639_v27 = vcombine.low %v11358_v20, %v11712_v38  ;;  %v15729_v0 = vcombine.low %v11426_v7, %v11436_v48  ;;  %v12176_v12 = vld [vmem:[%s15291_s3 + $0x690] sm:$0xff] }
 0x1df   :  { %8752 = vmatpush3.bf16.msra.mxu1 %v15718_v37  ;;  %v15722_v15 = vpack.c.bf16 %v15720_v24, %v15721_v55  ;;  %v15723_v37 = vld [vmem:[#allocation76_spill] sm:$0xff]  ;;  %v8793_v24 = vpack.c.bf16 %v7202_v47, %v7201_v3  ;;  %v7185_v6 = vld [vmem:[%s15291_s3 + $0x500] sm:$0xff]  ;;  %v15736_v48 = vcombine.low %v11439_v42, %v11429_v32  ;;  %v7203_v42 = vld [vmem:[%s15291_s3 + $0x590] sm:$0xff] }
 0x1e0   :  { %v15725_v19 = vpack.c.bf16 %v15723_v37, %v15724_v9  ;;  %v2605_v16 = vcombine.high %v2594_v29, %v2601_v26  ;;  %v2604_v35 = vcombine.low %v2594_v29, %v2601_v26  ;;  %v7154_v9 = vld [vmem:[%s15291_s3 + $0x408] sm:$0xff]  ;;  %v15726_v62 = vld [vmem:[#allocation61_spill] sm:$0xff]  ;;  %v2662_v58 = vrot.slane %v15729_v0, %v10506_v14  ;;  %v15734_v26 = vld [vmem:[#allocation84_spill] sm:$0xff] }
 0x1e1   :  { %8722 = vmatprep.subr.bf16.mxu0 %v15722_v15  ;;  %v15727_v40 = vld [vmem:[#allocation65_spill] sm:$0xff]  ;;  %v2603_v15 = vcombine.high %v2580_v23, %v2587_v59  ;;  %v2602_v37 = vcombine.low %v2580_v23, %v2587_v59  ;;  %v2655_v7 = vrot.slane %v2639_v27, %v10506_v14  ;;  %v8795_v0 = vpack.c.bf16 %v7186_v43, %v7185_v6  ;;  %v7204_v23 = vld [vmem:[%s15291_s3 + $0x598] sm:$0xff]  ;;  %v12171_v32 = vld [vmem:[%s15291_s3 + $0x708] sm:$0xff] }
 0x1e2   :  { %8754 = vmatprep.subr.bf16.mxu1 %v15725_v19  ;;  %v15728_v18 = vcombine.low %v15726_v62, %v15727_v40  ;;  %v15730_v19 = vld [vmem:[#allocation78_spill] sm:$0xff]  ;;  %v15731_v54 = vld [vmem:[#allocation77_spill] sm:$0xff]  ;;  %v11842_v20 = vrot.slane %v2605_v16, %v10506_v14  ;;  %v11845_v62 = vrot.slane %v2604_v35, %v10506_v14  ;;  %v2669_v40 = vrot.slane %v15736_v48, %v10506_v14  ;;  %v7171_v16 = vld [vmem:[%s15291_s3 + $0x490] sm:$0xff] }
 0x1e3   :  { %v15732_v3 = vpack.c.bf16 %v15730_v19, %v15731_v54  ;;  %v15733_v47 = vld [vmem:[#allocation85_spill] sm:$0xff]  ;;  %v7172_v35 = vld [vmem:[%s15291_s3 + $0x498] sm:$0xff]  ;;  %v7155_v54 = vld [vmem:[%s15291_s3 + $0x410] sm:$0xff]  ;;  %v15738_v48 = vcombine.low %v11673_v49, %v11676_v45 }
 0x1e4   :  { %v2648_v29 = vrot.slane %v15728_v18, %v10506_v14  ;;  %v15735_v55 = vpack.c.bf16 %v15733_v47, %v15734_v26  ;;  %v8763_v18 = vpack.c.bf16 %v7154_v9, %v11813_v22  ;;  %v2673_v59 = vcombine.high %v2662_v58, %v2669_v40  ;;  %v7188_v47 = vld [vmem:[%s15291_s3 + $0x518] sm:$0xff]  ;;  %v7173_v26 = vld [vmem:[%s15291_s3 + $0x4a0] sm:$0xff] }
 0x1e5   :  { %8724 = vmatpush3.bf16.msra.mxu0 %v15732_v3  ;;  %v2672_v6 = vcombine.low %v2662_v58, %v2669_v40  ;;  %v8765_v3 = vpack.c.bf16 %v7172_v35, %v7171_v16  ;;  %v15739_v40 = vcombine.high %v11673_v49, %v11676_v45  ;;  %v7174_v16 = vld [vmem:[%s15291_s3 + $0x4a8] sm:$0xff]  ;;  %v15740_v49 = vld [vmem:[#allocation80_spill] sm:$0xff]  ;;  %v7189_v38 = vld [vmem:[%s15291_s3 + $0x520] sm:$0xff] }
 0x1e6   :  { %8756 = vmatpush3.bf16.msra.mxu1 %v15735_v55  ;;  %8726 = vmatprep.subr.bf16.mxu0 %v8725_v30  ;;  %v2619_v30 = vrot.slane %v2603_v15, %v10506_v14  ;;  %v2671_v22 = vcombine.high %v2648_v29, %v2655_v7  ;;  %v2670_v9 = vcombine.low %v2648_v29, %v2655_v7  ;;  %v7156_v29 = vld [vmem:[%s15291_s3 + $0x418] sm:$0xff]  ;;  %v7206_v35 = vld [vmem:[%s15291_s3 + $0x5a8] sm:$0xff] }
 0x1e7   :  { %8758 = vmatprep.subr.bf16.mxu1 %v8757_v10  ;;  %v11858_v10 = vrot.slane %v2602_v37, %v10506_v14  ;;  %v11885_v58 = vrot.slane %v2673_v59, %v10506_v14  ;;  %v11900_v15 = vrot.slane %v2672_v6, %v10506_v14  ;;  %v15737_v37 = vld [vmem:[#allocation79_spill] sm:$0xff]  ;;  %v15741_v59 = vcombine.low %v11723_v17, %v11740_v21 }
 0x1e8   :  { %v2636_v43 = vcombine.low %v2619_v30, %v11842_v20  ;;  %v2637_v27 = vcombine.high %v2619_v30, %v11842_v20  ;;  %v11897_v55 = vrot.slane %v2670_v9, %v10506_v14  ;;  %v1121_v7 = vcombine.high %v15737_v37, %v15737_v37  ;;  %v7205_v30 = vld [vmem:[%s15291_s3 + $0x5a0] sm:$0xff] }
 0x1e9   :  { %8728 = vmatpush3.bf16.msra.mxu0 %v8727_v8  ;;  %v2635_v8 = vcombine.high %v11858_v10, %v11845_v62  ;;  %v15742_v9 = vcombine.high %v11723_v17, %v11740_v21  ;;  %v8801_v19 = vpack.c.bf16 %v7206_v35, %v7205_v30  ;;  %v7159_v35 = vld [vmem:[%s15291_s3 + $0x430] sm:$0xff] }
 0x1ea   :  { %8760 = vmatpush3.bf16.msra.mxu1 %v8759_v25  ;;  %8762 = vmatprep.subr.bf16.mxu0 %v8761_v2  ;;  %v11882_v25 = vrot.slane %v2671_v22, %v10506_v14  ;;  %v8797_v2 = vpack.c.bf16 %v7204_v23, %v7203_v42  ;;  %v1123_v22 = vcombine.high %v15740_v49, %v15740_v49  ;;  %v7157_v49 = vld [vmem:[%s15291_s3 + $0x420] sm:$0xff] }
 0x1eb   :  { %8794 = vmatprep.subr.bf16.mxu1 %v8793_v24  ;;  %v7187_v24 = vld [vmem:[%s15291_s3 + $0x510] sm:$0xff]  ;;  %v2702_v6 = vcombine.low %v11897_v55, %v11900_v15  ;;  %v2703_v37 = vcombine.high %v11897_v55, %v11900_v15 }
 0x1ec   :  { %2787 = vmatmul.mubr.f32.vlgmr.msra.gmra.mrb[22].mxu0 %v15738_v48  ;;  %v2704_v42 = vcombine.low %v11882_v25, %v11885_v58  ;;  %v2705_v23 = vcombine.high %v11882_v25, %v11885_v58  ;;  %v8767_v48 = vpack.c.bf16 %v7156_v29, %v7155_v54  ;;  %v15743_v54 = vcombine.low %v11743_v63, %v11746_v34 }
 0x1ed   :  { %2872 = vmatmul.mubr.f32.vlgmr.msra.gmra.mrb[22].mxu1 %v15739_v40  ;;  %2791 = vmatprep.mubr.f32.mxu0 %v15741_v59  ;;  %v8799_v40 = vpack.c.bf16 %v7188_v47, %v7187_v24  ;;  %v7158_v59 = vld [vmem:[%s15291_s3 + $0x428] sm:$0xff]  ;;  %v15744_v29 = vcombine.high %v11743_v63, %v11746_v34  ;;  %v7208_v24 = vld [vmem:[%s15291_s3 + $0x5b8] sm:$0xff]  ;;  %v11966_v47 = vmul.f32 %v15610_v50, %v1121_v7  ;;  %v7191_v50 = vld [vmem:[%s15291_s3 + $0x530] sm:$0xff] }
 0x1ee   :  { %2876 = vmatprep.mubr.f32.mxu1 %v15742_v9  ;;  %8764 = vmatpush3.bf16.msra.mxu0 %v8763_v18  ;;  %v8769_v9 = vpack.c.bf16 %v7174_v16, %v7173_v26  ;;  %v7190_v18 = vld [vmem:[%s15291_s3 + $0x528] sm:$0xff]  ;;  %v11969_v26 = vmul.f32 %v15627_v13, %v1123_v22  ;;  %v8771_v16 = vpack.c.bf16 %v7158_v59, %v7157_v49 }
 0x1ef   :  { %8796 = vmatpush3.bf16.msra.mxu1 %v8795_v0  ;;  %8766 = vmatprep.subr.bf16.mxu0 %v8765_v3  ;;  %v7175_v0 = vld [vmem:[%s15291_s3 + $0x4b0] sm:$0xff]  ;;  %v7176_v3 = vld [vmem:[%s15291_s3 + $0x4b8] sm:$0xff]  ;;  %v8803_v30 = vpack.c.bf16 %v7190_v18, %v7189_v38  ;;  %v7178_v7 = vld [vmem:[%s15291_s3 + $0x4c8] sm:$0xff]  ;;  %v15745_v22 = vcombine.low %v11858_v10, %v11845_v62  ;;  %v2971_v49 = vcombine.low %v11470_v51, %v11482_v31 }
 0x1f0   :  { %8798 = vmatprep.subr.bf16.mxu1 %v8797_v2  ;;  %2792 = vmatmul.mubr.f32.gmra.mrb[24].mxu0 %v15743_v54  ;;  %v7207_v2 = vld [vmem:[%s15291_s3 + $0x5b0] sm:$0xff]  ;;  %v7160_v54 = vld [vmem:[%s15291_s3 + $0x438] sm:$0xff]  ;;  %v8773_v13 = vpack.c.bf16 %v7176_v3, %v7175_v0  ;;  %v2974_v59 = vcombine.low %v11966_v47, %v11969_v26  ;;  %v7161_v18 = vld [vmem:[%s15291_s3 + $0x440] sm:$0xff] }
 0x1f1   :  { %2877 = vmatmul.mubr.f32.gmra.mrb[24].mxu1 %v15744_v29  ;;  %2796 = vmatprep.mubr.f32.mxu0 %v2636_v43  ;;  %v8805_v43 = vpack.c.bf16 %v7208_v24, %v7207_v2  ;;  %v7192_v38 = vld [vmem:[%s15291_s3 + $0x538] sm:$0xff]  ;;  %v7193_v0 = vld [vmem:[%s15291_s3 + $0x540] sm:$0xff]  ;;  %v7194_v29 = vld [vmem:[%s15291_s3 + $0x548] sm:$0xff] }
 0x1f2   :  { %2881 = vmatprep.mubr.f32.mxu1 %v2637_v27  ;;  %8768 = vmatpush3.bf16.msra.mxu0 %v8767_v48  ;;  %v7177_v27 = vld [vmem:[%s15291_s3 + $0x4c0] sm:$0xff]  ;;  %v7210_v48 = vld [vmem:[%s15291_s3 + $0x5c8] sm:$0xff]  ;;  %v8807_v10 = vpack.c.bf16 %v7192_v38, %v7191_v50  ;;  %v7179_v3 = vld [vmem:[%s15291_s3 + $0x4d0] sm:$0xff]  ;;  %v8811_v38 = vpack.c.bf16 %v7194_v29, %v7193_v0 }
 0x1f3   :  { %8800 = vmatpush3.bf16.msra.mxu1 %v8799_v40  ;;  %8770 = vmatprep.subr.bf16.mxu0 %v8769_v9  ;;  %v8775_v40 = vpack.c.bf16 %v7160_v54, %v7159_v35  ;;  %v8777_v9 = vpack.c.bf16 %v7178_v7, %v7177_v27  ;;  %v15746_v2 = vld [vmem:[#allocation82_spill] sm:$0xff]  ;;  %v15747_v24 = vld [vmem:[#allocation83_spill] sm:$0xff]  ;;  %v12026_v35 = vrot.slane %v2974_v59, %v10506_v14  ;;  %v7180_v54 = vld [vmem:[%s15291_s3 + $0x4d8] sm:$0xff] }
 0x1f4   :  { %8802 = vmatprep.subr.bf16.mxu1 %v8801_v19  ;;  %2797 = vmatmul.mubr.f32.gmra.mrb[26].mxu0 %v15745_v22  ;;  %v7209_v19 = vld [vmem:[%s15291_s3 + $0x5c0] sm:$0xff]  ;;  %v7211_v50 = vld [vmem:[%s15291_s3 + $0x5d0] sm:$0xff]  ;;  %v7164_v7 = vld [vmem:[%s15291_s3 + $0x458] sm:$0xff]  ;;  %v8781_v22 = vpack.c.bf16 %v7180_v54, %v7179_v3 }
 0x1f5   :  { %2882 = vmatmul.mubr.f32.gmra.mrb[26].mxu1 %v2635_v8  ;;  %2801 = vmatprep.mubr.f32.mxu0 %v2704_v42  ;;  %v2972_v8 = vcombine.high %v11470_v51, %v11482_v31  ;;  %v7162_v42 = vld [vmem:[%s15291_s3 + $0x448] sm:$0xff]  ;;  %v7163_v27 = vld [vmem:[%s15291_s3 + $0x450] sm:$0xff]  ;;  %v7165_v29 = vld [vmem:[%s15291_s3 + $0x460] sm:$0xff] }
 0x1f6   :  { %2886 = vmatprep.mubr.f32.mxu1 %v2705_v23  ;;  %8772 = vmatpush3.bf16.msra.mxu0 %v8771_v16  ;;  %v8809_v23 = vpack.c.bf16 %v7210_v48, %v7209_v19  ;;  %v15748_v16 = vcombine.low %v15746_v2, %v15747_v24  ;;  %v7195_v48 = vld [vmem:[%s15291_s3 + $0x550] sm:$0xff]  ;;  %v7182_v59 = vld [vmem:[%s15291_s3 + $0x4e8] sm:$0xff]  ;;  %v8783_v0 = vpack.c.bf16 %v7164_v7, %v7163_v27  ;;  %v7216_v27 = vld [vmem:[%s15291_s3 + $0x5f8] sm:$0xff] }
 0x1f7   :  { %8804 = vmatpush3.bf16.msra.mxu1 %v8803_v30  ;;  %8774 = vmatprep.subr.bf16.mxu0 %v8773_v13  ;;  %v7212_v13 = vld [vmem:[%s15291_s3 + $0x5d8] sm:$0xff]  ;;  %v7166_v3 = vld [vmem:[%s15291_s3 + $0x468] sm:$0xff]  ;;  %v7183_v54 = vld [vmem:[%s15291_s3 + $0x4f0] sm:$0xff] }
 0x1f8   :  { %8806 = vmatprep.subr.bf16.mxu1 %v8805_v43  ;;  %v12023_v30 = vrot.slane %v15748_v16, %v10506_v14  ;;  %2802 = vmatmul.mubr.f32.gmra.mrb[28].mxu0 %v2702_v6  ;;  %v8813_v19 = vpack.c.bf16 %v7212_v13, %v7211_v50  ;;  %v7198_v2 = vld [vmem:[%s15291_s3 + $0x568] sm:$0xff]  ;;  %v7184_v50 = vld [vmem:[%s15291_s3 + $0x4f8] sm:$0xff]  ;;  %v7215_v13 = vld [vmem:[%s15291_s3 + $0x5f0] sm:$0xff]  ;;  %v15751_v43 = vcombine.high %v11463_v4, %v11476_v57 }
 0x1f9   :  { %2887 = vmatmul.mubr.f32.gmra.mrb[28].mxu1 %v2703_v37  ;;  %3129 = vmatprep.mubr.f32.mxu0 %v2971_v49  ;;  %v8779_v37 = vpack.c.bf16 %v7162_v42, %v7161_v18  ;;  %v7181_v49 = vld [vmem:[%s15291_s3 + $0x4e0] sm:$0xff]  ;;  %v15750_v42 = vcombine.low %v11473_v52, %v11546_v53  ;;  %v7200_v6 = vld [vmem:[%s15291_s3 + $0x578] sm:$0xff]  ;;  %v8787_v31 = vpack.c.bf16 %v7166_v3, %v7165_v29  ;;  %v15752_v3 = vld [vmem:[#allocation87_spill] sm:$0xff] }
 0x1fa   :  { %3214 = vmatprep.mubr.f32.mxu1 %v2972_v8  ;;  %8776 = vmatpush3.bf16.msra.mxu0 %v8775_v40  ;;  %v7196_v40 = vld [vmem:[%s15291_s3 + $0x558] sm:$0xff]  ;;  %v7214_v8 = vld [vmem:[%s15291_s3 + $0x5e8] sm:$0xff]  ;;  %v12126_v7 = vld [vmem:[%s15291_s3 + $0x680] sm:$0xff]  ;;  %v8789_v57 = vpack.c.bf16 %v7184_v50, %v7183_v54  ;;  %v3011_v50 = vcombine.low %v11537_v1, %v11562_v5  ;;  %v3012_v54 = vcombine.high %v11537_v1, %v11562_v5 }
 0x1fb   :  { %8808 = vmatpush3.bf16.msra.mxu1 %v8807_v10  ;;  %8778 = vmatprep.subr.bf16.mxu0 %v8777_v9  ;;  %v7213_v10 = vld [vmem:[%s15291_s3 + $0x5e0] sm:$0xff]  ;;  %v15749_v9 = vcombine.low %v11443_v11, %v11446_v28  ;;  %v8815_v16 = vpack.c.bf16 %v7196_v40, %v7195_v48  ;;  %v8785_v40 = vpack.c.bf16 %v7182_v59, %v7181_v49  ;;  %v12143_v59 = vld [vmem:[%s15291_s3 + $0x788] sm:$0xff]  ;;  %v12181_v4 = vld [vmem:[%s15291_s3 + $0x698] sm:$0xff] }
 0x1fc   :  { %8810 = vmatprep.subr.bf16.mxu1 %v8809_v23  ;;  %v12075_v23 = vrot.slane %v15750_v42, %v10506_v14  ;;  %v7197_v11 = vld [vmem:[%s15291_s3 + $0x560] sm:$0xff]  ;;  %v12118_v42 = vld [vmem:[%s15291_s3 + $0x570] sm:$0xff]  ;;  %v12336_v1 = vld [vmem:[%s15291_s3 + $0x6b8] sm:$0xff] }
 0x1fd   :  { %v12069_v18 = vrot.slane %v15749_v9, %v10506_v14  ;;  %v8817_v9 = vpack.c.bf16 %v7214_v8, %v7213_v10  ;;  %v12138_v49 = vld [vmem:[%s15291_s3 + $0x780] sm:$0xff]  ;;  %v12166_v10 = vrot.slane %v15751_v43, %v10506_v14  ;;  %v8819_v51 = vpack.c.bf16 %v7198_v2, %v7197_v11  ;;  %v12329_v5 = vld [vmem:[%s15291_s3 + $0x6b0] sm:$0xff] }
 0x1fe   :  { %8780 = vmatpush3.bf16.msra.mxu0 %v8779_v37  ;;  %v12104_v37 = vld [vmem:[%s15291_s3 + $0x470] sm:$0xff]  ;;  %v12150_v8 = vld [vmem:[%s15291_s3 + $0x600] sm:$0xff]  ;;  %v8821_v43 = vpack.c.bf16 %v7216_v27, %v7215_v13  ;;  %v8823_v29 = vpack.c.bf16 %v7200_v6, %v12118_v42  ;;  %v2969_v11 = vcombine.low %v15752_v3, %v11506_v39  ;;  %v2970_v2 = vcombine.high %v15752_v3, %v11506_v39  ;;  %v9292_v42 = vld [vmem:[%s15297_s9 + $0x88] sm:$0x1f] }
 0x1ff   :  { %8812 = vmatpush3.bf16.msra.mxu1 %v8811_v38  ;;  %v12109_v38 = vld [vmem:[%s15291_s3 + $0x478] sm:$0xff]  ;;  %8782 = vmatprep.subr.bf16.mxu0 %v8781_v22  ;;  %v12155_v22 = vld [vmem:[%s15291_s3 + $0x608] sm:$0xff]  ;;  %v12160_v48 = vld [vmem:[%s15291_s3 + $0x700] sm:$0xff]  ;;  %v15753_v13 = vcombine.high %v12023_v30, %v12026_v35 }
 0x200   :  { %8814 = vmatprep.subr.bf16.mxu1 %v8813_v19  ;;  %v12133_v19 = vld [vmem:[%s15291_s3 + $0x688] sm:$0xff]  ;;  %v12267_v6 = vld [vmem:[%s15291_s3 + $0x6a0] sm:$0xff] }
 0x201   :  { %v12204_v27 = vrot.slane %v15753_v13, %v10506_v14  ;;  %v12242_v13 = vld [vmem:[%s15291_s3 + $0x618] sm:$0xff] }
 0x202   :  { %8784 = vmatpush3.bf16.msra.mxu0 %v8783_v0  ;;  %v8791_v0 = vpack.c.bf16 %v12109_v38, %v12104_v37  ;;  %v12209_v37 = vld [vmem:[%s15291_s3 + $0x790] sm:$0xff]  ;;  %v12214_v38 = vld [vmem:[%s15291_s3 + $0x798] sm:$0xff] }
 0x203   :  { %8816 = vmatpush3.bf16.msra.mxu1 %v8815_v16  ;;  %8786 = vmatprep.subr.bf16.mxu0 %v8785_v40  ;;  %v8825_v16 = vpack.c.bf16 %v12133_v19, %v12126_v7  ;;  %v8857_v40 = vpack.c.bf16 %v12143_v59, %v12138_v49  ;;  %15754 = vst [vmem:[#allocation36_spill] sm:$0xff] %v12204_v27  ;;  %v12223_v7 = vld [vmem:[%s15291_s3 + $0x610] sm:$0xff]  ;;  %v9294_v59 = vld [vmem:[%s15297_s9 + $0x98] sm:$0x1f] }
 0x204   :  { %8818 = vmatprep.subr.bf16.mxu1 %v8817_v9  ;;  %v9291_v9 = vld [vmem:[%s15297_s9 + $0x80] sm:$0x1f]  ;;  %v9293_v49 = vld [vmem:[%s15297_s9 + $0x90] sm:$0x1f] }
 0x205   :  { %v1663_v19 = vcombine.high %v9291_v9, %v9292_v42  ;;  %v12247_v9 = vld [vmem:[%s15291_s3 + $0x710] sm:$0xff]  ;;  %v12252_v42 = vld [vmem:[%s15291_s3 + $0x718] sm:$0xff] }
 0x206   :  { %8788 = vmatpush3.bf16.msra.mxu0 %v8787_v31  ;;  %v3010_v31 = vcombine.high %v11543_v36, %v11579_v61 }
 0x207   :  { %8820 = vmatpush3.bf16.msra.mxu1 %v8819_v51  ;;  %8790 = vmatprep.subr.bf16.mxu0 %v8789_v57  ;;  %v1665_v57 = vcombine.high %v9293_v49, %v9294_v59  ;;  %v12272_v49 = vld [vmem:[%s15291_s3 + $0x6a8] sm:$0xff]  ;;  %v1679_v59 = vrot.slane %v1663_v19, %v10506_v14  ;;  %v7269_v19 = vld [vmem:[%s15291_s3 + $0x7a0] sm:$0xff] }
 0x208   :  { %8822 = vmatprep.subr.bf16.mxu1 %v8821_v43  ;;  %v8861_v43 = vpack.c.bf16 %v12214_v38, %v12209_v37  ;;  %v15755_v37 = vcombine.low %v12023_v30, %v12026_v35  ;;  %v12297_v30 = vld [vmem:[%s15291_s3 + $0x620] sm:$0xff]  ;;  %v8831_v35 = vpack.c.bf16 %v12242_v13, %v12223_v7  ;;  %v15757_v7 = vld [vmem:[#allocation28_spill] sm:$0xff] }
 0x209   :  { %v1693_v51 = vrot.slane %v1665_v57, %v10506_v14  ;;  %v12306_v57 = vld [vmem:[%s15291_s3 + $0x628] sm:$0xff]  ;;  %v3007_v13 = vcombine.low %v15757_v7, %v12204_v27 }
 0x20a   :  { %8792 = vmatpush3.bf16.msra.mxu0 %v8791_v0  ;;  %v12282_v38 = vrot.slane %v15755_v37, %v10506_v14  ;;  %v7270_v0 = vld [vmem:[%s15291_s3 + $0x7a8] sm:$0xff]  ;;  %v12311_v37 = vld [vmem:[%s15291_s3 + $0x720] sm:$0xff] }
 0x20b   :  { %8824 = vmatpush3.bf16.msra.mxu1 %v8823_v29  ;;  %8826 = vmatprep.subr.bf16.mxu0 %v8825_v16  ;;  %v8863_v29 = vpack.c.bf16 %v12252_v42, %v12247_v9  ;;  %v12316_v16 = vld [vmem:[%s15291_s3 + $0x728] sm:$0xff]  ;;  %v3008_v9 = vcombine.high %v15757_v7, %v12204_v27  ;;  %v3009_v42 = vcombine.low %v11543_v36, %v11579_v61  ;;  %v12341_v61 = vld [vmem:[%s15291_s3 + $0x7b0] sm:$0xff]  ;;  %v12346_v36 = vld [vmem:[%s15291_s3 + $0x7b8] sm:$0xff] }
 0x20c   :  { %15756 = vst [vmem:[#allocation22_spill] sm:$0xff] %v12282_v38  ;;  %8858 = vmatprep.subr.bf16.mxu1 %v8857_v40  ;;  %v1696_v40 = vcombine.low %v1679_v59, %v1693_v51  ;;  %v8833_v51 = vpack.c.bf16 %v12272_v49, %v12267_v6  ;;  %v8865_v59 = vpack.c.bf16 %v7270_v0, %v7269_v19  ;;  %v12358_v0 = vld [vmem:[%s15291_s3 + $0x630] sm:$0xff] }
 0x20d   :  { %3130 = vmatmul.mubr.f32.vlgmr.msra.gmra.mrb[30].mxu0 %v2969_v11  ;;  %v8835_v49 = vpack.c.bf16 %v12306_v57, %v12297_v30  ;;  %v8867_v19 = vpack.c.bf16 %v12316_v16, %v12311_v37  ;;  %v15760_v30 = vpack.c.bf16 %v12171_v32, %v12160_v48  ;;  %v12376_v37 = vld [vmem:[%s15291_s3 + $0x730] sm:$0xff]  ;;  %v12381_v16 = vld [vmem:[%s15291_s3 + $0x738] sm:$0xff]  ;;  %v15762_v32 = vpack.c.bf16 %v12181_v4, %v12176_v12  ;;  %v12407_v12 = vld [vmem:[%s15291_s3 + $0x6c0] sm:$0xff] }
 0x20e   :  { %3215 = vmatmul.mubr.f32.vlgmr.msra.gmra.mrb[30].mxu1 %v2970_v2  ;;  %v1710_v11 = vrot.slane %v1696_v40, %v10506_v14  ;;  %3134 = vmatprep.mubr.f32.mxu0 %v3007_v13  ;;  %v15758_v2 = vld [vmem:[#allocation56_spill] sm:$0xff]  ;;  %v15759_v13 = vpack.c.bf16 %v12155_v22, %v12150_v8  ;;  %v15763_v48 = vcombine.high %v12069_v18, %v12075_v23  ;;  %v12412_v4 = vld [vmem:[%s15291_s3 + $0x6c8] sm:$0xff] }
 0x20f   :  { %3219 = vmatprep.mubr.f32.mxu1 %v3008_v9  ;;  %v3005_v6 = vcombine.low %v15758_v2, %v12282_v38  ;;  %v12363_v40 = vld [vmem:[%s15291_s3 + $0x638] sm:$0xff]  ;;  %8860 = vmatpush3.bf16.msra.mxu1 %v15760_v30  ;;  %v3006_v57 = vcombine.high %v15758_v2, %v12282_v38  ;;  %v15761_v9 = vld [vmem:[#allocation86_spill] sm:$0xff]  ;;  %v8837_v30 = vpack.c.bf16 %v12336_v1, %v12329_v5 }
 0x210   :  { %8828 = vmatpush3.bf16.msra.mxu0 %v15759_v13  ;;  %v12384_v22 = vmul.f32 %v1710_v11, %v15761_v9  ;;  %v12387_v8 = vmul.f32 %v1710_v11, %v12166_v10  ;;  %8862 = vmatprep.subr.bf16.mxu1 %v8861_v43  ;;  %v12396_v13 = vrot.slane %v15763_v48, %v10506_v14  ;;  %v7257_v48 = vld [vmem:[%s15291_s3 + $0x740] sm:$0xff] }
 0x211   :  { %8830 = vmatprep.subr.bf16.mxu0 %v15762_v32  ;;  %v8869_v9 = vpack.c.bf16 %v12346_v36, %v12341_v61  ;;  %3135 = vmatmul.mubr.f32.gmra.mrb[32].mxu0 %v3005_v6  ;;  %v8839_v10 = vpack.c.bf16 %v12363_v40, %v12358_v0  ;;  %v15765_v5 = vcombine.low %v12069_v18, %v12075_v23 }
 0x212   :  { %15764 = vst [vmem:[#allocation21_spill] sm:$0xff] %v12396_v13  ;;  %3220 = vmatmul.mubr.f32.gmra.mrb[32].mxu1 %v3006_v57  ;;  %v3311_v1 = vcombine.low %v11969_v26, %v12384_v22  ;;  %v3351_v36 = vcombine.low %v11546_v53, %v12387_v8  ;;  %3139 = vmatprep.mubr.f32.mxu0 %v3011_v50  ;;  %v7273_v50 = vld [vmem:[%s15291_s3 + $0x7c0] sm:$0xff] }
 0x213   :  { %3224 = vmatprep.mubr.f32.mxu1 %v3012_v54  ;;  %v12422_v61 = vrot.slane %v15765_v5, %v10506_v14  ;;  %v8871_v43 = vpack.c.bf16 %v12381_v16, %v12376_v37  ;;  %v15767_v11 = vcombine.low %v15747_v24, %v11966_v47  ;;  %8864 = vmatpush3.bf16.msra.mxu1 %v8863_v29 }
 0x214   :  { %8832 = vmatpush3.bf16.msra.mxu0 %v8831_v35  ;;  %v3325_v53 = vrot.slane %v3311_v1, %v10506_v14  ;;  %v15768_v26 = vcombine.low %v11446_v28, %v11473_v52  ;;  %v3365_v18 = vrot.slane %v3351_v36, %v10506_v14  ;;  %8866 = vmatprep.subr.bf16.mxu1 %v8865_v59  ;;  %v7274_v28 = vld [vmem:[%s15291_s3 + $0x7c8] sm:$0xff]  ;;  %v7225_v52 = vld [vmem:[%s15291_s3 + $0x640] sm:$0xff] }
 0x215   :  { %15766 = vst [vmem:[#allocation26_spill] sm:$0xff] %v12422_v61  ;;  %v3318_v6 = vrot.slane %v15767_v11, %v10506_v14  ;;  %8834 = vmatprep.subr.bf16.mxu0 %v8833_v51  ;;  %v3047_v23 = vcombine.low %v11573_v60, %v12396_v13  ;;  %v3048_v47 = vcombine.high %v11573_v60, %v12396_v13  ;;  %v7226_v35 = vld [vmem:[%s15291_s3 + $0x648] sm:$0xff] }
 0x216   :  { %v3358_v54 = vrot.slane %v15768_v26, %v10506_v14  ;;  %v8841_v24 = vpack.c.bf16 %v12412_v4, %v12407_v12  ;;  %3140 = vmatmul.mubr.f32.gmra.mrb[34].mxu0 %v3009_v42  ;;  %3225 = vmatmul.mubr.f32.gmra.mrb[34].mxu1 %v3010_v31  ;;  %v3045_v31 = vcombine.low %v11588_v33, %v12422_v61  ;;  %v7276_v4 = vld [vmem:[%s15291_s3 + $0x7d8] sm:$0xff] }
 0x217   :  { %v3327_v29 = vcombine.high %v3318_v6, %v3325_v53  ;;  %v3326_v51 = vcombine.low %v3318_v6, %v3325_v53  ;;  %3144 = vmatprep.mubr.f32.mxu0 %v3047_v23  ;;  %3229 = vmatprep.mubr.f32.mxu1 %v3048_v47  ;;  %v3046_v42 = vcombine.high %v11588_v33, %v12422_v61  ;;  %v7227_v23 = vld [vmem:[%s15291_s3 + $0x650] sm:$0xff] }
 0x218   :  { %v3367_v59 = vcombine.high %v3358_v54, %v3365_v18  ;;  %v3366_v0 = vcombine.low %v3358_v54, %v3365_v18  ;;  %8836 = vmatpush3.bf16.msra.mxu0 %v8835_v49  ;;  %8868 = vmatpush3.bf16.msra.mxu1 %v8867_v19  ;;  %v8873_v16 = vpack.c.bf16 %v7274_v28, %v7273_v50  ;;  %v7258_v49 = vld [vmem:[%s15291_s3 + $0x748] sm:$0xff]  ;;  %v7243_v19 = vld [vmem:[%s15291_s3 + $0x6d0] sm:$0xff]  ;;  %v7260_v28 = vld [vmem:[%s15291_s3 + $0x758] sm:$0xff] }
 0x219   :  { %v12459_v40 = vrot.slane %v3327_v29, %v10506_v14  ;;  %v12462_v57 = vrot.slane %v3326_v51, %v10506_v14  ;;  %8838 = vmatprep.subr.bf16.mxu0 %v8837_v30  ;;  %8870 = vmatprep.subr.bf16.mxu1 %v8869_v9  ;;  %v8843_v32 = vpack.c.bf16 %v7226_v35, %v7225_v52  ;;  %v7244_v30 = vld [vmem:[%s15291_s3 + $0x6d8] sm:$0xff]  ;;  %v7275_v9 = vld [vmem:[%s15291_s3 + $0x7d0] sm:$0xff]  ;;  %v7245_v52 = vld [vmem:[%s15291_s3 + $0x6e0] sm:$0xff] }
 0x21a   :  { %v12465_v37 = vrot.slane %v3367_v59, %v10506_v14  ;;  %v12477_v12 = vrot.slane %v3366_v0, %v10506_v14  ;;  %3145 = vmatmul.mubr.f32.gmra.mrb[36].mxu0 %v3045_v31  ;;  %3230 = vmatmul.mubr.f32.gmra.mrb[36].mxu1 %v3046_v42  ;;  %v15769_v11 = vcombine.low %v11685_v56, %v11723_v17  ;;  %v7246_v35 = vld [vmem:[%s15291_s3 + $0x6e8] sm:$0xff]  ;;  %v7229_v59 = vld [vmem:[%s15291_s3 + $0x660] sm:$0xff] }
 0x21b   :  { %v3344_v1 = vcombine.low %v11740_v21, %v12459_v40  ;;  %v3345_v36 = vcombine.high %v11740_v21, %v12459_v40  ;;  %v3342_v5 = vcombine.low %v11746_v34, %v12462_v57  ;;  %v15770_v6 = vcombine.high %v11685_v56, %v11723_v17  ;;  %v7228_v56 = vld [vmem:[%s15291_s3 + $0x658] sm:$0xff]  ;;  %v7278_v29 = vld [vmem:[%s15291_s3 + $0x7e8] sm:$0xff]  ;;  %v7261_v42 = vld [vmem:[%s15291_s3 + $0x760] sm:$0xff] }
 0x21c   :  { %3466 = vmatprep.mubr.f32.mxu0 %v15769_v11  ;;  %v3343_v53 = vcombine.high %v11746_v34, %v12462_v57  ;;  %v3384_v26 = vcombine.low %v11885_v58, %v12465_v37  ;;  %v3385_v54 = vcombine.high %v11885_v58, %v12465_v37  ;;  %8840 = vmatpush3.bf16.msra.mxu0 %v8839_v10  ;;  %v7230_v31 = vld [vmem:[%s15291_s3 + $0x668] sm:$0xff]  ;;  %v3637_v58 = vld [vmem:[%s15293_s5 + $0x38] sm:$0xff] }
 0x21d   :  { %3551 = vmatprep.mubr.f32.mxu1 %v15770_v6  ;;  %8872 = vmatpush3.bf16.msra.mxu1 %v8871_v43  ;;  %v8875_v18 = vpack.c.bf16 %v7258_v49, %v7257_v48  ;;  %v3382_v17 = vcombine.low %v11900_v15, %v12477_v12  ;;  %v3383_v47 = vcombine.high %v11900_v15, %v12477_v12  ;;  %v7259_v43 = vld [vmem:[%s15291_s3 + $0x750] sm:$0xff]  ;;  %v3631_v34 = vld [vmem:[%s15293_s5 + $0x8] sm:$0xff]  ;;  %v3634_v15 = vld [vmem:[%s15293_s5 + $0x20] sm:$0xff] }
 0x21e   :  { %8842 = vmatprep.subr.bf16.mxu0 %v8841_v24  ;;  %8874 = vmatprep.subr.bf16.mxu1 %v8873_v16  ;;  %v8845_v50 = vpack.c.bf16 %v7244_v30, %v7243_v19  ;;  %v8877_v10 = vpack.c.bf16 %v7276_v4, %v7275_v9  ;;  %v7277_v24 = vld [vmem:[%s15291_s3 + $0x7e0] sm:$0xff]  ;;  %v5525_v51 = vrot.slane %v12384_v22, %v10506_v14  ;;  %v7262_v22 = vld [vmem:[%s15291_s3 + $0x768] sm:$0xff]  ;;  %v7247_v49 = vld [vmem:[%s15291_s3 + $0x6f0] sm:$0xff] }
 0x21f   :  { %v5655_v0 = vrot.slane %v12387_v8, %v10506_v14  ;;  %v8847_v16 = vpack.c.bf16 %v7228_v56, %v7227_v23  ;;  %v8879_v48 = vpack.c.bf16 %v7260_v28, %v7259_v43  ;;  %v7248_v19 = vld [vmem:[%s15291_s3 + $0x6f8] sm:$0xff]  ;;  %v8849_v30 = vpack.c.bf16 %v7246_v35, %v7245_v52  ;;  %v7263_v35 = vld [vmem:[%s15291_s3 + $0x770] sm:$0xff] }
 0x220   :  { %8844 = vmatpush3.bf16.msra.mxu0 %v8843_v32  ;;  %v8881_v8 = vpack.c.bf16 %v7278_v29, %v7277_v24  ;;  %v7279_v32 = vld [vmem:[%s15291_s3 + $0x7f0] sm:$0xff]  ;;  %v7280_v9 = vld [vmem:[%s15291_s3 + $0x7f8] sm:$0xff]  ;;  %v8851_v4 = vpack.c.bf16 %v7230_v31, %v7229_v59  ;;  %v5526_v11 = vcombine.high %v5525_v51, %v5525_v51  ;;  %v8883_v6 = vpack.c.bf16 %v7262_v22, %v7261_v42  ;;  %v13301_v22 = vld [vmem:[%s15295_s7 + $0x208] sm:$0xff] }
 0x221   :  { %8876 = vmatpush3.bf16.msra.mxu1 %v8875_v18  ;;  %8846 = vmatprep.subr.bf16.mxu0 %v8845_v50  ;;  %v8853_v18 = vpack.c.bf16 %v7248_v19, %v7247_v49  ;;  %v12563_v23 = vrot.slane %v5525_v51, %v10506_v14  ;;  %v5656_v56 = vcombine.high %v5655_v0, %v5655_v0  ;;  %v7232_v52 = vld [vmem:[%s15291_s3 + $0x678] sm:$0xff]  ;;  %v3632_v12 = vld [vmem:[%s15293_s5 + $0x10] sm:$0xff]  ;;  %v13311_v51 = vld [vmem:[%s15295_s7 + $0x308] sm:$0xff] }
 0x222   :  { %8878 = vmatprep.subr.bf16.mxu1 %v8877_v10  ;;  %v8885_v50 = vpack.c.bf16 %v7280_v9, %v7279_v32  ;;  %v7231_v10 = vld [vmem:[%s15291_s3 + $0x670] sm:$0xff]  ;;  %v12569_v43 = vrot.slane %v5526_v11, %v10506_v14  ;;  %v12572_v28 = vrot.slane %v5655_v0, %v10506_v14  ;;  %v7264_v24 = vld [vmem:[%s15291_s3 + $0x778] sm:$0xff]  ;;  %v15779_v21 = vcombine.low %v11845_v62, %v11897_v55  ;;  %v3642_v32 = vld [vmem:[%s15293_s5 + $0x60] sm:$0xff]  ;;  %s9327_s3 = scalar_lea.vmem %s7077_s0, 512 }
 0x223   :  { %15771 = vst [vmem:[#allocation25_spill] sm:$0xff] %v12563_v23  ;;  %v12588_v59 = vrot.slane %v5656_v56, %v10506_v14  ;;  %v8855_v49 = vpack.c.bf16 %v7232_v52, %v7231_v10  ;;  %v8887_v19 = vpack.c.bf16 %v7264_v24, %v7263_v35  ;;  %v15780_v40 = vcombine.high %v11845_v62, %v11897_v55  ;;  %v3633_v62 = vld [vmem:[%s15293_s5 + $0x18] sm:$0xff]  ;;  %v3630_v55 = vld [vmem:[%s15293_s5] sm:$0xff]  ;;  %v3640_v11 = vld [vmem:[%s15293_s5 + $0x50] sm:$0xff]  ;;  %p9328_p5 = scmp.ne.s32.totalorder %s7077_s0, %s9327_s3  ;;  %p9333_p7 = scmp.lt.s32.totalorder %s9327_s3, %s9327_s3 }
 0x224   :  { %8848 = vmatpush3.bf16.msra.mxu0 %v8847_v16  ;;  %15772 = vst [vmem:[#allocation31_spill] sm:$0xff] %v12569_v43  ;;  %15773 = vst [vmem:[#allocation27_spill] sm:$0xff] %v12572_v28  ;;  %v8897_v57 = vpack.c.bf16 %v3637_v58, %v3633_v62  ;;  %v8891_v37 = vpack.c.bf16 %v3634_v15, %v3630_v55  ;;  %v7307_v56 = vld [vmem:[%s15293_s5 + $0x88] sm:$0xff]  ;;  %v7309_v10 = vld [vmem:[%s15293_s5 + $0x98] sm:$0xff]  ;;  %v9355_v52 = vmov 0.0  }
 0x225   :  { %8880 = vmatpush3.bf16.msra.mxu1 %v8879_v48  ;;  %8850 = vmatprep.subr.bf16.mxu0 %v8849_v30  ;;  %15774 = vst [vmem:[#allocation33_spill] sm:$0xff] %v12588_v59  ;;  %v15775_v30 = vcombine.low %v11676_v45, %v11743_v63  ;;  %3590 = vst [vmem:[#allocation2] sm:$0x1f] %v9355_v52  ;;  %v7313_v24 = vld [vmem:[%s15293_s5 + $0xb8] sm:$0xff]  ;;  %v13296_v0 = vld [vmem:[%s15295_s7 + $0x200] sm:$0xff]  ;;  %p9334_p8 = por %p9333_p7, %p9332_p6 }
 0x226   :  { %8882 = vmatprep.subr.bf16.mxu1 %v8881_v8  ;;  %v15776_v8 = vcombine.high %v11676_v45, %v11743_v63  ;;  %v15777_v45 = vcombine.low %v11842_v20, %v11882_v25  ;;  %v15778_v63 = vcombine.high %v11842_v20, %v11882_v25  ;;  %v3635_v20 = vld [vmem:[%s15293_s5 + $0x28] sm:$0xff]  ;;  %3591 = vst [vmem:[#allocation2 + $0x8] sm:$0x1f] %v9355_v52  ;;  %3592 = vst [vmem:[#allocation2 + $0x10] sm:$0x1f] %v9355_v52  ;;  %v13306_v48 = vld [vmem:[%s15295_s7 + $0x300] sm:$0xff] }
 0x227   :  { %v8889_v25 = vpack.c.bf16 %v3635_v20, %v3631_v34  ;;  %3593 = vst [vmem:[#allocation2 + $0x18] sm:$0x1f] %v9355_v52  ;;  %3594 = vst [vmem:[#allocation2 + $0x20] sm:$0x1f] %v9355_v52  ;;  %v13336_v31 = vld [vmem:[%s15295_s7 + $0x390] sm:$0xff]  ;;  %p9335_p9 = pnand %p9334_p8, %p9328_p5 }
 0x228   :  { %8852 = vmatpush3.bf16.msra.mxu0 %v8851_v4  ;;  %3595 = vst [vmem:[#allocation2 + $0x28] sm:$0x1f] %v9355_v52  ;;  %3596 = vst [vmem:[#allocation2 + $0x30] sm:$0x1f] %v9355_v52 }
 0x229   :  { %8884 = vmatpush3.bf16.msra.mxu1 %v8883_v6  ;;  %8854 = vmatprep.subr.bf16.mxu0 %v8853_v18  ;;  %v3644_v6 = vld [vmem:[%s15293_s5 + $0x70] sm:$0xff]  ;;  %3597 = vst [vmem:[#allocation2 + $0x38] sm:$0x1f] %v9355_v52  ;;  %3598 = vst [vmem:[#allocation2 + $0x40] sm:$0x1f] %v9355_v52 }
 0x22a   :  { %8886 = vmatprep.subr.bf16.mxu1 %v8885_v50  ;;  %v8903_v18 = vpack.c.bf16 %v3644_v6, %v3640_v11  ;;  %v7311_v50 = vld [vmem:[%s15293_s5 + $0xa8] sm:$0xff]  ;;  %3599 = vst [vmem:[#allocation2 + $0x48] sm:$0x1f] %v9355_v52  ;;  %3600 = vst [vmem:[#allocation2 + $0x50] sm:$0x1f] %v9355_v52 }
 0x22b   :  { %3601 = vst [vmem:[#allocation2 + $0x58] sm:$0x1f] %v9355_v52  ;;  %3602 = vst [vmem:[#allocation2 + $0x60] sm:$0x1f] %v9355_v52  ;;  %v8905_v35 = vpack.c.bf16 %v7311_v50, %v7307_v56 }
 0x22c   :  { %8856 = vmatpush3.bf16.msra.mxu0 %v8855_v49  ;;  %3603 = vst [vmem:[#allocation2 + $0x68] sm:$0x1f] %v9355_v52  ;;  %3604 = vst [vmem:[#allocation2 + $0x70] sm:$0x1f] %v9355_v52  ;;  %v8913_v49 = vpack.c.bf16 %v7313_v24, %v7309_v10 }
 0x22d   :  { %8888 = vmatpush3.bf16.msra.mxu1 %v8887_v19  ;;  %8890 = vmatprep.subr.bf16.mxu0 %v8889_v25  ;;  %3605 = vst [vmem:[#allocation2 + $0x78] sm:$0x1f] %v9355_v52  ;;  %3606 = vst [vmem:[#allocation2 + $0x80] sm:$0x1f] %v9355_v52 }
 0x22e   :  { %8898 = vmatprep.subr.bf16.mxu1 %v8897_v57  ;;  %3607 = vst [vmem:[#allocation2 + $0x88] sm:$0x1f] %v9355_v52  ;;  %3608 = vst [vmem:[#allocation2 + $0x90] sm:$0x1f] %v9355_v52  ;;  %v3841_v13 = vld [vmem:[#allocation2 + $0x20] sm:$0xf] }
 0x22f   :  { %3467 = vmatmul.mubr.f32.vlgmr.msra.gmra.mrb[38].mxu0 %v15775_v30  ;;  %3609 = vst [vmem:[#allocation2 + $0x98] sm:$0x1f] %v9355_v52  ;;  %3610 = vst [vmem:[#allocation2 + $0xa0] sm:$0x1f] %v9355_v52 }
 0x230   :  { %3552 = vmatmul.mubr.f32.vlgmr.msra.gmra.mrb[38].mxu1 %v15776_v8  ;;  %3471 = vmatprep.mubr.f32.mxu0 %v3344_v1  ;;  %v3636_v1 = vld [vmem:[%s15293_s5 + $0x30] sm:$0xff]  ;;  %3611 = vst [vmem:[#allocation2 + $0xa8] sm:$0x1f] %v9355_v52  ;;  %3612 = vst [vmem:[#allocation2 + $0xb0] sm:$0x1f] %v9355_v52 }
 0x231   :  { %3556 = vmatprep.mubr.f32.mxu1 %v3345_v36  ;;  %v8899_v36 = vpack.c.bf16 %v3636_v1, %v3632_v12  ;;  %8892 = vmatpush1.bf16.msra.mxu0 %v8891_v37  ;;  %3613 = vst [vmem:[#allocation2 + $0xb8] sm:$0x1f] %v9355_v52  ;;  %3614 = vst [vmem:[#allocation2 + $0xc0] sm:$0x1f] %v9355_v52 }
 0x232   :  { %3615 = vst [vmem:[#allocation2 + $0xc8] sm:$0x1f] %v9355_v52  ;;  %3616 = vst [vmem:[#allocation2 + $0xd0] sm:$0x1f] %v9355_v52  ;;  %v3849_v27 = vld [vmem:[#allocation2 + $0x60] sm:$0xf] }
 0x233   :  { %3472 = vmatmul.mubr.f32.gmra.mrb[40].mxu0 %v3342_v5  ;;  %8900 = vmatpush1.bf16.msra.mxu1 %v8899_v36  ;;  %v3639_v5 = vld [vmem:[%s15293_s5 + $0x48] sm:$0xff]  ;;  %3617 = vst [vmem:[#allocation2 + $0xd8] sm:$0x1f] %v9355_v52  ;;  %3618 = vst [vmem:[#allocation2 + $0xe0] sm:$0x1f] %v9355_v52 }
 0x234   :  { %3557 = vmatmul.mubr.f32.gmra.mrb[40].mxu1 %v3343_v53  ;;  %3476 = vmatprep.mubr.f32.mxu0 %v15777_v45  ;;  %v3643_v53 = vld [vmem:[%s15293_s5 + $0x68] sm:$0xff]  ;;  %3619 = vst [vmem:[#allocation2 + $0xe8] sm:$0x1f] %v9355_v52  ;;  %3620 = vst [vmem:[#allocation2 + $0xf0] sm:$0x1f] %v9355_v52 }
 0x235   :  { %3561 = vmatprep.mubr.f32.mxu1 %v15778_v63  ;;  %3621 = vst [vmem:[#allocation2 + $0xf8] sm:$0x1f] %v9355_v52  ;;  %3622 = vst [vmem:[#allocation2 + $0x100] sm:$0x1f] %v9355_v52 }
 0x236   :  { %3623 = vst [vmem:[#allocation2 + $0x108] sm:$0x1f] %v9355_v52  ;;  %3624 = vst [vmem:[#allocation2 + $0x110] sm:$0x1f] %v9355_v52 }
 0x237   :  { %3477 = vmatmul.mubr.f32.gmra.mrb[42].mxu0 %v15779_v21  ;;  %3625 = vst [vmem:[#allocation2 + $0x118] sm:$0x1f] %v9355_v52  ;;  %3626 = vst [vmem:[#allocation2 + $0x120] sm:$0x1f] %v9355_v52 }
 0x238   :  { %3562 = vmatmul.mubr.f32.gmra.mrb[42].mxu1 %v15780_v40  ;;  %3481 = vmatprep.mubr.f32.mxu0 %v3384_v26  ;;  %v3641_v26 = vld [vmem:[%s15293_s5 + $0x58] sm:$0xff]  ;;  %3627 = vst [vmem:[#allocation2 + $0x128] sm:$0x1f] %v9355_v52  ;;  %3628 = vst [vmem:[#allocation2 + $0x130] sm:$0x1f] %v9355_v52 }
 0x239   :  { %3566 = vmatprep.mubr.f32.mxu1 %v3385_v54  ;;  %v8893_v54 = vpack.c.bf16 %v3643_v53, %v3639_v5  ;;  %3629 = vst [vmem:[#allocation2 + $0x138] sm:$0x1f] %v9355_v52 }
 0x23b   :  { %3482 = vmatmul.mubr.f32.gmra.mrb[44].mxu0 %v3382_v17  ;;  %v3645_v17 = vld [vmem:[%s15293_s5 + $0x78] sm:$0xff]  ;;  %8894 = vmatprep.subr.bf16.mxu0 %v8893_v54 }
 0x23c   :  { %3567 = vmatmul.mubr.f32.gmra.mrb[44].mxu1 %v3383_v47  ;;  %v3638_v47 = vld [vmem:[%s15293_s5 + $0x40] sm:$0xff]  ;;  %v8901_v9 = vpack.c.bf16 %v3645_v17, %v3641_v26  ;;  %3723 = vmatprep.mubr.f32.mxu0 %v9355_v52 }
 0x23d   :  { %v8895_v4 = vpack.c.bf16 %v3642_v32, %v3638_v47  ;;  %3812 = vmatprep.mubr.f32.mxu1 %v9355_v52 }
 0x23e   :  { %8902 = vmatprep.subr.bf16.mxu1 %v8901_v9 }
 0x23f   :  { %8896 = vmatpush1.bf16.msra.mxu0 %v8895_v4  ;;  %8904 = vmatpush1.bf16.msra.mxu1 %v8903_v18  ;;  %v7088_v18 = vld [vmem:[%s15292_s4] ss:$0 sm:$0xff]  ;;  %s7281_s4 = sld [smem:[#allocation3 + $0x1]] }
 0x240   :  { %8906 = vmatprep.subr.bf16.mxu0 %v8905_v35  ;;  %8914 = vmatprep.subr.bf16.mxu1 %v8913_v49 }
 0x293   :  { %v7705_v19 = vpop.f32.mrb[14].mxu0  ;;  %v7749_v30 = vpop.f32.mrb[14].mxu1 }
 0x294   :  { %v7706_v8 = vpop.f32.mrb[15].mxu0  ;;  %v7750_v45 = vpop.f32.mrb[15].mxu1 }
 0x295   :  { %v7707_v63 = vadd.f32 %v7706_v8, %v7705_v19  ;;  %v7751_v21 = vadd.f32 %v7750_v45, %v7749_v30 }
 0x297   :  { %v2339_v40 = vadd.f32 %v7751_v21, %v7707_v63 }
 0x299   :  { %v7708_v34 = vpop.f32.mrb[16].mxu0  ;;  %v7752_v20 = vpop.f32.mrb[16].mxu1  ;;  %v2357_v24 = vadd.f32 %v7088_v18, %v2339_v40 }
 0x29a   :  { %v7709_v62 = vpop.f32.mrb[17].mxu0  ;;  %v7753_v25 = vpop.f32.mrb[17].mxu1 }
 0x29b   :  { %v7710_v58 = vadd.f32 %v7709_v62, %v7708_v34  ;;  %v7754_v55 = vadd.f32 %v7753_v25, %v7752_v20 }
 0x29d   :  { %v2344_v15 = vadd.f32 %v7754_v55, %v7710_v58 }
 0x29f   :  { %v2358_v20 = vadd.f32 %v7088_v18, %v2344_v15 }
 0x2a0   :  { %v7711_v57 = vpop.f32.mrb[18].mxu0  ;;  %v7755_v37 = vpop.f32.mrb[18].mxu1 }
 0x2a1   :  { %v7712_v12 = vpop.f32.mrb[19].mxu0  ;;  %v7756_v1 = vpop.f32.mrb[19].mxu1 }
 0x2a2   :  { %v7713_v36 = vadd.f32 %v7712_v12, %v7711_v57  ;;  %v7757_v5 = vadd.f32 %v7756_v1, %v7755_v37 }
 0x2a4   :  { %v2349_v53 = vadd.f32 %v7757_v5, %v7713_v36 }
 0x2a5   :  { %v7714_v26 = vpop.f32.mrb[20].mxu0  ;;  %v7758_v54 = vpop.f32.mrb[20].mxu1 }
 0x2a6   :  { %v7715_v17 = vpop.f32.mrb[21].mxu0  ;;  %v7759_v47 = vpop.f32.mrb[21].mxu1  ;;  %v2359_v36 = vadd.f32 %v7088_v18, %v2349_v53 }
 0x2a7   :  { %v7716_v32 = vadd.f32 %v7715_v17, %v7714_v26  ;;  %v7760_v9 = vadd.f32 %v7759_v47, %v7758_v54 }
 0x2a9   :  { %v2354_v4 = vadd.f32 %v7760_v9, %v7716_v32 }
 0x2bf   :  { %v7793_v11 = vpop.f32.mrb[22].mxu0 }
 0x2c0   :  { %v7837_v6 = vpop.f32.mrb[22].mxu1  ;;  %v7794_v56 = vpop.f32.mrb[23].mxu0 }
 0x2c1   :  { %v7838_v50 = vpop.f32.mrb[23].mxu1  ;;  %v7795_v10 = vadd.f32 %v7794_v56, %v7793_v11  ;;  %v2360_v11 = vadd.f32 %v7088_v18, %v2354_v4 }
 0x2c2   :  { %v7839_v35 = vadd.f32 %v7838_v50, %v7837_v6 }
 0x2c3   :  { %v7796_v19 = vpop.f32.mrb[24].mxu0 }
 0x2c4   :  { %v2874_v49 = vadd.f32 %v7839_v35, %v7795_v10  ;;  %v7840_v30 = vpop.f32.mrb[24].mxu1  ;;  %v7797_v8 = vpop.f32.mrb[25].mxu0 }
 0x2c5   :  { %v7841_v45 = vpop.f32.mrb[25].mxu1  ;;  %v7798_v21 = vadd.f32 %v7797_v8, %v7796_v19 }
 0x2c6   :  { %v2892_v63 = vadd.f32 %v2874_v49, %v2357_v24  ;;  %v7842_v34 = vadd.f32 %v7841_v45, %v7840_v30 }
 0x2c7   :  { %v7799_v25 = vpop.f32.mrb[26].mxu0 }
 0x2c8   :  { %v2879_v62 = vadd.f32 %v7842_v34, %v7798_v21  ;;  %v7843_v58 = vpop.f32.mrb[26].mxu1  ;;  %v7800_v55 = vpop.f32.mrb[27].mxu0 }
 0x2c9   :  { %v7844_v57 = vpop.f32.mrb[27].mxu1  ;;  %v7801_v12 = vadd.f32 %v7800_v55, %v7799_v25 }
 0x2ca   :  { %v2893_v37 = vadd.f32 %v2879_v62, %v2358_v20  ;;  %v7845_v1 = vadd.f32 %v7844_v57, %v7843_v58 }
 0x2cb   :  { %v7802_v40 = vpop.f32.mrb[28].mxu0 }
 0x2cc   :  { %v2884_v5 = vadd.f32 %v7845_v1, %v7801_v12  ;;  %v7846_v26 = vpop.f32.mrb[28].mxu1  ;;  %v7803_v54 = vpop.f32.mrb[29].mxu0 }
 0x2cd   :  { %v7847_v17 = vpop.f32.mrb[29].mxu1  ;;  %v7804_v32 = vadd.f32 %v7803_v54, %v7802_v40 }
 0x2ce   :  { %v2894_v47 = vadd.f32 %v2884_v5, %v2359_v36  ;;  %v7848_v9 = vadd.f32 %v7847_v17, %v7846_v26 }
 0x2d0   :  { %v2889_v6 = vadd.f32 %v7848_v9, %v7804_v32 }
 0x2d2   :  { %v2895_v15 = vadd.f32 %v2889_v6, %v2360_v11 }
 0x2e0   :  { %v7881_v56 = vpop.f32.mrb[30].mxu0 }
 0x2e1   :  { %v7925_v50 = vpop.f32.mrb[30].mxu1  ;;  %v7882_v10 = vpop.f32.mrb[31].mxu0 }
 0x2e2   :  { %v7926_v35 = vpop.f32.mrb[31].mxu1  ;;  %v7883_v24 = vadd.f32 %v7882_v10, %v7881_v56 }
 0x2e3   :  { %v7927_v49 = vadd.f32 %v7926_v35, %v7925_v50 }
 0x2e4   :  { %v7884_v30 = vpop.f32.mrb[32].mxu0 }
 0x2e5   :  { %v3217_v19 = vadd.f32 %v7927_v49, %v7883_v24  ;;  %v7928_v53 = vpop.f32.mrb[32].mxu1  ;;  %v7885_v8 = vpop.f32.mrb[33].mxu0 }
 0x2e6   :  { %v7929_v45 = vpop.f32.mrb[33].mxu1  ;;  %v7886_v34 = vadd.f32 %v7885_v8, %v7884_v30  ;;  %v7308_v8 = vld [vmem:[%s15293_s5 + $0x90] sm:$0xff] }
 0x2e7   :  { %v3235_v21 = vadd.f32 %v3217_v19, %v2892_v63  ;;  %v7930_v20 = vadd.f32 %v7929_v45, %v7928_v53  ;;  %v7310_v19 = vld [vmem:[%s15293_s5 + $0xa0] sm:$0xff]  ;;  %v7312_v45 = vld [vmem:[%s15293_s5 + $0xb0] sm:$0xff] }
 0x2e9   :  { %v3222_v62 = vadd.f32 %v7930_v20, %v7886_v34  ;;  %v7887_v25 = vpop.f32.mrb[34].mxu0  ;;  %v7931_v58 = vpop.f32.mrb[34].mxu1 }
 0x2ea   :  { %v7888_v4 = vpop.f32.mrb[35].mxu0  ;;  %v7932_v18 = vpop.f32.mrb[35].mxu1 }
 0x2eb   :  { %v3236_v55 = vadd.f32 %v3222_v62, %v2893_v37  ;;  %v7889_v57 = vadd.f32 %v7888_v4, %v7887_v25  ;;  %v7933_v12 = vadd.f32 %v7932_v18, %v7931_v58  ;;  %v7315_v25 = vld [vmem:[%s15293_s5 + $0xc8] sm:$0xff] }
 0x2ec   :  { %v7319_v58 = vld [vmem:[%s15293_s5 + $0xe8] sm:$0xff] }
 0x2ed   :  { %v3227_v1 = vadd.f32 %v7933_v12, %v7889_v57  ;;  %v7890_v36 = vpop.f32.mrb[36].mxu0  ;;  %v7934_v5 = vpop.f32.mrb[36].mxu1 }
 0x2ee   :  { %v7891_v40 = vpop.f32.mrb[37].mxu0  ;;  %v7935_v26 = vpop.f32.mrb[37].mxu1 }
 0x2ef   :  { %v12749_v54 = vadd.f32 %v3227_v1, %v2894_v47  ;;  %v7892_v17 = vadd.f32 %v7891_v40, %v7890_v36  ;;  %v7936_v32 = vadd.f32 %v7935_v26, %v7934_v5  ;;  %v7306_v47 = vld [vmem:[%s15293_s5 + $0x80] sm:$0xff]  ;;  %v8915_v36 = vpack.c.bf16 %v7312_v45, %v7308_v8  ;;  %v7321_v5 = vld [vmem:[%s15293_s5 + $0xf8] sm:$0xff] }
 0x2f0   :  { %v8907_v4 = vpack.c.bf16 %v7310_v19, %v7306_v47 }
 0x2f1   :  { %v3232_v63 = vadd.f32 %v7936_v32, %v7892_v17  ;;  %v8909_v17 = vpack.c.bf16 %v7319_v58, %v7315_v25  ;;  %v7314_v32 = vld [vmem:[%s15293_s5 + $0xc0] sm:$0xff] }
 0x2f3   :  { %v12751_v9 = vadd.f32 %v3232_v63, %v2895_v15  ;;  %v12759_v15 = vstv %s7281_s4  ;;  %v7318_v63 = vld [vmem:[%s15293_s5 + $0xe0] sm:$0xff] }
 0x2f4   :  { %v8911_v45 = vpack.c.bf16 %v7318_v63, %v7314_v32  ;;  %v7355_v32 = vld [vmem:[%s15293_s5 + $0x148] sm:$0xff] }
 0x2f5   :  { %v7359_v63 = vld [vmem:[%s15293_s5 + $0x168] sm:$0xff] }
 0x302   :  { %v7969_v11 = vpop.f32.mrb[38].mxu0 }
 0x303   :  { %v8013_v6 = vpop.f32.mrb[38].mxu1  ;;  %v7970_v56 = vpop.f32.mrb[39].mxu0 }
 0x304   :  { %v8014_v50 = vpop.f32.mrb[39].mxu1  ;;  %v7971_v37 = vadd.f32 %v7970_v56, %v7969_v11  ;;  %v7316_v11 = vld [vmem:[%s15293_s5 + $0xd0] sm:$0xff] }
 0x305   :  { %v8015_v10 = vadd.f32 %v8014_v50, %v8013_v6 }
 0x306   :  { %v7972_v24 = vpop.f32.mrb[40].mxu0 }
 0x307   :  { %v3554_v35 = vadd.f32 %v8015_v10, %v7971_v37  ;;  %v8016_v49 = vpop.f32.mrb[40].mxu1  ;;  %v7973_v30 = vpop.f32.mrb[41].mxu0  ;;  %v7320_v10 = vld [vmem:[%s15293_s5 + $0xf0] sm:$0xff] }
 0x308   :  { %v8017_v53 = vpop.f32.mrb[41].mxu1  ;;  %v7974_v20 = vadd.f32 %v7973_v30, %v7972_v24  ;;  %v7351_v24 = vld [vmem:[%s15293_s5 + $0x128] sm:$0xff] }
 0x309   :  { %v3572_v34 = vadd.f32 %v3554_v35, %v3235_v21  ;;  %v8018_v62 = vadd.f32 %v8017_v53, %v8016_v49  ;;  %v7317_v21 = vld [vmem:[%s15293_s5 + $0xd8] sm:$0xff]  ;;  %v7347_v35 = vld [vmem:[%s15293_s5 + $0x108] sm:$0xff] }
 0x30a   :  { %v7975_v12 = vpop.f32.mrb[42].mxu0  ;;  %v8917_v30 = vpack.c.bf16 %v7321_v5, %v7317_v21 }
 0x30b   :  { %vm3577_vm13 = vcmp.ge.f32.partialorder %v3572_v34, 0.0  ;;  %v3582_v18 = vmul.f32 %v12759_v15, %v3572_v34  ;;  %v3559_v57 = vadd.f32 %v8018_v62, %v7974_v20  ;;  %v8019_v1 = vpop.f32.mrb[42].mxu1  ;;  %v7976_v40 = vpop.f32.mrb[43].mxu0  ;;  %v8921_v20 = vpack.c.bf16 %v7351_v24, %v7347_v35  ;;  %v7358_v35 = vld [vmem:[%s15293_s5 + $0x160] sm:$0xff] }
 0x30c   :  { %v8020_v26 = vpop.f32.mrb[43].mxu1  ;;  %v7977_v50 = vadd.f32 %v7976_v40, %v7975_v12  ;;  %v7346_v40 = vld [vmem:[%s15293_s5 + $0x100] sm:$0xff]  ;;  %v8925_v24 = vpack.c.bf16 %v7359_v63, %v7355_v32  ;;  %v7396_v63 = vld [vmem:[%s15293_s5 + $0x1d0] sm:$0xff] }
 0x30d   :  { %v12789_v6 = vsel %vm3577_vm13, %v3572_v34, %v3582_v18  ;;  %v3573_v56 = vadd.f32 %v3559_v57, %v3236_v55  ;;  %v8021_v37 = vadd.f32 %v8020_v26, %v8019_v1  ;;  %v8919_v34 = vpack.c.bf16 %v7320_v10, %v7316_v11  ;;  %v7353_v57 = vld [vmem:[%s15293_s5 + $0x138] sm:$0xff]  ;;  %v7348_v26 = vld [vmem:[%s15293_s5 + $0x110] sm:$0xff]  ;;  %v7354_v10 = vld [vmem:[%s15293_s5 + $0x140] sm:$0xff] }
 0x30e   :  { %15781 = vst [vmem:[#allocation32_spill] sm:$0xff] %v12789_v6  ;;  %7282 = vmatmul.mubr.msk.f32.vlgmr.msra.gmra.mrb[46].mxu0 %vm3646_vm12, %v12789_v6  ;;  %7286 = vmatmul.mubr.msk.f32.vlgmr.msra.gmra.mrb[46].mxu1 %vm3646_vm12, %v12789_v6  ;;  %v7978_v47 = vpop.f32.mrb[44].mxu0  ;;  %v7357_v11 = vld [vmem:[%s15293_s5 + $0x158] sm:$0xff]  ;;  %v7398_v32 = vld [vmem:[%s15293_s5 + $0x1e0] sm:$0xff] }
 0x30f   :  { %vm3578_vm14 = vcmp.ge.f32.partialorder %v3573_v56, 0.0  ;;  %v3583_v55 = vmul.f32 %v12759_v15, %v3573_v56  ;;  %v3564_v49 = vadd.f32 %v8021_v37, %v7977_v50  ;;  %8908 = vmatpush1.bf16.msra.mxu0 %v8907_v4  ;;  %8916 = vmatpush1.bf16.msra.mxu1 %v8915_v36  ;;  %v8022_v19 = vpop.f32.mrb[44].mxu1  ;;  %v7979_v53 = vpop.f32.mrb[45].mxu0  ;;  %v7349_v4 = vld [vmem:[%s15293_s5 + $0x118] sm:$0xff] }
 0x310   :  { %v8023_v8 = vpop.f32.mrb[45].mxu1  ;;  %3729 = vmatprep.mubr.f32.mxu0 %v9355_v52  ;;  %3818 = vmatprep.mubr.f32.mxu1 %v9355_v52  ;;  %v7980_v58 = vadd.f32 %v7979_v53, %v7978_v47  ;;  %v8929_v1 = vpack.c.bf16 %v7353_v57, %v7349_v4  ;;  %v7360_v47 = vld [vmem:[%s15293_s5 + $0x170] sm:$0xff]  ;;  %v7389_v53 = vld [vmem:[%s15293_s5 + $0x198] sm:$0xff] }
 0x311   :  { %v12807_v62 = vsel %vm3578_vm14, %v3573_v56, %v3583_v55  ;;  %v3574_v25 = vadd.f32 %v3564_v49, %v12749_v54  ;;  %v8024_v18 = vadd.f32 %v8023_v8, %v8022_v19  ;;  %8910 = vmatprep.subr.bf16.mxu0 %v8909_v17  ;;  %8918 = vmatprep.subr.bf16.mxu1 %v8917_v30  ;;  %v7361_v56 = vld [vmem:[%s15293_s5 + $0x178] sm:$0xff]  ;;  %v7356_v49 = vld [vmem:[%s15293_s5 + $0x150] sm:$0xff]  ;;  %v7387_v19 = vld [vmem:[%s15293_s5 + $0x188] sm:$0xff] }
 0x312   :  { %15782 = vst [vmem:[#allocation66_spill] sm:$0xff] %v12807_v62  ;;  %7283 = vmatmul.mubr.msk.f32.gmra.mrb[48].mxu0 %vm3646_vm12, %v12807_v62  ;;  %7287 = vmatmul.mubr.msk.f32.gmra.mrb[48].mxu1 %vm3646_vm12, %v12807_v62  ;;  %v8933_v55 = vpack.c.bf16 %v7361_v56, %v7357_v11  ;;  %v7391_v30 = vld [vmem:[%s15293_s5 + $0x1a8] sm:$0xff]  ;;  %v7393_v8 = vld [vmem:[%s15293_s5 + $0x1b8] sm:$0xff]  ;;  %v7388_v4 = vld [vmem:[%s15293_s5 + $0x190] sm:$0xff] }
 0x313   :  { %vm3579_vm15 = vcmp.ge.f32.partialorder %v3574_v25, 0.0  ;;  %v3584_v54 = vmul.f32 %v12759_v15, %v3574_v25  ;;  %v3569_v12 = vadd.f32 %v8024_v18, %v7980_v58  ;;  %3735 = vmatprep.mubr.f32.mxu0 %v9355_v52  ;;  %3824 = vmatprep.mubr.f32.mxu1 %v9355_v52  ;;  %v7386_v58 = vld [vmem:[%s15293_s5 + $0x180] sm:$0xff]  ;;  %v7392_v57 = vld [vmem:[%s15293_s5 + $0x1b0] sm:$0xff] }
 0x314   :  { %8912 = vmatpush1.bf16.msra.mxu0 %v8911_v45  ;;  %8920 = vmatpush1.bf16.msra.mxu1 %v8919_v34  ;;  %v8927_v45 = vpack.c.bf16 %v7358_v35, %v7354_v10  ;;  %v8935_v34 = vpack.c.bf16 %v7360_v47, %v7356_v49  ;;  %v7390_v18 = vld [vmem:[%s15293_s5 + $0x1a0] sm:$0xff]  ;;  %v7400_v11 = vld [vmem:[%s15293_s5 + $0x1f0] sm:$0xff]  ;;  %v5868_v10 = vld [vmem:[%s15295_s7 + $0x88] sm:$0xff] }
 0x315   :  { %v12823_v36 = vsel %vm3579_vm15, %v3574_v25, %v3584_v54  ;;  %v3575_v21 = vadd.f32 %v3569_v12, %v12751_v9  ;;  %8922 = vmatprep.subr.bf16.mxu0 %v8921_v20  ;;  %8930 = vmatprep.subr.bf16.mxu1 %v8929_v1  ;;  %v7350_v9 = vld [vmem:[%s15293_s5 + $0x120] sm:$0xff]  ;;  %v8937_v20 = vpack.c.bf16 %v7391_v30, %v7387_v19  ;;  %v7395_v54 = vld [vmem:[%s15293_s5 + $0x1c8] sm:$0xff]  ;;  %v7397_v1 = vld [vmem:[%s15293_s5 + $0x1d8] sm:$0xff] }
 0x316   :  { %15783 = vst [vmem:[#allocation35_spill] sm:$0xff] %v12823_v36  ;;  %7284 = vmatmul.mubr.msk.f32.gmra.mrb[50].mxu0 %vm3646_vm12, %v12823_v36  ;;  %7288 = vmatmul.mubr.msk.f32.gmra.mrb[50].mxu1 %vm3646_vm12, %v12823_v36  ;;  %v8923_v50 = vpack.c.bf16 %v7350_v9, %v7346_v40  ;;  %v8945_v25 = vpack.c.bf16 %v7393_v8, %v7389_v53  ;;  %v7399_v12 = vld [vmem:[%s15293_s5 + $0x1e8] sm:$0xff]  ;;  %v7394_v9 = vld [vmem:[%s15293_s5 + $0x1c0] sm:$0xff] }
 0x317   :  { %vm3580_vm0 = vcmp.ge.f32.partialorder %v3575_v21, 0.0  ;;  %v3585_v5 = vmul.f32 %v12759_v15, %v3575_v21  ;;  %3741 = vmatprep.mubr.f32.mxu0 %v9355_v52  ;;  %3830 = vmatprep.mubr.f32.mxu1 %v9355_v52  ;;  %v7352_v15 = vld [vmem:[%s15293_s5 + $0x130] sm:$0xff]  ;;  %v8947_v40 = vpack.c.bf16 %v7392_v57, %v7388_v4  ;;  %v8943_v56 = vpack.c.bf16 %v7398_v32, %v7394_v9  ;;  %v5899_v35 = vld [vmem:[%s15295_s7 + $0x180] sm:$0xff]  ;;  %v5852_v49 = vld [vmem:[%s15295_s7 + $0x8] sm:$0xff] }
 0x318   :  { %v8931_v37 = vpack.c.bf16 %v7352_v15, %v7348_v26  ;;  %v8941_v26 = vpack.c.bf16 %v7399_v12, %v7395_v54  ;;  %v5883_v30 = vld [vmem:[%s15295_s7 + $0x100] sm:$0xff]  ;;  %v5884_v53 = vld [vmem:[%s15295_s7 + $0x108] sm:$0xff]  ;;  %v5854_v4 = vld [vmem:[%s15295_s7 + $0x18] sm:$0xff] }
 0x319   :  { %v12845_v17 = vsel %vm3580_vm0, %v3575_v21, %v3585_v5  ;;  %v7401_v21 = vld [vmem:[%s15293_s5 + $0x1f8] sm:$0xff]  ;;  %v8939_v5 = vpack.c.bf16 %v7390_v18, %v7386_v58  ;;  %v8987_v8 = vpack.c.bf16 %v5884_v53, %v5883_v30  ;;  %v5853_v18 = vld [vmem:[%s15295_s7 + $0x10] sm:$0xff]  ;;  %v5903_v9 = vld [vmem:[%s15295_s7 + $0x1a0] sm:$0xff] }
 0x31a   :  { %15784 = vst [vmem:[#allocation34_spill] sm:$0xff] %v12845_v17  ;;  %7285 = vmatmul.mubr.msk.f32.gmra.mrb[52].mxu0 %vm3646_vm12, %v12845_v17  ;;  %7289 = vmatmul.mubr.msk.f32.gmra.mrb[52].mxu1 %vm3646_vm12, %v12845_v17  ;;  %v8949_v15 = vpack.c.bf16 %v7401_v21, %v7397_v1  ;;  %v5902_v58 = vld [vmem:[%s15295_s7 + $0x198] sm:$0xff]  ;;  %v8959_v54 = vpack.c.bf16 %v5854_v4, %v5853_v18  ;;  %v5885_v12 = vld [vmem:[%s15295_s7 + $0x110] sm:$0xff]  ;;  %v5855_v32 = vld [vmem:[%s15295_s7 + $0x20] sm:$0xff] }
 0x31b   :  { %4094 = vmatprep.mubr.f32.mxu0 %v9355_v52  ;;  %4183 = vmatprep.mubr.f32.mxu1 %v9355_v52  ;;  %v5886_v1 = vld [vmem:[%s15295_s7 + $0x118] sm:$0xff]  ;;  %v5908_v4 = vld [vmem:[%s15295_s7 + $0x1c8] sm:$0xff] }
 0x31c   :  { %v8991_v21 = vpack.c.bf16 %v5886_v1, %v5885_v12 }
 0x31e   :  { %7322 = vmatmul.mubr.msk.f32.vlgmr.msra.gmra.mrb[54].mxu0 %vm3646_vm12, %v12789_v6  ;;  %7326 = vmatmul.mubr.msk.f32.vlgmr.msra.gmra.mrb[54].mxu1 %vm3646_vm12, %v12789_v6 }
 0x31f   :  { %8924 = vmatpush1.bf16.msra.mxu0 %v8923_v50  ;;  %8932 = vmatpush1.bf16.msra.mxu1 %v8931_v37  ;;  %v8951_v50 = vpack.c.bf16 %v7400_v11, %v7396_v63  ;;  %v5867_v37 = vld [vmem:[%s15295_s7 + $0x80] sm:$0xff]  ;;  %v5856_v63 = vld [vmem:[%s15295_s7 + $0x28] sm:$0xff] }
 0x320   :  { %4100 = vmatprep.mubr.f32.mxu0 %v9355_v52  ;;  %4189 = vmatprep.mubr.f32.mxu1 %v9355_v52 }
 0x321   :  { %8926 = vmatprep.subr.bf16.mxu0 %v8925_v24  ;;  %8934 = vmatprep.subr.bf16.mxu1 %v8933_v55  ;;  %v8953_v24 = vpack.c.bf16 %v5868_v10, %v5867_v37  ;;  %v5851_v55 = vld [vmem:[%s15295_s7] sm:$0xff]  ;;  %v5888_v37 = vld [vmem:[%s15295_s7 + $0x128] sm:$0xff] }
 0x322   :  { %7323 = vmatmul.mubr.msk.f32.gmra.mrb[56].mxu0 %vm3646_vm12, %v12807_v62  ;;  %7327 = vmatmul.mubr.msk.f32.gmra.mrb[56].mxu1 %vm3646_vm12, %v12807_v62  ;;  %v8955_v19 = vpack.c.bf16 %v5852_v49, %v5851_v55  ;;  %v5906_v49 = vld [vmem:[%s15295_s7 + $0x1b8] sm:$0xff] }
 0x323   :  { %4106 = vmatprep.mubr.f32.mxu0 %v9355_v52  ;;  %4195 = vmatprep.mubr.f32.mxu1 %v9355_v52 }
 0x324   :  { %8928 = vmatpush1.bf16.msra.mxu0 %v8927_v45  ;;  %8936 = vmatpush1.bf16.msra.mxu1 %v8935_v34  ;;  %v5869_v45 = vld [vmem:[%s15295_s7 + $0x90] sm:$0xff]  ;;  %v5870_v34 = vld [vmem:[%s15295_s7 + $0x98] sm:$0xff] }
 0x325   :  { %8938 = vmatprep.subr.bf16.mxu0 %v8937_v20  ;;  %8946 = vmatprep.subr.bf16.mxu1 %v8945_v25  ;;  %v5901_v20 = vld [vmem:[%s15295_s7 + $0x190] sm:$0xff]  ;;  %v8957_v25 = vpack.c.bf16 %v5870_v34, %v5869_v45  ;;  %v5890_v45 = vld [vmem:[%s15295_s7 + $0x138] sm:$0xff] }
 0x326   :  { %7324 = vmatmul.mubr.msk.f32.gmra.mrb[58].mxu0 %vm3646_vm12, %v12823_v36  ;;  %7328 = vmatmul.mubr.msk.f32.gmra.mrb[58].mxu1 %vm3646_vm12, %v12823_v36  ;;  %v8989_v57 = vpack.c.bf16 %v5902_v58, %v5901_v20  ;;  %v5875_v20 = vld [vmem:[%s15295_s7 + $0xc0] sm:$0xff] }
 0x327   :  { %4112 = vmatprep.mubr.f32.mxu0 %v9355_v52  ;;  %4201 = vmatprep.mubr.f32.mxu1 %v9355_v52  ;;  %v5907_v58 = vld [vmem:[%s15295_s7 + $0x1c0] sm:$0xff] }
 0x328   :  { %v9001_v12 = vpack.c.bf16 %v5908_v4, %v5907_v58  ;;  %v5882_v58 = vld [vmem:[%s15295_s7 + $0xf8] sm:$0xff] }
 0x32a   :  { %7325 = vmatmul.mubr.msk.f32.gmra.mrb[60].mxu0 %vm3646_vm12, %v12845_v17  ;;  %7329 = vmatmul.mubr.msk.f32.gmra.mrb[60].mxu1 %vm3646_vm12, %v12845_v17 }
 0x32b   :  { %4497 = vmatprep.mubr.f32.mxu0 %v9355_v52  ;;  %4586 = vmatprep.mubr.f32.mxu1 %v9355_v52 }
 0x32e   :  { %7362 = vmatmul.mubr.msk.f32.vlgmr.msra.gmra.mrb[62].mxu0 %vm3646_vm12, %v12789_v6  ;;  %7366 = vmatmul.mubr.msk.f32.vlgmr.msra.gmra.mrb[62].mxu1 %vm3646_vm12, %v12789_v6 }
 0x32f   :  { %8940 = vmatpush1.bf16.msra.mxu0 %v8939_v5  ;;  %8948 = vmatpush1.bf16.msra.mxu1 %v8947_v40  ;;  %v5871_v5 = vld [vmem:[%s15295_s7 + $0xa0] sm:$0xff]  ;;  %v5872_v40 = vld [vmem:[%s15295_s7 + $0xa8] sm:$0xff] }
 0x330   :  { %4503 = vmatprep.mubr.f32.mxu0 %v9355_v52  ;;  %4592 = vmatprep.mubr.f32.mxu1 %v9355_v52 }
 0x331   :  { %8942 = vmatprep.subr.bf16.mxu0 %v8941_v26  ;;  %8950 = vmatprep.subr.bf16.mxu1 %v8949_v15  ;;  %v8961_v26 = vpack.c.bf16 %v5872_v40, %v5871_v5  ;;  %v5904_v15 = vld [vmem:[%s15295_s7 + $0x1a8] sm:$0xff] }
 0x332   :  { %7363 = vmatmul.mubr.msk.f32.gmra.mrb[64].mxu0 %vm3646_vm12, %v12807_v62  ;;  %7367 = vmatmul.mubr.msk.f32.gmra.mrb[64].mxu1 %vm3646_vm12, %v12807_v62  ;;  %v8993_v11 = vpack.c.bf16 %v5904_v15, %v5903_v9  ;;  %v5892_v5 = vld [vmem:[%s15295_s7 + $0x148] sm:$0xff]  ;;  %v5877_v9 = vld [vmem:[%s15295_s7 + $0xd0] sm:$0xff] }
 0x333   :  { %4509 = vmatprep.mubr.f32.mxu0 %v9355_v52  ;;  %4598 = vmatprep.mubr.f32.mxu1 %v9355_v52  ;;  %v5909_v15 = vld [vmem:[%s15295_s7 + $0x1d0] sm:$0xff] }
 0x334   :  { %8944 = vmatpush1.bf16.msra.mxu0 %v8943_v56  ;;  %8952 = vmatpush1.bf16.msra.mxu1 %v8951_v50  ;;  %v8963_v56 = vpack.c.bf16 %v5856_v63, %v5855_v32  ;;  %v5887_v50 = vld [vmem:[%s15295_s7 + $0x120] sm:$0xff]  ;;  %v5910_v63 = vld [vmem:[%s15295_s7 + $0x1d8] sm:$0xff] }
 0x335   :  { %8954 = vmatprep.subr.bf16.mxu0 %v8953_v24  ;;  %v8995_v10 = vpack.c.bf16 %v5888_v37, %v5887_v50  ;;  %v5874_v24 = vld [vmem:[%s15295_s7 + $0xb8] sm:$0xff]  ;;  %v9005_v50 = vpack.c.bf16 %v5910_v63, %v5909_v15  ;;  %v7476_v15 = vld [vmem:[%s15295_s7 + $0x280] sm:$0xff] }
 0x336   :  { %7364 = vmatmul.mubr.msk.f32.gmra.mrb[66].mxu0 %vm3646_vm12, %v12823_v36  ;;  %7368 = vmatmul.mubr.msk.f32.gmra.mrb[66].mxu1 %vm3646_vm12, %v12823_v36  ;;  %v7508_v63 = vld [vmem:[%s15295_s7 + $0x380] sm:$0xff] }
 0x337   :  { %4515 = vmatprep.mubr.f32.mxu0 %v9355_v52  ;;  %4604 = vmatprep.mubr.f32.mxu1 %v9355_v52 }
 0x33a   :  { %7365 = vmatmul.mubr.msk.f32.gmra.mrb[68].mxu0 %vm3646_vm12, %v12845_v17  ;;  %7369 = vmatmul.mubr.msk.f32.gmra.mrb[68].mxu1 %vm3646_vm12, %v12845_v17 }
 0x33b   :  { %4869 = vmatprep.mubr.f32.mxu0 %v9355_v52  ;;  %4958 = vmatprep.mubr.f32.mxu1 %v9355_v52 }
 0x33e   :  { %7402 = vmatmul.mubr.msk.f32.vlgmr.msra.gmra.mrb[70].mxu0 %vm3646_vm12, %v12789_v6  ;;  %7406 = vmatmul.mubr.msk.f32.vlgmr.msra.gmra.mrb[70].mxu1 %vm3646_vm12, %v12789_v6  ;;  %v3838_v6 = vld [vmem:[#allocation2 + $0x8] sm:$0xf] }
 0x33f   :  { %4875 = vmatprep.mubr.f32.mxu0 %v9355_v52  ;;  %4964 = vmatprep.mubr.f32.mxu1 %v9355_v52 }
 0x340   :  { %8956 = vmatpush3.bf16.msra.mxu0 %v8955_v19  ;;  %v5858_v19 = vld [vmem:[%s15295_s7 + $0x38] sm:$0xff] }
 0x341   :  { %8958 = vmatprep.subr.bf16.mxu0 %v8957_v25  ;;  %v5876_v25 = vld [vmem:[%s15295_s7 + $0xc8] sm:$0xff] }
 0x342   :  { %7403 = vmatmul.mubr.msk.f32.gmra.mrb[72].mxu0 %vm3646_vm12, %v12807_v62  ;;  %7407 = vmatmul.mubr.msk.f32.gmra.mrb[72].mxu1 %vm3646_vm12, %v12807_v62  ;;  %v8969_v18 = vpack.c.bf16 %v5876_v25, %v5875_v20  ;;  %v5896_v20 = vld [vmem:[%s15295_s7 + $0x168] sm:$0xff]  ;;  %v5881_v25 = vld [vmem:[%s15295_s7 + $0xf0] sm:$0xff]  ;;  %v3837_v62 = vld [vmem:[#allocation2] sm:$0xf] }
 0x343   :  { %4881 = vmatprep.mubr.f32.mxu0 %v9355_v52  ;;  %4970 = vmatprep.mubr.f32.mxu1 %v9355_v52  ;;  %v8981_v4 = vpack.c.bf16 %v5882_v58, %v5881_v25 }
 0x344   :  { %8960 = vmatpush3.bf16.msra.mxu0 %v8959_v54  ;;  %v5860_v54 = vld [vmem:[%s15295_s7 + $0x48] sm:$0xff] }
 0x345   :  { %8962 = vmatprep.subr.bf16.mxu0 %v8961_v26  ;;  %v5878_v26 = vld [vmem:[%s15295_s7 + $0xd8] sm:$0xff] }
 0x346   :  { %7404 = vmatmul.mubr.msk.f32.gmra.mrb[74].mxu0 %vm3646_vm12, %v12823_v36  ;;  %7408 = vmatmul.mubr.msk.f32.gmra.mrb[74].mxu1 %vm3646_vm12, %v12823_v36  ;;  %v8973_v32 = vpack.c.bf16 %v5878_v26, %v5877_v9  ;;  %v13439_v36 = vld [vmem:[%s15295_s7 + $0x320] sm:$0xff] }
 0x347   :  { %4887 = vmatprep.mubr.f32.mxu0 %v9355_v52  ;;  %4976 = vmatprep.mubr.f32.mxu1 %v9355_v52  ;;  %v5900_v52 = vld [vmem:[%s15295_s7 + $0x188] sm:$0xff]  ;;  %15828 = vst [vmem:[#allocation62_spill] sm:$0xff] %v13439_v36 }
 0x348   :  { %v8985_v47 = vpack.c.bf16 %v5900_v52, %v5899_v35  ;;  %8964 = vmatpush3.bf16.msra.mxu0 %v8963_v56  ;;  %v5873_v35 = vld [vmem:[%s15295_s7 + $0xb0] sm:$0xff]  ;;  %v5862_v56 = vld [vmem:[%s15295_s7 + $0x58] sm:$0xff] }
 0x349   :  { %v5905_v52 = vld [vmem:[%s15295_s7 + $0x1b0] sm:$0xff]  ;;  %v8965_v55 = vpack.c.bf16 %v5874_v24, %v5873_v35  ;;  %v5894_v35 = vld [vmem:[%s15295_s7 + $0x158] sm:$0xff]  ;;  %v5879_v24 = vld [vmem:[%s15295_s7 + $0xe0] sm:$0xff] }
 0x34a   :  { %7405 = vmatmul.mubr.msk.f32.gmra.mrb[76].mxu0 %vm3646_vm12, %v12845_v17  ;;  %7409 = vmatmul.mubr.msk.f32.gmra.mrb[76].mxu1 %vm3646_vm12, %v12845_v17  ;;  %v8997_v30 = vpack.c.bf16 %v5906_v49, %v5905_v52  ;;  %v5911_v49 = vld [vmem:[%s15295_s7 + $0x1e0] sm:$0xff]  ;;  %v13434_v17 = vld [vmem:[%s15295_s7 + $0x228] sm:$0xff] }
 0x34b   :  { %8986 = vmatprep.subr.bf16.mxu1 %v8985_v47  ;;  %v5857_v47 = vld [vmem:[%s15295_s7 + $0x30] sm:$0xff]  ;;  %8966 = vmatprep.subr.bf16.mxu0 %v8965_v55  ;;  %v5880_v55 = vld [vmem:[%s15295_s7 + $0xe8] sm:$0xff]  ;;  %15827 = vst [vmem:[#allocation58_spill] sm:$0xff] %v13434_v17 }
 0x34c   :  { %8988 = vmatpush3.bf16.msra.mxu1 %v8987_v8  ;;  %v8967_v53 = vpack.c.bf16 %v5858_v19, %v5857_v47  ;;  %v5889_v8 = vld [vmem:[%s15295_s7 + $0x130] sm:$0xff]  ;;  %v5912_v47 = vld [vmem:[%s15295_s7 + $0x1e8] sm:$0xff]  ;;  %v8977_v19 = vpack.c.bf16 %v5880_v55, %v5879_v24  ;;  %v5231_v55 = vld [vmem:[%s15294_s6] sm:$0xf]  ;;  %s13267_s6 = sld [smem:[#allocation3 + $0x2]] }
 0x34d   :  { %8990 = vmatprep.subr.bf16.mxu1 %v8989_v57  ;;  %v8999_v34 = vpack.c.bf16 %v5890_v45, %v5889_v8  ;;  %v5859_v57 = vld [vmem:[%s15295_s7 + $0x40] sm:$0xff]  ;;  %v5864_v8 = vld [vmem:[%s15295_s7 + $0x68] sm:$0xff] }
 0x34e   :  { %8968 = vmatpush3.bf16.msra.mxu0 %v8967_v53  ;;  %v8971_v1 = vpack.c.bf16 %v5860_v54, %v5859_v57  ;;  %v5863_v53 = vld [vmem:[%s15295_s7 + $0x60] sm:$0xff]  ;;  %v5913_v57 = vld [vmem:[%s15295_s7 + $0x1f0] sm:$0xff]  ;;  %v5914_v54 = vld [vmem:[%s15295_s7 + $0x1f8] sm:$0xff] }
 0x34f   :  { %8970 = vmatprep.subr.bf16.mxu0 %v8969_v18  ;;  %v5895_v45 = vld [vmem:[%s15295_s7 + $0x160] sm:$0xff]  ;;  %v15785_v24 = vld [vmem:[#allocation10_spill] sm:$0xff] }
 0x350   :  { %8992 = vmatpush3.bf16.msra.mxu1 %v8991_v21  ;;  %v5891_v21 = vld [vmem:[%s15295_s7 + $0x140] sm:$0xff]  ;;  %v9011_v18 = vpack.c.bf16 %v5896_v20, %v5895_v45  ;;  %v3846_v17 = vld [vmem:[#allocation2 + $0x48] sm:$0xf] }
 0x351   :  { %8994 = vmatprep.subr.bf16.mxu1 %v8993_v11  ;;  %v9003_v40 = vpack.c.bf16 %v5892_v5, %v5891_v21  ;;  %v5861_v11 = vld [vmem:[%s15295_s7 + $0x50] sm:$0xff]  ;;  %v5866_v21 = vld [vmem:[%s15295_s7 + $0x78] sm:$0xff] }
 0x352   :  { %8972 = vmatpush3.bf16.msra.mxu0 %v8971_v1  ;;  %v8975_v37 = vpack.c.bf16 %v5862_v56, %v5861_v11  ;;  %v9013_v1 = vpack.c.bf16 %v5914_v54, %v5913_v57  ;;  %v5897_v5 = vld [vmem:[%s15295_s7 + $0x170] sm:$0xff]  ;;  %v7509_v56 = vld [vmem:[%s15295_s7 + $0x388] sm:$0xff]  ;;  %v13420_v28 = vstv %s13267_s6 }
 0x353   :  { %8974 = vmatprep.subr.bf16.mxu0 %v8973_v32  ;;  %v7477_v32 = vld [vmem:[%s15295_s7 + $0x288] sm:$0xff]  ;;  %15825 = vst [vmem:[#allocation54_spill] sm:$0xff] %v13420_v28 }
 0x354   :  { %8996 = vmatpush3.bf16.msra.mxu1 %v8995_v10  ;;  %v5893_v10 = vld [vmem:[%s15295_s7 + $0x150] sm:$0xff]  ;;  %v9017_v11 = vpack.c.bf16 %v7477_v32, %v7476_v15 }
 0x355   :  { %8998 = vmatprep.subr.bf16.mxu1 %v8997_v30  ;;  %v9007_v52 = vpack.c.bf16 %v5894_v35, %v5893_v10  ;;  %v9009_v30 = vpack.c.bf16 %v5912_v47, %v5911_v49  ;;  %v5473_v10 = vrot.slane %v15680_v41, %v10506_v14  ;;  %v5499_v35 = vrot.slane %v11374_v46, %v10506_v14  ;;  %v15786_v47 = vld [vmem:[#allocation51_spill] sm:$0xff] }
 0x356   :  { %8976 = vmatpush3.bf16.msra.mxu0 %v8975_v37  ;;  %v5447_v37 = vrot.slane %v11065_v44, %v10506_v14 }
 0x357   :  { %8978 = vmatprep.subr.bf16.mxu0 %v8977_v19  ;;  %v5551_v19 = vrot.slane %v15786_v47, %v10506_v14  ;;  %v5474_v46 = vcombine.high %v5473_v10, %v5473_v10  ;;  %v5500_v45 = vcombine.high %v5499_v35, %v5499_v35  ;;  %v13429_v47 = vld [vmem:[%s15295_s7 + $0x220] sm:$0xff] }
 0x358   :  { %9000 = vmatpush3.bf16.msra.mxu1 %v8999_v34  ;;  %v8979_v34 = vpack.c.bf16 %v5864_v8, %v5863_v53  ;;  %v5448_v49 = vcombine.high %v5447_v37, %v5447_v37  ;;  %v15788_v53 = vld [vmem:[#allocation17_spill] sm:$0xff]  ;;  %v13217_v8 = vrot.slane %v5447_v37, %v10506_v14  ;;  %15826 = vst [vmem:[#allocation59_spill] sm:$0xff] %v13429_v47 }
 0x359   :  { %9002 = vmatprep.subr.bf16.mxu1 %v9001_v12  ;;  %v5865_v12 = vld [vmem:[%s15295_s7 + $0x70] sm:$0xff]  ;;  %v5422_v41 = vcombine.high %v15788_v53, %v15788_v53  ;;  %v13252_v37 = vrot.slane %v5474_v46, %v10506_v14  ;;  %v13318_v16 = vrot.slane %v5551_v19, %v10506_v14 }
 0x35a   :  { %8980 = vmatpush3.bf16.msra.mxu0 %v8979_v34  ;;  %v8983_v9 = vpack.c.bf16 %v5866_v21, %v5865_v12  ;;  %v15789_v34 = vld [vmem:[#allocation9_spill] sm:$0xff]  ;;  %v13376_v21 = vld [vmem:[%s15295_s7 + $0x310] sm:$0xff] }
 0x35b   :  { %8982 = vmatprep.subr.bf16.mxu0 %v8981_v4  ;;  %v15790_v20 = vsub.s32 0, %v15789_v34  ;;  %v15792_v58 = vsub.s32 2, %v15789_v34  ;;  %v15794_v4 = vsub.s32 1, %v15789_v34  ;;  %v15796_v12 = vsub.s32 3, %v15789_v34  ;;  %15808 = vst [vmem:[#allocation44_spill] sm:$0xff] %v13318_v16  ;;  %15817 = vst [vmem:[#allocation49_spill] sm:$0xff] %v13376_v21 }
 0x35c   :  { %9004 = vmatpush3.bf16.msra.mxu1 %v9003_v40  ;;  %v5898_v40 = vld [vmem:[%s15295_s7 + $0x178] sm:$0xff]  ;;  %v13274_v34 = vrot.slane %v5499_v35, %v10506_v14  ;;  %v13326_v35 = vld [vmem:[%s15295_s7 + $0x290] sm:$0xff] }
 0x35d   :  { %9006 = vmatprep.subr.bf16.mxu1 %v9005_v50  ;;  %v9015_v26 = vpack.c.bf16 %v5898_v40, %v5897_v5  ;;  %v9049_v50 = vpack.c.bf16 %v7509_v56, %v7508_v63  ;;  %v13221_v25 = vrot.slane %v5231_v55, %v15790_v20  ;;  %v13229_v57 = vrot.slane %v5231_v55, %v15794_v4  ;;  %v13399_v56 = vld [vmem:[%s15295_s7 + $0x2a8] sm:$0xff]  ;;  %v3844_v16 = vld [vmem:[#allocation2 + $0x38] sm:$0xf] }
 0x35e   :  { %8984 = vmatpush3.bf16.msra.mxu0 %v8983_v9  ;;  %v13238_v5 = vrot.slane %v5448_v49, %v10506_v14  ;;  %v5552_v40 = vcombine.high %v5551_v19, %v5551_v19  ;;  %v13245_v63 = vrot.slane %v5422_v41, %v10506_v14  ;;  %v15803_v41 = vld [vmem:[#allocation24_spill] sm:$0xff]  ;;  %15804 = vst [vmem:[#allocation69_spill] sm:$0xff] %v13274_v34  ;;  %15821 = vst [vmem:[#allocation53_spill] sm:$0xff] %v13399_v56  ;;  %v13404_v49 = vld [vmem:[%s15295_s7 + $0x3a0] sm:$0xff] }
 0x35f   :  { %9018 = vmatprep.subr.bf16.mxu0 %v9017_v11  ;;  %15791 = vst [vmem:[#allocation38_spill] sm:$0xff] %v13221_v25  ;;  %15795 = vst [vmem:[#allocation40_spill] sm:$0xff] %v13229_v57  ;;  %v15799_v11 = vld [vmem:[#allocation12_spill] sm:$0xff]  ;;  %v3839_v19 = vld [vmem:[#allocation2 + $0x10] sm:$0xf] }
 0x360   :  { %9008 = vmatpush3.bf16.msra.mxu1 %v9007_v52  ;;  %v5577_v52 = vrot.slane %v15785_v24, %v10506_v14  ;;  %v13255_v24 = vrot.slane %v5500_v45, %v10506_v14  ;;  %v13277_v20 = vrot.slane %v5552_v40, %v10506_v14  ;;  %v13386_v45 = vld [vmem:[%s15295_s7 + $0x2a0] sm:$0xff]  ;;  %15822 = vst [vmem:[#allocation52_spill] sm:$0xff] %v13404_v49  ;;  %v3847_v56 = vld [vmem:[#allocation2 + $0x50] sm:$0xf] }
 0x361   :  { %9010 = vmatprep.subr.bf16.mxu1 %v9009_v30  ;;  %v15787_v30 = vld [vmem:[#allocation11_spill] sm:$0xff]  ;;  %15819 = vst [vmem:[#allocation23_spill] sm:$0xff] %v13386_v45 }
 0x362   :  { %v5629_v44 = vrot.slane %v15787_v30, %v10506_v14  ;;  %v5578_v54 = vcombine.high %v5577_v52, %v5577_v52  ;;  %v13262_v30 = vrot.slane %v5473_v10, %v10506_v14  ;;  %15805 = vst [vmem:[#allocation72_spill] sm:$0xff] %v13277_v20  ;;  %v13321_v40 = vrot.slane %v5577_v52, %v10506_v14  ;;  %v13357_v10 = vld [vmem:[%s15295_s7 + $0x210] sm:$0xff]  ;;  %v3845_v20 = vld [vmem:[#allocation2 + $0x40] sm:$0xf] }
 0x363   :  { %15813 = vst [vmem:[#allocation47_spill] sm:$0xff] %v13357_v10 }
 0x364   :  { %9012 = vmatpush3.bf16.msra.mxu1 %v9011_v18  ;;  %v13225_v18 = vrot.slane %v5231_v55, %v15792_v58  ;;  %v5630_v32 = vcombine.high %v5629_v44, %v5629_v44  ;;  %15801 = vst [vmem:[#allocation42_spill] sm:$0xff] %v13262_v30  ;;  %v13265_v53 = vrot.slane %v5578_v54, %v10506_v14  ;;  %15809 = vst [vmem:[#allocation43_spill] sm:$0xff] %v13321_v40  ;;  %v13352_v58 = vld [vmem:[%s15295_s7 + $0x398] sm:$0xff] }
 0x365   :  { %9014 = vmatprep.subr.bf16.mxu1 %v9013_v1  ;;  %v13233_v1 = vrot.slane %v5231_v55, %v15796_v12  ;;  %v15800_v55 = vld [vmem:[#allocation67_spill] sm:$0xff]  ;;  %v13331_v12 = vld [vmem:[%s15295_s7 + $0x298] sm:$0xff]  ;;  %v13347_v4 = vrot.slane %v5629_v44, %v10506_v14 }
 0x366   :  { %15793 = vst [vmem:[#allocation37_spill] sm:$0xff] %v13225_v18  ;;  %15802 = vst [vmem:[#allocation41_spill] sm:$0xff] %v13265_v53  ;;  %v13341_v52 = vrot.slane %v5630_v32, %v10506_v14  ;;  %v13362_v32 = vld [vmem:[%s15295_s7 + $0x218] sm:$0xff]  ;;  %v3843_v44 = vld [vmem:[#allocation2 + $0x30] sm:$0xf] }
 0x367   :  { %15797 = vst [vmem:[#allocation39_spill] sm:$0xff] %v13233_v1  ;;  %15812 = vst [vmem:[#allocation48_spill] sm:$0xff] %v13347_v4  ;;  %v3842_v4 = vld [vmem:[#allocation2 + $0x28] sm:$0xf]  ;;  %v3840_v40 = vld [vmem:[#allocation2 + $0x18] sm:$0xf] }
 0x368   :  { %9016 = vmatpush3.bf16.msra.mxu1 %v9015_v26  ;;  %v15798_v26 = vld [vmem:[#allocation19_spill] sm:$0xff]  ;;  %15810 = vst [vmem:[#allocation46_spill] sm:$0xff] %v13341_v52 }
 0x369   :  { %9050 = vmatprep.subr.bf16.mxu1 %v9049_v50  ;;  %v5603_v15 = vrot.slane %v15798_v26, %v10506_v14  ;;  %v13381_v50 = vld [vmem:[%s15295_s7 + $0x318] sm:$0xff] }
 0x36a   :  { %15818 = vst [vmem:[#allocation81_spill] sm:$0xff] %v13381_v50  ;;  %v3850_v50 = vld [vmem:[#allocation2 + $0x68] sm:$0xf] }
 0x36b   :  { %v5604_v54 = vcombine.high %v5603_v15, %v5603_v15  ;;  %v13344_v42 = vrot.slane %v5603_v15, %v10506_v14 }
 0x36d   :  { %15811 = vst [vmem:[#allocation45_spill] sm:$0xff] %v13344_v42  ;;  %v13371_v9 = vrot.slane %v5604_v54, %v10506_v14  ;;  %v13409_v54 = vld [vmem:[%s15295_s7 + $0x3a8] sm:$0xff] }
 0x36e   :  { %15823 = vst [vmem:[#allocation57_spill] sm:$0xff] %v13409_v54  ;;  %v13454_v42 = vld [vmem:[%s15295_s7 + $0x328] sm:$0xff] }
 0x36f   :  { %15816 = vst [vmem:[#allocation50_spill] sm:$0xff] %v13371_v9  ;;  %15829 = vst [vmem:[#allocation60_spill] sm:$0xff] %v13454_v42 }
 0x3e1   :  { %v3725_v61 = vpop.f32.mrb[46].mxu0  ;;  %v3814_v59 = vpop.f32.mrb[46].mxu1 }
 0x3e2   :  { %v3727_v14 = vpop.f32.mrb[47].mxu0  ;;  %v3816_v33 = vpop.f32.mrb[47].mxu1 }
 0x3e3   :  { %v3885_v52 = vcombine.low %v3725_v61, %v3727_v14  ;;  %v3886_v60 = vcombine.high %v3725_v61, %v3727_v14  ;;  %v7290_v9 = vcombine.low %v3727_v14, %v3727_v14  ;;  %v7292_v46 = vcombine.high %v3727_v14, %v3727_v14 }
 0x3e4   :  { %v3887_v15 = vcombine.low %v3814_v59, %v3816_v33  ;;  %v3888_v53 = vcombine.high %v3814_v59, %v3816_v33  ;;  %v7291_v29 = vcombine.low %v3816_v33, %v3816_v33  ;;  %v7293_v23 = vcombine.high %v3816_v33, %v3816_v33 }
 0x3e5   :  { %v3949_v26 = vadd.f32 %v3885_v52, %v3837_v62  ;;  %v3950_v38 = vadd.f32 %v7290_v9, %v3838_v6  ;;  %v3953_v49 = vadd.f32 %v3886_v60, %v3841_v13  ;;  %v3954_v54 = vadd.f32 %v7292_v46, %v3842_v4  ;;  %v3731_v43 = vpop.f32.mrb[48].mxu0  ;;  %v3820_v47 = vpop.f32.mrb[48].mxu1  ;;  %v3848_v6 = vld [vmem:[#allocation2 + $0x58] sm:$0xf]  ;;  %v3851_v62 = vld [vmem:[#allocation2 + $0x70] sm:$0xf] }
 0x3e6   :  { %v3951_v36 = vadd.f32 %v3887_v15, %v3839_v19  ;;  %v3952_v61 = vadd.f32 %v7291_v29, %v3840_v40  ;;  %v3955_v42 = vadd.f32 %v3888_v53, %v3843_v44  ;;  %v3956_v14 = vadd.f32 %v7293_v23, %v3844_v16  ;;  %v3733_v21 = vpop.f32.mrb[49].mxu0  ;;  %v3822_v45 = vpop.f32.mrb[49].mxu1  ;;  %v3852_v9 = vld [vmem:[#allocation2 + $0x78] sm:$0xf]  ;;  %v3853_v46 = vld [vmem:[#allocation2 + $0xa0] sm:$0xf] }
 0x3e7   :  { %3981 = vst [vmem:[#allocation2] sm:$0xf] %v3949_v26  ;;  %3982 = vst [vmem:[#allocation2 + $0x8] sm:$0xf] %v3950_v38  ;;  %v3889_v33 = vcombine.low %v3731_v43, %v3733_v21  ;;  %v3890_v59 = vcombine.high %v3731_v43, %v3733_v21  ;;  %v7294_v60 = vcombine.low %v3733_v21, %v3733_v21  ;;  %v3854_v19 = vld [vmem:[#allocation2 + $0xa8] sm:$0xf] }
 0x3e8   :  { %3985 = vst [vmem:[#allocation2 + $0x20] sm:$0xf] %v3953_v49  ;;  %3986 = vst [vmem:[#allocation2 + $0x28] sm:$0xf] %v3954_v54  ;;  %v7296_v13 = vcombine.high %v3733_v21, %v3733_v21  ;;  %v3891_v23 = vcombine.low %v3820_v47, %v3822_v45  ;;  %v3892_v29 = vcombine.high %v3820_v47, %v3822_v45  ;;  %v3857_v21 = vld [vmem:[#allocation2 + $0xc0] sm:$0xf] }
 0x3e9   :  { %3983 = vst [vmem:[#allocation2 + $0x10] sm:$0xf] %v3951_v36  ;;  %3984 = vst [vmem:[#allocation2 + $0x18] sm:$0xf] %v3952_v61  ;;  %v7295_v16 = vcombine.low %v3822_v45, %v3822_v45  ;;  %v7297_v53 = vcombine.high %v3822_v45, %v3822_v45  ;;  %v3957_v4 = vadd.f32 %v3889_v33, %v3845_v20  ;;  %v3737_v26 = vpop.f32.mrb[50].mxu0  ;;  %v3826_v43 = vpop.f32.mrb[50].mxu1 }
 0x3ea   :  { %3987 = vst [vmem:[#allocation2 + $0x30] sm:$0xf] %v3955_v42  ;;  %3988 = vst [vmem:[#allocation2 + $0x38] sm:$0xf] %v3956_v14  ;;  %v3958_v38 = vadd.f32 %v7294_v60, %v3846_v17  ;;  %v3961_v49 = vadd.f32 %v3890_v59, %v3849_v27  ;;  %v3962_v40 = vadd.f32 %v7296_v13, %v3850_v50  ;;  %v3739_v54 = vpop.f32.mrb[51].mxu0  ;;  %v3828_v61 = vpop.f32.mrb[51].mxu1 }
 0x3eb   :  { %v3959_v52 = vadd.f32 %v3891_v23, %v3847_v56  ;;  %v3960_v15 = vadd.f32 %v7295_v16, %v3848_v6  ;;  %v3963_v44 = vadd.f32 %v3892_v29, %v3851_v62  ;;  %v3964_v36 = vadd.f32 %v7297_v53, %v3852_v9  ;;  %v3858_v42 = vld [vmem:[#allocation2 + $0xc8] sm:$0xf]  ;;  %v3855_v14 = vld [vmem:[#allocation2 + $0xb0] sm:$0xf]  ;;  %3989 = vst [vmem:[#allocation2 + $0x40] sm:$0xf] %v3957_v4 }
 0x3ec   :  { %3990 = vst [vmem:[#allocation2 + $0x48] sm:$0xf] %v3958_v38  ;;  %3993 = vst [vmem:[#allocation2 + $0x60] sm:$0xf] %v3961_v49  ;;  %v3893_v47 = vcombine.low %v3737_v26, %v3739_v54  ;;  %v3894_v17 = vcombine.high %v3737_v26, %v3739_v54  ;;  %v7298_v27 = vcombine.low %v3739_v54, %v3739_v54  ;;  %v3856_v45 = vld [vmem:[#allocation2 + $0xb8] sm:$0xf] }
 0x3ed   :  { %3994 = vst [vmem:[#allocation2 + $0x68] sm:$0xf] %v3962_v40  ;;  %v7300_v50 = vcombine.high %v3739_v54, %v3739_v54  ;;  %v3859_v20 = vld [vmem:[#allocation2 + $0xd0] sm:$0xf]  ;;  %v3860_v33 = vld [vmem:[#allocation2 + $0xd8] sm:$0xf]  ;;  %v3895_v56 = vcombine.low %v3826_v43, %v3828_v61  ;;  %v3896_v59 = vcombine.high %v3826_v43, %v3828_v61  ;;  %v7299_v60 = vcombine.low %v3828_v61, %v3828_v61 }
 0x3ee   :  { %3991 = vst [vmem:[#allocation2 + $0x50] sm:$0xf] %v3959_v52  ;;  %3992 = vst [vmem:[#allocation2 + $0x58] sm:$0xf] %v3960_v15  ;;  %v7301_v13 = vcombine.high %v3828_v61, %v3828_v61  ;;  %v3861_v6 = vld [vmem:[#allocation2 + $0xe0] sm:$0xf]  ;;  %v3965_v62 = vadd.f32 %v3893_v47, %v3853_v46  ;;  %v3966_v9 = vadd.f32 %v7298_v27, %v3854_v19 }
 0x3ef   :  { %3995 = vst [vmem:[#allocation2 + $0x70] sm:$0xf] %v3963_v44  ;;  %3996 = vst [vmem:[#allocation2 + $0x78] sm:$0xf] %v3964_v36  ;;  %v3969_v23 = vadd.f32 %v3894_v17, %v3857_v21  ;;  %v3970_v29 = vadd.f32 %v7300_v50, %v3858_v42  ;;  %v3743_v16 = vpop.f32.mrb[52].mxu0  ;;  %v3832_v53 = vpop.f32.mrb[52].mxu1  ;;  %v3967_v49 = vadd.f32 %v3895_v56, %v3855_v14 }
 0x3f0   :  { %v3862_v4 = vld [vmem:[#allocation2 + $0xe8] sm:$0xf]  ;;  %v3865_v38 = vld [vmem:[#allocation2 + $0x100] sm:$0xf]  ;;  %v3968_v40 = vadd.f32 %v7299_v60, %v3856_v45  ;;  %v3971_v26 = vadd.f32 %v3896_v59, %v3859_v20  ;;  %v3972_v52 = vadd.f32 %v7301_v13, %v3860_v33  ;;  %v3745_v15 = vpop.f32.mrb[53].mxu0  ;;  %v3834_v36 = vpop.f32.mrb[53].mxu1 }
 0x3f1   :  { %v3866_v44 = vld [vmem:[#allocation2 + $0x108] sm:$0xf]  ;;  %v3863_v54 = vld [vmem:[#allocation2 + $0xf0] sm:$0xf]  ;;  %3997 = vst [vmem:[#allocation2 + $0xa0] sm:$0xf] %v3965_v62  ;;  %v3897_v46 = vcombine.low %v3743_v16, %v3745_v15  ;;  %v3898_v43 = vcombine.high %v3743_v16, %v3745_v15  ;;  %v7302_v19 = vcombine.low %v3745_v15, %v3745_v15  ;;  %v7304_v21 = vcombine.high %v3745_v15, %v3745_v15 }
 0x3f2   :  { %3998 = vst [vmem:[#allocation2 + $0xa8] sm:$0xf] %v3966_v9  ;;  %4001 = vst [vmem:[#allocation2 + $0xc0] sm:$0xf] %v3969_v23  ;;  %v3864_v42 = vld [vmem:[#allocation2 + $0xf8] sm:$0xf]  ;;  %v3899_v14 = vcombine.low %v3832_v53, %v3834_v36  ;;  %v3900_v17 = vcombine.high %v3832_v53, %v3834_v36  ;;  %v7303_v27 = vcombine.low %v3834_v36, %v3834_v36 }
 0x3f3   :  { %4002 = vst [vmem:[#allocation2 + $0xc8] sm:$0xf] %v3970_v29  ;;  %v3867_v61 = vld [vmem:[#allocation2 + $0x110] sm:$0xf]  ;;  %v3868_v47 = vld [vmem:[#allocation2 + $0x118] sm:$0xf]  ;;  %v7305_v50 = vcombine.high %v3834_v36, %v3834_v36  ;;  %v3973_v45 = vadd.f32 %v3897_v46, %v3861_v6  ;;  %v3974_v20 = vadd.f32 %v7302_v19, %v3862_v4  ;;  %v3977_v33 = vadd.f32 %v3898_v43, %v3865_v38 }
 0x3f4   :  { %3999 = vst [vmem:[#allocation2 + $0xb0] sm:$0xf] %v3967_v49  ;;  %4000 = vst [vmem:[#allocation2 + $0xb8] sm:$0xf] %v3968_v40  ;;  %v3978_v56 = vadd.f32 %v7304_v21, %v3866_v44  ;;  %v4096_v59 = vpop.f32.mrb[54].mxu0  ;;  %v4185_v60 = vpop.f32.mrb[54].mxu1  ;;  %v3975_v13 = vadd.f32 %v3899_v14, %v3863_v54  ;;  %v3976_v62 = vadd.f32 %v7303_v27, %v3864_v42 }
 0x3f5   :  { %4003 = vst [vmem:[#allocation2 + $0xd0] sm:$0xf] %v3971_v26  ;;  %4004 = vst [vmem:[#allocation2 + $0xd8] sm:$0xf] %v3972_v52  ;;  %v3979_v9 = vadd.f32 %v3900_v17, %v3867_v61  ;;  %v3980_v23 = vadd.f32 %v7305_v50, %v3868_v47  ;;  %v4098_v29 = vpop.f32.mrb[55].mxu0  ;;  %v4187_v16 = vpop.f32.mrb[55].mxu1 }
 0x3f6   :  { %4005 = vst [vmem:[#allocation2 + $0xe0] sm:$0xf] %v3973_v45  ;;  %4006 = vst [vmem:[#allocation2 + $0xe8] sm:$0xf] %v3974_v20  ;;  %v4256_v49 = vcombine.low %v4096_v59, %v4098_v29  ;;  %v4257_v53 = vcombine.high %v4096_v59, %v4098_v29  ;;  %v7330_v40 = vcombine.low %v4098_v29, %v4098_v29  ;;  %v4208_v6 = vld [vmem:[#allocation2] sm:$0x1e] }
 0x3f7   :  { %4009 = vst [vmem:[#allocation2 + $0x100] sm:$0xf] %v3977_v33  ;;  %4010 = vst [vmem:[#allocation2 + $0x108] sm:$0xf] %v3978_v56  ;;  %v7332_v26 = vcombine.high %v4098_v29, %v4098_v29  ;;  %v4209_v4 = vld [vmem:[#allocation2 + $0x8] sm:$0x1e]  ;;  %v4258_v15 = vcombine.low %v4185_v60, %v4187_v16  ;;  %v4259_v44 = vcombine.high %v4185_v60, %v4187_v16 }
 0x3f8   :  { %4007 = vst [vmem:[#allocation2 + $0xf0] sm:$0xf] %v3975_v13  ;;  %4008 = vst [vmem:[#allocation2 + $0xf8] sm:$0xf] %v3976_v62  ;;  %v4212_v38 = vld [vmem:[#allocation2 + $0x20] sm:$0x1e]  ;;  %v7331_v36 = vcombine.low %v4187_v16, %v4187_v16  ;;  %v7333_v54 = vcombine.high %v4187_v16, %v4187_v16 }
 0x3f9   :  { %4011 = vst [vmem:[#allocation2 + $0x110] sm:$0xf] %v3979_v9  ;;  %4012 = vst [vmem:[#allocation2 + $0x118] sm:$0xf] %v3980_v23  ;;  %v4213_v52 = vld [vmem:[#allocation2 + $0x28] sm:$0x1e] }
 0x3fa   :  { %v4288_v46 = vrot.slane %v4256_v49, 7  ;;  %v4289_v43 = vrot.slane %v7330_v40, 7  ;;  %v4292_v19 = vrot.slane %v4257_v53, 7  ;;  %v4293_v21 = vrot.slane %v7332_v26, 7  ;;  %v4210_v42 = vld [vmem:[#allocation2 + $0x10] sm:$0x1e] }
 0x3fb   :  { %v4102_v61 = vpop.f32.mrb[56].mxu0  ;;  %v4191_v47 = vpop.f32.mrb[56].mxu1  ;;  %v4290_v14 = vrot.slane %v4258_v15, 7  ;;  %v4291_v17 = vrot.slane %v7331_v36, 7  ;;  %v4294_v27 = vrot.slane %v4259_v44, 7  ;;  %v4295_v50 = vrot.slane %v7333_v54, 7 }
 0x3fc   :  { %v4104_v45 = vpop.f32.mrb[57].mxu0  ;;  %v4193_v20 = vpop.f32.mrb[57].mxu1  ;;  %v4352_v33 = vadd.f32 %v4288_v46, %v4208_v6  ;;  %v4353_v56 = vadd.f32 %v4289_v43, %v4209_v4  ;;  %v4356_v59 = vadd.f32 %v4292_v19, %v4212_v38  ;;  %v4357_v13 = vadd.f32 %v4293_v21, %v4213_v52  ;;  %v4211_v60 = vld [vmem:[#allocation2 + $0x18] sm:$0x1e]  ;;  %v4214_v62 = vld [vmem:[#allocation2 + $0x30] sm:$0x1e] }
 0x3fd   :  { %v4215_v9 = vld [vmem:[#allocation2 + $0x38] sm:$0x1e]  ;;  %v4354_v23 = vadd.f32 %v4290_v14, %v4210_v42  ;;  %v4355_v29 = vadd.f32 %v4291_v17, %v4211_v60  ;;  %v4358_v16 = vadd.f32 %v4294_v27, %v4214_v62  ;;  %v4260_v53 = vcombine.low %v4102_v61, %v4104_v45  ;;  %v4108_v44 = vpop.f32.mrb[58].mxu0  ;;  %v13464_v6 = vpop.f32.mrb[58].mxu1  ;;  %v4216_v4 = vld [vmem:[#allocation2 + $0x40] sm:$0x1e] }
 0x3fe   :  { %v4359_v49 = vadd.f32 %v4295_v50, %v4215_v9  ;;  %4384 = vst [vmem:[#allocation2] sm:$0x1e] %v4352_v33  ;;  %4385 = vst [vmem:[#allocation2 + $0x8] sm:$0x1e] %v4353_v56  ;;  %v4261_v40 = vcombine.high %v4102_v61, %v4104_v45  ;;  %v7334_v26 = vcombine.low %v4104_v45, %v4104_v45  ;;  %v4217_v38 = vld [vmem:[#allocation2 + $0x48] sm:$0x1e] }
 0x3ff   :  { %4388 = vst [vmem:[#allocation2 + $0x20] sm:$0x1e] %v4356_v59  ;;  %4389 = vst [vmem:[#allocation2 + $0x28] sm:$0x1e] %v4357_v13  ;;  %v7336_v15 = vcombine.high %v4104_v45, %v4104_v45  ;;  %v4220_v52 = vld [vmem:[#allocation2 + $0x60] sm:$0x1e]  ;;  %v4262_v54 = vcombine.low %v4191_v47, %v4193_v20  ;;  %v4263_v46 = vcombine.high %v4191_v47, %v4193_v20 }
 0x400   :  { %4386 = vst [vmem:[#allocation2 + $0x10] sm:$0x1e] %v4354_v23  ;;  %4387 = vst [vmem:[#allocation2 + $0x18] sm:$0x1e] %v4355_v29  ;;  %v4221_v36 = vld [vmem:[#allocation2 + $0x68] sm:$0x1e]  ;;  %v7335_v43 = vcombine.low %v4193_v20, %v4193_v20  ;;  %v7337_v19 = vcombine.high %v4193_v20, %v4193_v20 }
 0x401   :  { %4390 = vst [vmem:[#allocation2 + $0x30] sm:$0x1e] %v4358_v16  ;;  %4391 = vst [vmem:[#allocation2 + $0x38] sm:$0x1e] %v4359_v49  ;;  %v4110_v21 = vpop.f32.mrb[59].mxu0  ;;  %v4199_v42 = vpop.f32.mrb[59].mxu1 }
 0x402   :  { %v4296_v61 = vrot.slane %v4260_v53, 7  ;;  %v4297_v14 = vrot.slane %v7334_v26, 7  ;;  %v4300_v17 = vrot.slane %v4261_v40, 7  ;;  %v4301_v27 = vrot.slane %v7336_v15, 7  ;;  %v4218_v50 = vld [vmem:[#allocation2 + $0x50] sm:$0x1e] }
 0x403   :  { %v4219_v45 = vld [vmem:[#allocation2 + $0x58] sm:$0x1e]  ;;  %v4298_v33 = vrot.slane %v4262_v54, 7  ;;  %v4299_v56 = vrot.slane %v7335_v43, 7  ;;  %v4302_v59 = vrot.slane %v4263_v46, 7  ;;  %v4303_v13 = vrot.slane %v7337_v19, 7 }
 0x404   :  { %v4360_v60 = vadd.f32 %v4296_v61, %v4216_v4  ;;  %v4361_v62 = vadd.f32 %v4297_v14, %v4217_v38  ;;  %v4364_v9 = vadd.f32 %v4300_v17, %v4220_v52  ;;  %v4365_v23 = vadd.f32 %v4301_v27, %v4221_v36  ;;  %v4222_v29 = vld [vmem:[#allocation2 + $0x70] sm:$0x1e]  ;;  %v4223_v47 = vld [vmem:[#allocation2 + $0x78] sm:$0x1e]  ;;  %v13466_v16 = vpop.f32.mrb[60].mxu0  ;;  %v13468_v20 = vpop.f32.mrb[60].mxu1 }
 0x405   :  { %v4362_v49 = vadd.f32 %v4298_v33, %v4218_v50  ;;  %v4363_v53 = vadd.f32 %v4299_v56, %v4219_v45  ;;  %v4366_v40 = vadd.f32 %v4302_v59, %v4222_v29  ;;  %v4367_v26 = vadd.f32 %v4303_v13, %v4223_v47  ;;  %v13470_v15 = vpop.f32.mrb[61].mxu0  ;;  %v13472_v54 = vpop.f32.mrb[61].mxu1  ;;  %v4224_v46 = vld [vmem:[#allocation2 + $0xa0] sm:$0x1e]  ;;  %v4225_v43 = vld [vmem:[#allocation2 + $0xa8] sm:$0x1e] }
 0x406   :  { %4392 = vst [vmem:[#allocation2 + $0x40] sm:$0x1e] %v4360_v60  ;;  %4393 = vst [vmem:[#allocation2 + $0x48] sm:$0x1e] %v4361_v62  ;;  %v4264_v4 = vcombine.low %v4108_v44, %v4110_v21  ;;  %v4265_v38 = vcombine.high %v4108_v44, %v4110_v21  ;;  %v7338_v52 = vcombine.low %v4110_v21, %v4110_v21  ;;  %v4228_v19 = vld [vmem:[#allocation2 + $0xc0] sm:$0x1e] }
 0x407   :  { %4396 = vst [vmem:[#allocation2 + $0x60] sm:$0x1e] %v4364_v9  ;;  %4397 = vst [vmem:[#allocation2 + $0x68] sm:$0x1e] %v4365_v23  ;;  %v7340_v36 = vcombine.high %v4110_v21, %v4110_v21  ;;  %v4229_v61 = vld [vmem:[#allocation2 + $0xc8] sm:$0x1e]  ;;  %v4266_v14 = vcombine.low %v13464_v6, %v4199_v42  ;;  %v4267_v17 = vcombine.high %v13464_v6, %v4199_v42 }
 0x408   :  { %4394 = vst [vmem:[#allocation2 + $0x50] sm:$0x1e] %v4362_v49  ;;  %4395 = vst [vmem:[#allocation2 + $0x58] sm:$0x1e] %v4363_v53  ;;  %v7339_v27 = vcombine.low %v4199_v42, %v4199_v42  ;;  %v7341_v50 = vcombine.high %v4199_v42, %v4199_v42  ;;  %v4304_v45 = vrot.slane %v4264_v4, 7  ;;  %v4305_v33 = vrot.slane %v7338_v52, 7 }
 0x409   :  { %4398 = vst [vmem:[#allocation2 + $0x70] sm:$0x1e] %v4366_v40  ;;  %4399 = vst [vmem:[#allocation2 + $0x78] sm:$0x1e] %v4367_v26  ;;  %v4308_v56 = vrot.slane %v4265_v38, 7  ;;  %v4309_v44 = vrot.slane %v7340_v36, 7 }
 0x40a   :  { %v4226_v59 = vld [vmem:[#allocation2 + $0xb0] sm:$0x1e]  ;;  %v13476_v21 = vpop.f32.mrb[62].mxu0  ;;  %v13478_v13 = vpop.f32.mrb[62].mxu1  ;;  %v4306_v60 = vrot.slane %v4266_v14, 7  ;;  %v4307_v62 = vrot.slane %v7339_v27, 7  ;;  %v4368_v6 = vadd.f32 %v4304_v45, %v4224_v46  ;;  %v4369_v49 = vadd.f32 %v4305_v33, %v4225_v43 }
 0x40b   :  { %v4310_v9 = vrot.slane %v4267_v17, 7  ;;  %v4311_v23 = vrot.slane %v7341_v50, 7  ;;  %v13480_v29 = vpop.f32.mrb[63].mxu0  ;;  %v13482_v47 = vpop.f32.mrb[63].mxu1  ;;  %v4372_v42 = vadd.f32 %v4308_v56, %v4228_v19  ;;  %v4373_v53 = vadd.f32 %v4309_v44, %v4229_v61  ;;  %v4227_v40 = vld [vmem:[#allocation2 + $0xb8] sm:$0x1e] }
 0x40c   :  { %v4230_v26 = vld [vmem:[#allocation2 + $0xd0] sm:$0x1e]  ;;  %v4231_v4 = vld [vmem:[#allocation2 + $0xd8] sm:$0x1e]  ;;  %v4370_v38 = vadd.f32 %v4306_v60, %v4226_v59  ;;  %v4371_v52 = vadd.f32 %v4307_v62, %v4227_v40  ;;  %4400 = vst [vmem:[#allocation2 + $0xa0] sm:$0x1e] %v4368_v6  ;;  %v4268_v14 = vcombine.low %v13466_v16, %v13470_v15  ;;  %v4269_v46 = vcombine.high %v13466_v16, %v13470_v15 }
 0x40d   :  { %v4374_v36 = vadd.f32 %v4310_v9, %v4230_v26  ;;  %v4375_v34 = vadd.f32 %v4311_v23, %v4231_v4  ;;  %4401 = vst [vmem:[#allocation2 + $0xa8] sm:$0x1e] %v4369_v49  ;;  %4404 = vst [vmem:[#allocation2 + $0xc0] sm:$0x1e] %v4372_v42  ;;  %v7342_v43 = vcombine.low %v13470_v15, %v13470_v15  ;;  %v13492_v61 = vpop.f32.mrb[64].mxu0  ;;  %v13494_v17 = vpop.f32.mrb[64].mxu1 }
 0x40e   :  { %4405 = vst [vmem:[#allocation2 + $0xc8] sm:$0x1e] %v4373_v53  ;;  %v7344_v19 = vcombine.high %v13470_v15, %v13470_v15  ;;  %4402 = vst [vmem:[#allocation2 + $0xb0] sm:$0x1e] %v4370_v38  ;;  %v4232_v27 = vld [vmem:[#allocation2 + $0xe0] sm:$0x1e]  ;;  %v4270_v16 = vcombine.low %v13468_v20, %v13472_v54  ;;  %v4271_v33 = vcombine.high %v13468_v20, %v13472_v54 }
 0x40f   :  { %4403 = vst [vmem:[#allocation2 + $0xb8] sm:$0x1e] %v4371_v52  ;;  %4406 = vst [vmem:[#allocation2 + $0xd0] sm:$0x1e] %v4374_v36  ;;  %v4233_v50 = vld [vmem:[#allocation2 + $0xe8] sm:$0x1e]  ;;  %v7343_v15 = vcombine.low %v13472_v54, %v13472_v54  ;;  %v7345_v56 = vcombine.high %v13472_v54, %v13472_v54 }
 0x410   :  { %4407 = vst [vmem:[#allocation2 + $0xd8] sm:$0x1e] %v4375_v34  ;;  %v4236_v45 = vld [vmem:[#allocation2 + $0x100] sm:$0x1e]  ;;  %v13504_v44 = vpop.f32.mrb[65].mxu0  ;;  %v13506_v59 = vpop.f32.mrb[65].mxu1 }
 0x411   :  { %v4237_v34 = vld [vmem:[#allocation2 + $0x108] sm:$0x1e]  ;;  %v4312_v60 = vrot.slane %v4268_v14, 7  ;;  %v4313_v62 = vrot.slane %v7342_v43, 7  ;;  %v4316_v9 = vrot.slane %v4269_v46, 7  ;;  %v4317_v23 = vrot.slane %v7344_v19, 7 }
 0x412   :  { %v4234_v6 = vld [vmem:[#allocation2 + $0xf0] sm:$0x1e]  ;;  %v4314_v49 = vrot.slane %v4270_v16, 7  ;;  %v4315_v42 = vrot.slane %v7343_v15, 7  ;;  %v4318_v53 = vrot.slane %v4271_v33, 7  ;;  %v4319_v20 = vrot.slane %v7345_v56, 7 }
 0x413   :  { %v4376_v40 = vadd.f32 %v4312_v60, %v4232_v27  ;;  %v4377_v26 = vadd.f32 %v4313_v62, %v4233_v50  ;;  %v4380_v4 = vadd.f32 %v4316_v9, %v4236_v45  ;;  %v4381_v38 = vadd.f32 %v4317_v23, %v4237_v34  ;;  %v4235_v52 = vld [vmem:[#allocation2 + $0xf8] sm:$0x1e]  ;;  %v4238_v54 = vld [vmem:[#allocation2 + $0x110] sm:$0x1e]  ;;  %v4616_v14 = vld [vmem:[#allocation2 + $0x40] sm:$0xf] }
 0x414   :  { %v4239_v36 = vld [vmem:[#allocation2 + $0x118] sm:$0x1e]  ;;  %v4378_v2 = vadd.f32 %v4314_v49, %v4234_v6  ;;  %v4379_v30 = vadd.f32 %v4315_v42, %v4235_v52  ;;  %v4382_v39 = vadd.f32 %v4318_v53, %v4238_v54  ;;  %v4617_v43 = vld [vmem:[#allocation2 + $0x48] sm:$0xf]  ;;  %v13508_v46 = vpop.f32.mrb[66].mxu0  ;;  %v13510_v19 = vpop.f32.mrb[66].mxu1  ;;  %v4660_v27 = vcombine.low %v13476_v21, %v13480_v29 }
 0x415   :  { %v4383_v10 = vadd.f32 %v4319_v20, %v4239_v36  ;;  %4408 = vst [vmem:[#allocation2 + $0xe0] sm:$0x1e] %v4376_v40  ;;  %4409 = vst [vmem:[#allocation2 + $0xe8] sm:$0x1e] %v4377_v26  ;;  %v4661_v50 = vcombine.high %v13476_v21, %v13480_v29  ;;  %v7370_v45 = vcombine.low %v13480_v29, %v13480_v29  ;;  %v4618_v33 = vld [vmem:[#allocation2 + $0x50] sm:$0xf] }
 0x416   :  { %4412 = vst [vmem:[#allocation2 + $0x100] sm:$0x1e] %v4380_v4  ;;  %4413 = vst [vmem:[#allocation2 + $0x108] sm:$0x1e] %v4381_v38  ;;  %v7372_v16 = vcombine.high %v13480_v29, %v13480_v29  ;;  %v4619_v15 = vld [vmem:[#allocation2 + $0x58] sm:$0xf]  ;;  %v4662_v21 = vcombine.low %v13478_v13, %v13482_v47  ;;  %v4663_v9 = vcombine.high %v13478_v13, %v13482_v47 }
 0x417   :  { %v13520_v56 = vpop.f32.mrb[67].mxu0  ;;  %v13522_v34 = vpop.f32.mrb[67].mxu1  ;;  %4410 = vst [vmem:[#allocation2 + $0xf0] sm:$0x1e] %v4378_v2  ;;  %4411 = vst [vmem:[#allocation2 + $0xf8] sm:$0x1e] %v4379_v30  ;;  %v7371_v29 = vcombine.low %v13482_v47, %v13482_v47  ;;  %v7373_v23 = vcombine.high %v13482_v47, %v13482_v47  ;;  %v4728_v2 = vadd.f32 %v4661_v50, %v4616_v14 }
 0x418   :  { %4414 = vst [vmem:[#allocation2 + $0x110] sm:$0x1e] %v4382_v39  ;;  %4415 = vst [vmem:[#allocation2 + $0x118] sm:$0x1e] %v4383_v10  ;;  %v4612_v60 = vld [vmem:[#allocation2 + $0x20] sm:$0xf]  ;;  %v4729_v30 = vadd.f32 %v7372_v16, %v4617_v43  ;;  %v4730_v26 = vadd.f32 %v4663_v9, %v4618_v33  ;;  %v4664_v47 = vcombine.low %v13492_v61, %v13504_v44 }
 0x419   :  { %v4613_v62 = vld [vmem:[#allocation2 + $0x28] sm:$0xf]  ;;  %v4724_v6 = vadd.f32 %v4660_v27, %v4612_v60  ;;  %v4614_v39 = vld [vmem:[#allocation2 + $0x30] sm:$0xf]  ;;  %v4615_v10 = vld [vmem:[#allocation2 + $0x38] sm:$0xf]  ;;  %v4731_v13 = vadd.f32 %v7373_v23, %v4619_v15  ;;  %v4665_v36 = vcombine.high %v13492_v61, %v13504_v44  ;;  %v7374_v14 = vcombine.low %v13504_v44, %v13504_v44 }
 0x41a   :  { %v4725_v49 = vadd.f32 %v7370_v45, %v4613_v62  ;;  %v13532_v42 = vpop.f32.mrb[68].mxu0  ;;  %v13534_v53 = vpop.f32.mrb[68].mxu1  ;;  %v4726_v20 = vadd.f32 %v4662_v21, %v4614_v39  ;;  %v4727_v40 = vadd.f32 %v7371_v29, %v4615_v10  ;;  %v4624_v4 = vld [vmem:[#allocation2 + $0x80] sm:$0xf]  ;;  %v4625_v38 = vld [vmem:[#allocation2 + $0x88] sm:$0xf]  ;;  %v7376_v43 = vcombine.high %v13504_v44, %v13504_v44 }
 0x41b   :  { %v13536_v52 = vpop.f32.mrb[69].mxu0  ;;  %v13538_v54 = vpop.f32.mrb[69].mxu1  ;;  %4756 = vst [vmem:[#allocation2 + $0x20] sm:$0xf] %v4724_v6  ;;  %4760 = vst [vmem:[#allocation2 + $0x40] sm:$0xf] %v4728_v2  ;;  %v4666_v33 = vcombine.low %v13494_v17, %v13506_v59  ;;  %v4667_v61 = vcombine.high %v13494_v17, %v13506_v59  ;;  %v7375_v15 = vcombine.low %v13506_v59, %v13506_v59 }
 0x41c   :  { %4757 = vst [vmem:[#allocation2 + $0x28] sm:$0xf] %v4725_v49  ;;  %4761 = vst [vmem:[#allocation2 + $0x48] sm:$0xf] %v4729_v30  ;;  %v4626_v27 = vld [vmem:[#allocation2 + $0x90] sm:$0xf]  ;;  %v7377_v44 = vcombine.high %v13506_v59, %v13506_v59  ;;  %v4736_v21 = vadd.f32 %v4665_v36, %v4624_v4  ;;  %v4737_v9 = vadd.f32 %v7376_v43, %v4625_v38 }
 0x41d   :  { %v4627_v50 = vld [vmem:[#allocation2 + $0x98] sm:$0xf]  ;;  %4758 = vst [vmem:[#allocation2 + $0x30] sm:$0xf] %v4726_v20  ;;  %4759 = vst [vmem:[#allocation2 + $0x38] sm:$0xf] %v4727_v40  ;;  %v4738_v39 = vadd.f32 %v4667_v61, %v4626_v27  ;;  %v4668_v59 = vcombine.low %v13508_v46, %v13520_v56  ;;  %v4669_v40 = vcombine.high %v13508_v46, %v13520_v56 }
 0x41e   :  { %4762 = vst [vmem:[#allocation2 + $0x50] sm:$0xf] %v4730_v26  ;;  %4763 = vst [vmem:[#allocation2 + $0x58] sm:$0xf] %v4731_v13  ;;  %v4620_v45 = vld [vmem:[#allocation2 + $0x60] sm:$0xf]  ;;  %v4739_v17 = vadd.f32 %v7377_v44, %v4627_v50  ;;  %v7378_v26 = vcombine.low %v13520_v56, %v13520_v56  ;;  %v7380_v13 = vcombine.high %v13520_v56, %v13520_v56 }
 0x41f   :  { %v4621_v16 = vld [vmem:[#allocation2 + $0x68] sm:$0xf]  ;;  %v4732_v60 = vadd.f32 %v4664_v47, %v4620_v45  ;;  %v4622_v29 = vld [vmem:[#allocation2 + $0x70] sm:$0xf]  ;;  %v4623_v23 = vld [vmem:[#allocation2 + $0x78] sm:$0xf]  ;;  %v4671_v46 = vcombine.high %v13510_v19, %v13522_v34  ;;  %v7379_v43 = vcombine.low %v13522_v34, %v13522_v34  ;;  %v7381_v56 = vcombine.high %v13522_v34, %v13522_v34 }
 0x420   :  { %v4733_v62 = vadd.f32 %v7374_v14, %v4621_v16  ;;  %v13556_v6 = vpop.f32.mrb[70].mxu0  ;;  %v13558_v49 = vpop.f32.mrb[70].mxu1  ;;  %v4734_v2 = vadd.f32 %v4666_v33, %v4622_v29  ;;  %v4735_v30 = vadd.f32 %v7375_v15, %v4623_v23  ;;  %v4632_v10 = vld [vmem:[#allocation2 + $0xe0] sm:$0xf]  ;;  %v4633_v20 = vld [vmem:[#allocation2 + $0xe8] sm:$0xf]  ;;  %v4670_v14 = vcombine.low %v13510_v19, %v13522_v34 }
 0x421   :  { %4764 = vst [vmem:[#allocation2 + $0x60] sm:$0xf] %v4732_v60  ;;  %4768 = vst [vmem:[#allocation2 + $0x80] sm:$0xf] %v4736_v21  ;;  %v4634_v4 = vld [vmem:[#allocation2 + $0xf0] sm:$0xf]  ;;  %v4744_v33 = vadd.f32 %v4669_v40, %v4632_v10  ;;  %v4745_v61 = vadd.f32 %v7380_v13, %v4633_v20  ;;  %v7383_v13 = vcombine.low %v13538_v54, %v13538_v54 }
 0x422   :  { %4765 = vst [vmem:[#allocation2 + $0x68] sm:$0xf] %v4733_v62  ;;  %4769 = vst [vmem:[#allocation2 + $0x88] sm:$0xf] %v4737_v9  ;;  %v4635_v38 = vld [vmem:[#allocation2 + $0xf8] sm:$0xf]  ;;  %v4746_v9 = vadd.f32 %v4671_v46, %v4634_v4 }
 0x423   :  { %4766 = vst [vmem:[#allocation2 + $0x70] sm:$0xf] %v4734_v2  ;;  %4767 = vst [vmem:[#allocation2 + $0x78] sm:$0xf] %v4735_v30  ;;  %v4628_v47 = vld [vmem:[#allocation2 + $0xc0] sm:$0xf]  ;;  %v4747_v29 = vadd.f32 %v7381_v56, %v4635_v38  ;;  %v4672_v2 = vcombine.low %v13532_v42, %v13536_v52  ;;  %v4673_v30 = vcombine.high %v13532_v42, %v13536_v52 }
 0x424   :  { %4770 = vst [vmem:[#allocation2 + $0x90] sm:$0xf] %v4738_v39  ;;  %4771 = vst [vmem:[#allocation2 + $0x98] sm:$0xf] %v4739_v17  ;;  %v4629_v36 = vld [vmem:[#allocation2 + $0xc8] sm:$0xf]  ;;  %v4740_v45 = vadd.f32 %v4668_v59, %v4628_v47  ;;  %v7382_v39 = vcombine.low %v13536_v52, %v13536_v52  ;;  %v7384_v17 = vcombine.high %v13536_v52, %v13536_v52 }
 0x425   :  { %v13576_v27 = vpop.f32.mrb[71].mxu0  ;;  %v13578_v50 = vpop.f32.mrb[71].mxu1  ;;  %v4741_v16 = vadd.f32 %v7378_v26, %v4629_v36  ;;  %v4630_v15 = vld [vmem:[#allocation2 + $0xd0] sm:$0xf]  ;;  %v4631_v44 = vld [vmem:[#allocation2 + $0xd8] sm:$0xf]  ;;  %v4674_v26 = vcombine.low %v13534_v53, %v13538_v54  ;;  %v4675_v42 = vcombine.high %v13534_v53, %v13538_v54  ;;  %v7385_v52 = vcombine.high %v13538_v54, %v13538_v54 }
 0x426   :  { %v13580_v60 = vpop.f32.mrb[72].mxu0  ;;  %v13582_v62 = vpop.f32.mrb[72].mxu1  ;;  %v4742_v19 = vadd.f32 %v4670_v14, %v4630_v15  ;;  %v4743_v21 = vadd.f32 %v7379_v43, %v4631_v44  ;;  %v4640_v23 = vld [vmem:[#allocation2 + $0x120] sm:$0xf]  ;;  %v4641_v34 = vld [vmem:[#allocation2 + $0x128] sm:$0xf]  ;;  %v5031_v54 = vcombine.low %v13556_v6, %v13576_v27  ;;  %v5032_v44 = vcombine.high %v13556_v6, %v13576_v27 }
 0x427   :  { %4772 = vst [vmem:[#allocation2 + $0xc0] sm:$0xf] %v4740_v45  ;;  %4773 = vst [vmem:[#allocation2 + $0xc8] sm:$0xf] %v4741_v16  ;;  %v4642_v10 = vld [vmem:[#allocation2 + $0x130] sm:$0xf]  ;;  %v4752_v14 = vadd.f32 %v4673_v30, %v4640_v23  ;;  %v4753_v46 = vadd.f32 %v7384_v17, %v4641_v34  ;;  %v5034_v6 = vcombine.high %v13558_v49, %v13578_v50 }
 0x428   :  { %4776 = vst [vmem:[#allocation2 + $0xe0] sm:$0xf] %v4744_v33  ;;  %4777 = vst [vmem:[#allocation2 + $0xe8] sm:$0xf] %v4745_v61  ;;  %v4643_v20 = vld [vmem:[#allocation2 + $0x138] sm:$0xf]  ;;  %v4754_v61 = vadd.f32 %v4675_v42, %v4642_v10  ;;  %v7411_v30 = vcombine.low %v13578_v50, %v13578_v50 }
 0x429   :  { %4774 = vst [vmem:[#allocation2 + $0xd0] sm:$0xf] %v4742_v19  ;;  %4775 = vst [vmem:[#allocation2 + $0xd8] sm:$0xf] %v4743_v21  ;;  %v4636_v59 = vld [vmem:[#allocation2 + $0x100] sm:$0xf]  ;;  %v4755_v15 = vadd.f32 %v7385_v52, %v4643_v20  ;;  %v7410_v19 = vcombine.low %v13576_v27, %v13576_v27  ;;  %v7412_v21 = vcombine.high %v13576_v27, %v13576_v27 }
 0x42a   :  { %4778 = vst [vmem:[#allocation2 + $0xf0] sm:$0xf] %v4746_v9  ;;  %4779 = vst [vmem:[#allocation2 + $0xf8] sm:$0xf] %v4747_v29  ;;  %v4637_v40 = vld [vmem:[#allocation2 + $0x108] sm:$0xf]  ;;  %v4748_v47 = vadd.f32 %v4672_v2, %v4636_v59  ;;  %v5033_v2 = vcombine.low %v13558_v49, %v13578_v50  ;;  %v7413_v27 = vcombine.high %v13578_v50, %v13578_v50 }
 0x42b   :  { %v13600_v4 = vpop.f32.mrb[73].mxu0  ;;  %v13602_v38 = vpop.f32.mrb[73].mxu1  ;;  %v4749_v36 = vadd.f32 %v7382_v39, %v4637_v40  ;;  %v4638_v43 = vld [vmem:[#allocation2 + $0x110] sm:$0xf]  ;;  %v4639_v56 = vld [vmem:[#allocation2 + $0x118] sm:$0xf] }
 0x42c   :  { %v13604_v45 = vpop.f32.mrb[74].mxu0  ;;  %v13606_v16 = vpop.f32.mrb[74].mxu1  ;;  %v4750_v53 = vadd.f32 %v4674_v26, %v4638_v43  ;;  %v4751_v33 = vadd.f32 %v7383_v13, %v4639_v56  ;;  %4780 = vst [vmem:[#allocation2 + $0x100] sm:$0xf] %v4748_v47  ;;  %4784 = vst [vmem:[#allocation2 + $0x120] sm:$0xf] %v4752_v14 }
 0x42d   :  { %4781 = vst [vmem:[#allocation2 + $0x108] sm:$0xf] %v4749_v36  ;;  %4785 = vst [vmem:[#allocation2 + $0x128] sm:$0xf] %v4753_v46  ;;  %v4983_v9 = vld [vmem:[#allocation2 + $0x20] sm:$0x1e] }
 0x42e   :  { %4782 = vst [vmem:[#allocation2 + $0x110] sm:$0xf] %v4750_v53  ;;  %4783 = vst [vmem:[#allocation2 + $0x118] sm:$0xf] %v4751_v33  ;;  %v4984_v29 = vld [vmem:[#allocation2 + $0x28] sm:$0x1e] }
 0x42f   :  { %4786 = vst [vmem:[#allocation2 + $0x130] sm:$0xf] %v4754_v61  ;;  %4787 = vst [vmem:[#allocation2 + $0x138] sm:$0xf] %v4755_v15  ;;  %v4987_v23 = vld [vmem:[#allocation2 + $0x40] sm:$0x1e] }
 0x430   :  { %v4988_v34 = vld [vmem:[#allocation2 + $0x48] sm:$0x1e]  ;;  %v13624_v39 = vpop.f32.mrb[75].mxu0  ;;  %v13626_v17 = vpop.f32.mrb[75].mxu1  ;;  %v5063_v10 = vrot.slane %v5031_v54, 7  ;;  %v5064_v20 = vrot.slane %v7410_v19, 7  ;;  %v5035_v19 = vcombine.low %v13580_v60, %v13600_v4 }
 0x431   :  { %v5067_v59 = vrot.slane %v5032_v44, 7  ;;  %v5068_v40 = vrot.slane %v7412_v21, 7  ;;  %v13628_v26 = vpop.f32.mrb[76].mxu0  ;;  %v13630_v42 = vpop.f32.mrb[76].mxu1  ;;  %v4985_v13 = vld [vmem:[#allocation2 + $0x30] sm:$0x1e]  ;;  %v5036_v21 = vcombine.high %v13580_v60, %v13600_v4  ;;  %v5037_v60 = vcombine.low %v13582_v62, %v13602_v38 }
 0x432   :  { %v5065_v49 = vrot.slane %v5033_v2, 7  ;;  %v5066_v52 = vrot.slane %v7411_v30, 7  ;;  %v5069_v47 = vrot.slane %v5034_v6, 7  ;;  %v5070_v36 = vrot.slane %v7413_v27, 7  ;;  %v4986_v56 = vld [vmem:[#allocation2 + $0x38] sm:$0x1e] }
 0x433   :  { %v5127_v14 = vadd.f32 %v5063_v10, %v4983_v9  ;;  %v5128_v46 = vadd.f32 %v5064_v20, %v4984_v29  ;;  %v5131_v50 = vadd.f32 %v5067_v59, %v4987_v23  ;;  %v5132_v43 = vadd.f32 %v5068_v40, %v4988_v34  ;;  %v4989_v53 = vld [vmem:[#allocation2 + $0x50] sm:$0x1e]  ;;  %v4990_v33 = vld [vmem:[#allocation2 + $0x58] sm:$0x1e]  ;;  %v13640_v23 = vpop.f32.mrb[77].mxu0  ;;  %v13642_v34 = vpop.f32.mrb[77].mxu1 }
 0x434   :  { %v5129_v61 = vadd.f32 %v5065_v49, %v4985_v13  ;;  %v5130_v15 = vadd.f32 %v5066_v52, %v4986_v56  ;;  %v5133_v54 = vadd.f32 %v5069_v47, %v4989_v53  ;;  %v5134_v44 = vadd.f32 %v5070_v36, %v4990_v33  ;;  %v4991_v2 = vld [vmem:[#allocation2 + $0x60] sm:$0x1e]  ;;  %v4992_v6 = vld [vmem:[#allocation2 + $0x68] sm:$0x1e]  ;;  %v4993_v52 = vld [vmem:[#allocation2 + $0x70] sm:$0x1e] }
 0x435   :  { %5159 = vst [vmem:[#allocation2 + $0x20] sm:$0x1e] %v5127_v14  ;;  %5160 = vst [vmem:[#allocation2 + $0x28] sm:$0x1e] %v5128_v46  ;;  %v7414_v9 = vcombine.low %v13600_v4, %v13600_v4  ;;  %v7416_v29 = vcombine.high %v13600_v4, %v13600_v4  ;;  %v4995_v30 = vld [vmem:[#allocation2 + $0x80] sm:$0x1e]  ;;  %v5038_v27 = vcombine.high %v13582_v62, %v13602_v38 }
 0x436   :  { %5163 = vst [vmem:[#allocation2 + $0x40] sm:$0x1e] %v5131_v50  ;;  %5164 = vst [vmem:[#allocation2 + $0x48] sm:$0x1e] %v5132_v43  ;;  %v7415_v4 = vcombine.low %v13602_v38, %v13602_v38  ;;  %v7417_v10 = vcombine.high %v13602_v38, %v13602_v38  ;;  %v4996_v20 = vld [vmem:[#allocation2 + $0x88] sm:$0x1e] }
 0x437   :  { %5161 = vst [vmem:[#allocation2 + $0x30] sm:$0x1e] %v5129_v61  ;;  %5162 = vst [vmem:[#allocation2 + $0x38] sm:$0x1e] %v5130_v15  ;;  %v5071_v59 = vrot.slane %v5035_v19, 7  ;;  %v5072_v40 = vrot.slane %v7414_v9, 7  ;;  %v5039_v19 = vcombine.low %v13604_v45, %v13624_v39  ;;  %v7418_v9 = vcombine.low %v13624_v39, %v13624_v39 }
 0x438   :  { %5165 = vst [vmem:[#allocation2 + $0x50] sm:$0x1e] %v5133_v54  ;;  %5166 = vst [vmem:[#allocation2 + $0x58] sm:$0x1e] %v5134_v44  ;;  %v5075_v13 = vrot.slane %v5036_v21, 7  ;;  %v5076_v49 = vrot.slane %v7416_v29, 7  ;;  %v5040_v21 = vcombine.high %v13604_v45, %v13624_v39  ;;  %v7420_v29 = vcombine.high %v13624_v39, %v13624_v39 }
 0x439   :  { %v5073_v47 = vrot.slane %v5037_v60, 7  ;;  %v5074_v36 = vrot.slane %v7415_v4, 7  ;;  %v5077_v14 = vrot.slane %v5038_v27, 7  ;;  %v5078_v46 = vrot.slane %v7417_v10, 7  ;;  %v4994_v53 = vld [vmem:[#allocation2 + $0x78] sm:$0x1e] }
 0x43a   :  { %v5135_v50 = vadd.f32 %v5071_v59, %v4991_v2  ;;  %v5136_v43 = vadd.f32 %v5072_v40, %v4992_v6  ;;  %v5139_v56 = vadd.f32 %v5075_v13, %v4995_v30  ;;  %v5140_v62 = vadd.f32 %v5076_v49, %v4996_v20  ;;  %v4997_v33 = vld [vmem:[#allocation2 + $0x90] sm:$0x1e]  ;;  %v4998_v61 = vld [vmem:[#allocation2 + $0x98] sm:$0x1e]  ;;  %v4999_v2 = vld [vmem:[#allocation2 + $0xc0] sm:$0x1e] }
 0x43b   :  { %v5137_v15 = vadd.f32 %v5073_v47, %v4993_v52  ;;  %v5138_v54 = vadd.f32 %v5074_v36, %v4994_v53  ;;  %v5141_v38 = vadd.f32 %v5077_v14, %v4997_v33  ;;  %v5142_v44 = vadd.f32 %v5078_v46, %v4998_v61  ;;  %v5000_v6 = vld [vmem:[#allocation2 + $0xc8] sm:$0x1e]  ;;  %v5003_v30 = vld [vmem:[#allocation2 + $0xe0] sm:$0x1e]  ;;  %v5001_v13 = vld [vmem:[#allocation2 + $0xd0] sm:$0x1e] }
 0x43c   :  { %5167 = vst [vmem:[#allocation2 + $0x60] sm:$0x1e] %v5135_v50  ;;  %5168 = vst [vmem:[#allocation2 + $0x68] sm:$0x1e] %v5136_v43  ;;  %v5041_v60 = vcombine.low %v13606_v16, %v13626_v17  ;;  %v5042_v27 = vcombine.high %v13606_v16, %v13626_v17  ;;  %v7419_v45 = vcombine.low %v13626_v17, %v13626_v17  ;;  %v5004_v39 = vld [vmem:[#allocation2 + $0xe8] sm:$0x1e] }
 0x43d   :  { %5171 = vst [vmem:[#allocation2 + $0x80] sm:$0x1e] %v5139_v56  ;;  %5172 = vst [vmem:[#allocation2 + $0x88] sm:$0x1e] %v5140_v62  ;;  %v7421_v4 = vcombine.high %v13626_v17, %v13626_v17  ;;  %v5079_v10 = vrot.slane %v5039_v19, 7  ;;  %v5080_v20 = vrot.slane %v7418_v9, 7 }
 0x43e   :  { %5169 = vst [vmem:[#allocation2 + $0x70] sm:$0x1e] %v5137_v15  ;;  %5170 = vst [vmem:[#allocation2 + $0x78] sm:$0x1e] %v5138_v54  ;;  %v5083_v59 = vrot.slane %v5040_v21, 7  ;;  %v5084_v40 = vrot.slane %v7420_v29, 7  ;;  %v5043_v15 = vcombine.low %v13628_v26, %v13640_v23  ;;  %v5044_v54 = vcombine.high %v13628_v26, %v13640_v23 }
 0x43f   :  { %5173 = vst [vmem:[#allocation2 + $0x90] sm:$0x1e] %v5141_v38  ;;  %5174 = vst [vmem:[#allocation2 + $0x98] sm:$0x1e] %v5142_v44  ;;  %v5081_v49 = vrot.slane %v5041_v60, 7  ;;  %v5082_v52 = vrot.slane %v7419_v45, 7  ;;  %v5143_v14 = vadd.f32 %v5079_v10, %v4999_v2  ;;  %v5144_v46 = vadd.f32 %v5080_v20, %v5000_v6 }
 0x440   :  { %v5085_v47 = vrot.slane %v5042_v27, 7  ;;  %v5086_v36 = vrot.slane %v7421_v4, 7  ;;  %v5147_v50 = vadd.f32 %v5083_v59, %v5003_v30  ;;  %v5148_v16 = vadd.f32 %v5084_v40, %v5004_v39  ;;  %v5002_v43 = vld [vmem:[#allocation2 + $0xd8] sm:$0x1e]  ;;  %v5005_v56 = vld [vmem:[#allocation2 + $0xf0] sm:$0x1e] }
 0x441   :  { %v5006_v62 = vld [vmem:[#allocation2 + $0xf8] sm:$0x1e]  ;;  %v5145_v53 = vadd.f32 %v5081_v49, %v5001_v13  ;;  %v5146_v33 = vadd.f32 %v5082_v52, %v5002_v43  ;;  %5175 = vst [vmem:[#allocation2 + $0xc0] sm:$0x1e] %v5143_v14  ;;  %5176 = vst [vmem:[#allocation2 + $0xc8] sm:$0x1e] %v5144_v46  ;;  %v7422_v38 = vcombine.low %v13640_v23, %v13640_v23 }
 0x442   :  { %v5149_v17 = vadd.f32 %v5085_v47, %v5005_v56  ;;  %v5150_v61 = vadd.f32 %v5086_v36, %v5006_v62  ;;  %5179 = vst [vmem:[#allocation2 + $0xe0] sm:$0x1e] %v5147_v50  ;;  %5180 = vst [vmem:[#allocation2 + $0xe8] sm:$0x1e] %v5148_v16  ;;  %v7424_v44 = vcombine.high %v13640_v23, %v13640_v23  ;;  %v5007_v19 = vld [vmem:[#allocation2 + $0x100] sm:$0x1e] }
 0x443   :  { %5177 = vst [vmem:[#allocation2 + $0xd0] sm:$0x1e] %v5145_v53  ;;  %5178 = vst [vmem:[#allocation2 + $0xd8] sm:$0x1e] %v5146_v33  ;;  %v5008_v21 = vld [vmem:[#allocation2 + $0x108] sm:$0x1e]  ;;  %v5045_v2 = vcombine.low %v13630_v42, %v13642_v34  ;;  %v5046_v26 = vcombine.high %v13630_v42, %v13642_v34  ;;  %v7423_v6 = vcombine.low %v13642_v34, %v13642_v34 }
 0x444   :  { %5181 = vst [vmem:[#allocation2 + $0xf0] sm:$0x1e] %v5149_v17  ;;  %5182 = vst [vmem:[#allocation2 + $0xf8] sm:$0x1e] %v5150_v61  ;;  %v5011_v9 = vld [vmem:[#allocation2 + $0x120] sm:$0x1e]  ;;  %v7425_v23 = vcombine.high %v13642_v34, %v13642_v34 }
 0x445   :  { %v5012_v29 = vld [vmem:[#allocation2 + $0x128] sm:$0x1e]  ;;  %v5194_v60 = vld [vmem:[#allocation2 + $0x18] sm:$0x1f]  ;;  %v5087_v27 = vrot.slane %v5043_v15, 7  ;;  %v5088_v45 = vrot.slane %v7422_v38, 7 }
 0x446   :  { %v5192_v30 = vld [vmem:[#allocation2 + $0x8] sm:$0x1f]  ;;  %v5091_v4 = vrot.slane %v5044_v54, 7  ;;  %v5092_v39 = vrot.slane %v7424_v44, 7  ;;  %v5009_v10 = vld [vmem:[#allocation2 + $0x110] sm:$0x1e]  ;;  %v5256_v38 = vadd.f32 %v13233_v1, %v5194_v60 }
 0x447   :  { %v5010_v20 = vld [vmem:[#allocation2 + $0x118] sm:$0x1e]  ;;  %v5013_v59 = vld [vmem:[#allocation2 + $0x130] sm:$0x1e]  ;;  %v5196_v40 = vld [vmem:[#allocation2 + $0x28] sm:$0x1f]  ;;  %v5151_v46 = vadd.f32 %v5087_v27, %v5007_v19  ;;  %v5152_v50 = vadd.f32 %v5088_v45, %v5008_v21  ;;  %v5254_v15 = vadd.f32 %v13229_v57, %v5192_v30  ;;  %v15830_v27 = vcombine.low %v15800_v55, %v13245_v63 }
 0x448   :  { %v5191_v13 = vld [vmem:[#allocation2] sm:$0x1f]  ;;  %v5193_v49 = vld [vmem:[#allocation2 + $0x10] sm:$0x1f]  ;;  %v5089_v52 = vrot.slane %v5045_v2, 7  ;;  %v5090_v42 = vrot.slane %v7423_v6, 7  ;;  %v5155_v34 = vadd.f32 %v5091_v4, %v5011_v9  ;;  %v5156_v16 = vadd.f32 %v5092_v39, %v5012_v29 }
 0x449   :  { %v5093_v47 = vrot.slane %v5046_v26, 7  ;;  %v5094_v36 = vrot.slane %v7425_v23, 7  ;;  %v5198_v14 = vld [vmem:[#allocation2 + $0x38] sm:$0x1f]  ;;  %v5195_v56 = vld [vmem:[#allocation2 + $0x20] sm:$0x1f]  ;;  %v5258_v54 = vadd.f32 %v13229_v57, %v5196_v40  ;;  %v5253_v19 = vadd.f32 %v13221_v25, %v5191_v13 }
 0x44a   :  { %v5014_v43 = vld [vmem:[#allocation2 + $0x138] sm:$0x1e]  ;;  %v5197_v62 = vld [vmem:[#allocation2 + $0x30] sm:$0x1f]  ;;  %v5153_v53 = vadd.f32 %v5089_v52, %v5009_v10  ;;  %v5154_v33 = vadd.f32 %v5090_v42, %v5010_v20  ;;  %5183 = vst [vmem:[#allocation2 + $0x100] sm:$0x1e] %v5151_v46  ;;  %v5260_v44 = vadd.f32 %v13233_v1, %v5198_v14  ;;  %v5257_v21 = vadd.f32 %v13221_v25, %v5195_v56 }
 0x44b   :  { %v5157_v17 = vadd.f32 %v5093_v47, %v5013_v59  ;;  %v5158_v61 = vadd.f32 %v5094_v36, %v5014_v43  ;;  %5184 = vst [vmem:[#allocation2 + $0x108] sm:$0x1e] %v5152_v50  ;;  %5187 = vst [vmem:[#allocation2 + $0x120] sm:$0x1e] %v5155_v34  ;;  %v5255_v9 = vadd.f32 %v13225_v18, %v5193_v49  ;;  %vm5295_vm1 = vcmp.ge.f32.partialorder %v5254_v15, 0.0 }
 0x44c   :  { %5188 = vst [vmem:[#allocation2 + $0x128] sm:$0x1e] %v5156_v16  ;;  %5185 = vst [vmem:[#allocation2 + $0x110] sm:$0x1e] %v5153_v53  ;;  %v5259_v29 = vadd.f32 %v13225_v18, %v5197_v62  ;;  %vm5299_vm2 = vcmp.ge.f32.partialorder %v5258_v54, 0.0  ;;  %v5336_v2 = vmul.f32 %v13420_v28, %v5254_v15  ;;  %v5340_v26 = vmul.f32 %v13420_v28, %v5258_v54  ;;  %v15836_v53 = vld [vmem:[#allocation68_spill] sm:$0xff] }
 0x44d   :  { %5186 = vst [vmem:[#allocation2 + $0x118] sm:$0x1e] %v5154_v33  ;;  %5189 = vst [vmem:[#allocation2 + $0x130] sm:$0x1e] %v5157_v17  ;;  %vm5297_vm3 = vcmp.ge.f32.partialorder %v5256_v38, 0.0  ;;  %vm5301_vm4 = vcmp.ge.f32.partialorder %v5260_v44, 0.0  ;;  %v5338_v6 = vmul.f32 %v13420_v28, %v5256_v38  ;;  %v5342_v23 = vmul.f32 %v13420_v28, %v5260_v44 }
 0x44e   :  { %5190 = vst [vmem:[#allocation2 + $0x138] sm:$0x1e] %v5158_v61  ;;  %v5376_v30 = vsel %vm5295_vm1, %v5254_v15, %v5336_v2  ;;  %v5380_v60 = vsel %vm5299_vm2, %v5258_v54, %v5340_v26  ;;  %vm5294_vm5 = vcmp.ge.f32.partialorder %v5253_v19, 0.0  ;;  %vm5298_vm6 = vcmp.ge.f32.partialorder %v5257_v21, 0.0  ;;  %v13713_v47 = vld [vmem:[%s15297_s9 + $0x8] sm:$0x1f] }
 0x44f   :  { %v5716_v45 = vsub.f32 %v5376_v30, %v15830_v27  ;;  %v15831_v4 = vcombine.low %v15799_v11, %v13238_v5  ;;  %v5378_v10 = vsel %vm5297_vm3, %v5256_v38, %v5338_v6  ;;  %v5382_v20 = vsel %vm5301_vm4, %v5260_v44, %v5342_v23  ;;  %v13729_v14 = vld [vmem:[%s15297_s9 + $0x18] sm:$0x1f]  ;;  %v13761_v26 = vld [vmem:[%s15297_s9] sm:$0x1f] }
 0x450   :  { %v15832_v59 = vcombine.high %v15800_v55, %v13245_v63  ;;  %v15833_v13 = vcombine.high %v15799_v11, %v13238_v5  ;;  %v5335_v52 = vmul.f32 %v13420_v28, %v5253_v19  ;;  %v5339_v42 = vmul.f32 %v13420_v28, %v5257_v21  ;;  %v13721_v63 = vld [vmem:[%s15297_s9 + $0x28] sm:$0x1f]  ;;  %v13737_v50 = vld [vmem:[%s15297_s9 + $0x38] sm:$0x1f]  ;;  %v13769_v23 = vld [vmem:[%s15297_s9 + $0x20] sm:$0x1f] }
 0x451   :  { %v5720_v39 = vsub.f32 %v5380_v60, %v15831_v4  ;;  %v13716_v36 = vmul.f32 %v13713_v47, %v5716_v45  ;;  %vm5296_vm7 = vcmp.ge.f32.partialorder %v5255_v9, 0.0  ;;  %vm5300_vm8 = vcmp.ge.f32.partialorder %v5259_v29, 0.0  ;;  %v5200_v11 = vld [vmem:[#allocation2 + $0x48] sm:$0x1f]  ;;  %v5202_v56 = vld [vmem:[#allocation2 + $0x58] sm:$0x1f] }
 0x452   :  { %v5718_v40 = vsub.f32 %v5378_v10, %v15832_v59  ;;  %v5722_v49 = vsub.f32 %v5382_v20, %v15833_v13  ;;  %v5204_v55 = vld [vmem:[#allocation2 + $0x68] sm:$0x1f]  ;;  %v5375_v16 = vsel %vm5294_vm5, %v5253_v19, %v5335_v52  ;;  %v5379_v43 = vsel %vm5298_vm6, %v5257_v21, %v5339_v42  ;;  %v15837_v33 = vld [vmem:[#allocation20_spill] sm:$0xff]  ;;  %v5199_v20 = vld [vmem:[#allocation2 + $0x40] sm:$0x1f] }
 0x453   :  { %v13724_v5 = vmul.f32 %v13721_v63, %v5720_v39  ;;  %v15838_v17 = vcombine.low %v15836_v53, %v15837_v33  ;;  %v15839_v15 = vcombine.low %v15752_v3, %v13217_v8  ;;  %v5337_v38 = vmul.f32 %v13420_v28, %v5255_v9  ;;  %v5206_v27 = vld [vmem:[#allocation2 + $0x78] sm:$0x1f] }
 0x454   :  { %v13732_v46 = vmul.f32 %v13729_v14, %v5718_v40  ;;  %v13740_v34 = vmul.f32 %v13737_v50, %v5722_v49  ;;  %v5341_v19 = vmul.f32 %v13420_v28, %v5259_v29  ;;  %v5262_v21 = vadd.f32 %v13229_v57, %v5200_v11 }
 0x455   :  { %15834 = vst [vmem:[#allocation64_spill] sm:$0xff] %v13724_v5  ;;  %v7429_v62 = vcombine.low %v13716_v36, %v13724_v5  ;;  %v5715_v61 = vsub.f32 %v5375_v16, %v15838_v17  ;;  %v5719_v54 = vsub.f32 %v5379_v43, %v15839_v15  ;;  %v5266_v2 = vadd.f32 %v13229_v57, %v5204_v55  ;;  %v5203_v55 = vld [vmem:[#allocation2 + $0x60] sm:$0x1f] }
 0x456   :  { %15835 = vst [vmem:[#allocation63_spill] sm:$0xff] %v13740_v34  ;;  %v7431_v44 = vcombine.low %v13732_v46, %v13740_v34  ;;  %v5377_v60 = vsel %vm5296_vm7, %v5255_v9, %v5337_v38  ;;  %v5264_v45 = vadd.f32 %v13233_v1, %v5202_v56  ;;  %v5381_v4 = vsel %vm5300_vm8, %v5259_v29, %v5341_v19  ;;  %v13790_v29 = vld [vmem:[%s15297_s9 + $0x10] sm:$0x1f] }
 0x457   :  { %6011 = vmatprep.mubr.f32.mxu0 %v7429_v62  ;;  %v13764_v6 = vmul.f32 %v13761_v26, %v5715_v61  ;;  %v13772_v30 = vmul.f32 %v13769_v23, %v5719_v54  ;;  %v15841_v39 = vcombine.high %v15836_v53, %v15837_v33  ;;  %vm5303_vm9 = vcmp.ge.f32.partialorder %v5262_v21, 0.0  ;;  %v5205_v19 = vld [vmem:[#allocation2 + $0x70] sm:$0x1f] }
 0x458   :  { %6096 = vmatprep.mubr.f32.mxu1 %v7431_v44  ;;  %vm5307_vm10 = vcmp.ge.f32.partialorder %v5266_v2, 0.0  ;;  %v15842_v40 = vcombine.high %v15752_v3, %v13217_v8  ;;  %v5344_v13 = vmul.f32 %v13420_v28, %v5262_v21  ;;  %v5348_v49 = vmul.f32 %v13420_v28, %v5266_v2  ;;  %v13800_v3 = vld [vmem:[%s15297_s9 + $0x30] sm:$0x1f] }
 0x459   :  { %15840 = vst [vmem:[#allocation71_spill] sm:$0xff] %v13772_v30  ;;  %v5717_v10 = vsub.f32 %v5377_v60, %v15841_v39  ;;  %v7428_v59 = vcombine.low %v13764_v6, %v13772_v30  ;;  %v5268_v42 = vadd.f32 %v13233_v1, %v5206_v27  ;;  %vm5305_vm11 = vcmp.ge.f32.partialorder %v5264_v45, 0.0  ;;  %v13835_v60 = vld [vmem:[%s15297_s9 + $0x68] sm:$0x1f] }
 0x45a   :  { %v5721_v9 = vsub.f32 %v5381_v4, %v15842_v40  ;;  %v5346_v11 = vmul.f32 %v13420_v28, %v5264_v45  ;;  %v5384_v16 = vsel %vm5303_vm9, %v5262_v21, %v5344_v13  ;;  %v5388_v43 = vsel %vm5307_vm10, %v5266_v2, %v5348_v49  ;;  %v13827_v21 = vld [vmem:[%s15297_s9 + $0x48] sm:$0x1f] }
 0x45b   :  { %v13793_v52 = vmul.f32 %v13790_v29, %v5717_v10  ;;  %6012 = vmatmul.mubr.f32.vlgmr.msra.gmra.mrb[78].mxu0 %v7428_v59  ;;  %v5261_v56 = vadd.f32 %v13221_v25, %v5199_v20  ;;  %v15844_v62 = vpack.c.bf16 %v13301_v22, %v13296_v0  ;;  %v15845_v53 = vcombine.low %v15803_v41, %v13252_v37  ;;  %v5201_v22 = vld [vmem:[#allocation2 + $0x50] sm:$0x1f] }
 0x45c   :  { %v13803_v8 = vmul.f32 %v13800_v3, %v5721_v9  ;;  %v15846_v17 = vcombine.low %v15757_v7, %v13255_v24  ;;  %vm5309_vm13 = vcmp.ge.f32.partialorder %v5268_v42, 0.0  ;;  %v5350_v15 = vmul.f32 %v13420_v28, %v5268_v42  ;;  %v5212_v9 = vld [vmem:[#allocation2 + $0xa8] sm:$0x1f] }
 0x45d   :  { %9020 = vmatpush3.bf16.msra.mxu0 %v15844_v62  ;;  %v5724_v33 = vsub.f32 %v5384_v16, %v15845_v53  ;;  %v5386_v38 = vsel %vm5305_vm11, %v5264_v45, %v5346_v11  ;;  %v15847_v44 = vpack.c.bf16 %v13331_v12, %v13326_v35  ;;  %v5265_v0 = vadd.f32 %v13221_v25, %v5203_v55  ;;  %v15852_v11 = vld [vmem:[#allocation47_spill] sm:$0xff]  ;;  %v5216_v16 = vld [vmem:[#allocation2 + $0xc8] sm:$0x1f] }
 0x45e   :  { %15843 = vst [vmem:[#allocation70_spill] sm:$0xff] %v13803_v8  ;;  %v5728_v61 = vsub.f32 %v5388_v43, %v15846_v17  ;;  %v7430_v54 = vcombine.low %v13793_v52, %v13803_v8  ;;  %vm5302_vm14 = vcmp.ge.f32.partialorder %v5261_v56, 0.0  ;;  %v5390_v35 = vsel %vm5309_vm13, %v5268_v42, %v5350_v15  ;;  %v5214_v43 = vld [vmem:[#allocation2 + $0xb8] sm:$0x1f]  ;;  %v15854_v62 = vld [vmem:[#allocation55_spill] sm:$0xff]  ;;  %v15855_v53 = vld [vmem:[#allocation42_spill] sm:$0xff] }
 0x45f   :  { %9022 = vmatprep.subr.bf16.mxu0 %v15847_v44  ;;  %v13830_v2 = vmul.f32 %v13827_v21, %v5724_v33  ;;  %v15848_v27 = vcombine.high %v15803_v41, %v13252_v37  ;;  %v15849_v4 = vcombine.high %v15757_v7, %v13255_v24  ;;  %vm5306_vm15 = vcmp.ge.f32.partialorder %v5265_v0, 0.0  ;;  %v13856_v37 = vld [vmem:[%s15297_s9 + $0x58] sm:$0x1f]  ;;  %v15858_v15 = vld [vmem:[#allocation69_spill] sm:$0xff] }
 0x460   :  { %v13838_v12 = vmul.f32 %v13835_v60, %v5728_v61  ;;  %6097 = vmatmul.mubr.f32.vlgmr.msra.gmra.mrb[78].mxu1 %v7430_v54  ;;  %v5343_v10 = vmul.f32 %v13420_v28, %v5261_v56  ;;  %v5347_v20 = vmul.f32 %v13420_v28, %v5265_v0  ;;  %v15850_v59 = vpack.c.bf16 %v13311_v51, %v13306_v48  ;;  %v13866_v51 = vld [vmem:[%s15297_s9 + $0x78] sm:$0x1f] }
 0x461   :  { %v5726_v45 = vsub.f32 %v5386_v38, %v15848_v27  ;;  %v5730_v39 = vsub.f32 %v5390_v35, %v15849_v4  ;;  %v5263_v24 = vadd.f32 %v13225_v18, %v5201_v22  ;;  %v5267_v41 = vadd.f32 %v13225_v18, %v5205_v19  ;;  %v15857_v61 = vld [vmem:[#allocation56_spill] sm:$0xff]  ;;  %v13895_v19 = vld [vmem:[%s15297_s9 + $0x40] sm:$0x1f] }
 0x462   :  { %9052 = vmatpush3.bf16.msra.mxu1 %v15850_v59  ;;  %v7433_v40 = vcombine.low %v13830_v2, %v13838_v12  ;;  %v15851_v13 = vpack.c.bf16 %v13352_v58, %v13336_v31  ;;  %v5383_v49 = vsel %vm5302_vm14, %v5261_v56, %v5343_v10  ;;  %v5387_v42 = vsel %vm5306_vm15, %v5265_v0, %v5347_v20  ;;  %v15860_v31 = vld [vmem:[#allocation53_spill] sm:$0xff]  ;;  %v15861_v58 = vld [vmem:[#allocation23_spill] sm:$0xff]  ;;  %v5218_v59 = vld [vmem:[#allocation2 + $0xd8] sm:$0x1f] }
 0x463   :  { %v13859_v7 = vmul.f32 %v13856_v37, %v5726_v45  ;;  %v13869_v48 = vmul.f32 %v13866_v51, %v5730_v39  ;;  %v15853_v55 = vpack.c.bf16 %v13362_v32, %v15852_v11  ;;  %v15856_v33 = vcombine.low %v15854_v62, %v15855_v53  ;;  %v13903_v27 = vld [vmem:[%s15297_s9 + $0x60] sm:$0x1f]  ;;  %v15867_v11 = vld [vmem:[#allocation52_spill] sm:$0xff] }
 0x464   :  { %9054 = vmatprep.subr.bf16.mxu1 %v15851_v13  ;;  %6016 = vmatprep.mubr.f32.mxu0 %v7433_v40  ;;  %v15859_v54 = vcombine.low %v15857_v61, %v15858_v15  ;;  %vm5304_vm0 = vcmp.ge.f32.partialorder %v5263_v24, 0.0  ;;  %vm5308_vm1 = vcmp.ge.f32.partialorder %v5267_v41, 0.0  ;;  %v15862_v56 = vpack.c.bf16 %v15860_v31, %v15861_v58  ;;  %v15863_v4 = vld [vmem:[#allocation81_spill] sm:$0xff] }
 0x465   :  { %9024 = vmatpush3.bf16.msra.mxu0 %v15853_v55  ;;  %v5723_v17 = vsub.f32 %v5383_v49, %v15856_v33  ;;  %v7435_v32 = vcombine.low %v13859_v7, %v13869_v48  ;;  %v5345_v44 = vmul.f32 %v13420_v28, %v5263_v24  ;;  %v5349_v0 = vmul.f32 %v13420_v28, %v5267_v41  ;;  %v15864_v39 = vld [vmem:[#allocation49_spill] sm:$0xff] }
 0x466   :  { %v5727_v38 = vsub.f32 %v5387_v42, %v15859_v54  ;;  %9026 = vmatprep.subr.bf16.mxu0 %v15862_v56  ;;  %v5274_v22 = vadd.f32 %v13229_v57, %v5212_v9  ;;  %v15865_v10 = vpack.c.bf16 %v15863_v4, %v15864_v39  ;;  %v5278_v20 = vadd.f32 %v13229_v57, %v5216_v16  ;;  %v15866_v42 = vld [vmem:[#allocation57_spill] sm:$0xff]  ;;  %v15871_v54 = vld [vmem:[#allocation58_spill] sm:$0xff] }
 0x467   :  { %v13898_v35 = vmul.f32 %v13895_v19, %v5723_v17  ;;  %v5276_v40 = vadd.f32 %v13233_v1, %v5214_v43  ;;  %6101 = vmatprep.mubr.f32.mxu1 %v7435_v32  ;;  %v5385_v9 = vsel %vm5304_vm0, %v5263_v24, %v5345_v44  ;;  %v5389_v13 = vsel %vm5308_vm1, %v5267_v41, %v5349_v0  ;;  %v5211_v41 = vld [vmem:[#allocation2 + $0xa0] sm:$0x1f]  ;;  %v15874_v44 = vld [vmem:[#allocation16_spill] sm:$0xff] }
 0x468   :  { %v13906_v45 = vmul.f32 %v13903_v27, %v5727_v38  ;;  %9056 = vmatpush3.bf16.msra.mxu1 %v15865_v10  ;;  %vm5315_vm2 = vcmp.ge.f32.partialorder %v5274_v22, 0.0  ;;  %v5356_v49 = vmul.f32 %v13420_v28, %v5274_v22  ;;  %v15868_v55 = vpack.c.bf16 %v15866_v42, %v15867_v11  ;;  %v15872_v38 = vld [vmem:[#allocation59_spill] sm:$0xff]  ;;  %v15875_v0 = vld [vmem:[#allocation72_spill] sm:$0xff]  ;;  %v5215_v10 = vld [vmem:[#allocation2 + $0xc0] sm:$0x1f] }
 0x469   :  { %v15869_v16 = vcombine.high %v15854_v62, %v15855_v53  ;;  %v15870_v43 = vcombine.high %v15857_v61, %v15858_v15  ;;  %vm5319_vm3 = vcmp.ge.f32.partialorder %v5278_v20, 0.0  ;;  %v15873_v31 = vpack.c.bf16 %v15871_v54, %v15872_v38  ;;  %v13935_v62 = vld [vmem:[%s15297_s9 + $0x50] sm:$0x1f]  ;;  %v15877_v42 = vld [vmem:[#allocation60_spill] sm:$0xff]  ;;  %v15878_v11 = vld [vmem:[#allocation62_spill] sm:$0xff] }
 0x46a   :  { %9058 = vmatprep.subr.bf16.mxu1 %v15868_v55  ;;  %v7432_v33 = vcombine.low %v13898_v35, %v13906_v45  ;;  %v5360_v58 = vmul.f32 %v13420_v28, %v5278_v20  ;;  %v5396_v56 = vsel %vm5315_vm2, %v5274_v22, %v5356_v49  ;;  %v5280_v32 = vadd.f32 %v13233_v1, %v5218_v59  ;;  %v13943_v61 = vld [vmem:[%s15297_s9 + $0x70] sm:$0x1f] }
 0x46b   :  { %v5725_v17 = vsub.f32 %v5385_v9, %v15869_v16  ;;  %v5729_v24 = vsub.f32 %v5389_v13, %v15870_v43  ;;  %9028 = vmatpush3.bf16.msra.mxu0 %v15873_v31  ;;  %vm5317_vm4 = vcmp.ge.f32.partialorder %v5276_v40, 0.0  ;;  %v15876_v22 = vcombine.low %v15874_v44, %v15875_v0  ;;  %v5213_v49 = vld [vmem:[#allocation2 + $0xb0] sm:$0x1f]  ;;  %v15880_v16 = vld [vmem:[#allocation29_spill] sm:$0xff] }
 0x46c   :  { %6017 = vmatmul.mubr.f32.gmra.mrb[80].mxu0 %v7432_v33  ;;  %v5358_v39 = vmul.f32 %v13420_v28, %v5276_v40  ;;  %v5400_v59 = vsel %vm5319_vm3, %v5278_v20, %v5360_v58  ;;  %vm5321_vm5 = vcmp.ge.f32.partialorder %v5280_v32, 0.0  ;;  %v5362_v9 = vmul.f32 %v13420_v28, %v5280_v32  ;;  %v5217_v38 = vld [vmem:[#allocation2 + $0xd0] sm:$0x1f] }
 0x46d   :  { %v13938_v53 = vmul.f32 %v13935_v62, %v5725_v17  ;;  %v13946_v15 = vmul.f32 %v13943_v61, %v5729_v24  ;;  %v5736_v4 = vsub.f32 %v5396_v56, %v15876_v22  ;;  %v5273_v13 = vadd.f32 %v13221_v25, %v5211_v41  ;;  %v15881_v17 = vld [vmem:[#allocation41_spill] sm:$0xff] }
 0x46e   :  { %v15879_v55 = vpack.c.bf16 %v15877_v42, %v15878_v11  ;;  %v15882_v43 = vcombine.low %v15880_v16, %v15881_v17  ;;  %v5398_v20 = vsel %vm5317_vm4, %v5276_v40, %v5358_v39  ;;  %v5402_v31 = vsel %vm5321_vm5, %v5280_v32, %v5362_v9  ;;  %v5220_v39 = vld [vmem:[#allocation2 + $0xe8] sm:$0x1f]  ;;  %v5222_v11 = vld [vmem:[#allocation2 + $0xf8] sm:$0x1f] }
 0x46f   :  { %v7434_v33 = vcombine.low %v13938_v53, %v13946_v15  ;;  %v13963_v54 = vmul.f32 %v13713_v47, %v5736_v4  ;;  %v15883_v41 = vcombine.high %v15874_v44, %v15875_v0  ;;  %v5277_v56 = vadd.f32 %v13221_v25, %v5215_v10  ;;  %v5224_v42 = vld [vmem:[#allocation2 + $0x108] sm:$0x1f] }
 0x470   :  { %9060 = vmatpush3.bf16.msra.mxu1 %v15879_v55  ;;  %v5740_v24 = vsub.f32 %v5400_v59, %v15882_v43  ;;  %vm5314_vm6 = vcmp.ge.f32.partialorder %v5273_v13, 0.0  ;;  %v15884_v59 = vcombine.high %v15880_v16, %v15881_v17  ;;  %v5355_v4 = vmul.f32 %v13420_v28, %v5273_v13  ;;  %v15885_v55 = vld [vmem:[#allocation15_spill] sm:$0xff] }
 0x471   :  { %v5738_v58 = vsub.f32 %v5398_v20, %v15883_v41  ;;  %6102 = vmatmul.mubr.f32.gmra.mrb[80].mxu1 %v7434_v33  ;;  %v5275_v40 = vadd.f32 %v13225_v18, %v5213_v49  ;;  %vm5318_vm7 = vcmp.ge.f32.partialorder %v5277_v56, 0.0  ;;  %v5359_v44 = vmul.f32 %v13420_v28, %v5277_v56  ;;  %v15889_v20 = vld [vmem:[#allocation43_spill] sm:$0xff] }
 0x472   :  { %v13971_v22 = vmul.f32 %v13721_v63, %v5740_v24  ;;  %v5742_v47 = vsub.f32 %v5402_v31, %v15884_v59  ;;  %v5279_v0 = vadd.f32 %v13225_v18, %v5217_v38  ;;  %v5395_v9 = vsel %vm5314_vm6, %v5273_v13, %v5355_v4  ;;  %v15888_v24 = vld [vmem:[#allocation88_spill] sm:$0xff] }
 0x473   :  { %v13979_v32 = vmul.f32 %v13729_v14, %v5738_v58  ;;  %vm5316_vm8 = vcmp.ge.f32.partialorder %v5275_v40, 0.0  ;;  %v5399_v49 = vsel %vm5318_vm7, %v5277_v56, %v5359_v44  ;;  %v15886_v14 = vld [vmem:[#allocation44_spill] sm:$0xff]  ;;  %v5357_v17 = vmul.f32 %v13420_v28, %v5275_v40 }
 0x474   :  { %v7437_v63 = vcombine.low %v13963_v54, %v13971_v22  ;;  %v13986_v10 = vmul.f32 %v13737_v50, %v5742_v47  ;;  %v15887_v33 = vcombine.low %v15885_v55, %v15886_v14  ;;  %vm5320_vm9 = vcmp.ge.f32.partialorder %v5279_v0, 0.0  ;;  %v5226_v59 = vld [vmem:[#allocation2 + $0x118] sm:$0x1f] }
 0x475   :  { %v15890_v50 = vcombine.low %v15888_v24, %v15889_v20  ;;  %v5361_v13 = vmul.f32 %v13420_v28, %v5279_v0  ;;  %v5282_v31 = vadd.f32 %v13229_v57, %v5220_v39  ;;  %v5397_v58 = vsel %vm5316_vm8, %v5275_v40, %v5357_v17 }
 0x476   :  { %v5735_v16 = vsub.f32 %v5395_v9, %v15887_v33  ;;  %6021 = vmatprep.mubr.f32.mxu0 %v7437_v63  ;;  %v7439_v43 = vcombine.low %v13979_v32, %v13986_v10  ;;  %v5286_v56 = vadd.f32 %v13229_v57, %v5224_v42  ;;  %v5284_v47 = vadd.f32 %v13233_v1, %v5222_v11  ;;  %v7515_v33 = vld [vmem:[%s15295_s7 + $0x3b8] sm:$0xff] }
 0x477   :  { %v5739_v38 = vsub.f32 %v5399_v49, %v15890_v50  ;;  %v5401_v44 = vsel %vm5320_vm9, %v5279_v0, %v5361_v13  ;;  %v15891_v63 = vcombine.high %v15885_v55, %v15886_v14  ;;  %vm5323_vm10 = vcmp.ge.f32.partialorder %v5282_v31, 0.0  ;;  %v7483_v55 = vld [vmem:[%s15295_s7 + $0x2b8] sm:$0xff]  ;;  %v7514_v14 = vld [vmem:[%s15295_s7 + $0x3b0] sm:$0xff]  ;;  %v15896_v13 = vld [vmem:[#allocation14_spill] sm:$0xff] }
 0x478   :  { %v14000_v41 = vmul.f32 %v13761_v26, %v5735_v16  ;;  %6106 = vmatprep.mubr.f32.mxu1 %v7439_v43  ;;  %v15892_v26 = vcombine.high %v15888_v24, %v15889_v20  ;;  %vm5327_vm11 = vcmp.ge.f32.partialorder %v5286_v56, 0.0  ;;  %v5364_v40 = vmul.f32 %v13420_v28, %v5282_v31  ;;  %v15893_v24 = vld [vmem:[#allocation30_spill] sm:$0xff] }
 0x479   :  { %v14005_v4 = vmul.f32 %v13769_v23, %v5739_v38  ;;  %v5737_v9 = vsub.f32 %v5397_v58, %v15891_v63  ;;  %v5368_v42 = vmul.f32 %v13420_v28, %v5286_v56  ;;  %v7482_v23 = vld [vmem:[%s15295_s7 + $0x2b0] sm:$0xff]  ;;  %v5288_v49 = vadd.f32 %v13233_v1, %v5226_v59  ;;  %v15894_v20 = vld [vmem:[#allocation50_spill] sm:$0xff] }
 0x47a   :  { %v5741_v39 = vsub.f32 %v5401_v44, %v15892_v26  ;;  %vm5325_vm13 = vcmp.ge.f32.partialorder %v5284_v47, 0.0  ;;  %v5366_v43 = vmul.f32 %v13420_v28, %v5284_v47  ;;  %v15895_v50 = vcombine.low %v15893_v24, %v15894_v20  ;;  %v15897_v58 = vld [vmem:[#allocation46_spill] sm:$0xff]  ;;  %v5223_v26 = vld [vmem:[#allocation2 + $0x100] sm:$0x1f] }
 0x47b   :  { %v7436_v0 = vcombine.low %v14000_v41, %v14005_v4  ;;  %v14021_v11 = vmul.f32 %v13790_v29, %v5737_v9  ;;  %v5404_v29 = vsel %vm5323_vm10, %v5282_v31, %v5364_v40  ;;  %v5408_v17 = vsel %vm5327_vm11, %v5286_v56, %v5368_v42  ;;  %v5219_v9 = vld [vmem:[#allocation2 + $0xe0] sm:$0x1f]  ;;  %v5221_v40 = vld [vmem:[#allocation2 + $0xf0] sm:$0x1f] }
 0x47c   :  { %v14034_v16 = vmul.f32 %v13800_v3, %v5741_v39  ;;  %v5744_v38 = vsub.f32 %v5404_v29, %v15895_v50  ;;  %v15898_v59 = vcombine.low %v15896_v13, %v15897_v58  ;;  %vm5329_vm14 = vcmp.ge.f32.partialorder %v5288_v49, 0.0  ;;  %v5225_v42 = vld [vmem:[#allocation2 + $0x110] sm:$0x1f] }
 0x47d   :  { %6022 = vmatmul.mubr.f32.gmra.mrb[82].mxu0 %v7436_v0  ;;  %v5370_v63 = vmul.f32 %v13420_v28, %v5288_v49  ;;  %v5406_v31 = vsel %vm5325_vm13, %v5284_v47, %v5366_v43  ;;  %v9029_v56 = vpack.c.bf16 %v7483_v55, %v7482_v23  ;;  %v9061_v39 = vpack.c.bf16 %v7515_v33, %v7514_v14  ;;  %v7467_v33 = vld [vmem:[%s15295_s7 + $0x238] sm:$0xff] }
 0x47e   :  { %v5748_v44 = vsub.f32 %v5408_v17, %v15898_v59  ;;  %v7438_v3 = vcombine.low %v14021_v11, %v14034_v16  ;;  %v14048_v0 = vmul.f32 %v13827_v21, %v5744_v38  ;;  %v15899_v50 = vcombine.high %v15893_v24, %v15894_v20  ;;  %v7498_v24 = vld [vmem:[%s15295_s7 + $0x330] sm:$0xff]  ;;  %v7499_v20 = vld [vmem:[%s15295_s7 + $0x338] sm:$0xff] }
 0x47f   :  { %v5410_v17 = vsel %vm5329_vm14, %v5288_v49, %v5370_v63  ;;  %v15900_v1 = vcombine.high %v15896_v13, %v15897_v58  ;;  %9030 = vmatprep.subr.bf16.mxu0 %v9029_v56  ;;  %v5281_v23 = vadd.f32 %v13221_v25, %v5219_v9  ;;  %v5285_v55 = vadd.f32 %v13221_v25, %v5223_v26  ;;  %v15901_v26 = vld [vmem:[#allocation13_spill] sm:$0xff] }
 0x480   :  { %v14051_v29 = vmul.f32 %v13835_v60, %v5748_v44  ;;  %v5746_v59 = vsub.f32 %v5406_v31, %v15899_v50  ;;  %6107 = vmatmul.mubr.f32.gmra.mrb[82].mxu1 %v7438_v3  ;;  %vm6137_vm15 = vcmask 1042432   ;;  %9062 = vmatprep.subr.bf16.mxu1 %v9061_v39  ;;  %v5283_v49 = vadd.f32 %v13225_v18, %v5221_v40  ;;  %v15902_v3 = vld [vmem:[#allocation45_spill] sm:$0xff] }
 0x481   :  { %v5750_v47 = vsub.f32 %v5410_v17, %v15900_v1  ;;  %v5287_v14 = vadd.f32 %v13225_v18, %v5225_v42  ;;  %v7466_v1 = vld [vmem:[%s15295_s7 + $0x230] sm:$0xff]  ;;  %vm5322_vm0 = vcmp.ge.f32.partialorder %v5281_v23, 0.0  ;;  %vm5326_vm1 = vcmp.ge.f32.partialorder %v5285_v55, 0.0  ;;  %v15904_v42 = vld [vmem:[#allocation18_spill] sm:$0xff]  ;;  %v15905_v17 = vld [vmem:[#allocation48_spill] sm:$0xff] }
 0x482   :  { %v7441_v21 = vcombine.low %v14048_v0, %v14051_v29  ;;  %v14064_v60 = vmul.f32 %v13856_v37, %v5746_v59  ;;  %v5363_v37 = vmul.f32 %v13420_v28, %v5281_v23  ;;  %v5367_v38 = vmul.f32 %v13420_v28, %v5285_v55 }
 0x483   :  { %v14075_v43 = vmul.f32 %v13866_v51, %v5750_v47  ;;  %vm5324_vm2 = vcmp.ge.f32.partialorder %v5283_v49, 0.0  ;;  %vm5328_vm3 = vcmp.ge.f32.partialorder %v5287_v14, 0.0  ;;  %v5365_v51 = vmul.f32 %v13420_v28, %v5283_v49 }
 0x484   :  { %6026 = vmatprep.mubr.f32.mxu0 %v7441_v21  ;;  %v5403_v58 = vsel %vm5322_vm0, %v5281_v23, %v5363_v37  ;;  %v5369_v44 = vmul.f32 %v13420_v28, %v5287_v14  ;;  %v9031_v63 = vpack.c.bf16 %v7467_v33, %v7466_v1  ;;  %v5407_v9 = vsel %vm5326_vm1, %v5285_v55, %v5367_v38  ;;  %v7484_v38 = vld [vmem:[%s15295_s7 + $0x2c0] sm:$0xff]  ;;  %v14240_v28 = vld [vmem:[%s15295_s7 + $0x368] sm:$0xff] }
 0x485   :  { %v7443_v13 = vcombine.low %v14064_v60, %v14075_v43  ;;  %v15903_v31 = vcombine.low %v15901_v26, %v15902_v3  ;;  %v5405_v39 = vsel %vm5324_vm2, %v5283_v49, %v5365_v51  ;;  %v9063_v40 = vpack.c.bf16 %v7499_v20, %v7498_v24  ;;  %v7485_v51 = vld [vmem:[%s15295_s7 + $0x2c8] sm:$0xff] }
 0x486   :  { %v15906_v50 = vcombine.low %v15904_v42, %v15905_v17  ;;  %v5409_v47 = vsel %vm5328_vm3, %v5287_v14, %v5369_v44  ;;  %v15907_v21 = vcombine.high %v15901_v26, %v15902_v3  ;;  %9032 = vmatpush3.bf16.msra.mxu0 %v9031_v63  ;;  %vm6138_vm4 = vcmask 1046532   ;;  %v7517_v44 = vld [vmem:[%s15295_s7 + $0x3c8] sm:$0xff]  ;;  %v7486_v3 = vld [vmem:[%s15295_s7 + $0x2d0] sm:$0xff] }
 0x487   :  { %v5743_v56 = vsub.f32 %v5403_v58, %v15903_v31  ;;  %6111 = vmatprep.mubr.f32.mxu1 %v7443_v13  ;;  %v15908_v1 = vcombine.high %v15904_v42, %v15905_v17  ;;  %9064 = vmatpush3.bf16.msra.mxu1 %v9063_v40  ;;  %v5835_v33 = vcombine.low %v13764_v6, %v13716_v36  ;;  %vm14128_vm5 = vmor %vm6137_vm15, %vm6138_vm4  ;;  %v7516_v58 = vld [vmem:[%s15295_s7 + $0x3c0] sm:$0xff]  ;;  %v7469_v63 = vld [vmem:[%s15295_s7 + $0x248] sm:$0xff] }
 0x488   :  { %v5747_v59 = vsub.f32 %v5407_v9, %v15906_v50  ;;  %v5745_v23 = vsub.f32 %v5405_v39, %v15907_v21  ;;  %v5837_v14 = vcombine.low %v13772_v30, %v13724_v5  ;;  %v6123_v20 = vcombine.high %v13772_v30, %v13724_v5  ;;  %v14149_v9 = vld [vmem:[%s15295_s7 + $0x340] sm:$0xff]  ;;  %v7501_v26 = vld [vmem:[%s15295_s7 + $0x348] sm:$0xff]  ;;  %v7487_v31 = vld [vmem:[%s15295_s7 + $0x2d8] sm:$0xff] }
 0x489   :  { %v14099_v55 = vmul.f32 %v13895_v19, %v5743_v56  ;;  %v5749_v49 = vsub.f32 %v5409_v47, %v15908_v1  ;;  %v6121_v19 = vcombine.high %v13764_v6, %v13716_v36  ;;  %v7444_v36 = vrot.slane %v5835_v33, 9  ;;  %v7518_v17 = vld [vmem:[%s15295_s7 + $0x3d0] sm:$0xff]  ;;  %v7519_v50 = vld [vmem:[%s15295_s7 + $0x3d8] sm:$0xff]  ;;  %v14235_v30 = vld [vmem:[%s15295_s7 + $0x360] sm:$0xff] }
 0x48a   :  { %v14109_v37 = vmul.f32 %v13903_v27, %v5747_v59  ;;  %v14112_v24 = vmul.f32 %v13935_v62, %v5745_v23  ;;  %v15910_v62 = vmov 0  ;;  %v7446_v6 = vrot.slane %v5837_v14, 9  ;;  %v14173_v59 = vld [vmem:[%s15295_s7 + $0x250] sm:$0xff]  ;;  %v14192_v14 = vld [vmem:[%s15295_s7 + $0x358] sm:$0xff] }
 0x48b   :  { %v14125_v27 = vmul.f32 %v13943_v61, %v5749_v49  ;;  %v15911_v62 = vsel %vm14128_vm5, 4294967295, %v15910_v62  ;;  %v5836_v13 = vcombine.low %v13793_v52, %v13732_v46  ;;  %v7468_v61 = vld [vmem:[%s15295_s7 + $0x240] sm:$0xff]  ;;  %v6142_v39 = vrot.slane %v6121_v19, 5  ;;  %v7471_v49 = vld [vmem:[%s15295_s7 + $0x258] sm:$0xff]  ;;  %v14187_v33 = vld [vmem:[%s15295_s7 + $0x350] sm:$0xff] }
 0x48c   :  { %15912 = vst [vmem:[#allocation73_spill] sm:$0xff] %v15911_v62  ;;  %v7440_v56 = vcombine.low %v14099_v55, %v14109_v37  ;;  %v6150_v40 = vrot.slane %v6123_v20, 5  ;;  %v5838_v42 = vcombine.low %v13803_v8, %v13740_v34  ;;  %v6122_v21 = vcombine.high %v13793_v52, %v13732_v46  ;;  %v14266_v5 = vld [vmem:[%s15295_s7 + $0x270] sm:$0xff] }
 0x48d   :  { %15909 = vst [vmem:[#allocation74_spill] sm:$0xff] %v14125_v27  ;;  %v7442_v47 = vcombine.low %v14112_v24, %v14125_v27  ;;  %v6124_v23 = vcombine.high %v13803_v8, %v13740_v34  ;;  %v7445_v1 = vrot.slane %v5836_v13, 9  ;;  %v14196_v46 = vsel %vm14128_vm5, %v7444_v36, %v6142_v39  ;;  %v7488_v13 = vld [vmem:[%s15295_s7 + $0x2e0] sm:$0xff]  ;;  %v7489_v8 = vld [vmem:[%s15295_s7 + $0x2e8] sm:$0xff]  ;;  %v14261_v34 = vld [vmem:[%s15295_s7 + $0x3f8] sm:$0xff] }
 0x48e   :  { %6027 = vmatmul.mubr.f32.gmra.mrb[84].mxu0 %v7440_v56  ;;  %v14200_v52 = vsel %vm14128_vm5, %v7446_v6, %v6150_v40  ;;  %v7447_v19 = vrot.slane %v5838_v42, 9  ;;  %v9033_v20 = vpack.c.bf16 %v7485_v51, %v7484_v38  ;;  %v14211_v56 = vld [vmem:[%s15295_s7 + $0x3e0] sm:$0xff]  ;;  %v14216_v36 = vld [vmem:[%s15295_s7 + $0x3e8] sm:$0xff]  ;;  %v6146_v40 = vrot.slane %v6122_v21, 5  ;;  %v14250_v21 = vld [vmem:[%s15295_s7 + $0x2f8] sm:$0xff] }
 0x48f   :  { %v14221_v38 = vld [vmem:[%s15295_s7 + $0x260] sm:$0xff]  ;;  %v14226_v51 = vld [vmem:[%s15295_s7 + $0x268] sm:$0xff]  ;;  %6112 = vmatmul.mubr.f32.gmra.mrb[84].mxu1 %v7442_v47  ;;  %v6270_v39 = vcombine.high %v14196_v46, %v14200_v52  ;;  %v6154_v42 = vrot.slane %v6124_v23, 5  ;;  %v14245_v47 = vld [vmem:[%s15295_s7 + $0x2f0] sm:$0xff]  ;;  %v9065_v6 = vpack.c.bf16 %v7517_v44, %v7516_v58  ;;  %v9035_v18 = vpack.c.bf16 %v7469_v63, %v7468_v61 }
 0x490   :  { %v14255_v23 = vld [vmem:[%s15295_s7 + $0x3f0] sm:$0xff]  ;;  %9034 = vmatprep.subr.bf16.mxu0 %v9033_v20  ;;  %v9067_v25 = vpack.c.bf16 %v7501_v26, %v14149_v9  ;;  %v9037_v57 = vpack.c.bf16 %v7487_v31, %v7486_v3  ;;  %v14271_v27 = vld [vmem:[%s15295_s7 + $0x278] sm:$0xff]  ;;  %v14275_v58 = vsel %vm14128_vm5, %v7445_v1, %v6146_v40  ;;  %v9069_v61 = vpack.c.bf16 %v7519_v50, %v7518_v17  ;;  %v14295_v3 = vld [vmem:[%s15295_s7 + $0x480] sm:$0xff] }
 0x491   :  { %6365 = vmatprep.mubr.f32.mxu0 %v6270_v39  ;;  %v14279_v44 = vsel %vm14128_vm5, %v7447_v19, %v6154_v42  ;;  %v9039_v63 = vpack.c.bf16 %v7471_v49, %v14173_v59  ;;  %v14285_v9 = vld [vmem:[%s15295_s7 + $0x370] sm:$0xff]  ;;  %v14290_v26 = vld [vmem:[%s15295_s7 + $0x378] sm:$0xff]  ;;  %9066 = vmatprep.subr.bf16.mxu1 %v9065_v6  ;;  %v9071_v50 = vpack.c.bf16 %v14192_v14, %v14187_v33  ;;  %v14306_v59 = vld [vmem:[%s15295_s7 + $0x488] sm:$0xff] }
 0x492   :  { %v6271_v31 = vcombine.low %v14275_v58, %v14279_v44  ;;  %v6272_v17 = vcombine.high %v14275_v58, %v14279_v44  ;;  %9036 = vmatpush3.bf16.msra.mxu0 %v9035_v18  ;;  %v14311_v1 = vld [vmem:[%s15295_s7 + $0x580] sm:$0xff]  ;;  %v14316_v49 = vld [vmem:[%s15295_s7 + $0x588] sm:$0xff]  ;;  %9068 = vmatpush3.bf16.msra.mxu1 %v9067_v25  ;;  %v9041_v18 = vpack.c.bf16 %v7489_v8, %v7488_v13  ;;  %v14829_v62 = vld [vmem:[%s15295_s7 + $0x610] sm:$0xff] }
 0x493   :  { %9038 = vmatprep.subr.bf16.mxu0 %v9037_v57  ;;  %v9073_v33 = vpack.c.bf16 %v14216_v36, %v14211_v56  ;;  %v9043_v14 = vpack.c.bf16 %v14226_v51, %v14221_v38  ;;  %9070 = vmatprep.subr.bf16.mxu1 %v9069_v61  ;;  %v9075_v19 = vpack.c.bf16 %v14240_v28, %v14235_v30  ;;  %v14358_v51 = vld [vmem:[%s15295_s7 + $0x408] sm:$0xff]  ;;  %v14363_v39 = vld [vmem:[%s15295_s7 + $0x500] sm:$0xff]  ;;  %v14373_v61 = vld [vmem:[%s15295_s7 + $0x490] sm:$0xff] }
 0x494   :  { %6450 = vmatprep.mubr.f32.mxu1 %v6272_v17  ;;  %v9045_v20 = vpack.c.bf16 %v14250_v21, %v14245_v47  ;;  %v9077_v6 = vpack.c.bf16 %v14261_v34, %v14255_v23  ;;  %v9047_v25 = vpack.c.bf16 %v14271_v27, %v14266_v5  ;;  %v9079_v57 = vpack.c.bf16 %v14290_v26, %v14285_v9  ;;  %v14347_v27 = vld [vmem:[%s15295_s7 + $0x400] sm:$0xff]  ;;  %v14368_v40 = vld [vmem:[%s15295_s7 + $0x508] sm:$0xff]  ;;  %v14380_v17 = vld [vmem:[%s15295_s7 + $0x498] sm:$0xff] }
 0x495   :  { %v9081_v8 = vpack.c.bf16 %v14306_v59, %v14295_v3  ;;  %v9113_v13 = vpack.c.bf16 %v14316_v49, %v14311_v1  ;;  %v5839_v28 = vcombine.low %v13898_v35, %v13830_v2  ;;  %v5841_v30 = vcombine.low %v13906_v45, %v13838_v12  ;;  %v14390_v59 = vld [vmem:[%s15295_s7 + $0x598] sm:$0xff] }
 0x496   :  { %9040 = vmatpush3.bf16.msra.mxu0 %v9039_v63  ;;  %v6125_v34 = vcombine.high %v13898_v35, %v13830_v2  ;;  %v6127_v5 = vcombine.high %v13906_v45, %v13838_v12  ;;  %9072 = vmatpush3.bf16.msra.mxu1 %v9071_v50  ;;  %v5840_v56 = vcombine.low %v13938_v53, %v13859_v7  ;;  %v14385_v50 = vld [vmem:[%s15295_s7 + $0x590] sm:$0xff] }
 0x497   :  { %9042 = vmatprep.subr.bf16.mxu0 %v9041_v18  ;;  %v5842_v36 = vcombine.low %v13946_v15, %v13869_v48  ;;  %v6126_v38 = vcombine.high %v13938_v53, %v13859_v7  ;;  %9074 = vmatprep.subr.bf16.mxu1 %v9073_v33  ;;  %v7448_v42 = vrot.slane %v5839_v28, 9  ;;  %v7450_v21 = vrot.slane %v5841_v30, 9 }
 0x498   :  { %v6158_v47 = vrot.slane %v6125_v34, 5  ;;  %v6166_v23 = vrot.slane %v6127_v5, 5  ;;  %v6128_v63 = vcombine.high %v13946_v15, %v13869_v48  ;;  %v7449_v9 = vrot.slane %v5840_v56, 9 }
 0x499   :  { %v6162_v26 = vrot.slane %v6126_v38, 5  ;;  %v7451_v3 = vrot.slane %v5842_v36, 9  ;;  %v9083_v28 = vpack.c.bf16 %v14358_v51, %v14347_v27  ;;  %v9115_v30 = vpack.c.bf16 %v14368_v40, %v14363_v39  ;;  %v14423_v38 = vld [vmem:[%s15295_s7 + $0x410] sm:$0xff] }
 0x49a   :  { %9044 = vmatpush3.bf16.msra.mxu0 %v9043_v14  ;;  %v14394_v18 = vsel %vm14128_vm5, %v7448_v42, %v6158_v47  ;;  %v14398_v33 = vsel %vm14128_vm5, %v7450_v21, %v6166_v23  ;;  %9076 = vmatpush3.bf16.msra.mxu1 %v9075_v19  ;;  %v6170_v5 = vrot.slane %v6128_v63, 5  ;;  %v9085_v27 = vpack.c.bf16 %v14380_v17, %v14373_v61  ;;  %v14438_v42 = vld [vmem:[%s15295_s7 + $0x418] sm:$0xff]  ;;  %v14443_v47 = vld [vmem:[%s15295_s7 + $0x510] sm:$0xff]  ;;  %v7545_v17 = vld [vmem:[%s15295_s7 + $0x4a8] sm:$0xff] }
 0x49b   :  { %15913 = vst [vmem:[#allocation76_spill] sm:$0xff] %v14398_v33  ;;  %9046 = vmatprep.subr.bf16.mxu0 %v9045_v20  ;;  %v6274_v34 = vcombine.high %v14394_v18, %v14398_v33  ;;  %v14408_v14 = vsel %vm14128_vm5, %v7449_v9, %v6162_v26  ;;  %v6273_v56 = vcombine.low %v14394_v18, %v14398_v33  ;;  %v14803_v33 = vld [vmem:[%s15295_s7 + $0x698] sm:$0xff] }
 0x49c   :  { %9078 = vmatprep.subr.bf16.mxu1 %v9077_v6  ;;  %v9117_v36 = vpack.c.bf16 %v14390_v59, %v14385_v50  ;;  %v5843_v19 = vcombine.low %v14000_v41, %v13963_v54  ;;  %v5845_v20 = vcombine.low %v14005_v4, %v13971_v22  ;;  %v14427_v6 = vsel %vm14128_vm5, %v7451_v3, %v6170_v5  ;;  %v7577_v59 = vld [vmem:[%s15295_s7 + $0x5a8] sm:$0xff] }
 0x49d   :  { %15914 = vst [vmem:[#allocation75_spill] sm:$0xff] %v14427_v6  ;;  %v6129_v51 = vcombine.high %v14000_v41, %v13963_v54  ;;  %v6131_v39 = vcombine.high %v14005_v4, %v13971_v22  ;;  %v5844_v40 = vcombine.low %v14021_v11, %v13979_v32  ;;  %v14448_v54 = vld [vmem:[%s15295_s7 + $0x518] sm:$0xff]  ;;  %v6276_v41 = vcombine.high %v14408_v14, %v14427_v6 }
 0x49e   :  { %9048 = vmatpush3.bf16.msra.mxu0 %v9047_v25  ;;  %v6275_v21 = vcombine.low %v14408_v14, %v14427_v6  ;;  %v7452_v23 = vrot.slane %v5843_v19, 9  ;;  %v7454_v61 = vrot.slane %v5845_v20, 9  ;;  %9080 = vmatpush3.bf16.msra.mxu1 %v9079_v57  ;;  %v5846_v26 = vcombine.low %v14034_v16, %v13986_v10  ;;  %v7544_v25 = vld [vmem:[%s15295_s7 + $0x4a0] sm:$0xff] }
 0x49f   :  { %9082 = vmatprep.subr.bf16.mxu0 %v9081_v8  ;;  %v6174_v63 = vrot.slane %v6129_v51, 5  ;;  %v6182_v9 = vrot.slane %v6131_v39, 5  ;;  %v6130_v3 = vcombine.high %v14021_v11, %v13979_v32  ;;  %9114 = vmatprep.subr.bf16.mxu1 %v9113_v13  ;;  %v6132_v57 = vcombine.high %v14034_v16, %v13986_v10  ;;  %v7576_v11 = vld [vmem:[%s15295_s7 + $0x5a0] sm:$0xff] }
 0x4a0   :  { %v7453_v8 = vrot.slane %v5844_v40, 9  ;;  %v9087_v50 = vpack.c.bf16 %v14438_v42, %v14423_v38  ;;  %v9119_v32 = vpack.c.bf16 %v14448_v54, %v14443_v47  ;;  %v15915_v1 = vcombine.low %v14196_v46, %v14200_v52  ;;  %v7529_v47 = vld [vmem:[%s15295_s7 + $0x428] sm:$0xff]  ;;  %v14766_v6 = vld [vmem:[%s15295_s7 + $0x600] sm:$0xff] }
 0x4a1   :  { %v6175_v49 = vsel %vm14128_vm5, %v7452_v23, %v6174_v63  ;;  %v14486_v13 = vsel %vm14128_vm5, %v7454_v61, %v6182_v9  ;;  %v6178_v5 = vrot.slane %v6130_v3, 5  ;;  %v7455_v19 = vrot.slane %v5846_v26, 9  ;;  %6451 = vmatmul.mubr.f32.vlgmr.msra.gmra.mrb[86].mxu1 %v6271_v31  ;;  %v7560_v23 = vld [vmem:[%s15295_s7 + $0x520] sm:$0xff]  ;;  %v7561_v61 = vld [vmem:[%s15295_s7 + $0x528] sm:$0xff]  ;;  %v7546_v3 = vld [vmem:[%s15295_s7 + $0x4b0] sm:$0xff] }
 0x4a2   :  { %6366 = vmatmul.mubr.f32.vlgmr.msra.gmra.mrb[86].mxu0 %v15915_v1  ;;  %v6278_v20 = vcombine.high %v6175_v49, %v14486_v13  ;;  %v6186_v38 = vrot.slane %v6132_v57, 5  ;;  %v6277_v46 = vcombine.low %v6175_v49, %v14486_v13  ;;  %v9089_v51 = vpack.c.bf16 %v7545_v17, %v7544_v25  ;;  %6455 = vmatprep.mubr.f32.mxu1 %v6276_v41  ;;  %v15917_v9 = vld [vmem:[#allocation74_spill] sm:$0xff]  ;;  %v7547_v25 = vld [vmem:[%s15295_s7 + $0x4b8] sm:$0xff] }
 0x4a3   :  { %6370 = vmatprep.mubr.f32.mxu0 %v6274_v34  ;;  %9084 = vmatpush3.bf16.msra.mxu0 %v9083_v28  ;;  %v6179_v39 = vsel %vm14128_vm5, %v7453_v8, %v6178_v5  ;;  %v9121_v40 = vpack.c.bf16 %v7577_v59, %v7576_v11  ;;  %v5847_v42 = vcombine.low %v14099_v55, %v14048_v0  ;;  %v7528_v28 = vld [vmem:[%s15295_s7 + $0x420] sm:$0xff]  ;;  %v7578_v11 = vld [vmem:[%s15295_s7 + $0x5b0] sm:$0xff]  ;;  %v7579_v59 = vld [vmem:[%s15295_s7 + $0x5b8] sm:$0xff] }
 0x4a4   :  { %9116 = vmatpush3.bf16.msra.mxu1 %v9115_v30  ;;  %9086 = vmatprep.subr.bf16.mxu0 %v9085_v27  ;;  %v14499_v58 = vsel %vm14128_vm5, %v7455_v19, %v6186_v38  ;;  %v5849_v31 = vcombine.low %v14109_v37, %v14051_v29  ;;  %v6133_v34 = vcombine.high %v14099_v55, %v14048_v0  ;;  %v7562_v38 = vld [vmem:[%s15295_s7 + $0x530] sm:$0xff] }
 0x4a5   :  { %15916 = vst [vmem:[#allocation61_spill] sm:$0xff] %v14499_v58  ;;  %9118 = vmatprep.subr.bf16.mxu1 %v9117_v36  ;;  %v6280_v30 = vcombine.high %v6179_v39, %v14499_v58  ;;  %v6279_v27 = vcombine.low %v6179_v39, %v14499_v58  ;;  %v6135_v54 = vcombine.high %v14109_v37, %v14051_v29  ;;  %v7456_v41 = vrot.slane %v5847_v42, 9  ;;  %v5227_v58 = vld [vmem:[#allocation2 + $0x120] sm:$0x1f] }
 0x4a6   :  { %6371 = vmatmul.mubr.f32.gmra.mrb[88].mxu0 %v6273_v56  ;;  %6456 = vmatmul.mubr.f32.gmra.mrb[88].mxu1 %v6275_v21  ;;  %v6190_v56 = vrot.slane %v6133_v34, 5  ;;  %v7458_v36 = vrot.slane %v5849_v31, 9  ;;  %v5848_v63 = vcombine.low %v14112_v24, %v14064_v60  ;;  %v5850_v26 = vcombine.low %v15917_v9, %v14075_v43  ;;  %v7548_v34 = vld [vmem:[%s15295_s7 + $0x4c0] sm:$0xff] }
 0x4a7   :  { %6375 = vmatprep.mubr.f32.mxu0 %v6278_v20  ;;  %6460 = vmatprep.mubr.f32.mxu1 %v6280_v30  ;;  %v6198_v21 = vrot.slane %v6135_v54, 5  ;;  %v6134_v17 = vcombine.high %v14112_v24, %v14064_v60  ;;  %v6136_v57 = vcombine.high %v15917_v9, %v14075_v43  ;;  %v9091_v8 = vpack.c.bf16 %v7529_v47, %v7528_v28  ;;  %v7531_v20 = vld [vmem:[%s15295_s7 + $0x438] sm:$0xff]  ;;  %v7549_v28 = vld [vmem:[%s15295_s7 + $0x4c8] sm:$0xff] }
 0x4a8   :  { %9088 = vmatpush3.bf16.msra.mxu0 %v9087_v50  ;;  %v7530_v50 = vld [vmem:[%s15295_s7 + $0x430] sm:$0xff]  ;;  %9120 = vmatpush3.bf16.msra.mxu1 %v9119_v32  ;;  %v14546_v1 = vsel %vm14128_vm5, %v7456_v41, %v6190_v56  ;;  %v7457_v49 = vrot.slane %v5848_v63, 9  ;;  %v7459_v5 = vrot.slane %v5850_v26, 9  ;;  %v9123_v19 = vpack.c.bf16 %v7561_v61, %v7560_v23  ;;  %v7563_v32 = vld [vmem:[%s15295_s7 + $0x538] sm:$0xff]  ;;  %v7581_v54 = vld [vmem:[%s15295_s7 + $0x5c8] sm:$0xff] }
 0x4a9   :  { %9090 = vmatprep.subr.bf16.mxu0 %v9089_v51  ;;  %9122 = vmatprep.subr.bf16.mxu1 %v9121_v40  ;;  %v14559_v51 = vsel %vm14128_vm5, %v7458_v36, %v6198_v21  ;;  %v6194_v39 = vrot.slane %v6134_v17, 5  ;;  %v6202_v42 = vrot.slane %v6136_v57, 5  ;;  %v9093_v31 = vpack.c.bf16 %v7547_v25, %v7546_v3  ;;  %v7532_v41 = vld [vmem:[%s15295_s7 + $0x440] sm:$0xff]  ;;  %v7533_v23 = vld [vmem:[%s15295_s7 + $0x448] sm:$0xff]  ;;  %v7550_v26 = vld [vmem:[%s15295_s7 + $0x4d0] sm:$0xff] }
 0x4aa   :  { %6376 = vmatmul.mubr.f32.gmra.mrb[90].mxu0 %v6277_v46  ;;  %15918 = vst [vmem:[#allocation65_spill] sm:$0xff] %v14559_v51  ;;  %v7580_v46 = vld [vmem:[%s15295_s7 + $0x5c0] sm:$0xff]  ;;  %6461 = vmatmul.mubr.f32.gmra.mrb[90].mxu1 %v6279_v27  ;;  %v6282_v40 = vcombine.high %v14546_v1, %v14559_v51  ;;  %v6281_v47 = vcombine.low %v14546_v1, %v14559_v51  ;;  %v7565_v63 = vld [vmem:[%s15295_s7 + $0x548] sm:$0xff]  ;;  %v7551_v17 = vld [vmem:[%s15295_s7 + $0x4d8] sm:$0xff] }
 0x4ab   :  { %v9125_v30 = vpack.c.bf16 %v7579_v59, %v7578_v11  ;;  %v14585_v27 = vsel %vm14128_vm5, %v7457_v49, %v6194_v39  ;;  %v14589_v61 = vsel %vm14128_vm5, %v7459_v5, %v6202_v42  ;;  %v9095_v56 = vpack.c.bf16 %v7531_v20, %v7530_v50  ;;  %v7564_v36 = vld [vmem:[%s15295_s7 + $0x540] sm:$0xff]  ;;  %v7582_v57 = vld [vmem:[%s15295_s7 + $0x5d0] sm:$0xff]  ;;  %v14621_v50 = vld [vmem:[%s15295_s7 + $0x458] sm:$0xff] }
 0x4ac   :  { %15919 = vst [vmem:[#allocation78_spill] sm:$0xff] %v14585_v27  ;;  %15920 = vst [vmem:[#allocation77_spill] sm:$0xff] %v14589_v61  ;;  %9092 = vmatpush3.bf16.msra.mxu0 %v9091_v8  ;;  %6380 = vmatprep.mubr.f32.mxu0 %v6282_v40  ;;  %v6284_v3 = vcombine.high %v14585_v27, %v14589_v61  ;;  %v6283_v25 = vcombine.low %v14585_v27, %v14589_v61  ;;  %v7583_v8 = vld [vmem:[%s15295_s7 + $0x5d8] sm:$0xff]  ;;  %v14616_v59 = vld [vmem:[%s15295_s7 + $0x450] sm:$0xff] }
 0x4ad   :  { %9124 = vmatpush3.bf16.msra.mxu1 %v9123_v19  ;;  %v9127_v21 = vpack.c.bf16 %v7563_v32, %v7562_v38  ;;  %9094 = vmatprep.subr.bf16.mxu0 %v9093_v31  ;;  %v9097_v11 = vpack.c.bf16 %v7549_v28, %v7548_v34  ;;  %v14626_v49 = vld [vmem:[%s15295_s7 + $0x550] sm:$0xff]  ;;  %v14631_v5 = vld [vmem:[%s15295_s7 + $0x558] sm:$0xff]  ;;  %v14636_v19 = vld [vmem:[%s15295_s7 + $0x4e0] sm:$0xff]  ;;  %v9129_v39 = vpack.c.bf16 %v7581_v54, %v7580_v46 }
 0x4ae   :  { %6381 = vmatmul.mubr.f32.gmra.mrb[92].mxu0 %v6281_v47  ;;  %v14641_v20 = vld [vmem:[%s15295_s7 + $0x4e8] sm:$0xff]  ;;  %6465 = vmatprep.mubr.f32.mxu1 %v6284_v3  ;;  %v15921_v38 = vld [vmem:[#allocation64_spill] sm:$0xff]  ;;  %v14648_v42 = vld [vmem:[%s15295_s7 + $0x5e0] sm:$0xff]  ;;  %v9099_v46 = vpack.c.bf16 %v7533_v23, %v7532_v41  ;;  %v9131_v54 = vpack.c.bf16 %v7565_v63, %v7564_v36  ;;  %v9133_v3 = vpack.c.bf16 %v7583_v8, %v7582_v57 }
 0x4af   :  { %9126 = vmatprep.subr.bf16.mxu1 %v9125_v30  ;;  %v7589_v32 = vcombine.low %v15921_v38, %v13830_v2  ;;  %v14653_v31 = vld [vmem:[%s15295_s7 + $0x5e8] sm:$0xff]  ;;  %v14658_v34 = vld [vmem:[%s15295_s7 + $0x460] sm:$0xff]  ;;  %6466 = vmatmul.mubr.f32.gmra.mrb[92].mxu1 %v6283_v25  ;;  %v15922_v2 = vld [vmem:[#allocation63_spill] sm:$0xff]  ;;  %v9103_v36 = vpack.c.bf16 %v14621_v50, %v14616_v59  ;;  %v9135_v63 = vpack.c.bf16 %v14631_v5, %v14626_v49 }
 0x4b0   :  { %9096 = vmatpush3.bf16.msra.mxu0 %v9095_v56  ;;  %v7591_v28 = vcombine.low %v15922_v2, %v13859_v7  ;;  %v14665_v40 = vld [vmem:[%s15295_s7 + $0x468] sm:$0xff]  ;;  %v14670_v47 = vld [vmem:[%s15295_s7 + $0x560] sm:$0xff]  ;;  %v9101_v7 = vpack.c.bf16 %v7551_v17, %v7550_v26  ;;  %v14680_v41 = vld [vmem:[%s15295_s7 + $0x4f0] sm:$0xff]  ;;  %v9105_v26 = vpack.c.bf16 %v14641_v20, %v14636_v19 }
 0x4b1   :  { %v14675_v30 = vld [vmem:[%s15295_s7 + $0x568] sm:$0xff]  ;;  %6648 = vmatprep.mubr.f32.mxu0 %v7589_v32  ;;  %9128 = vmatpush3.bf16.msra.mxu1 %v9127_v21  ;;  %v5210_v56 = vld [vmem:[#allocation2 + $0x98] sm:$0x1f]  ;;  %v5207_v38 = vld [vmem:[#allocation2 + $0x80] sm:$0x1f]  ;;  %v9137_v21 = vpack.c.bf16 %v14653_v31, %v14648_v42  ;;  %v9107_v17 = vpack.c.bf16 %v14665_v40, %v14658_v34 }
 0x4b2   :  { %v5208_v23 = vld [vmem:[#allocation2 + $0x88] sm:$0x1f]  ;;  %6733 = vmatprep.mubr.f32.mxu1 %v7591_v28  ;;  %9098 = vmatprep.subr.bf16.mxu0 %v9097_v11  ;;  %v14685_v25 = vld [vmem:[%s15295_s7 + $0x4f8] sm:$0xff]  ;;  %v5209_v32 = vld [vmem:[#allocation2 + $0x90] sm:$0x1f] }
 0x4b3   :  { %9130 = vmatprep.subr.bf16.mxu1 %v9129_v39  ;;  %v14702_v8 = vld [vmem:[%s15295_s7 + $0x5f0] sm:$0xff]  ;;  %v15923_v11 = vld [vmem:[#allocation40_spill] sm:$0xff]  ;;  %v9109_v5 = vpack.c.bf16 %v14685_v25, %v14680_v41  ;;  %v15925_v42 = vld [vmem:[#allocation38_spill] sm:$0xff] }
 0x4b4   :  { %9100 = vmatpush3.bf16.msra.mxu0 %v9099_v46  ;;  %v5270_v59 = vadd.f32 %v15923_v11, %v5208_v23  ;;  %v15924_v50 = vld [vmem:[#allocation39_spill] sm:$0xff]  ;;  %v14711_v19 = vld [vmem:[%s15295_s7 + $0x5f8] sm:$0xff]  ;;  %v5269_v31 = vadd.f32 %v15925_v42, %v5207_v38  ;;  %v15926_v34 = vld [vmem:[#allocation37_spill] sm:$0xff] }
 0x4b5   :  { %v5272_v49 = vadd.f32 %v15924_v50, %v5210_v56  ;;  %9132 = vmatpush3.bf16.msra.mxu1 %v9131_v54  ;;  %9102 = vmatprep.subr.bf16.mxu0 %v9101_v7  ;;  %v14716_v20 = vld [vmem:[%s15295_s7 + $0x470] sm:$0xff]  ;;  %v14721_v39 = vld [vmem:[%s15295_s7 + $0x478] sm:$0xff]  ;;  %v5271_v2 = vadd.f32 %v15926_v34, %v5209_v32  ;;  %v15927_v40 = vld [vmem:[#allocation54_spill] sm:$0xff]  ;;  %v9141_v38 = vpack.c.bf16 %v14711_v19, %v14702_v8 }
 0x4b6   :  { %9134 = vmatprep.subr.bf16.mxu1 %v9133_v3  ;;  %v14728_v28 = vld [vmem:[%s15295_s7 + $0x570] sm:$0xff]  ;;  %v14733_v46 = vld [vmem:[%s15295_s7 + $0x578] sm:$0xff]  ;;  %vm5311_vm6 = vcmp.ge.f32.partialorder %v5270_v59, 0.0  ;;  %v5352_v54 = vmul.f32 %v15927_v40, %v5270_v59  ;;  %v14740_v41 = vld [vmem:[%s15295_s7 + $0x680] sm:$0xff]  ;;  %vm5310_vm8 = vcmp.ge.f32.partialorder %v5269_v31, 0.0  ;;  %v5351_v3 = vmul.f32 %v15927_v40, %v5269_v31 }
 0x4b7   :  { %vm5313_vm7 = vcmp.ge.f32.partialorder %v5272_v49, 0.0  ;;  %v5354_v7 = vmul.f32 %v15927_v40, %v5272_v49  ;;  %v14745_v23 = vld [vmem:[%s15295_s7 + $0x688] sm:$0xff]  ;;  %v14750_v56 = vld [vmem:[%s15295_s7 + $0x780] sm:$0xff]  ;;  %vm5312_vm9 = vcmp.ge.f32.partialorder %v5271_v2, 0.0  ;;  %v5353_v25 = vmul.f32 %v15927_v40, %v5271_v2  ;;  %v15928_v19 = vld [vmem:[#allocation36_spill] sm:$0xff] }
 0x4b8   :  { %9104 = vmatpush3.bf16.msra.mxu0 %v9103_v36  ;;  %v9111_v32 = vpack.c.bf16 %v14721_v39, %v14716_v20  ;;  %v14761_v57 = vld [vmem:[%s15295_s7 + $0x788] sm:$0xff]  ;;  %v5392_v61 = vsel %vm5311_vm6, %v5270_v59, %v5352_v54  ;;  %v9143_v8 = vpack.c.bf16 %v14733_v46, %v14728_v28  ;;  %v15929_v20 = vld [vmem:[#allocation31_spill] sm:$0xff] }
 0x4b9   :  { %v5394_v51 = vsel %vm5313_vm7, %v5272_v49, %v5354_v7  ;;  %v14771_v36 = vld [vmem:[%s15295_s7 + $0x608] sm:$0xff]  ;;  %9136 = vmatpush3.bf16.msra.mxu1 %v9135_v63  ;;  %9106 = vmatprep.subr.bf16.mxu0 %v9105_v26  ;;  %v15930_v39 = vcombine.low %v15928_v19, %v15929_v20  ;;  %v14781_v49 = vld [vmem:[%s15295_s7 + $0x700] sm:$0xff]  ;;  %v5391_v63 = vsel %vm5310_vm8, %v5269_v31, %v5351_v3  ;;  %v14792_v26 = vld [vmem:[%s15295_s7 + $0x690] sm:$0xff] }
 0x4ba   :  { %v14786_v54 = vld [vmem:[%s15295_s7 + $0x708] sm:$0xff]  ;;  %9138 = vmatprep.subr.bf16.mxu1 %v9137_v21  ;;  %v15932_v46 = vcombine.high %v15928_v19, %v15929_v20  ;;  %v14808_v31 = vld [vmem:[%s15295_s7 + $0x790] sm:$0xff]  ;;  %v9145_v3 = vpack.c.bf16 %v14745_v23, %v14740_v41  ;;  %v15935_v20 = vld [vmem:[#allocation25_spill] sm:$0xff]  ;;  %v9147_v41 = vpack.c.bf16 %v14771_v36, %v14766_v6  ;;  %v15937_v36 = vpack.c.bf16 %v14675_v30, %v14670_v47 }
 0x4bb   :  { %v5732_v59 = vsub.f32 %v5392_v61, %v15930_v39  ;;  %v15931_v61 = vld [vmem:[#allocation71_spill] sm:$0xff]  ;;  %v5393_v39 = vsel %vm5312_vm9, %v5271_v2, %v5353_v25  ;;  %v15933_v21 = vld [vmem:[#allocation70_spill] sm:$0xff]  ;;  %v9177_v25 = vpack.c.bf16 %v14761_v57, %v14750_v56  ;;  %v14848_v56 = vld [vmem:[%s15295_s7 + $0x718] sm:$0xff] }
 0x4bc   :  { %v7588_v28 = vcombine.low %v15931_v61, %v13898_v35  ;;  %v5734_v7 = vsub.f32 %v5394_v51, %v15932_v46  ;;  %v14813_v35 = vld [vmem:[%s15295_s7 + $0x798] sm:$0xff]  ;;  %v7590_v2 = vcombine.low %v15933_v21, %v13938_v53  ;;  %v15934_v19 = vld [vmem:[#allocation22_spill] sm:$0xff]  ;;  %9108 = vmatpush3.bf16.msra.mxu0 %v9107_v17  ;;  %v14843_v23 = vld [vmem:[%s15295_s7 + $0x710] sm:$0xff]  ;;  %v9149_v17 = vpack.c.bf16 %v14803_v33, %v14792_v26 }
 0x4bd   :  { %v15936_v61 = vcombine.low %v15934_v19, %v15935_v20  ;;  %v14834_v51 = vld [vmem:[%s15295_s7 + $0x618] sm:$0xff]  ;;  %v5228_v53 = vld [vmem:[#allocation2 + $0x128] sm:$0x1f]  ;;  %9140 = vmatpush3.bf16.msra.mxu1 %v15937_v36  ;;  %9110 = vmatprep.subr.bf16.mxu0 %v9109_v5  ;;  %v5229_v27 = vld [vmem:[#allocation2 + $0x130] sm:$0x1f]  ;;  %v9181_v5 = vpack.c.bf16 %v14813_v35, %v14808_v31 }
 0x4be   :  { %v5230_v6 = vld [vmem:[#allocation2 + $0x138] sm:$0x1f]  ;;  %v14860_v21 = vld [vmem:[%s15297_s9 + $0x88] sm:$0x1f]  ;;  %9142 = vmatprep.subr.bf16.mxu1 %v9141_v38  ;;  %v9313_v33 = vld [vmem:[%s15297_s9 + $0x80] sm:$0x1f]  ;;  %v9151_v26 = vpack.c.bf16 %v14834_v51, %v14829_v62  ;;  %v5291_v35 = vadd.f32 %v15926_v34, %v5229_v27 }
 0x4bf   :  { %v5731_v46 = vsub.f32 %v5391_v63, %v15936_v61  ;;  %v14863_v61 = vmul.f32 %v14860_v21, %v5732_v59  ;;  %v15938_v63 = vcombine.high %v15934_v19, %v15935_v20  ;;  %v14873_v47 = vld [vmem:[%s15297_s9 + $0x98] sm:$0x1f]  ;;  %v7597_v59 = vcombine.low %v13971_v22, %v14048_v0  ;;  %v14912_v27 = vld [vmem:[%s15295_s7 + $0x6a8] sm:$0xff]  ;;  %v14933_v36 = vld [vmem:[%s15295_s7 + $0x620] sm:$0xff] }
 0x4c0   :  { %v14876_v30 = vmul.f32 %v14873_v47, %v5734_v7  ;;  %v9183_v7 = vpack.c.bf16 %v14848_v56, %v14843_v23  ;;  %v5292_v19 = vadd.f32 %v15924_v50, %v5230_v6  ;;  %9112 = vmatpush3.bf16.msra.mxu0 %v9111_v32  ;;  %vm5332_vm14 = vcmp.ge.f32.partialorder %v5291_v35, 0.0  ;;  %v15051_v22 = vld [vmem:[%s15295_s7 + $0x640] sm:$0xff]  ;;  %v15096_v23 = vld [vmem:[%s15295_s7 + $0x6d8] sm:$0xff] }
 0x4c1   :  { %v5733_v57 = vsub.f32 %v5393_v39, %v15938_v63  ;;  %v5290_v39 = vadd.f32 %v15923_v11, %v5228_v53  ;;  %v14886_v38 = vmul.f32 %v9313_v33, %v5731_v46  ;;  %v5289_v11 = vadd.f32 %v15925_v42, %v5227_v58  ;;  %9144 = vmatpush3.bf16.msra.mxu1 %v9143_v8  ;;  %v9314_v46 = vld [vmem:[%s15297_s9 + $0x90] sm:$0x1f]  ;;  %v14907_v58 = vld [vmem:[%s15295_s7 + $0x6a0] sm:$0xff]  ;;  %v14925_v8 = vld [vmem:[%s15295_s7 + $0x7a8] sm:$0xff] }
 0x4c2   :  { %9146 = vmatprep.subr.bf16.mxu0 %v9145_v3  ;;  %v7593_v20 = vcombine.low %v13838_v12, %v14863_v61  ;;  %vm5333_vm11 = vcmp.ge.f32.partialorder %v5292_v19, 0.0  ;;  %v5374_v50 = vmul.f32 %v15927_v40, %v5292_v19  ;;  %9178 = vmatprep.subr.bf16.mxu1 %v9177_v25  ;;  %v14917_v12 = vld [vmem:[%s15295_s7 + $0x7a0] sm:$0xff]  ;;  %v7595_v32 = vcombine.low %v13869_v48, %v14876_v30 }
 0x4c3   :  { %vm5331_vm10 = vcmp.ge.f32.partialorder %v5290_v39, 0.0  ;;  %v5372_v31 = vmul.f32 %v15927_v40, %v5290_v39  ;;  %v14901_v53 = vmul.f32 %v9314_v46, %v5733_v57  ;;  %vm5330_vm13 = vcmp.ge.f32.partialorder %v5289_v11, 0.0  ;;  %6649 = vmatmul.mubr.f32.vlgmr.msra.gmra.mrb[94].mxu0 %v7588_v28  ;;  %v15939_v3 = vld [vmem:[#allocation21_spill] sm:$0xff]  ;;  %v14938_v28 = vld [vmem:[%s15295_s7 + $0x628] sm:$0xff] }
 0x4c4   :  { %v5371_v34 = vmul.f32 %v15927_v40, %v5289_v11  ;;  %v15940_v25 = vld [vmem:[#allocation33_spill] sm:$0xff]  ;;  %v5414_v6 = vsel %vm5333_vm11, %v5292_v19, %v5374_v50  ;;  %v5373_v48 = vmul.f32 %v15927_v40, %v5291_v35  ;;  %6734 = vmatmul.mubr.f32.vlgmr.msra.gmra.mrb[94].mxu1 %v7590_v2  ;;  %6653 = vmatprep.mubr.f32.mxu0 %v7593_v20  ;;  %v15943_v20 = vld [vmem:[#allocation26_spill] sm:$0xff] }
 0x4c5   :  { %v5412_v42 = vsel %vm5331_vm10, %v5290_v39, %v5372_v31  ;;  %v15941_v57 = vcombine.low %v15939_v3, %v15940_v25  ;;  %v7592_v39 = vcombine.low %v13906_v45, %v14886_v38  ;;  %v15942_v19 = vcombine.high %v15939_v3, %v15940_v25  ;;  %v14949_v50 = vld [vmem:[%s15295_s7 + $0x720] sm:$0xff]  ;;  %v14960_v45 = vld [vmem:[%s15295_s7 + $0x6b0] sm:$0xff]  ;;  %6738 = vmatprep.mubr.f32.mxu1 %v7595_v32 }
 0x4c6   :  { %v5411_v40 = vsel %vm5330_vm13, %v5289_v11, %v5371_v34  ;;  %9148 = vmatpush3.bf16.msra.mxu0 %v9147_v41  ;;  %v9153_v2 = vpack.c.bf16 %v14912_v27, %v14907_v58  ;;  %v15944_v3 = vld [vmem:[#allocation27_spill] sm:$0xff]  ;;  %v7631_v11 = vld [vmem:[%s15295_s7 + $0x6b8] sm:$0xff]  ;;  %v15946_v58 = vpack.c.bf16 %v14786_v54, %v14781_v49  ;;  %v9185_v54 = vpack.c.bf16 %v14925_v8, %v14917_v12  ;;  %v15041_v8 = vld [vmem:[%s15295_s7 + $0x7c0] sm:$0xff] }
 0x4c7   :  { %v5752_v63 = vsub.f32 %v5412_v42, %v15941_v57  ;;  %v5754_v31 = vsub.f32 %v5414_v6, %v15942_v19  ;;  %v14954_v42 = vld [vmem:[%s15295_s7 + $0x728] sm:$0xff]  ;;  %v15945_v25 = vcombine.low %v15943_v20, %v15944_v3  ;;  %v5413_v6 = vsel %vm5332_vm14, %v5291_v35, %v5373_v48  ;;  %v14974_v34 = vld [vmem:[%s15295_s7 + $0x7b0] sm:$0xff]  ;;  %v14979_v41 = vld [vmem:[%s15295_s7 + $0x7b8] sm:$0xff]  ;;  %9150 = vmatprep.subr.bf16.mxu0 %v9149_v17 }
 0x4c8   :  { %9180 = vmatpush3.bf16.msra.mxu1 %v15946_v58  ;;  %v7594_v35 = vcombine.low %v13946_v15, %v14901_v53  ;;  %v15947_v32 = vcombine.high %v15943_v20, %v15944_v3  ;;  %v14995_v19 = vld [vmem:[%s15295_s7 + $0x630] sm:$0xff]  ;;  %v15000_v49 = vld [vmem:[%s15295_s7 + $0x638] sm:$0xff]  ;;  %6654 = vmatmul.mubr.f32.gmra.mrb[96].mxu0 %v7592_v39  ;;  %v15046_v39 = vld [vmem:[%s15295_s7 + $0x7c8] sm:$0xff]  ;;  %v15948_v0 = vcombine.low %v13986_v10, %v14064_v60 }
 0x4c9   :  { %v5751_v57 = vsub.f32 %v5411_v40, %v15945_v25  ;;  %v14987_v27 = vmul.f32 %v14860_v21, %v5752_v63  ;;  %v15005_v15 = vld [vmem:[%s15295_s7 + $0x730] sm:$0xff]  ;;  %9182 = vmatprep.subr.bf16.mxu1 %v9181_v5  ;;  %v15010_v17 = vmul.f32 %v14873_v47, %v5754_v31  ;;  %v15017_v63 = vld [vmem:[%s15295_s7 + $0x738] sm:$0xff]  ;;  %v15022_v40 = vld [vmem:[%s15295_s7 + $0x6c0] sm:$0xff]  ;;  %6658 = vmatprep.mubr.f32.mxu0 %v7597_v59 }
 0x4ca   :  { %v5753_v48 = vsub.f32 %v5413_v6, %v15947_v32  ;;  %v15027_v5 = vld [vmem:[%s15295_s7 + $0x6c8] sm:$0xff]  ;;  %6739 = vmatmul.mubr.f32.gmra.mrb[96].mxu1 %v7594_v35  ;;  %v9155_v47 = vpack.c.bf16 %v14938_v28, %v14933_v36  ;;  %9152 = vmatpush3.bf16.msra.mxu0 %v9151_v26  ;;  %v9189_v36 = vpack.c.bf16 %v14979_v41, %v14974_v34  ;;  %v15072_v10 = vld [vmem:[%s15295_s7 + $0x740] sm:$0xff]  ;;  %v15091_v26 = vld [vmem:[%s15295_s7 + $0x6d0] sm:$0xff] }
 0x4cb   :  { %v15012_v21 = vmul.f32 %v9313_v33, %v5751_v57  ;;  %v9187_v33 = vpack.c.bf16 %v14954_v42, %v14949_v50  ;;  %6743 = vmatprep.mubr.f32.mxu1 %v15948_v0  ;;  %v15067_v28 = vld [vmem:[%s15295_s7 + $0x648] sm:$0xff]  ;;  %9154 = vmatprep.subr.bf16.mxu0 %v9153_v2  ;;  %v9159_v51 = vpack.c.bf16 %v15000_v49, %v14995_v19  ;;  %v15115_v50 = vld [vmem:[%s15295_s7 + $0x7d8] sm:$0xff]  ;;  %v15952_v49 = vld [vmem:[#allocation61_spill] sm:$0xff] }
 0x4cc   :  { %v15036_v12 = vmul.f32 %v9314_v46, %v5753_v48  ;;  %v9157_v46 = vpack.c.bf16 %v7631_v11, %v14960_v45  ;;  %v15077_v60 = vld [vmem:[%s15295_s7 + $0x748] sm:$0xff]  ;;  %9184 = vmatpush3.bf16.msra.mxu1 %v9183_v7  ;;  %v7603_v56 = vcombine.low %v14075_v43, %v15010_v17  ;;  %v6844_v7 = vcombine.high %v14200_v52, %v14394_v18  ;;  %v15125_v43 = vld [vmem:[%s15295_s7 + $0x658] sm:$0xff] }
 0x4cd   :  { %v7600_v59 = vcombine.low %v14109_v37, %v15012_v21  ;;  %v7601_v37 = vcombine.low %v14051_v29, %v14987_v27  ;;  %v15101_v29 = vld [vmem:[%s15295_s7 + $0x7d0] sm:$0xff]  ;;  %9186 = vmatprep.subr.bf16.mxu1 %v9185_v54  ;;  %v9191_v31 = vpack.c.bf16 %v15017_v63, %v15005_v15  ;;  %v6846_v42 = vcombine.high %v14279_v44, %v14408_v14  ;;  %v15951_v19 = vld [vmem:[#allocation78_spill] sm:$0xff] }
 0x4ce   :  { %v7602_v62 = vcombine.low %v15917_v9, %v15036_v12  ;;  %v15949_v9 = vcombine.low %v14005_v4, %v14099_v55  ;;  %v15120_v4 = vld [vmem:[%s15295_s7 + $0x650] sm:$0xff]  ;;  %v15950_v55 = vcombine.low %v14034_v16, %v14112_v24  ;;  %v9161_v45 = vpack.c.bf16 %v15027_v5, %v15022_v40  ;;  %9156 = vmatpush3.bf16.msra.mxu0 %v9155_v47  ;;  %v7651_v40 = vld [vmem:[%s15295_s7 + $0x758] sm:$0xff]  ;;  %v7636_v5 = vld [vmem:[%s15295_s7 + $0x6e0] sm:$0xff] }
 0x4cf   :  { %v9193_v2 = vpack.c.bf16 %v15046_v39, %v15041_v8  ;;  %v9163_v20 = vpack.c.bf16 %v15067_v28, %v15051_v22  ;;  %v9195_v3 = vpack.c.bf16 %v15077_v60, %v15072_v10  ;;  %v9165_v16 = vpack.c.bf16 %v15096_v23, %v15091_v26  ;;  %9158 = vmatprep.subr.bf16.mxu0 %v9157_v46  ;;  %v7637_v47 = vld [vmem:[%s15295_s7 + $0x6e8] sm:$0xff]  ;;  %v15955_v60 = vld [vmem:[#allocation75_spill] sm:$0xff]  ;;  %v7620_v23 = vld [vmem:[%s15295_s7 + $0x660] sm:$0xff] }
 0x4d0   :  { %6659 = vmatmul.mubr.f32.gmra.mrb[98].mxu0 %v15949_v9  ;;  %6744 = vmatmul.mubr.f32.gmra.mrb[98].mxu1 %v15950_v55  ;;  %v9197_v24 = vpack.c.bf16 %v15115_v50, %v15101_v29  ;;  %v9167_v25 = vpack.c.bf16 %v15125_v43, %v15120_v4  ;;  %v6843_v57 = vcombine.low %v14200_v52, %v14394_v18  ;;  %v7669_v46 = vld [vmem:[%s15295_s7 + $0x7e8] sm:$0xff]  ;;  %v7652_v9 = vld [vmem:[%s15295_s7 + $0x760] sm:$0xff]  ;;  %v7638_v50 = vld [vmem:[%s15295_s7 + $0x6f0] sm:$0xff] }
 0x4d1   :  { %6663 = vmatprep.mubr.f32.mxu0 %v7601_v37  ;;  %6748 = vmatprep.mubr.f32.mxu1 %v7603_v56  ;;  %v6845_v6 = vcombine.low %v14279_v44, %v14408_v14  ;;  %v6483_v11 = vcombine.low %v14886_v38, %v14863_v61  ;;  %v6758_v34 = vcombine.high %v14886_v38, %v14863_v61  ;;  %v7650_v38 = vld [vmem:[%s15295_s7 + $0x750] sm:$0xff]  ;;  %v7621_v29 = vld [vmem:[%s15295_s7 + $0x668] sm:$0xff]  ;;  %v7639_v55 = vld [vmem:[%s15295_s7 + $0x6f8] sm:$0xff] }
 0x4d2   :  { %9188 = vmatpush3.bf16.msra.mxu1 %v9187_v33  ;;  %v6484_v41 = vcombine.low %v14901_v53, %v14876_v30  ;;  %v6759_v58 = vcombine.high %v14901_v53, %v14876_v30  ;;  %v6852_v35 = vcombine.high %v14486_v13, %v14546_v1  ;;  %9160 = vmatpush3.bf16.msra.mxu0 %v9159_v51  ;;  %v7654_v43 = vld [vmem:[%s15295_s7 + $0x770] sm:$0xff] }
 0x4d3   :  { %9190 = vmatprep.subr.bf16.mxu1 %v9189_v36  ;;  %v7604_v32 = vrot.slane %v6483_v11, 9  ;;  %v6764_v48 = vrot.slane %v6758_v34, 5  ;;  %v6854_v15 = vcombine.high %v15952_v49, %v15951_v19  ;;  %v6851_v61 = vcombine.low %v14486_v13, %v14546_v1  ;;  %9162 = vmatprep.subr.bf16.mxu0 %v9161_v45  ;;  %v15954_v36 = vld [vmem:[#allocation76_spill] sm:$0xff]  ;;  %v7670_v45 = vld [vmem:[%s15295_s7 + $0x7f0] sm:$0xff]  ;;  %v15957_v34 = vld [vmem:[#allocation77_spill] sm:$0xff] }
 0x4d4   :  { %6664 = vmatmul.mubr.f32.gmra.mrb[100].mxu0 %v7600_v59  ;;  %6749 = vmatmul.mubr.f32.gmra.mrb[100].mxu1 %v7602_v62  ;;  %v7605_v30 = vrot.slane %v6484_v41, 9  ;;  %v6768_v53 = vrot.slane %v6759_v58, 5  ;;  %v6853_v54 = vcombine.low %v15952_v49, %v15951_v19  ;;  %v6485_v63 = vcombine.low %v15012_v21, %v14987_v27  ;;  %v7668_v59 = vld [vmem:[%s15295_s7 + $0x7e0] sm:$0xff] }
 0x4d5   :  { %6939 = vmatprep.mubr.f32.mxu0 %v6844_v7  ;;  %7024 = vmatprep.mubr.f32.mxu1 %v6846_v42  ;;  %v6765_v8 = vsel %vm14128_vm5, %v7604_v32, %v6764_v48  ;;  %v6760_v39 = vcombine.high %v15012_v21, %v14987_v27  ;;  %v6486_v22 = vcombine.low %v15036_v12, %v15010_v17 }
 0x4d6   :  { %9192 = vmatpush3.bf16.msra.mxu1 %v9191_v31  ;;  %v6761_v0 = vcombine.high %v15036_v12, %v15010_v17  ;;  %v6848_v28 = vcombine.high %v15954_v36, %v6765_v8  ;;  %v6769_v10 = vsel %vm14128_vm5, %v7605_v30, %v6768_v53  ;;  %v6847_v27 = vcombine.low %v15954_v36, %v6765_v8  ;;  %v7653_v31 = vld [vmem:[%s15295_s7 + $0x768] sm:$0xff]  ;;  %v7623_v30 = vld [vmem:[%s15295_s7 + $0x678] sm:$0xff] }
 0x4d7   :  { %9194 = vmatprep.subr.bf16.mxu1 %v9193_v2  ;;  %v7606_v21 = vrot.slane %v6485_v63, 9  ;;  %9164 = vmatpush3.bf16.msra.mxu0 %v9163_v20  ;;  %v6850_v37 = vcombine.high %v15955_v60, %v6769_v10  ;;  %v6849_v17 = vcombine.low %v15955_v60, %v6769_v10  ;;  %v6772_v12 = vrot.slane %v6760_v39, 5  ;;  %v7671_v2 = vld [vmem:[%s15295_s7 + $0x7f8] sm:$0xff]  ;;  %v15956_v20 = vld [vmem:[#allocation65_spill] sm:$0xff] }
 0x4d8   :  { %v7607_v62 = vrot.slane %v6486_v22, 9  ;;  %9166 = vmatprep.subr.bf16.mxu0 %v9165_v16  ;;  %v9199_v51 = vpack.c.bf16 %v7651_v40, %v7650_v38  ;;  %v9169_v26 = vpack.c.bf16 %v7637_v47, %v7636_v5  ;;  %v6776_v56 = vrot.slane %v6761_v0, 5  ;;  %v7622_v38 = vld [vmem:[%s15295_s7 + $0x670] sm:$0xff] }
 0x4d9   :  { %v9201_v7 = vpack.c.bf16 %v7669_v46, %v7668_v59  ;;  %v6773_v42 = vsel %vm14128_vm5, %v7606_v21, %v6772_v12  ;;  %v9171_v11 = vpack.c.bf16 %v7621_v29, %v7620_v23  ;;  %v9203_v32 = vpack.c.bf16 %v7653_v31, %v7652_v9 }
 0x4da   :  { %9196 = vmatpush3.bf16.msra.mxu1 %v9195_v3  ;;  %v6856_v3 = vcombine.high %v15956_v20, %v6773_v42  ;;  %v6777_v16 = vsel %vm14128_vm5, %v7607_v62, %v6776_v56  ;;  %v9173_v48 = vpack.c.bf16 %v7639_v55, %v7638_v50  ;;  %v9205_v4 = vpack.c.bf16 %v7671_v2, %v7670_v45 }
 0x4db   :  { %9198 = vmatprep.subr.bf16.mxu1 %v9197_v24  ;;  %v6855_v24 = vcombine.low %v15956_v20, %v6773_v42  ;;  %9168 = vmatpush3.bf16.msra.mxu0 %v9167_v25  ;;  %v6858_v41 = vcombine.high %v15957_v34, %v6777_v16  ;;  %v6857_v58 = vcombine.low %v15957_v34, %v6777_v16  ;;  %v7655_v25 = vld [vmem:[%s15295_s7 + $0x778] sm:$0xff] }
 0x4dc   :  { %9170 = vmatprep.subr.bf16.mxu0 %v9169_v26  ;;  %v9175_v53 = vpack.c.bf16 %v7623_v30, %v7622_v38  ;;  %v9207_v63 = vpack.c.bf16 %v7655_v25, %v7654_v43 }
 0x4de   :  { %9200 = vmatpush3.bf16.msra.mxu1 %v9199_v51 }
 0x4df   :  { %9202 = vmatprep.subr.bf16.mxu1 %v9201_v7  ;;  %9172 = vmatpush3.bf16.msra.mxu0 %v9171_v11 }
 0x4e0   :  { %9174 = vmatprep.subr.bf16.mxu0 %v9173_v48 }
 0x4e2   :  { %9204 = vmatpush3.bf16.msra.mxu1 %v9203_v32 }
 0x4e3   :  { %9206 = vmatprep.subr.bf16.mxu1 %v9205_v4  ;;  %9176 = vmatpush3.bf16.msra.mxu0 %v9175_v53 }
 0x4e6   :  { %9208 = vmatpush3.bf16.msra.mxu1 %v9207_v63  ;;  %6940 = vmatmul.mubr.f32.vlgmr.msra.gmra.mrb[102].mxu0 %v6843_v57 }
 0x4e7   :  { %6944 = vmatprep.mubr.f32.mxu0 %v6848_v28 }
 0x4e9   :  { %7025 = vmatmul.mubr.f32.vlgmr.msra.gmra.mrb[102].mxu1 %v6845_v6 }
 0x4ea   :  { %7029 = vmatprep.mubr.f32.mxu1 %v6850_v37  ;;  %6945 = vmatmul.mubr.f32.gmra.mrb[104].mxu0 %v6847_v27 }
 0x4eb   :  { %6949 = vmatprep.mubr.f32.mxu0 %v6852_v35 }
 0x4ed   :  { %7030 = vmatmul.mubr.f32.gmra.mrb[104].mxu1 %v6849_v17  ;;  %v7427_v17 = vld [vmem:[%s15296_s8] ss:$0 sm:$0xff]  ;;  %s7672_s8 = sld [smem:[#allocation3 + $0x3]] }
 0x4ee   :  { %7034 = vmatprep.mubr.f32.mxu1 %v6854_v15  ;;  %6950 = vmatmul.mubr.f32.gmra.mrb[106].mxu0 %v6851_v61 }
 0x4ef   :  { %6954 = vmatprep.mubr.f32.mxu0 %v6856_v3 }
 0x4f1   :  { %7035 = vmatmul.mubr.f32.gmra.mrb[106].mxu1 %v6853_v54 }
 0x4f2   :  { %7039 = vmatprep.mubr.f32.mxu1 %v6858_v41  ;;  %6955 = vmatmul.mubr.f32.gmra.mrb[108].mxu0 %v6855_v24 }
 0x4f5   :  { %7040 = vmatmul.mubr.f32.gmra.mrb[108].mxu1 %v6857_v58 }
 0x52e   :  { %v8057_v52 = vpop.f32.mrb[78].mxu0 }
 0x52f   :  { %v8058_v44 = vpop.f32.mrb[79].mxu0 }
 0x530   :  { %v8059_v18 = vadd.f32 %v8058_v44, %v8057_v52 }
 0x533   :  { %v8101_v14 = vpop.f32.mrb[78].mxu1 }
 0x534   :  { %v8102_v57 = vpop.f32.mrb[79].mxu1 }
 0x535   :  { %v8103_v6 = vadd.f32 %v8102_v57, %v8101_v14 }
 0x537   :  { %v6099_v35 = vadd.f32 %v8103_v6, %v8059_v18 }
 0x539   :  { %v6117_v23 = vadd.f32 %v7427_v17, %v6099_v35 }
 0x53f   :  { %v8060_v15 = vpop.f32.mrb[80].mxu0 }
 0x540   :  { %v8061_v40 = vpop.f32.mrb[81].mxu0 }
 0x541   :  { %v8062_v5 = vadd.f32 %v8061_v40, %v8060_v15 }
 0x544   :  { %v8104_v13 = vpop.f32.mrb[80].mxu1 }
 0x545   :  { %v8105_v1 = vpop.f32.mrb[81].mxu1 }
 0x546   :  { %v8106_v61 = vadd.f32 %v8105_v1, %v8104_v13 }
 0x548   :  { %v6104_v47 = vadd.f32 %v8106_v61, %v8062_v5 }
 0x54a   :  { %v6118_v45 = vadd.f32 %v7427_v17, %v6104_v47 }
 0x550   :  { %v8063_v19 = vpop.f32.mrb[82].mxu0 }
 0x551   :  { %v8064_v49 = vpop.f32.mrb[83].mxu0 }
 0x552   :  { %v8065_v54 = vadd.f32 %v8064_v49, %v8063_v19 }
 0x553   :  { %v8107_v33 = vpop.f32.mrb[82].mxu1 }
 0x554   :  { %v8108_v8 = vpop.f32.mrb[83].mxu1 }
 0x555   :  { %v8109_v39 = vadd.f32 %v8108_v8, %v8107_v33 }
 0x557   :  { %v6109_v22 = vadd.f32 %v8109_v39, %v8065_v54 }
 0x559   :  { %v6119_v58 = vadd.f32 %v7427_v17, %v6109_v22 }
 0x561   :  { %v8066_v0 = vpop.f32.mrb[84].mxu0 }
 0x562   :  { %v8110_v59 = vpop.f32.mrb[84].mxu1  ;;  %v8067_v46 = vpop.f32.mrb[85].mxu0 }
 0x563   :  { %v8068_v36 = vadd.f32 %v8067_v46, %v8066_v0  ;;  %v8111_v28 = vpop.f32.mrb[85].mxu1 }
 0x564   :  { %v8112_v10 = vadd.f32 %v8111_v28, %v8110_v59 }
 0x566   :  { %v6114_v27 = vadd.f32 %v8112_v10, %v8068_v36 }
 0x568   :  { %v6120_v53 = vadd.f32 %v7427_v17, %v6114_v27 }
 0x574   :  { %v8189_v60 = vpop.f32.mrb[86].mxu1 }
 0x575   :  { %v8145_v21 = vpop.f32.mrb[86].mxu0  ;;  %v8190_v62 = vpop.f32.mrb[87].mxu1 }
 0x576   :  { %v8146_v37 = vpop.f32.mrb[87].mxu0  ;;  %v8191_v51 = vadd.f32 %v8190_v62, %v8189_v60 }
 0x577   :  { %v8147_v12 = vadd.f32 %v8146_v37, %v8145_v21 }
 0x579   :  { %v8148_v26 = vpop.f32.mrb[88].mxu0  ;;  %v6453_v29 = vadd.f32 %v8191_v51, %v8147_v12  ;;  %v8192_v9 = vpop.f32.mrb[88].mxu1 }
 0x57a   :  { %v8149_v56 = vpop.f32.mrb[89].mxu0  ;;  %v8193_v31 = vpop.f32.mrb[89].mxu1 }
 0x57b   :  { %v8150_v7 = vadd.f32 %v8149_v56, %v8148_v26  ;;  %v6471_v50 = vadd.f32 %v6453_v29, %v6117_v23  ;;  %v8194_v55 = vadd.f32 %v8193_v31, %v8192_v9 }
 0x57d   :  { %v8151_v42 = vpop.f32.mrb[90].mxu0  ;;  %v6458_v2 = vadd.f32 %v8194_v55, %v8150_v7  ;;  %v8195_v20 = vpop.f32.mrb[90].mxu1  ;;  %v7054_v55 = vstv %s7672_s8 }
 0x57e   :  { %v8152_v3 = vpop.f32.mrb[91].mxu0  ;;  %v8196_v24 = vpop.f32.mrb[91].mxu1 }
 0x57f   :  { %v8153_v16 = vadd.f32 %v8152_v3, %v8151_v42  ;;  %v6472_v11 = vadd.f32 %v6458_v2, %v6118_v45  ;;  %v8197_v34 = vadd.f32 %v8196_v24, %v8195_v20 }
 0x581   :  { %v8154_v41 = vpop.f32.mrb[92].mxu0  ;;  %v6463_v32 = vadd.f32 %v8197_v34, %v8153_v16 }
 0x582   :  { %v8155_v48 = vpop.f32.mrb[93].mxu0  ;;  %v8198_v38 = vpop.f32.mrb[92].mxu1 }
 0x583   :  { %v8156_v30 = vadd.f32 %v8155_v48, %v8154_v41  ;;  %v6473_v4 = vadd.f32 %v6463_v32, %v6119_v58  ;;  %v8199_v43 = vpop.f32.mrb[93].mxu1 }
 0x584   :  { %v8200_v25 = vadd.f32 %v8199_v43, %v8198_v38 }
 0x586   :  { %v6468_v63 = vadd.f32 %v8200_v25, %v8156_v30  ;;  %v15958_v30 = vld [vmem:[#allocation32_spill] sm:$0xff] }
 0x588   :  { %v6474_v52 = vadd.f32 %v6468_v63, %v6120_v53 }
 0x596   :  { %v8233_v44 = vpop.f32.mrb[94].mxu0 }
 0x597   :  { %v8277_v18 = vpop.f32.mrb[94].mxu1  ;;  %v8234_v14 = vpop.f32.mrb[95].mxu0 }
 0x598   :  { %v8235_v57 = vadd.f32 %v8234_v14, %v8233_v44  ;;  %v8278_v6 = vpop.f32.mrb[95].mxu1 }
 0x599   :  { %v8279_v35 = vadd.f32 %v8278_v6, %v8277_v18 }
 0x59b   :  { %v8236_v15 = vpop.f32.mrb[96].mxu0  ;;  %v6736_v40 = vadd.f32 %v8279_v35, %v8235_v57  ;;  %v15959_v35 = vld [vmem:[#allocation66_spill] sm:$0xff] }
 0x59c   :  { %v8237_v13 = vpop.f32.mrb[97].mxu0 }
 0x59d   :  { %v8280_v5 = vpop.f32.mrb[96].mxu1  ;;  %v8238_v1 = vadd.f32 %v8237_v13, %v8236_v15  ;;  %v6754_v47 = vadd.f32 %v6736_v40, %v6471_v50 }
 0x59e   :  { %v8281_v61 = vpop.f32.mrb[97].mxu1 }
 0x59f   :  { %v8282_v19 = vadd.f32 %v8281_v61, %v8280_v5  ;;  %v15960_v61 = vld [vmem:[#allocation35_spill] sm:$0xff] }
 0x5a1   :  { %v6741_v54 = vadd.f32 %v8282_v19, %v8238_v1 }
 0x5a3   :  { %v8239_v49 = vpop.f32.mrb[98].mxu0  ;;  %v8283_v33 = vpop.f32.mrb[98].mxu1  ;;  %v6755_v0 = vadd.f32 %v6741_v54, %v6472_v11  ;;  %v15961_v54 = vld [vmem:[#allocation34_spill] sm:$0xff] }
 0x5a4   :  { %v8240_v8 = vpop.f32.mrb[99].mxu0  ;;  %v8284_v22 = vpop.f32.mrb[99].mxu1 }
 0x5a5   :  { %v8241_v39 = vadd.f32 %v8240_v8, %v8239_v49  ;;  %v8285_v59 = vadd.f32 %v8284_v22, %v8283_v33 }
 0x5a7   :  { %v8242_v46 = vpop.f32.mrb[100].mxu0  ;;  %v6746_v36 = vadd.f32 %v8285_v59, %v8241_v39  ;;  %v8286_v28 = vpop.f32.mrb[100].mxu1 }
 0x5a8   :  { %v8243_v10 = vpop.f32.mrb[101].mxu0  ;;  %v8287_v21 = vpop.f32.mrb[101].mxu1 }
 0x5a9   :  { %v8244_v27 = vadd.f32 %v8243_v10, %v8242_v46  ;;  %v6756_v60 = vadd.f32 %v6746_v36, %v6473_v4  ;;  %v8288_v37 = vadd.f32 %v8287_v21, %v8286_v28 }
 0x5ab   :  { %v6751_v17 = vadd.f32 %v8288_v37, %v8244_v27 }
 0x5ad   :  { %v6757_v12 = vadd.f32 %v6751_v17, %v6474_v52 }
 0x5b9   :  { %v8321_v62 = vpop.f32.mrb[102].mxu0 }
 0x5ba   :  { %v8322_v26 = vpop.f32.mrb[103].mxu0 }
 0x5bb   :  { %v8323_v23 = vadd.f32 %v8322_v26, %v8321_v62 }
 0x5bc   :  { %v8365_v51 = vpop.f32.mrb[102].mxu1 }
 0x5bd   :  { %v8366_v29 = vpop.f32.mrb[103].mxu1  ;;  %v8324_v56 = vpop.f32.mrb[104].mxu0 }
 0x5be   :  { %v8367_v9 = vadd.f32 %v8366_v29, %v8365_v51  ;;  %v8325_v50 = vpop.f32.mrb[105].mxu0 }
 0x5bf   :  { %v8326_v42 = vadd.f32 %v8325_v50, %v8324_v56 }
 0x5c0   :  { %v7027_v7 = vadd.f32 %v8367_v9, %v8323_v23  ;;  %v8368_v31 = vpop.f32.mrb[104].mxu1 }
 0x5c1   :  { %v8369_v45 = vpop.f32.mrb[105].mxu1  ;;  %v8327_v3 = vpop.f32.mrb[106].mxu0 }
 0x5c2   :  { %v7045_v2 = vadd.f32 %v7027_v7, %v6754_v47  ;;  %v8370_v20 = vadd.f32 %v8369_v45, %v8368_v31  ;;  %v8328_v34 = vpop.f32.mrb[107].mxu0 }
 0x5c3   :  { %v8329_v41 = vadd.f32 %v8328_v34, %v8327_v3 }
 0x5c4   :  { %vm7050_vm15 = vcmp.ge.f32.partialorder %v7045_v2, 0.0  ;;  %v7055_v16 = vmul.f32 %v7054_v55, %v7045_v2  ;;  %v7032_v24 = vadd.f32 %v8370_v20, %v8326_v42  ;;  %v8371_v11 = vpop.f32.mrb[106].mxu1 }
 0x5c5   :  { %v8372_v58 = vpop.f32.mrb[107].mxu1  ;;  %v8330_v43 = vpop.f32.mrb[108].mxu0 }
 0x5c6   :  { %v7059_v32 = vsel %vm7050_vm15, %v7045_v2, %v7055_v16  ;;  %v7046_v48 = vadd.f32 %v7032_v24, %v6755_v0  ;;  %v8373_v38 = vadd.f32 %v8372_v58, %v8371_v11  ;;  %v8331_v52 = vpop.f32.mrb[109].mxu0 }
 0x5c7   :  { %v7063_v4 = vadd.f32 %v7059_v32, %v15958_v30  ;;  %v8332_v44 = vadd.f32 %v8331_v52, %v8330_v43 }
 0x5c8   :  { %vm7051_vm0 = vcmp.ge.f32.partialorder %v7046_v48, 0.0  ;;  %v7056_v25 = vmul.f32 %v7054_v55, %v7046_v48  ;;  %v7037_v53 = vadd.f32 %v8373_v38, %v8329_v41  ;;  %v8374_v63 = vpop.f32.mrb[108].mxu1 }
 0x5c9   :  { %7067 = vst.msk [vmem:[#allocation6] sm:$0xff] %vm3646_vm12, %v7063_v4  ;;  %v8375_v18 = vpop.f32.mrb[109].mxu1 }
 0x5ca   :  { %v7060_v14 = vsel %vm7051_vm0, %v7046_v48, %v7056_v25  ;;  %v7047_v57 = vadd.f32 %v7037_v53, %v6756_v60  ;;  %v8376_v6 = vadd.f32 %v8375_v18, %v8374_v63 }
 0x5cb   :  { %v7064_v15 = vadd.f32 %v7060_v14, %v15959_v35 }
 0x5cc   :  { %vm7052_vm1 = vcmp.ge.f32.partialorder %v7047_v57, 0.0  ;;  %v7057_v40 = vmul.f32 %v7054_v55, %v7047_v57  ;;  %v7042_v5 = vadd.f32 %v8376_v6, %v8332_v44 }
 0x5cd   :  { %7068 = vst.msk [vmem:[#allocation6 + $0x8] sm:$0xff] %vm3646_vm12, %v7064_v15 }
 0x5ce   :  { %v7061_v13 = vsel %vm7052_vm1, %v7047_v57, %v7057_v40  ;;  %v7048_v1 = vadd.f32 %v7042_v5, %v6757_v12 }
 0x5cf   :  { %v7065_v47 = vadd.f32 %v7061_v13, %v15960_v61 }
 0x5d0   :  { %vm7053_vm2 = vcmp.ge.f32.partialorder %v7048_v1, 0.0  ;;  %v7058_v19 = vmul.f32 %v7054_v55, %v7048_v1 }
 0x5d1   :  { %7069 = vst.msk [vmem:[#allocation6 + $0x10] sm:$0xff] %vm3646_vm12, %v7065_v47 }
 0x5d2   :  { %v7062_v49 = vsel %vm7053_vm2, %v7048_v1, %v7058_v19 }
 0x5d3   :  { %v7066_v33 = vadd.f32 %v7062_v49, %v15961_v54 }
 0x5d5   :  { %7070 = vst.msk [vmem:[#allocation6 + $0x18] sm:$0xff] %vm3646_vm12, %v7066_v33 }
 0x5d6   :  { %9338 = shalt.err (!%p9335_p9)
}
 0x5d7   :  { %s9339_s25 = scalar_lea.hbm %s15299_s11, 512 }
 0x5d8   :  { %p9340_p10 = scmp.ne.s32.totalorder %s15299_s11, %s9339_s25  ;;  %p9343_p11 = scmp.lt.u32.totalorder %s9339_s25, %s15299_s11 }
 0x5da   :  { %p9345_p12 = pnand %p9343_p11, %p9340_p10 }
 0x5dc   :  { %9348 = shalt.err (!%p9345_p12)
}
 0x5dd   :  { %s9357_s5 = smov 128   ;;  %s9358_s29 = smov 8  }
 0x5de   :  { %7082 = dma.vmem_to_hbm [thread:$0]  %s7077_s0, 512, %s15299_s11, [#allocation4], %s9357_s5, %s9357_s5, %s9358_s29  }
 0x5df   :  { %9351 = dma.done.wait [#allocation4], 512  }
 0x5e0   :  { %9352 = vsyncadd [#allocation4], 4294966784 }
 0x5e1   :  { %7086 = vsyncpa [#allocation4], 1 }
 0x5e2   :  { %7087 = vsyncpa [#allocation5], 1 }

</bundles_post_ra>
